<compile_context>
chip_gen: v7x
topology: tpu7x:2x2x1
jax: 0.10.0
libtpu: 0.0.40
codegen_flags: <defaults>
</compile_context>

<pallas_src>
import functools

import jax
import jax.numpy as jnp
from jax import lax
from jax.experimental import pallas as pl
from jax.experimental.pallas import tpu as pltpu


def _round_up(x, m):
    return (x + m - 1) // m * m


def _direct_block_kernel(x_ref, w1_ref, b1_ref, w2_ref, b2_ref, w3_ref, b3_ref,
                         o_ref, pad_ref, *, Wp, base, row_strip):
    # x_ref block: (B, H, W, Cin); pad_ref: (pad_rows, Cmid) flat width-padded scratch.
    B, H, W, Cin = x_ref.shape
    Cmid = w1_ref.shape[1]
    Cout = w3_ref.shape[1]
    cdt = w1_ref.dtype                     # MXU-operand / scratch dtype
    pad_rows = pad_ref.shape[0]
    n_strips = H // row_strip
    rs = row_strip * Wp                    # padded flat rows per 3x3 strip

    b1v = b1_ref[...]
    b2v = b2_ref[...]
    b3v = b3_ref[...]
    w1v = w1_ref[...]
    w3v = w3_ref[...]

    # ---- zero only the scratch regions the data scatter never writes ---------------
    # (head rows, tail rows, and the Wp-W trailing pad columns of each row block).
    # Done once per grid step; all starts/sizes are sublane multiples -> aligned,
    # unmasked stores; no program_id guard needed (megacore-safe).
    pad_ref[0:base, :] = jnp.zeros((base, Cmid), cdt)
    tail0 = base + H * Wp
    pad_ref[tail0:pad_rows, :] = jnp.zeros((pad_rows - tail0, Cmid), cdt)
    zcols = jnp.zeros((Wp - W, Cmid), cdt)
    for y in range(H):
        pad_ref[base + y * Wp + W:base + (y + 1) * Wp, :] = zcols

    # Tap k = (dy, dx) of the 3x3 for padded output flat row r reads scratch row
    # r + offs[k]; every tap is one contiguous shifted slice (offs[0] >= 0 since
    # base >= Wp + 1).
    offs = [base + (k // 3 - 1) * Wp + (k % 3 - 1) for k in range(9)]

    for b in range(B):
        # ---- conv1: 1x1 (Cin -> Cmid) + folded BN + ReLU ---------------------------
        # Per image (M = H*W) rather than batched over B: keeps the MXU LHS and the
        # conv1 output comfortably inside the vreg/VMEM working set.
        x_b = x_ref[b].reshape(H * W, Cin).astype(cdt)
        h = jnp.dot(x_b, w1v, preferred_element_type=jnp.float32)
        h = jnp.maximum(h + b1v, 0.0).astype(cdt)

        # ---- scatter image rows into the width-padded flat scratch -----------------
        # Image row y occupies flat rows [base + y*Wp, base + y*Wp + W); the Wp-W
        # trailing zero columns provide row y's right pad and row y+1's left pad.
        for y in range(H):
            pad_ref[base + y * Wp:base + y * Wp + W, :] = h[y * W:(y + 1) * W, :]

        for s in range(n_strips):
            r0 = s * rs
            # ---- conv2: 3x3 (Cmid -> Cmid, pad=1) + folded BN + ReLU ---------------
            acc = jnp.dot(pad_ref[offs[0] + r0:offs[0] + r0 + rs, :], w2_ref[0],
                          preferred_element_type=jnp.float32)
            for k in range(1, 9):
                ok = offs[k] + r0
                acc = acc + jnp.dot(pad_ref[ok:ok + rs, :], w2_ref[k],
                                    preferred_element_type=jnp.float32)
            # Bias + ReLU + downcast on the padded strip, then drop the Wp-W pad
            # columns once (tile-aligned: W and Wp are sublane multiples).
            acc = jnp.maximum(acc + b2v, 0.0).astype(cdt)
            h2 = acc.reshape(row_strip, Wp, Cmid)[:, :W, :].reshape(row_strip * W, Cmid)

            # ---- conv3: 1x1 (Cmid -> Cout) + folded BN + residual + ReLU -----------
            out = jnp.dot(h2, w3v, preferred_element_type=jnp.float32) + b3v
            y0 = s * row_strip
            x_res = x_ref[b, y0:y0 + row_strip, :, :].reshape(row_strip * W, Cin)
            out = jnp.maximum(out + x_res.astype(jnp.float32), 0.0)
            o_ref[b, y0:y0 + row_strip, :, :] = out.reshape(
                row_strip, W, Cout).astype(o_ref.dtype)


def fold_bn(w, b, gamma, beta, mean, var, eps=1e-5):
    """Fold inference BatchNorm into conv weight/bias. w: (..., Cin, Cout), b: (Cout,)."""
    scale = gamma / jnp.sqrt(var + eps)
    return w * scale, (b - mean) * scale + beta


def _default_batch_tile(N, H, W, Cin, Cout, itemsize):
    # Largest divisor of N keeping double-buffered in+out activation blocks under
    # ~8 MiB, preferring a grid extent >= 2 so both v7x TensorCores get work.
    budget = 8 << 20
    per_img = 2 * H * W * (Cin + Cout) * itemsize
    cap = max(1, budget // per_img)
    divs = [d for d in range(1, N + 1) if N % d == 0 and d <= cap]
    two_core = [d for d in divs if N // d >= 2]
    return max(two_core) if two_core else max(divs)


def direct_block_nhwc(x, params, *, matmul_dtype=jnp.float32, eps=1e-5,
                      batch_tile=None, row_strip=8):
    """Fused DirectBlock on NHWC input (recommended: no layout transposes).

    matmul_dtype: MXU-operand / scratch dtype.  Keep f32 on v5e (no bf16 VPU);
    bf16 halves scratch bytes and is the native MXU dtype on v6e/v7x.
    """
    N, H, W, Cin = x.shape
    c1, c2, c3 = params
    w1, b1 = fold_bn(*c1, eps=eps)
    w2, b2 = fold_bn(*c2, eps=eps)
    w3, b3 = fold_bn(*c3, eps=eps)
    Cmid = w1.shape[-1]
    Cout = w3.shape[-1]
    assert Cout == Cin, "residual add requires 4*out_channels == in_channels"

    itemsize = jnp.dtype(matmul_dtype).itemsize
    w1 = w1.astype(matmul_dtype)
    w2 = w2.astype(matmul_dtype)
    w3 = w3.astype(matmul_dtype)
    b1 = b1.reshape(1, -1).astype(jnp.float32)
    b2 = b2.reshape(1, -1).astype(jnp.float32)
    b3 = b3.reshape(1, -1).astype(jnp.float32)

    # Sublane-aligned padded-scratch geometry (8-row quantum for f32, 16 for bf16):
    #   image row y lives at flat rows [base + y*Wp, base + y*Wp + W);
    #   tap (dy, dx) reads a contiguous slice shifted by base + (dy-1)*Wp + (dx-1),
    #   whose minimum is base - Wp - 1 >= 0 and whose maximum read index is
    #   base + (H+1)*Wp, which (plus 1, rounded up) sets pad_rows -- no magic slack.
    sub = {4: 8, 2: 16, 1: 32}[itemsize]
    Wp = _round_up(W + 2, sub)
    base = _round_up(Wp + 1, sub)
    pad_rows = _round_up(base + (H + 1) * Wp + 1, sub)

    if batch_tile is None:
        batch_tile = _default_batch_tile(N, H, W, Cin, Cout, x.dtype.itemsize)
    assert N % batch_tile == 0, "batch must be divisible by batch_tile"

    row_strip = max(1, min(row_strip, H))
    while H % row_strip:
        row_strip -= 1

    kernel = functools.partial(_direct_block_kernel, Wp=Wp, base=base,
                               row_strip=row_strip)

    def full(a):
        return pl.BlockSpec(a.shape, lambda i, nd=a.ndim: (0,) * nd)

    grid = (N // batch_tile,)
    grid_spec = pltpu.PrefetchScalarGridSpec(
        num_scalar_prefetch=0,
        grid=grid,
        in_specs=[
            pl.BlockSpec((batch_tile, H, W, Cin), lambda i: (i, 0, 0, 0)),
            full(w1), full(b1), full(w2), full(b2), full(w3), full(b3),
        ],
        out_specs=pl.BlockSpec((batch_tile, H, W, Cout), lambda i: (i, 0, 0, 0)),
        scratch_shapes=[pltpu.VMEM((pad_rows, Cmid), matmul_dtype)],
    )

    flops = 2 * N * H * W * Cmid * (Cin + 9 * Cmid + Cout)
    bytes_accessed = ((x.size + N * H * W * Cout) * x.dtype.itemsize
                      + (w1.size + w2.size + w3.size) * itemsize
                      + (b1.size + b2.size + b3.size) * 4)

    return pl.pallas_call(
        kernel,
        out_shape=jax.ShapeDtypeStruct((N, H, W, Cout), x.dtype),
        grid_spec=grid_spec,
        compiler_params=pltpu.CompilerParams(
            dimension_semantics=("parallel",)),
        cost_estimate=pl.CostEstimate(flops=int(flops), transcendentals=0,
                                      bytes_accessed=int(bytes_accessed)),
    )(x, w1, b1, w2, b2, w3, b3)


def direct_block(x_nchw, params, **kwargs):
    """PyTorch-layout (NCHW) wrapper.  NOTE: the two transposes are full HBM
    read+write passes around a memory-bound block; prefer direct_block_nhwc and
    keep the surrounding model NHWC end-to-end."""
    x = jnp.transpose(x_nchw, (0, 2, 3, 1))
    y = direct_block_nhwc(x, params, **kwargs)
    return jnp.transpose(y, (0, 3, 1, 2))


def make_params(key, in_channels, out_channels):
    """Deterministic synthetic raw params: ((w, b, gamma, beta, mean, var), ...) x 3."""
    expansion = 4
    c0, c1, c2 = in_channels, out_channels, expansion * out_channels

    def conv_bn(k, taps, cin, cout):
        ks = jax.random.split(k, 6)
        wshape = (taps, cin, cout) if taps > 1 else (cin, cout)
        w = 0.1 * jax.random.normal(ks[0], wshape, jnp.float32)
        b = 0.1 * jax.random.normal(ks[1], (cout,), jnp.float32)
        gamma = 1.0 + 0.1 * jax.random.normal(ks[2], (cout,), jnp.float32)
        beta = 0.1 * jax.random.normal(ks[3], (cout,), jnp.float32)
        mean = 0.1 * jax.random.normal(ks[4], (cout,), jnp.float32)
        var = jax.random.uniform(ks[5], (cout,), jnp.float32, 0.5, 1.5)
        return (w, b, gamma, beta, mean, var)

    k1, k2, k3 = jax.random.split(key, 3)
    return (conv_bn(k1, 1, c0, c1), conv_bn(k2, 9, c1, c1), conv_bn(k3, 1, c1, c2))


def direct_block_reference(x_nchw, params, eps=1e-5):
    """Pure-JAX reference (lax.conv + explicit BN) for correctness checking."""
    c1, c2, c3 = params
    x = jnp.transpose(x_nchw, (0, 2, 3, 1))
    dn = ('NHWC', 'HWIO', 'NHWC')

    def conv_bn(h, c, pad, ksize):
        w, b, gamma, beta, mean, var = c
        w_hwio = w.reshape(ksize, ksize, w.shape[-2], w.shape[-1])
        h = lax.conv_general_dilated(h, w_hwio, (1, 1), pad, dimension_numbers=dn,
                                     precision=lax.Precision.HIGHEST)
        h = h + b.reshape(1, 1, 1, -1)
        h = (h - mean) / jnp.sqrt(var + eps) * gamma + beta
        return h

    h = jnp.maximum(conv_bn(x, c1, 'VALID', 1), 0.0)
    h = jnp.maximum(conv_bn(h, c2, 'SAME', 3), 0.0)
    h = conv_bn(h, c3, 'VALID', 1)
    h = jnp.maximum(h + x, 0.0)
    return jnp.transpose(h, (0, 3, 1, 2))


if __name__ == "__main__":
    # Residual add forces Cin == 4*out_channels.  Channels chosen so the output lane
    # dim (Cin = Cout = 128) is lane-dense; N=4 so the default batch_tile=2 gives an
    # even grid extent of 2 (both v7x TensorCores busy) while staying small.
    N, out_channels = 4, 32
    in_channels = 4 * out_channels
    H = W = 16

    key = jax.random.PRNGKey(0)
    kx, kp = jax.random.split(key)
    x_nchw = jax.random.normal(kx, (N, in_channels, H, W), jnp.float32)
    params = make_params(kp, in_channels, out_channels)

    # Strict check of the f32 path through the PyTorch-layout wrapper.
    y = jax.block_until_ready(direct_block(x_nchw, params))
    y_ref = direct_block_reference(x_nchw, params)
    assert y.shape == (N, in_channels, H, W)
    max_err = float(jnp.max(jnp.abs(y - y_ref)))
    assert jnp.allclose(y, y_ref, atol=1e-3, rtol=1e-3), max_err

    # Loose sanity check of the transpose-free NHWC fast path with bf16 MXU operands
    # (the v6e/v7x option); bf16 rounding makes a tight tolerance inappropriate.
    x_nhwc = jnp.transpose(x_nchw, (0, 2, 3, 1))
    y_bf16 = jax.block_until_ready(
        direct_block_nhwc(x_nhwc, params, matmul_dtype=jnp.bfloat16))
    y_ref_nhwc = jnp.transpose(y_ref, (0, 2, 3, 1))
    max_err_bf16 = float(jnp.max(jnp.abs(y_bf16 - y_ref_nhwc)))
    assert max_err_bf16 < 0.5, max_err_bf16

    print("KERNEL_OK")
</pallas_src>

<mosaic_0001>
module attributes {stable_mosaic.version = 11 : i64} {
  func.func @_direct_block_kernel(%arg0: i32, %arg1: memref<2x16x16x128xf32, #tpu.memory_space<vmem>>, %arg2: memref<128x32xf32, #tpu.memory_space<vmem>>, %arg3: memref<1x32xf32, #tpu.memory_space<vmem>>, %arg4: memref<9x32x32xf32, #tpu.memory_space<vmem>>, %arg5: memref<1x32xf32, #tpu.memory_space<vmem>>, %arg6: memref<32x128xf32, #tpu.memory_space<vmem>>, %arg7: memref<1x128xf32, #tpu.memory_space<vmem>>, %arg8: memref<2x16x16x128xf32, #tpu.memory_space<vmem>>, %arg9: memref<448x32xf32, #tpu.memory_space<vmem>>) attributes {dimension_semantics = [#tpu.dimension_semantics<parallel>], iteration_bounds = array<i64: 2>, scalar_prefetch = 0 : i64, scratch_operands = 1 : i64, tpu.core_type = #tpu.core_type<tc>, window_params = [{transform_indices = @transform_0, window_bounds = array<i64: 2, 16, 16, 128>}, {pipeline_mode = #tpu.pipeline_mode<synchronous>, transform_indices = @transform_1, window_bounds = array<i64: 128, 32>}, {pipeline_mode = #tpu.pipeline_mode<synchronous>, transform_indices = @transform_2, window_bounds = array<i64: 1, 32>}, {pipeline_mode = #tpu.pipeline_mode<synchronous>, transform_indices = @transform_3, window_bounds = array<i64: 9, 32, 32>}, {pipeline_mode = #tpu.pipeline_mode<synchronous>, transform_indices = @transform_4, window_bounds = array<i64: 1, 32>}, {pipeline_mode = #tpu.pipeline_mode<synchronous>, transform_indices = @transform_5, window_bounds = array<i64: 32, 128>}, {pipeline_mode = #tpu.pipeline_mode<synchronous>, transform_indices = @transform_6, window_bounds = array<i64: 1, 128>}, {transform_indices = @transform_7, window_bounds = array<i64: 2, 16, 16, 128>}]} {
    %c0 = arith.constant 0 : index
    %c0_0 = arith.constant 0 : index
    %0 = vector.load %arg3[%c0, %c0_0] : memref<1x32xf32, #tpu.memory_space<vmem>>, vector<1x32xf32>
    %c0_1 = arith.constant 0 : index
    %c0_2 = arith.constant 0 : index
    %1 = vector.load %arg5[%c0_1, %c0_2] : memref<1x32xf32, #tpu.memory_space<vmem>>, vector<1x32xf32>
    %c0_3 = arith.constant 0 : index
    %c0_4 = arith.constant 0 : index
    %2 = vector.load %arg7[%c0_3, %c0_4] : memref<1x128xf32, #tpu.memory_space<vmem>>, vector<1x128xf32>
    %c0_5 = arith.constant 0 : index
    %c0_6 = arith.constant 0 : index
    %3 = vector.load %arg2[%c0_5, %c0_6] : memref<128x32xf32, #tpu.memory_space<vmem>>, vector<128x32xf32>
    %c0_7 = arith.constant 0 : index
    %c0_8 = arith.constant 0 : index
    %4 = vector.load %arg6[%c0_7, %c0_8] : memref<32x128xf32, #tpu.memory_space<vmem>>, vector<32x128xf32>
    %cst = arith.constant 0.000000e+00 : f32
    %5 = vector.broadcast %cst : f32 to vector<32x32xf32>
    %c0_9 = arith.constant 0 : index
    %c0_10 = arith.constant 0 : index
    %6 = vector.load %arg9[%c0_9, %c0_10] : memref<448x32xf32, #tpu.memory_space<vmem>>, vector<32x32xf32>
    tpu.vector_store %arg9[%c0_9, %c0_10], %5 {strides = array<i32>} : memref<448x32xf32, #tpu.memory_space<vmem>>, vector<32x32xf32>,
    %cst_11 = arith.constant 0.000000e+00 : f32
    %7 = vector.broadcast %cst_11 : f32 to vector<32x32xf32>
    %c416 = arith.constant 416 : index
    %c0_12 = arith.constant 0 : index
    %8 = vector.load %arg9[%c416, %c0_12] : memref<448x32xf32, #tpu.memory_space<vmem>>, vector<32x32xf32>
    tpu.vector_store %arg9[%c416, %c0_12], %7 {strides = array<i32>} : memref<448x32xf32, #tpu.memory_space<vmem>>, vector<32x32xf32>,
    %cst_13 = arith.constant 0.000000e+00 : f32
    %9 = vector.broadcast %cst_13 : f32 to vector<8x32xf32>
    %c48 = arith.constant 48 : index
    %c0_14 = arith.constant 0 : index
    %10 = vector.load %arg9[%c48, %c0_14] : memref<448x32xf32, #tpu.memory_space<vmem>>, vector<8x32xf32>
    tpu.vector_store %arg9[%c48, %c0_14], %9 {strides = array<i32>} : memref<448x32xf32, #tpu.memory_space<vmem>>, vector<8x32xf32>,
    %c72 = arith.constant 72 : index
    %c0_15 = arith.constant 0 : index
    %11 = vector.load %arg9[%c72, %c0_15] : memref<448x32xf32, #tpu.memory_space<vmem>>, vector<8x32xf32>
    tpu.vector_store %arg9[%c72, %c0_15], %9 {strides = array<i32>} : memref<448x32xf32, #tpu.memory_space<vmem>>, vector<8x32xf32>,
    %c96 = arith.constant 96 : index
    %c0_16 = arith.constant 0 : index
    %12 = vector.load %arg9[%c96, %c0_16] : memref<448x32xf32, #tpu.memory_space<vmem>>, vector<8x32xf32>
    tpu.vector_store %arg9[%c96, %c0_16], %9 {strides = array<i32>} : memref<448x32xf32, #tpu.memory_space<vmem>>, vector<8x32xf32>,
    %c120 = arith.constant 120 : index
    %c0_17 = arith.constant 0 : index
    %13 = vector.load %arg9[%c120, %c0_17] : memref<448x32xf32, #tpu.memory_space<vmem>>, vector<8x32xf32>
    tpu.vector_store %arg9[%c120, %c0_17], %9 {strides = array<i32>} : memref<448x32xf32, #tpu.memory_space<vmem>>, vector<8x32xf32>,
    %c144 = arith.constant 144 : index
    %c0_18 = arith.constant 0 : index
    %14 = vector.load %arg9[%c144, %c0_18] : memref<448x32xf32, #tpu.memory_space<vmem>>, vector<8x32xf32>
    tpu.vector_store %arg9[%c144, %c0_18], %9 {strides = array<i32>} : memref<448x32xf32, #tpu.memory_space<vmem>>, vector<8x32xf32>,
    %c168 = arith.constant 168 : index
    %c0_19 = arith.constant 0 : index
    %15 = vector.load %arg9[%c168, %c0_19] : memref<448x32xf32, #tpu.memory_space<vmem>>, vector<8x32xf32>
    tpu.vector_store %arg9[%c168, %c0_19], %9 {strides = array<i32>} : memref<448x32xf32, #tpu.memory_space<vmem>>, vector<8x32xf32>,
    %c192 = arith.constant 192 : index
    %c0_20 = arith.constant 0 : index
    %16 = vector.load %arg9[%c192, %c0_20] : memref<448x32xf32, #tpu.memory_space<vmem>>, vector<8x32xf32>
    tpu.vector_store %arg9[%c192, %c0_20], %9 {strides = array<i32>} : memref<448x32xf32, #tpu.memory_space<vmem>>, vector<8x32xf32>,
    %c216 = arith.constant 216 : index
    %c0_21 = arith.constant 0 : index
    %17 = vector.load %arg9[%c216, %c0_21] : memref<448x32xf32, #tpu.memory_space<vmem>>, vector<8x32xf32>
    tpu.vector_store %arg9[%c216, %c0_21], %9 {strides = array<i32>} : memref<448x32xf32, #tpu.memory_space<vmem>>, vector<8x32xf32>,
    %c240 = arith.constant 240 : index
    %c0_22 = arith.constant 0 : index
    %18 = vector.load %arg9[%c240, %c0_22] : memref<448x32xf32, #tpu.memory_space<vmem>>, vector<8x32xf32>
    tpu.vector_store %arg9[%c240, %c0_22], %9 {strides = array<i32>} : memref<448x32xf32, #tpu.memory_space<vmem>>, vector<8x32xf32>,
    %c264 = arith.constant 264 : index
    %c0_23 = arith.constant 0 : index
    %19 = vector.load %arg9[%c264, %c0_23] : memref<448x32xf32, #tpu.memory_space<vmem>>, vector<8x32xf32>
    tpu.vector_store %arg9[%c264, %c0_23], %9 {strides = array<i32>} : memref<448x32xf32, #tpu.memory_space<vmem>>, vector<8x32xf32>,
    %c288 = arith.constant 288 : index
    %c0_24 = arith.constant 0 : index
    %20 = vector.load %arg9[%c288, %c0_24] : memref<448x32xf32, #tpu.memory_space<vmem>>, vector<8x32xf32>
    tpu.vector_store %arg9[%c288, %c0_24], %9 {strides = array<i32>} : memref<448x32xf32, #tpu.memory_space<vmem>>, vector<8x32xf32>,
    %c312 = arith.constant 312 : index
    %c0_25 = arith.constant 0 : index
    %21 = vector.load %arg9[%c312, %c0_25] : memref<448x32xf32, #tpu.memory_space<vmem>>, vector<8x32xf32>
    tpu.vector_store %arg9[%c312, %c0_25], %9 {strides = array<i32>} : memref<448x32xf32, #tpu.memory_space<vmem>>, vector<8x32xf32>,
    %c336 = arith.constant 336 : index
    %c0_26 = arith.constant 0 : index
    %22 = vector.load %arg9[%c336, %c0_26] : memref<448x32xf32, #tpu.memory_space<vmem>>, vector<8x32xf32>
    tpu.vector_store %arg9[%c336, %c0_26], %9 {strides = array<i32>} : memref<448x32xf32, #tpu.memory_space<vmem>>, vector<8x32xf32>,
    %c360 = arith.constant 360 : index
    %c0_27 = arith.constant 0 : index
    %23 = vector.load %arg9[%c360, %c0_27] : memref<448x32xf32, #tpu.memory_space<vmem>>, vector<8x32xf32>
    tpu.vector_store %arg9[%c360, %c0_27], %9 {strides = array<i32>} : memref<448x32xf32, #tpu.memory_space<vmem>>, vector<8x32xf32>,
    %c384 = arith.constant 384 : index
    %c0_28 = arith.constant 0 : index
    %24 = vector.load %arg9[%c384, %c0_28] : memref<448x32xf32, #tpu.memory_space<vmem>>, vector<8x32xf32>
    tpu.vector_store %arg9[%c384, %c0_28], %9 {strides = array<i32>} : memref<448x32xf32, #tpu.memory_space<vmem>>, vector<8x32xf32>,
    %c408 = arith.constant 408 : index
    %c0_29 = arith.constant 0 : index
    %25 = vector.load %arg9[%c408, %c0_29] : memref<448x32xf32, #tpu.memory_space<vmem>>, vector<8x32xf32>
    tpu.vector_store %arg9[%c408, %c0_29], %9 {strides = array<i32>} : memref<448x32xf32, #tpu.memory_space<vmem>>, vector<8x32xf32>,
    %c0_30 = arith.constant 0 : index
    %c0_31 = arith.constant 0 : index
    %c0_32 = arith.constant 0 : index
    %c0_33 = arith.constant 0 : index
    %26 = vector.load %arg1[%c0_30, %c0_31, %c0_32, %c0_33] : memref<2x16x16x128xf32, #tpu.memory_space<vmem>>, vector<1x16x16x128xf32>
    %27 = vector.shape_cast %26 : vector<1x16x16x128xf32> to vector<16x16x128xf32>
    %28 = vector.shape_cast %27 : vector<16x16x128xf32> to vector<256x128xf32>
    %cst_34 = arith.constant dense<0.000000e+00> : vector<256x32xf32>
    %29 = tpu.matmul %28, %3, %cst_34 {dimension_numbers = #tpu.dot_dimension_numbers<[1], [0], [0], [1], [0, 0, 1, 1], [], []>} : vector<256x128xf32>, vector<128x32xf32>, vector<256x32xf32> -> vector<256x32xf32>
    %30 = vector.broadcast %0 : vector<1x32xf32> to vector<256x32xf32>
    %31 = arith.addf %29, %30 : vector<256x32xf32>
    %cst_35 = arith.constant 0.000000e+00 : f32
    %32 = vector.broadcast %cst_35 : f32 to vector<256x32xf32>
    %33 = arith.maximumf %31, %32 : vector<256x32xf32>
    %34 = vector.extract_strided_slice %33 {offsets = [0, 0], sizes = [16, 32], strides = [1, 1]} : vector<256x32xf32> to vector<16x32xf32>
    %c32 = arith.constant 32 : index
    %c0_36 = arith.constant 0 : index
    %35 = vector.load %arg9[%c32, %c0_36] : memref<448x32xf32, #tpu.memory_space<vmem>>, vector<16x32xf32>
    tpu.vector_store %arg9[%c32, %c0_36], %34 {strides = array<i32>} : memref<448x32xf32, #tpu.memory_space<vmem>>, vector<16x32xf32>,
    %36 = vector.extract_strided_slice %33 {offsets = [16, 0], sizes = [16, 32], strides = [1, 1]} : vector<256x32xf32> to vector<16x32xf32>
    %c56 = arith.constant 56 : index
    %c0_37 = arith.constant 0 : index
    %37 = vector.load %arg9[%c56, %c0_37] : memref<448x32xf32, #tpu.memory_space<vmem>>, vector<16x32xf32>
    tpu.vector_store %arg9[%c56, %c0_37], %36 {strides = array<i32>} : memref<448x32xf32, #tpu.memory_space<vmem>>, vector<16x32xf32>,
    %38 = vector.extract_strided_slice %33 {offsets = [32, 0], sizes = [16, 32], strides = [1, 1]} : vector<256x32xf32> to vector<16x32xf32>
    %c80 = arith.constant 80 : index
    %c0_38 = arith.constant 0 : index
    %39 = vector.load %arg9[%c80, %c0_38] : memref<448x32xf32, #tpu.memory_space<vmem>>, vector<16x32xf32>
    tpu.vector_store %arg9[%c80, %c0_38], %38 {strides = array<i32>} : memref<448x32xf32, #tpu.memory_space<vmem>>, vector<16x32xf32>,
    %40 = vector.extract_strided_slice %33 {offsets = [48, 0], sizes = [16, 32], strides = [1, 1]} : vector<256x32xf32> to vector<16x32xf32>
    %c104 = arith.constant 104 : index
    %c0_39 = arith.constant 0 : index
    %41 = vector.load %arg9[%c104, %c0_39] : memref<448x32xf32, #tpu.memory_space<vmem>>, vector<16x32xf32>
    tpu.vector_store %arg9[%c104, %c0_39], %40 {strides = array<i32>} : memref<448x32xf32, #tpu.memory_space<vmem>>, vector<16x32xf32>,
    %42 = vector.extract_strided_slice %33 {offsets = [64, 0], sizes = [16, 32], strides = [1, 1]} : vector<256x32xf32> to vector<16x32xf32>
    %c128 = arith.constant 128 : index
    %c0_40 = arith.constant 0 : index
    %43 = vector.load %arg9[%c128, %c0_40] : memref<448x32xf32, #tpu.memory_space<vmem>>, vector<16x32xf32>
    tpu.vector_store %arg9[%c128, %c0_40], %42 {strides = array<i32>} : memref<448x32xf32, #tpu.memory_space<vmem>>, vector<16x32xf32>,
    %44 = vector.extract_strided_slice %33 {offsets = [80, 0], sizes = [16, 32], strides = [1, 1]} : vector<256x32xf32> to vector<16x32xf32>
    %c152 = arith.constant 152 : index
    %c0_41 = arith.constant 0 : index
    %45 = vector.load %arg9[%c152, %c0_41] : memref<448x32xf32, #tpu.memory_space<vmem>>, vector<16x32xf32>
    tpu.vector_store %arg9[%c152, %c0_41], %44 {strides = array<i32>} : memref<448x32xf32, #tpu.memory_space<vmem>>, vector<16x32xf32>,
    %46 = vector.extract_strided_slice %33 {offsets = [96, 0], sizes = [16, 32], strides = [1, 1]} : vector<256x32xf32> to vector<16x32xf32>
    %c176 = arith.constant 176 : index
    %c0_42 = arith.constant 0 : index
    %47 = vector.load %arg9[%c176, %c0_42] : memref<448x32xf32, #tpu.memory_space<vmem>>, vector<16x32xf32>
    tpu.vector_store %arg9[%c176, %c0_42], %46 {strides = array<i32>} : memref<448x32xf32, #tpu.memory_space<vmem>>, vector<16x32xf32>,
    %48 = vector.extract_strided_slice %33 {offsets = [112, 0], sizes = [16, 32], strides = [1, 1]} : vector<256x32xf32> to vector<16x32xf32>
    %c200 = arith.constant 200 : index
    %c0_43 = arith.constant 0 : index
    %49 = vector.load %arg9[%c200, %c0_43] : memref<448x32xf32, #tpu.memory_space<vmem>>, vector<16x32xf32>
    tpu.vector_store %arg9[%c200, %c0_43], %48 {strides = array<i32>} : memref<448x32xf32, #tpu.memory_space<vmem>>, vector<16x32xf32>,
    %50 = vector.extract_strided_slice %33 {offsets = [128, 0], sizes = [16, 32], strides = [1, 1]} : vector<256x32xf32> to vector<16x32xf32>
    %c224 = arith.constant 224 : index
    %c0_44 = arith.constant 0 : index
    %51 = vector.load %arg9[%c224, %c0_44] : memref<448x32xf32, #tpu.memory_space<vmem>>, vector<16x32xf32>
    tpu.vector_store %arg9[%c224, %c0_44], %50 {strides = array<i32>} : memref<448x32xf32, #tpu.memory_space<vmem>>, vector<16x32xf32>,
    %52 = vector.extract_strided_slice %33 {offsets = [144, 0], sizes = [16, 32], strides = [1, 1]} : vector<256x32xf32> to vector<16x32xf32>
    %c248 = arith.constant 248 : index
    %c0_45 = arith.constant 0 : index
    %53 = vector.load %arg9[%c248, %c0_45] : memref<448x32xf32, #tpu.memory_space<vmem>>, vector<16x32xf32>
    tpu.vector_store %arg9[%c248, %c0_45], %52 {strides = array<i32>} : memref<448x32xf32, #tpu.memory_space<vmem>>, vector<16x32xf32>,
    %54 = vector.extract_strided_slice %33 {offsets = [160, 0], sizes = [16, 32], strides = [1, 1]} : vector<256x32xf32> to vector<16x32xf32>
    %c272 = arith.constant 272 : index
    %c0_46 = arith.constant 0 : index
    %55 = vector.load %arg9[%c272, %c0_46] : memref<448x32xf32, #tpu.memory_space<vmem>>, vector<16x32xf32>
    tpu.vector_store %arg9[%c272, %c0_46], %54 {strides = array<i32>} : memref<448x32xf32, #tpu.memory_space<vmem>>, vector<16x32xf32>,
    %56 = vector.extract_strided_slice %33 {offsets = [176, 0], sizes = [16, 32], strides = [1, 1]} : vector<256x32xf32> to vector<16x32xf32>
    %c296 = arith.constant 296 : index
    %c0_47 = arith.constant 0 : index
    %57 = vector.load %arg9[%c296, %c0_47] : memref<448x32xf32, #tpu.memory_space<vmem>>, vector<16x32xf32>
    tpu.vector_store %arg9[%c296, %c0_47], %56 {strides = array<i32>} : memref<448x32xf32, #tpu.memory_space<vmem>>, vector<16x32xf32>,
    %58 = vector.extract_strided_slice %33 {offsets = [192, 0], sizes = [16, 32], strides = [1, 1]} : vector<256x32xf32> to vector<16x32xf32>
    %c320 = arith.constant 320 : index
    %c0_48 = arith.constant 0 : index
    %59 = vector.load %arg9[%c320, %c0_48] : memref<448x32xf32, #tpu.memory_space<vmem>>, vector<16x32xf32>
    tpu.vector_store %arg9[%c320, %c0_48], %58 {strides = array<i32>} : memref<448x32xf32, #tpu.memory_space<vmem>>, vector<16x32xf32>,
    %60 = vector.extract_strided_slice %33 {offsets = [208, 0], sizes = [16, 32], strides = [1, 1]} : vector<256x32xf32> to vector<16x32xf32>
    %c344 = arith.constant 344 : index
    %c0_49 = arith.constant 0 : index
    %61 = vector.load %arg9[%c344, %c0_49] : memref<448x32xf32, #tpu.memory_space<vmem>>, vector<16x32xf32>
    tpu.vector_store %arg9[%c344, %c0_49], %60 {strides = array<i32>} : memref<448x32xf32, #tpu.memory_space<vmem>>, vector<16x32xf32>,
    %62 = vector.extract_strided_slice %33 {offsets = [224, 0], sizes = [16, 32], strides = [1, 1]} : vector<256x32xf32> to vector<16x32xf32>
    %c368 = arith.constant 368 : index
    %c0_50 = arith.constant 0 : index
    %63 = vector.load %arg9[%c368, %c0_50] : memref<448x32xf32, #tpu.memory_space<vmem>>, vector<16x32xf32>
    tpu.vector_store %arg9[%c368, %c0_50], %62 {strides = array<i32>} : memref<448x32xf32, #tpu.memory_space<vmem>>, vector<16x32xf32>,
    %64 = vector.extract_strided_slice %33 {offsets = [240, 0], sizes = [16, 32], strides = [1, 1]} : vector<256x32xf32> to vector<16x32xf32>
    %c392 = arith.constant 392 : index
    %c0_51 = arith.constant 0 : index
    %65 = vector.load %arg9[%c392, %c0_51] : memref<448x32xf32, #tpu.memory_space<vmem>>, vector<16x32xf32>
    tpu.vector_store %arg9[%c392, %c0_51], %64 {strides = array<i32>} : memref<448x32xf32, #tpu.memory_space<vmem>>, vector<16x32xf32>,
    %c7 = arith.constant 7 : index
    %c0_52 = arith.constant 0 : index
    %66 = vector.load %arg9[%c7, %c0_52] : memref<448x32xf32, #tpu.memory_space<vmem>>, vector<192x32xf32>
    %c0_53 = arith.constant 0 : index
    %c0_54 = arith.constant 0 : index
    %c0_55 = arith.constant 0 : index
    %67 = vector.load %arg4[%c0_53, %c0_54, %c0_55] : memref<9x32x32xf32, #tpu.memory_space<vmem>>, vector<1x32x32xf32>
    %68 = vector.shape_cast %67 : vector<1x32x32xf32> to vector<32x32xf32>
    %cst_56 = arith.constant dense<0.000000e+00> : vector<192x32xf32>
    %69 = tpu.matmul %66, %68, %cst_56 {dimension_numbers = #tpu.dot_dimension_numbers<[1], [0], [0], [1], [0, 0, 1, 1], [], []>} : vector<192x32xf32>, vector<32x32xf32>, vector<192x32xf32> -> vector<192x32xf32>
    %c8 = arith.constant 8 : index
    %c0_57 = arith.constant 0 : index
    %70 = vector.load %arg9[%c8, %c0_57] : memref<448x32xf32, #tpu.memory_space<vmem>>, vector<192x32xf32>
    %c1 = arith.constant 1 : index
    %c0_58 = arith.constant 0 : index
    %c0_59 = arith.constant 0 : index
    %71 = vector.load %arg4[%c1, %c0_58, %c0_59] : memref<9x32x32xf32, #tpu.memory_space<vmem>>, vector<1x32x32xf32>
    %72 = vector.shape_cast %71 : vector<1x32x32xf32> to vector<32x32xf32>
    %cst_60 = arith.constant dense<0.000000e+00> : vector<192x32xf32>
    %73 = tpu.matmul %70, %72, %cst_60 {dimension_numbers = #tpu.dot_dimension_numbers<[1], [0], [0], [1], [0, 0, 1, 1], [], []>} : vector<192x32xf32>, vector<32x32xf32>, vector<192x32xf32> -> vector<192x32xf32>
    %74 = arith.addf %69, %73 : vector<192x32xf32>
    %c9 = arith.constant 9 : index
    %c0_61 = arith.constant 0 : index
    %75 = vector.load %arg9[%c9, %c0_61] : memref<448x32xf32, #tpu.memory_space<vmem>>, vector<192x32xf32>
    %c2 = arith.constant 2 : index
    %c0_62 = arith.constant 0 : index
    %c0_63 = arith.constant 0 : index
    %76 = vector.load %arg4[%c2, %c0_62, %c0_63] : memref<9x32x32xf32, #tpu.memory_space<vmem>>, vector<1x32x32xf32>
    %77 = vector.shape_cast %76 : vector<1x32x32xf32> to vector<32x32xf32>
    %cst_64 = arith.constant dense<0.000000e+00> : vector<192x32xf32>
    %78 = tpu.matmul %75, %77, %cst_64 {dimension_numbers = #tpu.dot_dimension_numbers<[1], [0], [0], [1], [0, 0, 1, 1], [], []>} : vector<192x32xf32>, vector<32x32xf32>, vector<192x32xf32> -> vector<192x32xf32>
    %79 = arith.addf %74, %78 : vector<192x32xf32>
    %c31 = arith.constant 31 : index
    %c0_65 = arith.constant 0 : index
    %80 = vector.load %arg9[%c31, %c0_65] : memref<448x32xf32, #tpu.memory_space<vmem>>, vector<192x32xf32>
    %c3 = arith.constant 3 : index
    %c0_66 = arith.constant 0 : index
    %c0_67 = arith.constant 0 : index
    %81 = vector.load %arg4[%c3, %c0_66, %c0_67] : memref<9x32x32xf32, #tpu.memory_space<vmem>>, vector<1x32x32xf32>
    %82 = vector.shape_cast %81 : vector<1x32x32xf32> to vector<32x32xf32>
    %cst_68 = arith.constant dense<0.000000e+00> : vector<192x32xf32>
    %83 = tpu.matmul %80, %82, %cst_68 {dimension_numbers = #tpu.dot_dimension_numbers<[1], [0], [0], [1], [0, 0, 1, 1], [], []>} : vector<192x32xf32>, vector<32x32xf32>, vector<192x32xf32> -> vector<192x32xf32>
    %84 = arith.addf %79, %83 : vector<192x32xf32>
    %c32_69 = arith.constant 32 : index
    %c0_70 = arith.constant 0 : index
    %85 = vector.load %arg9[%c32_69, %c0_70] : memref<448x32xf32, #tpu.memory_space<vmem>>, vector<192x32xf32>
    %c4 = arith.constant 4 : index
    %c0_71 = arith.constant 0 : index
    %c0_72 = arith.constant 0 : index
    %86 = vector.load %arg4[%c4, %c0_71, %c0_72] : memref<9x32x32xf32, #tpu.memory_space<vmem>>, vector<1x32x32xf32>
    %87 = vector.shape_cast %86 : vector<1x32x32xf32> to vector<32x32xf32>
    %cst_73 = arith.constant dense<0.000000e+00> : vector<192x32xf32>
    %88 = tpu.matmul %85, %87, %cst_73 {dimension_numbers = #tpu.dot_dimension_numbers<[1], [0], [0], [1], [0, 0, 1, 1], [], []>} : vector<192x32xf32>, vector<32x32xf32>, vector<192x32xf32> -> vector<192x32xf32>
    %89 = arith.addf %84, %88 : vector<192x32xf32>
    %c33 = arith.constant 33 : index
    %c0_74 = arith.constant 0 : index
    %90 = vector.load %arg9[%c33, %c0_74] : memref<448x32xf32, #tpu.memory_space<vmem>>, vector<192x32xf32>
    %c5 = arith.constant 5 : index
    %c0_75 = arith.constant 0 : index
    %c0_76 = arith.constant 0 : index
    %91 = vector.load %arg4[%c5, %c0_75, %c0_76] : memref<9x32x32xf32, #tpu.memory_space<vmem>>, vector<1x32x32xf32>
    %92 = vector.shape_cast %91 : vector<1x32x32xf32> to vector<32x32xf32>
    %cst_77 = arith.constant dense<0.000000e+00> : vector<192x32xf32>
    %93 = tpu.matmul %90, %92, %cst_77 {dimension_numbers = #tpu.dot_dimension_numbers<[1], [0], [0], [1], [0, 0, 1, 1], [], []>} : vector<192x32xf32>, vector<32x32xf32>, vector<192x32xf32> -> vector<192x32xf32>
    %94 = arith.addf %89, %93 : vector<192x32xf32>
    %c55 = arith.constant 55 : index
    %c0_78 = arith.constant 0 : index
    %95 = vector.load %arg9[%c55, %c0_78] : memref<448x32xf32, #tpu.memory_space<vmem>>, vector<192x32xf32>
    %c6 = arith.constant 6 : index
    %c0_79 = arith.constant 0 : index
    %c0_80 = arith.constant 0 : index
    %96 = vector.load %arg4[%c6, %c0_79, %c0_80] : memref<9x32x32xf32, #tpu.memory_space<vmem>>, vector<1x32x32xf32>
    %97 = vector.shape_cast %96 : vector<1x32x32xf32> to vector<32x32xf32>
    %cst_81 = arith.constant dense<0.000000e+00> : vector<192x32xf32>
    %98 = tpu.matmul %95, %97, %cst_81 {dimension_numbers = #tpu.dot_dimension_numbers<[1], [0], [0], [1], [0, 0, 1, 1], [], []>} : vector<192x32xf32>, vector<32x32xf32>, vector<192x32xf32> -> vector<192x32xf32>
    %99 = arith.addf %94, %98 : vector<192x32xf32>
    %c56_82 = arith.constant 56 : index
    %c0_83 = arith.constant 0 : index
    %100 = vector.load %arg9[%c56_82, %c0_83] : memref<448x32xf32, #tpu.memory_space<vmem>>, vector<192x32xf32>
    %c7_84 = arith.constant 7 : index
    %c0_85 = arith.constant 0 : index
    %c0_86 = arith.constant 0 : index
    %101 = vector.load %arg4[%c7_84, %c0_85, %c0_86] : memref<9x32x32xf32, #tpu.memory_space<vmem>>, vector<1x32x32xf32>
    %102 = vector.shape_cast %101 : vector<1x32x32xf32> to vector<32x32xf32>
    %cst_87 = arith.constant dense<0.000000e+00> : vector<192x32xf32>
    %103 = tpu.matmul %100, %102, %cst_87 {dimension_numbers = #tpu.dot_dimension_numbers<[1], [0], [0], [1], [0, 0, 1, 1], [], []>} : vector<192x32xf32>, vector<32x32xf32>, vector<192x32xf32> -> vector<192x32xf32>
    %104 = arith.addf %99, %103 : vector<192x32xf32>
    %c57 = arith.constant 57 : index
    %c0_88 = arith.constant 0 : index
    %105 = vector.load %arg9[%c57, %c0_88] : memref<448x32xf32, #tpu.memory_space<vmem>>, vector<192x32xf32>
    %c8_89 = arith.constant 8 : index
    %c0_90 = arith.constant 0 : index
    %c0_91 = arith.constant 0 : index
    %106 = vector.load %arg4[%c8_89, %c0_90, %c0_91] : memref<9x32x32xf32, #tpu.memory_space<vmem>>, vector<1x32x32xf32>
    %107 = vector.shape_cast %106 : vector<1x32x32xf32> to vector<32x32xf32>
    %cst_92 = arith.constant dense<0.000000e+00> : vector<192x32xf32>
    %108 = tpu.matmul %105, %107, %cst_92 {dimension_numbers = #tpu.dot_dimension_numbers<[1], [0], [0], [1], [0, 0, 1, 1], [], []>} : vector<192x32xf32>, vector<32x32xf32>, vector<192x32xf32> -> vector<192x32xf32>
    %109 = arith.addf %104, %108 : vector<192x32xf32>
    %110 = vector.broadcast %1 : vector<1x32xf32> to vector<192x32xf32>
    %111 = arith.addf %109, %110 : vector<192x32xf32>
    %cst_93 = arith.constant 0.000000e+00 : f32
    %112 = vector.broadcast %cst_93 : f32 to vector<192x32xf32>
    %113 = arith.maximumf %111, %112 : vector<192x32xf32>
    %114 = vector.shape_cast %113 : vector<192x32xf32> to vector<8x24x32xf32>
    %115 = vector.extract_strided_slice %114 {offsets = [0, 0, 0], sizes = [8, 16, 32], strides = [1, 1, 1]} : vector<8x24x32xf32> to vector<8x16x32xf32>
    %116 = vector.shape_cast %115 : vector<8x16x32xf32> to vector<128x32xf32>
    %cst_94 = arith.constant dense<0.000000e+00> : vector<128x128xf32>
    %117 = tpu.matmul %116, %4, %cst_94 {dimension_numbers = #tpu.dot_dimension_numbers<[1], [0], [0], [1], [0, 0, 1, 1], [], []>} : vector<128x32xf32>, vector<32x128xf32>, vector<128x128xf32> -> vector<128x128xf32>
    %118 = vector.broadcast %2 : vector<1x128xf32> to vector<128x128xf32>
    %119 = arith.addf %117, %118 : vector<128x128xf32>
    %c0_95 = arith.constant 0 : index
    %c0_96 = arith.constant 0 : index
    %c0_97 = arith.constant 0 : index
    %c0_98 = arith.constant 0 : index
    %120 = vector.load %arg1[%c0_95, %c0_96, %c0_97, %c0_98] : memref<2x16x16x128xf32, #tpu.memory_space<vmem>>, vector<1x8x16x128xf32>
    %121 = vector.shape_cast %120 : vector<1x8x16x128xf32> to vector<8x16x128xf32>
    %122 = vector.shape_cast %121 : vector<8x16x128xf32> to vector<128x128xf32>
    %123 = arith.addf %119, %122 : vector<128x128xf32>
    %cst_99 = arith.constant 0.000000e+00 : f32
    %124 = vector.broadcast %cst_99 : f32 to vector<128x128xf32>
    %125 = arith.maximumf %123, %124 : vector<128x128xf32>
    %126 = vector.shape_cast %125 : vector<128x128xf32> to vector<8x16x128xf32>
    %c0_100 = arith.constant 0 : index
    %c0_101 = arith.constant 0 : index
    %c0_102 = arith.constant 0 : index
    %c0_103 = arith.constant 0 : index
    %127 = vector.load %arg8[%c0_100, %c0_101, %c0_102, %c0_103] : memref<2x16x16x128xf32, #tpu.memory_space<vmem>>, vector<1x8x16x128xf32>
    %128 = vector.shape_cast %127 : vector<1x8x16x128xf32> to vector<8x16x128xf32>
    %129 = vector.shape_cast %126 : vector<8x16x128xf32> to vector<1x8x16x128xf32>
    tpu.vector_store %arg8[%c0_100, %c0_101, %c0_102, %c0_103], %129 {strides = array<i32>} : memref<2x16x16x128xf32, #tpu.memory_space<vmem>>, vector<1x8x16x128xf32>,
    %c199 = arith.constant 199 : index
    %c0_104 = arith.constant 0 : index
    %130 = vector.load %arg9[%c199, %c0_104] : memref<448x32xf32, #tpu.memory_space<vmem>>, vector<192x32xf32>
    %c0_105 = arith.constant 0 : index
    %c0_106 = arith.constant 0 : index
    %c0_107 = arith.constant 0 : index
    %131 = vector.load %arg4[%c0_105, %c0_106, %c0_107] : memref<9x32x32xf32, #tpu.memory_space<vmem>>, vector<1x32x32xf32>
    %132 = vector.shape_cast %131 : vector<1x32x32xf32> to vector<32x32xf32>
    %cst_108 = arith.constant dense<0.000000e+00> : vector<192x32xf32>
    %133 = tpu.matmul %130, %132, %cst_108 {dimension_numbers = #tpu.dot_dimension_numbers<[1], [0], [0], [1], [0, 0, 1, 1], [], []>} : vector<192x32xf32>, vector<32x32xf32>, vector<192x32xf32> -> vector<192x32xf32>
    %c200_109 = arith.constant 200 : index
    %c0_110 = arith.constant 0 : index
    %134 = vector.load %arg9[%c200_109, %c0_110] : memref<448x32xf32, #tpu.memory_space<vmem>>, vector<192x32xf32>
    %c1_111 = arith.constant 1 : index
    %c0_112 = arith.constant 0 : index
    %c0_113 = arith.constant 0 : index
    %135 = vector.load %arg4[%c1_111, %c0_112, %c0_113] : memref<9x32x32xf32, #tpu.memory_space<vmem>>, vector<1x32x32xf32>
    %136 = vector.shape_cast %135 : vector<1x32x32xf32> to vector<32x32xf32>
    %cst_114 = arith.constant dense<0.000000e+00> : vector<192x32xf32>
    %137 = tpu.matmul %134, %136, %cst_114 {dimension_numbers = #tpu.dot_dimension_numbers<[1], [0], [0], [1], [0, 0, 1, 1], [], []>} : vector<192x32xf32>, vector<32x32xf32>, vector<192x32xf32> -> vector<192x32xf32>
    %138 = arith.addf %133, %137 : vector<192x32xf32>
    %c201 = arith.constant 201 : index
    %c0_115 = arith.constant 0 : index
    %139 = vector.load %arg9[%c201, %c0_115] : memref<448x32xf32, #tpu.memory_space<vmem>>, vector<192x32xf32>
    %c2_116 = arith.constant 2 : index
    %c0_117 = arith.constant 0 : index
    %c0_118 = arith.constant 0 : index
    %140 = vector.load %arg4[%c2_116, %c0_117, %c0_118] : memref<9x32x32xf32, #tpu.memory_space<vmem>>, vector<1x32x32xf32>
    %141 = vector.shape_cast %140 : vector<1x32x32xf32> to vector<32x32xf32>
    %cst_119 = arith.constant dense<0.000000e+00> : vector<192x32xf32>
    %142 = tpu.matmul %139, %141, %cst_119 {dimension_numbers = #tpu.dot_dimension_numbers<[1], [0], [0], [1], [0, 0, 1, 1], [], []>} : vector<192x32xf32>, vector<32x32xf32>, vector<192x32xf32> -> vector<192x32xf32>
    %143 = arith.addf %138, %142 : vector<192x32xf32>
    %c223 = arith.constant 223 : index
    %c0_120 = arith.constant 0 : index
    %144 = vector.load %arg9[%c223, %c0_120] : memref<448x32xf32, #tpu.memory_space<vmem>>, vector<192x32xf32>
    %c3_121 = arith.constant 3 : index
    %c0_122 = arith.constant 0 : index
    %c0_123 = arith.constant 0 : index
    %145 = vector.load %arg4[%c3_121, %c0_122, %c0_123] : memref<9x32x32xf32, #tpu.memory_space<vmem>>, vector<1x32x32xf32>
    %146 = vector.shape_cast %145 : vector<1x32x32xf32> to vector<32x32xf32>
    %cst_124 = arith.constant dense<0.000000e+00> : vector<192x32xf32>
    %147 = tpu.matmul %144, %146, %cst_124 {dimension_numbers = #tpu.dot_dimension_numbers<[1], [0], [0], [1], [0, 0, 1, 1], [], []>} : vector<192x32xf32>, vector<32x32xf32>, vector<192x32xf32> -> vector<192x32xf32>
    %148 = arith.addf %143, %147 : vector<192x32xf32>
    %c224_125 = arith.constant 224 : index
    %c0_126 = arith.constant 0 : index
    %149 = vector.load %arg9[%c224_125, %c0_126] : memref<448x32xf32, #tpu.memory_space<vmem>>, vector<192x32xf32>
    %c4_127 = arith.constant 4 : index
    %c0_128 = arith.constant 0 : index
    %c0_129 = arith.constant 0 : index
    %150 = vector.load %arg4[%c4_127, %c0_128, %c0_129] : memref<9x32x32xf32, #tpu.memory_space<vmem>>, vector<1x32x32xf32>
    %151 = vector.shape_cast %150 : vector<1x32x32xf32> to vector<32x32xf32>
    %cst_130 = arith.constant dense<0.000000e+00> : vector<192x32xf32>
    %152 = tpu.matmul %149, %151, %cst_130 {dimension_numbers = #tpu.dot_dimension_numbers<[1], [0], [0], [1], [0, 0, 1, 1], [], []>} : vector<192x32xf32>, vector<32x32xf32>, vector<192x32xf32> -> vector<192x32xf32>
    %153 = arith.addf %148, %152 : vector<192x32xf32>
    %c225 = arith.constant 225 : index
    %c0_131 = arith.constant 0 : index
    %154 = vector.load %arg9[%c225, %c0_131] : memref<448x32xf32, #tpu.memory_space<vmem>>, vector<192x32xf32>
    %c5_132 = arith.constant 5 : index
    %c0_133 = arith.constant 0 : index
    %c0_134 = arith.constant 0 : index
    %155 = vector.load %arg4[%c5_132, %c0_133, %c0_134] : memref<9x32x32xf32, #tpu.memory_space<vmem>>, vector<1x32x32xf32>
    %156 = vector.shape_cast %155 : vector<1x32x32xf32> to vector<32x32xf32>
    %cst_135 = arith.constant dense<0.000000e+00> : vector<192x32xf32>
    %157 = tpu.matmul %154, %156, %cst_135 {dimension_numbers = #tpu.dot_dimension_numbers<[1], [0], [0], [1], [0, 0, 1, 1], [], []>} : vector<192x32xf32>, vector<32x32xf32>, vector<192x32xf32> -> vector<192x32xf32>
    %158 = arith.addf %153, %157 : vector<192x32xf32>
    %c247 = arith.constant 247 : index
    %c0_136 = arith.constant 0 : index
    %159 = vector.load %arg9[%c247, %c0_136] : memref<448x32xf32, #tpu.memory_space<vmem>>, vector<192x32xf32>
    %c6_137 = arith.constant 6 : index
    %c0_138 = arith.constant 0 : index
    %c0_139 = arith.constant 0 : index
    %160 = vector.load %arg4[%c6_137, %c0_138, %c0_139] : memref<9x32x32xf32, #tpu.memory_space<vmem>>, vector<1x32x32xf32>
    %161 = vector.shape_cast %160 : vector<1x32x32xf32> to vector<32x32xf32>
    %cst_140 = arith.constant dense<0.000000e+00> : vector<192x32xf32>
    %162 = tpu.matmul %159, %161, %cst_140 {dimension_numbers = #tpu.dot_dimension_numbers<[1], [0], [0], [1], [0, 0, 1, 1], [], []>} : vector<192x32xf32>, vector<32x32xf32>, vector<192x32xf32> -> vector<192x32xf32>
    %163 = arith.addf %158, %162 : vector<192x32xf32>
    %c248_141 = arith.constant 248 : index
    %c0_142 = arith.constant 0 : index
    %164 = vector.load %arg9[%c248_141, %c0_142] : memref<448x32xf32, #tpu.memory_space<vmem>>, vector<192x32xf32>
    %c7_143 = arith.constant 7 : index
    %c0_144 = arith.constant 0 : index
    %c0_145 = arith.constant 0 : index
    %165 = vector.load %arg4[%c7_143, %c0_144, %c0_145] : memref<9x32x32xf32, #tpu.memory_space<vmem>>, vector<1x32x32xf32>
    %166 = vector.shape_cast %165 : vector<1x32x32xf32> to vector<32x32xf32>
    %cst_146 = arith.constant dense<0.000000e+00> : vector<192x32xf32>
    %167 = tpu.matmul %164, %166, %cst_146 {dimension_numbers = #tpu.dot_dimension_numbers<[1], [0], [0], [1], [0, 0, 1, 1], [], []>} : vector<192x32xf32>, vector<32x32xf32>, vector<192x32xf32> -> vector<192x32xf32>
    %168 = arith.addf %163, %167 : vector<192x32xf32>
    %c249 = arith.constant 249 : index
    %c0_147 = arith.constant 0 : index
    %169 = vector.load %arg9[%c249, %c0_147] : memref<448x32xf32, #tpu.memory_space<vmem>>, vector<192x32xf32>
    %c8_148 = arith.constant 8 : index
    %c0_149 = arith.constant 0 : index
    %c0_150 = arith.constant 0 : index
    %170 = vector.load %arg4[%c8_148, %c0_149, %c0_150] : memref<9x32x32xf32, #tpu.memory_space<vmem>>, vector<1x32x32xf32>
    %171 = vector.shape_cast %170 : vector<1x32x32xf32> to vector<32x32xf32>
    %cst_151 = arith.constant dense<0.000000e+00> : vector<192x32xf32>
    %172 = tpu.matmul %169, %171, %cst_151 {dimension_numbers = #tpu.dot_dimension_numbers<[1], [0], [0], [1], [0, 0, 1, 1], [], []>} : vector<192x32xf32>, vector<32x32xf32>, vector<192x32xf32> -> vector<192x32xf32>
    %173 = arith.addf %168, %172 : vector<192x32xf32>
    %174 = vector.broadcast %1 : vector<1x32xf32> to vector<192x32xf32>
    %175 = arith.addf %173, %174 : vector<192x32xf32>
    %cst_152 = arith.constant 0.000000e+00 : f32
    %176 = vector.broadcast %cst_152 : f32 to vector<192x32xf32>
    %177 = arith.maximumf %175, %176 : vector<192x32xf32>
    %178 = vector.shape_cast %177 : vector<192x32xf32> to vector<8x24x32xf32>
    %179 = vector.extract_strided_slice %178 {offsets = [0, 0, 0], sizes = [8, 16, 32], strides = [1, 1, 1]} : vector<8x24x32xf32> to vector<8x16x32xf32>
    %180 = vector.shape_cast %179 : vector<8x16x32xf32> to vector<128x32xf32>
    %cst_153 = arith.constant dense<0.000000e+00> : vector<128x128xf32>
    %181 = tpu.matmul %180, %4, %cst_153 {dimension_numbers = #tpu.dot_dimension_numbers<[1], [0], [0], [1], [0, 0, 1, 1], [], []>} : vector<128x32xf32>, vector<32x128xf32>, vector<128x128xf32> -> vector<128x128xf32>
    %182 = vector.broadcast %2 : vector<1x128xf32> to vector<128x128xf32>
    %183 = arith.addf %181, %182 : vector<128x128xf32>
    %c0_154 = arith.constant 0 : index
    %c8_155 = arith.constant 8 : index
    %c0_156 = arith.constant 0 : index
    %c0_157 = arith.constant 0 : index
    %184 = vector.load %arg1[%c0_154, %c8_155, %c0_156, %c0_157] : memref<2x16x16x128xf32, #tpu.memory_space<vmem>>, vector<1x8x16x128xf32>
    %185 = vector.shape_cast %184 : vector<1x8x16x128xf32> to vector<8x16x128xf32>
    %186 = vector.shape_cast %185 : vector<8x16x128xf32> to vector<128x128xf32>
    %187 = arith.addf %183, %186 : vector<128x128xf32>
    %cst_158 = arith.constant 0.000000e+00 : f32
    %188 = vector.broadcast %cst_158 : f32 to vector<128x128xf32>
    %189 = arith.maximumf %187, %188 : vector<128x128xf32>
    %190 = vector.shape_cast %189 : vector<128x128xf32> to vector<8x16x128xf32>
    %c0_159 = arith.constant 0 : index
    %c8_160 = arith.constant 8 : index
    %c0_161 = arith.constant 0 : index
    %c0_162 = arith.constant 0 : index
    %191 = vector.load %arg8[%c0_159, %c8_160, %c0_161, %c0_162] : memref<2x16x16x128xf32, #tpu.memory_space<vmem>>, vector<1x8x16x128xf32>
    %192 = vector.shape_cast %191 : vector<1x8x16x128xf32> to vector<8x16x128xf32>
    %193 = vector.shape_cast %190 : vector<8x16x128xf32> to vector<1x8x16x128xf32>
    tpu.vector_store %arg8[%c0_159, %c8_160, %c0_161, %c0_162], %193 {strides = array<i32>} : memref<2x16x16x128xf32, #tpu.memory_space<vmem>>, vector<1x8x16x128xf32>,
    %c1_163 = arith.constant 1 : index
    %c0_164 = arith.constant 0 : index
    %c0_165 = arith.constant 0 : index
    %c0_166 = arith.constant 0 : index
    %194 = vector.load %arg1[%c1_163, %c0_164, %c0_165, %c0_166] : memref<2x16x16x128xf32, #tpu.memory_space<vmem>>, vector<1x16x16x128xf32>
    %195 = vector.shape_cast %194 : vector<1x16x16x128xf32> to vector<16x16x128xf32>
    %196 = vector.shape_cast %195 : vector<16x16x128xf32> to vector<256x128xf32>
    %cst_167 = arith.constant dense<0.000000e+00> : vector<256x32xf32>
    %197 = tpu.matmul %196, %3, %cst_167 {dimension_numbers = #tpu.dot_dimension_numbers<[1], [0], [0], [1], [0, 0, 1, 1], [], []>} : vector<256x128xf32>, vector<128x32xf32>, vector<256x32xf32> -> vector<256x32xf32>
    %198 = vector.broadcast %0 : vector<1x32xf32> to vector<256x32xf32>
    %199 = arith.addf %197, %198 : vector<256x32xf32>
    %cst_168 = arith.constant 0.000000e+00 : f32
    %200 = vector.broadcast %cst_168 : f32 to vector<256x32xf32>
    %201 = arith.maximumf %199, %200 : vector<256x32xf32>
    %202 = vector.extract_strided_slice %201 {offsets = [0, 0], sizes = [16, 32], strides = [1, 1]} : vector<256x32xf32> to vector<16x32xf32>
    %c32_169 = arith.constant 32 : index
    %c0_170 = arith.constant 0 : index
    %203 = vector.load %arg9[%c32_169, %c0_170] : memref<448x32xf32, #tpu.memory_space<vmem>>, vector<16x32xf32>
    tpu.vector_store %arg9[%c32_169, %c0_170], %202 {strides = array<i32>} : memref<448x32xf32, #tpu.memory_space<vmem>>, vector<16x32xf32>,
    %204 = vector.extract_strided_slice %201 {offsets = [16, 0], sizes = [16, 32], strides = [1, 1]} : vector<256x32xf32> to vector<16x32xf32>
    %c56_171 = arith.constant 56 : index
    %c0_172 = arith.constant 0 : index
    %205 = vector.load %arg9[%c56_171, %c0_172] : memref<448x32xf32, #tpu.memory_space<vmem>>, vector<16x32xf32>
    tpu.vector_store %arg9[%c56_171, %c0_172], %204 {strides = array<i32>} : memref<448x32xf32, #tpu.memory_space<vmem>>, vector<16x32xf32>,
    %206 = vector.extract_strided_slice %201 {offsets = [32, 0], sizes = [16, 32], strides = [1, 1]} : vector<256x32xf32> to vector<16x32xf32>
    %c80_173 = arith.constant 80 : index
    %c0_174 = arith.constant 0 : index
    %207 = vector.load %arg9[%c80_173, %c0_174] : memref<448x32xf32, #tpu.memory_space<vmem>>, vector<16x32xf32>
    tpu.vector_store %arg9[%c80_173, %c0_174], %206 {strides = array<i32>} : memref<448x32xf32, #tpu.memory_space<vmem>>, vector<16x32xf32>,
    %208 = vector.extract_strided_slice %201 {offsets = [48, 0], sizes = [16, 32], strides = [1, 1]} : vector<256x32xf32> to vector<16x32xf32>
    %c104_175 = arith.constant 104 : index
    %c0_176 = arith.constant 0 : index
    %209 = vector.load %arg9[%c104_175, %c0_176] : memref<448x32xf32, #tpu.memory_space<vmem>>, vector<16x32xf32>
    tpu.vector_store %arg9[%c104_175, %c0_176], %208 {strides = array<i32>} : memref<448x32xf32, #tpu.memory_space<vmem>>, vector<16x32xf32>,
    %210 = vector.extract_strided_slice %201 {offsets = [64, 0], sizes = [16, 32], strides = [1, 1]} : vector<256x32xf32> to vector<16x32xf32>
    %c128_177 = arith.constant 128 : index
    %c0_178 = arith.constant 0 : index
    %211 = vector.load %arg9[%c128_177, %c0_178] : memref<448x32xf32, #tpu.memory_space<vmem>>, vector<16x32xf32>
    tpu.vector_store %arg9[%c128_177, %c0_178], %210 {strides = array<i32>} : memref<448x32xf32, #tpu.memory_space<vmem>>, vector<16x32xf32>,
    %212 = vector.extract_strided_slice %201 {offsets = [80, 0], sizes = [16, 32], strides = [1, 1]} : vector<256x32xf32> to vector<16x32xf32>
    %c152_179 = arith.constant 152 : index
    %c0_180 = arith.constant 0 : index
    %213 = vector.load %arg9[%c152_179, %c0_180] : memref<448x32xf32, #tpu.memory_space<vmem>>, vector<16x32xf32>
    tpu.vector_store %arg9[%c152_179, %c0_180], %212 {strides = array<i32>} : memref<448x32xf32, #tpu.memory_space<vmem>>, vector<16x32xf32>,
    %214 = vector.extract_strided_slice %201 {offsets = [96, 0], sizes = [16, 32], strides = [1, 1]} : vector<256x32xf32> to vector<16x32xf32>
    %c176_181 = arith.constant 176 : index
    %c0_182 = arith.constant 0 : index
    %215 = vector.load %arg9[%c176_181, %c0_182] : memref<448x32xf32, #tpu.memory_space<vmem>>, vector<16x32xf32>
    tpu.vector_store %arg9[%c176_181, %c0_182], %214 {strides = array<i32>} : memref<448x32xf32, #tpu.memory_space<vmem>>, vector<16x32xf32>,
    %216 = vector.extract_strided_slice %201 {offsets = [112, 0], sizes = [16, 32], strides = [1, 1]} : vector<256x32xf32> to vector<16x32xf32>
    %c200_183 = arith.constant 200 : index
    %c0_184 = arith.constant 0 : index
    %217 = vector.load %arg9[%c200_183, %c0_184] : memref<448x32xf32, #tpu.memory_space<vmem>>, vector<16x32xf32>
    tpu.vector_store %arg9[%c200_183, %c0_184], %216 {strides = array<i32>} : memref<448x32xf32, #tpu.memory_space<vmem>>, vector<16x32xf32>,
    %218 = vector.extract_strided_slice %201 {offsets = [128, 0], sizes = [16, 32], strides = [1, 1]} : vector<256x32xf32> to vector<16x32xf32>
    %c224_185 = arith.constant 224 : index
    %c0_186 = arith.constant 0 : index
    %219 = vector.load %arg9[%c224_185, %c0_186] : memref<448x32xf32, #tpu.memory_space<vmem>>, vector<16x32xf32>
    tpu.vector_store %arg9[%c224_185, %c0_186], %218 {strides = array<i32>} : memref<448x32xf32, #tpu.memory_space<vmem>>, vector<16x32xf32>,
    %220 = vector.extract_strided_slice %201 {offsets = [144, 0], sizes = [16, 32], strides = [1, 1]} : vector<256x32xf32> to vector<16x32xf32>
    %c248_187 = arith.constant 248 : index
    %c0_188 = arith.constant 0 : index
    %221 = vector.load %arg9[%c248_187, %c0_188] : memref<448x32xf32, #tpu.memory_space<vmem>>, vector<16x32xf32>
    tpu.vector_store %arg9[%c248_187, %c0_188], %220 {strides = array<i32>} : memref<448x32xf32, #tpu.memory_space<vmem>>, vector<16x32xf32>,
    %222 = vector.extract_strided_slice %201 {offsets = [160, 0], sizes = [16, 32], strides = [1, 1]} : vector<256x32xf32> to vector<16x32xf32>
    %c272_189 = arith.constant 272 : index
    %c0_190 = arith.constant 0 : index
    %223 = vector.load %arg9[%c272_189, %c0_190] : memref<448x32xf32, #tpu.memory_space<vmem>>, vector<16x32xf32>
    tpu.vector_store %arg9[%c272_189, %c0_190], %222 {strides = array<i32>} : memref<448x32xf32, #tpu.memory_space<vmem>>, vector<16x32xf32>,
    %224 = vector.extract_strided_slice %201 {offsets = [176, 0], sizes = [16, 32], strides = [1, 1]} : vector<256x32xf32> to vector<16x32xf32>
    %c296_191 = arith.constant 296 : index
    %c0_192 = arith.constant 0 : index
    %225 = vector.load %arg9[%c296_191, %c0_192] : memref<448x32xf32, #tpu.memory_space<vmem>>, vector<16x32xf32>
    tpu.vector_store %arg9[%c296_191, %c0_192], %224 {strides = array<i32>} : memref<448x32xf32, #tpu.memory_space<vmem>>, vector<16x32xf32>,
    %226 = vector.extract_strided_slice %201 {offsets = [192, 0], sizes = [16, 32], strides = [1, 1]} : vector<256x32xf32> to vector<16x32xf32>
    %c320_193 = arith.constant 320 : index
    %c0_194 = arith.constant 0 : index
    %227 = vector.load %arg9[%c320_193, %c0_194] : memref<448x32xf32, #tpu.memory_space<vmem>>, vector<16x32xf32>
    tpu.vector_store %arg9[%c320_193, %c0_194], %226 {strides = array<i32>} : memref<448x32xf32, #tpu.memory_space<vmem>>, vector<16x32xf32>,
    %228 = vector.extract_strided_slice %201 {offsets = [208, 0], sizes = [16, 32], strides = [1, 1]} : vector<256x32xf32> to vector<16x32xf32>
    %c344_195 = arith.constant 344 : index
    %c0_196 = arith.constant 0 : index
    %229 = vector.load %arg9[%c344_195, %c0_196] : memref<448x32xf32, #tpu.memory_space<vmem>>, vector<16x32xf32>
    tpu.vector_store %arg9[%c344_195, %c0_196], %228 {strides = array<i32>} : memref<448x32xf32, #tpu.memory_space<vmem>>, vector<16x32xf32>,
    %230 = vector.extract_strided_slice %201 {offsets = [224, 0], sizes = [16, 32], strides = [1, 1]} : vector<256x32xf32> to vector<16x32xf32>
    %c368_197 = arith.constant 368 : index
    %c0_198 = arith.constant 0 : index
    %231 = vector.load %arg9[%c368_197, %c0_198] : memref<448x32xf32, #tpu.memory_space<vmem>>, vector<16x32xf32>
    tpu.vector_store %arg9[%c368_197, %c0_198], %230 {strides = array<i32>} : memref<448x32xf32, #tpu.memory_space<vmem>>, vector<16x32xf32>,
    %232 = vector.extract_strided_slice %201 {offsets = [240, 0], sizes = [16, 32], strides = [1, 1]} : vector<256x32xf32> to vector<16x32xf32>
    %c392_199 = arith.constant 392 : index
    %c0_200 = arith.constant 0 : index
    %233 = vector.load %arg9[%c392_199, %c0_200] : memref<448x32xf32, #tpu.memory_space<vmem>>, vector<16x32xf32>
    tpu.vector_store %arg9[%c392_199, %c0_200], %232 {strides = array<i32>} : memref<448x32xf32, #tpu.memory_space<vmem>>, vector<16x32xf32>,
    %c7_201 = arith.constant 7 : index
    %c0_202 = arith.constant 0 : index
    %234 = vector.load %arg9[%c7_201, %c0_202] : memref<448x32xf32, #tpu.memory_space<vmem>>, vector<192x32xf32>
    %c0_203 = arith.constant 0 : index
    %c0_204 = arith.constant 0 : index
    %c0_205 = arith.constant 0 : index
    %235 = vector.load %arg4[%c0_203, %c0_204, %c0_205] : memref<9x32x32xf32, #tpu.memory_space<vmem>>, vector<1x32x32xf32>
    %236 = vector.shape_cast %235 : vector<1x32x32xf32> to vector<32x32xf32>
    %cst_206 = arith.constant dense<0.000000e+00> : vector<192x32xf32>
    %237 = tpu.matmul %234, %236, %cst_206 {dimension_numbers = #tpu.dot_dimension_numbers<[1], [0], [0], [1], [0, 0, 1, 1], [], []>} : vector<192x32xf32>, vector<32x32xf32>, vector<192x32xf32> -> vector<192x32xf32>
    %c8_207 = arith.constant 8 : index
    %c0_208 = arith.constant 0 : index
    %238 = vector.load %arg9[%c8_207, %c0_208] : memref<448x32xf32, #tpu.memory_space<vmem>>, vector<192x32xf32>
    %c1_209 = arith.constant 1 : index
    %c0_210 = arith.constant 0 : index
    %c0_211 = arith.constant 0 : index
    %239 = vector.load %arg4[%c1_209, %c0_210, %c0_211] : memref<9x32x32xf32, #tpu.memory_space<vmem>>, vector<1x32x32xf32>
    %240 = vector.shape_cast %239 : vector<1x32x32xf32> to vector<32x32xf32>
    %cst_212 = arith.constant dense<0.000000e+00> : vector<192x32xf32>
    %241 = tpu.matmul %238, %240, %cst_212 {dimension_numbers = #tpu.dot_dimension_numbers<[1], [0], [0], [1], [0, 0, 1, 1], [], []>} : vector<192x32xf32>, vector<32x32xf32>, vector<192x32xf32> -> vector<192x32xf32>
    %242 = arith.addf %237, %241 : vector<192x32xf32>
    %c9_213 = arith.constant 9 : index
    %c0_214 = arith.constant 0 : index
    %243 = vector.load %arg9[%c9_213, %c0_214] : memref<448x32xf32, #tpu.memory_space<vmem>>, vector<192x32xf32>
    %c2_215 = arith.constant 2 : index
    %c0_216 = arith.constant 0 : index
    %c0_217 = arith.constant 0 : index
    %244 = vector.load %arg4[%c2_215, %c0_216, %c0_217] : memref<9x32x32xf32, #tpu.memory_space<vmem>>, vector<1x32x32xf32>
    %245 = vector.shape_cast %244 : vector<1x32x32xf32> to vector<32x32xf32>
    %cst_218 = arith.constant dense<0.000000e+00> : vector<192x32xf32>
    %246 = tpu.matmul %243, %245, %cst_218 {dimension_numbers = #tpu.dot_dimension_numbers<[1], [0], [0], [1], [0, 0, 1, 1], [], []>} : vector<192x32xf32>, vector<32x32xf32>, vector<192x32xf32> -> vector<192x32xf32>
    %247 = arith.addf %242, %246 : vector<192x32xf32>
    %c31_219 = arith.constant 31 : index
    %c0_220 = arith.constant 0 : index
    %248 = vector.load %arg9[%c31_219, %c0_220] : memref<448x32xf32, #tpu.memory_space<vmem>>, vector<192x32xf32>
    %c3_221 = arith.constant 3 : index
    %c0_222 = arith.constant 0 : index
    %c0_223 = arith.constant 0 : index
    %249 = vector.load %arg4[%c3_221, %c0_222, %c0_223] : memref<9x32x32xf32, #tpu.memory_space<vmem>>, vector<1x32x32xf32>
    %250 = vector.shape_cast %249 : vector<1x32x32xf32> to vector<32x32xf32>
    %cst_224 = arith.constant dense<0.000000e+00> : vector<192x32xf32>
    %251 = tpu.matmul %248, %250, %cst_224 {dimension_numbers = #tpu.dot_dimension_numbers<[1], [0], [0], [1], [0, 0, 1, 1], [], []>} : vector<192x32xf32>, vector<32x32xf32>, vector<192x32xf32> -> vector<192x32xf32>
    %252 = arith.addf %247, %251 : vector<192x32xf32>
    %c32_225 = arith.constant 32 : index
    %c0_226 = arith.constant 0 : index
    %253 = vector.load %arg9[%c32_225, %c0_226] : memref<448x32xf32, #tpu.memory_space<vmem>>, vector<192x32xf32>
    %c4_227 = arith.constant 4 : index
    %c0_228 = arith.constant 0 : index
    %c0_229 = arith.constant 0 : index
    %254 = vector.load %arg4[%c4_227, %c0_228, %c0_229] : memref<9x32x32xf32, #tpu.memory_space<vmem>>, vector<1x32x32xf32>
    %255 = vector.shape_cast %254 : vector<1x32x32xf32> to vector<32x32xf32>
    %cst_230 = arith.constant dense<0.000000e+00> : vector<192x32xf32>
    %256 = tpu.matmul %253, %255, %cst_230 {dimension_numbers = #tpu.dot_dimension_numbers<[1], [0], [0], [1], [0, 0, 1, 1], [], []>} : vector<192x32xf32>, vector<32x32xf32>, vector<192x32xf32> -> vector<192x32xf32>
    %257 = arith.addf %252, %256 : vector<192x32xf32>
    %c33_231 = arith.constant 33 : index
    %c0_232 = arith.constant 0 : index
    %258 = vector.load %arg9[%c33_231, %c0_232] : memref<448x32xf32, #tpu.memory_space<vmem>>, vector<192x32xf32>
    %c5_233 = arith.constant 5 : index
    %c0_234 = arith.constant 0 : index
    %c0_235 = arith.constant 0 : index
    %259 = vector.load %arg4[%c5_233, %c0_234, %c0_235] : memref<9x32x32xf32, #tpu.memory_space<vmem>>, vector<1x32x32xf32>
    %260 = vector.shape_cast %259 : vector<1x32x32xf32> to vector<32x32xf32>
    %cst_236 = arith.constant dense<0.000000e+00> : vector<192x32xf32>
    %261 = tpu.matmul %258, %260, %cst_236 {dimension_numbers = #tpu.dot_dimension_numbers<[1], [0], [0], [1], [0, 0, 1, 1], [], []>} : vector<192x32xf32>, vector<32x32xf32>, vector<192x32xf32> -> vector<192x32xf32>
    %262 = arith.addf %257, %261 : vector<192x32xf32>
    %c55_237 = arith.constant 55 : index
    %c0_238 = arith.constant 0 : index
    %263 = vector.load %arg9[%c55_237, %c0_238] : memref<448x32xf32, #tpu.memory_space<vmem>>, vector<192x32xf32>
    %c6_239 = arith.constant 6 : index
    %c0_240 = arith.constant 0 : index
    %c0_241 = arith.constant 0 : index
    %264 = vector.load %arg4[%c6_239, %c0_240, %c0_241] : memref<9x32x32xf32, #tpu.memory_space<vmem>>, vector<1x32x32xf32>
    %265 = vector.shape_cast %264 : vector<1x32x32xf32> to vector<32x32xf32>
    %cst_242 = arith.constant dense<0.000000e+00> : vector<192x32xf32>
    %266 = tpu.matmul %263, %265, %cst_242 {dimension_numbers = #tpu.dot_dimension_numbers<[1], [0], [0], [1], [0, 0, 1, 1], [], []>} : vector<192x32xf32>, vector<32x32xf32>, vector<192x32xf32> -> vector<192x32xf32>
    %267 = arith.addf %262, %266 : vector<192x32xf32>
    %c56_243 = arith.constant 56 : index
    %c0_244 = arith.constant 0 : index
    %268 = vector.load %arg9[%c56_243, %c0_244] : memref<448x32xf32, #tpu.memory_space<vmem>>, vector<192x32xf32>
    %c7_245 = arith.constant 7 : index
    %c0_246 = arith.constant 0 : index
    %c0_247 = arith.constant 0 : index
    %269 = vector.load %arg4[%c7_245, %c0_246, %c0_247] : memref<9x32x32xf32, #tpu.memory_space<vmem>>, vector<1x32x32xf32>
    %270 = vector.shape_cast %269 : vector<1x32x32xf32> to vector<32x32xf32>
    %cst_248 = arith.constant dense<0.000000e+00> : vector<192x32xf32>
    %271 = tpu.matmul %268, %270, %cst_248 {dimension_numbers = #tpu.dot_dimension_numbers<[1], [0], [0], [1], [0, 0, 1, 1], [], []>} : vector<192x32xf32>, vector<32x32xf32>, vector<192x32xf32> -> vector<192x32xf32>
    %272 = arith.addf %267, %271 : vector<192x32xf32>
    %c57_249 = arith.constant 57 : index
    %c0_250 = arith.constant 0 : index
    %273 = vector.load %arg9[%c57_249, %c0_250] : memref<448x32xf32, #tpu.memory_space<vmem>>, vector<192x32xf32>
    %c8_251 = arith.constant 8 : index
    %c0_252 = arith.constant 0 : index
    %c0_253 = arith.constant 0 : index
    %274 = vector.load %arg4[%c8_251, %c0_252, %c0_253] : memref<9x32x32xf32, #tpu.memory_space<vmem>>, vector<1x32x32xf32>
    %275 = vector.shape_cast %274 : vector<1x32x32xf32> to vector<32x32xf32>
    %cst_254 = arith.constant dense<0.000000e+00> : vector<192x32xf32>
    %276 = tpu.matmul %273, %275, %cst_254 {dimension_numbers = #tpu.dot_dimension_numbers<[1], [0], [0], [1], [0, 0, 1, 1], [], []>} : vector<192x32xf32>, vector<32x32xf32>, vector<192x32xf32> -> vector<192x32xf32>
    %277 = arith.addf %272, %276 : vector<192x32xf32>
    %278 = vector.broadcast %1 : vector<1x32xf32> to vector<192x32xf32>
    %279 = arith.addf %277, %278 : vector<192x32xf32>
    %cst_255 = arith.constant 0.000000e+00 : f32
    %280 = vector.broadcast %cst_255 : f32 to vector<192x32xf32>
    %281 = arith.maximumf %279, %280 : vector<192x32xf32>
    %282 = vector.shape_cast %281 : vector<192x32xf32> to vector<8x24x32xf32>
    %283 = vector.extract_strided_slice %282 {offsets = [0, 0, 0], sizes = [8, 16, 32], strides = [1, 1, 1]} : vector<8x24x32xf32> to vector<8x16x32xf32>
    %284 = vector.shape_cast %283 : vector<8x16x32xf32> to vector<128x32xf32>
    %cst_256 = arith.constant dense<0.000000e+00> : vector<128x128xf32>
    %285 = tpu.matmul %284, %4, %cst_256 {dimension_numbers = #tpu.dot_dimension_numbers<[1], [0], [0], [1], [0, 0, 1, 1], [], []>} : vector<128x32xf32>, vector<32x128xf32>, vector<128x128xf32> -> vector<128x128xf32>
    %286 = vector.broadcast %2 : vector<1x128xf32> to vector<128x128xf32>
    %287 = arith.addf %285, %286 : vector<128x128xf32>
    %c1_257 = arith.constant 1 : index
    %c0_258 = arith.constant 0 : index
    %c0_259 = arith.constant 0 : index
    %c0_260 = arith.constant 0 : index
    %288 = vector.load %arg1[%c1_257, %c0_258, %c0_259, %c0_260] : memref<2x16x16x128xf32, #tpu.memory_space<vmem>>, vector<1x8x16x128xf32>
    %289 = vector.shape_cast %288 : vector<1x8x16x128xf32> to vector<8x16x128xf32>
    %290 = vector.shape_cast %289 : vector<8x16x128xf32> to vector<128x128xf32>
    %291 = arith.addf %287, %290 : vector<128x128xf32>
    %cst_261 = arith.constant 0.000000e+00 : f32
    %292 = vector.broadcast %cst_261 : f32 to vector<128x128xf32>
    %293 = arith.maximumf %291, %292 : vector<128x128xf32>
    %294 = vector.shape_cast %293 : vector<128x128xf32> to vector<8x16x128xf32>
    %c1_262 = arith.constant 1 : index
    %c0_263 = arith.constant 0 : index
    %c0_264 = arith.constant 0 : index
    %c0_265 = arith.constant 0 : index
    %295 = vector.load %arg8[%c1_262, %c0_263, %c0_264, %c0_265] : memref<2x16x16x128xf32, #tpu.memory_space<vmem>>, vector<1x8x16x128xf32>
    %296 = vector.shape_cast %295 : vector<1x8x16x128xf32> to vector<8x16x128xf32>
    %297 = vector.shape_cast %294 : vector<8x16x128xf32> to vector<1x8x16x128xf32>
    tpu.vector_store %arg8[%c1_262, %c0_263, %c0_264, %c0_265], %297 {strides = array<i32>} : memref<2x16x16x128xf32, #tpu.memory_space<vmem>>, vector<1x8x16x128xf32>,
    %c199_266 = arith.constant 199 : index
    %c0_267 = arith.constant 0 : index
    %298 = vector.load %arg9[%c199_266, %c0_267] : memref<448x32xf32, #tpu.memory_space<vmem>>, vector<192x32xf32>
    %c0_268 = arith.constant 0 : index
    %c0_269 = arith.constant 0 : index
    %c0_270 = arith.constant 0 : index
    %299 = vector.load %arg4[%c0_268, %c0_269, %c0_270] : memref<9x32x32xf32, #tpu.memory_space<vmem>>, vector<1x32x32xf32>
    %300 = vector.shape_cast %299 : vector<1x32x32xf32> to vector<32x32xf32>
    %cst_271 = arith.constant dense<0.000000e+00> : vector<192x32xf32>
    %301 = tpu.matmul %298, %300, %cst_271 {dimension_numbers = #tpu.dot_dimension_numbers<[1], [0], [0], [1], [0, 0, 1, 1], [], []>} : vector<192x32xf32>, vector<32x32xf32>, vector<192x32xf32> -> vector<192x32xf32>
    %c200_272 = arith.constant 200 : index
    %c0_273 = arith.constant 0 : index
    %302 = vector.load %arg9[%c200_272, %c0_273] : memref<448x32xf32, #tpu.memory_space<vmem>>, vector<192x32xf32>
    %c1_274 = arith.constant 1 : index
    %c0_275 = arith.constant 0 : index
    %c0_276 = arith.constant 0 : index
    %303 = vector.load %arg4[%c1_274, %c0_275, %c0_276] : memref<9x32x32xf32, #tpu.memory_space<vmem>>, vector<1x32x32xf32>
    %304 = vector.shape_cast %303 : vector<1x32x32xf32> to vector<32x32xf32>
    %cst_277 = arith.constant dense<0.000000e+00> : vector<192x32xf32>
    %305 = tpu.matmul %302, %304, %cst_277 {dimension_numbers = #tpu.dot_dimension_numbers<[1], [0], [0], [1], [0, 0, 1, 1], [], []>} : vector<192x32xf32>, vector<32x32xf32>, vector<192x32xf32> -> vector<192x32xf32>
    %306 = arith.addf %301, %305 : vector<192x32xf32>
    %c201_278 = arith.constant 201 : index
    %c0_279 = arith.constant 0 : index
    %307 = vector.load %arg9[%c201_278, %c0_279] : memref<448x32xf32, #tpu.memory_space<vmem>>, vector<192x32xf32>
    %c2_280 = arith.constant 2 : index
    %c0_281 = arith.constant 0 : index
    %c0_282 = arith.constant 0 : index
    %308 = vector.load %arg4[%c2_280, %c0_281, %c0_282] : memref<9x32x32xf32, #tpu.memory_space<vmem>>, vector<1x32x32xf32>
    %309 = vector.shape_cast %308 : vector<1x32x32xf32> to vector<32x32xf32>
    %cst_283 = arith.constant dense<0.000000e+00> : vector<192x32xf32>
    %310 = tpu.matmul %307, %309, %cst_283 {dimension_numbers = #tpu.dot_dimension_numbers<[1], [0], [0], [1], [0, 0, 1, 1], [], []>} : vector<192x32xf32>, vector<32x32xf32>, vector<192x32xf32> -> vector<192x32xf32>
    %311 = arith.addf %306, %310 : vector<192x32xf32>
    %c223_284 = arith.constant 223 : index
    %c0_285 = arith.constant 0 : index
    %312 = vector.load %arg9[%c223_284, %c0_285] : memref<448x32xf32, #tpu.memory_space<vmem>>, vector<192x32xf32>
    %c3_286 = arith.constant 3 : index
    %c0_287 = arith.constant 0 : index
    %c0_288 = arith.constant 0 : index
    %313 = vector.load %arg4[%c3_286, %c0_287, %c0_288] : memref<9x32x32xf32, #tpu.memory_space<vmem>>, vector<1x32x32xf32>
    %314 = vector.shape_cast %313 : vector<1x32x32xf32> to vector<32x32xf32>
    %cst_289 = arith.constant dense<0.000000e+00> : vector<192x32xf32>
    %315 = tpu.matmul %312, %314, %cst_289 {dimension_numbers = #tpu.dot_dimension_numbers<[1], [0], [0], [1], [0, 0, 1, 1], [], []>} : vector<192x32xf32>, vector<32x32xf32>, vector<192x32xf32> -> vector<192x32xf32>
    %316 = arith.addf %311, %315 : vector<192x32xf32>
    %c224_290 = arith.constant 224 : index
    %c0_291 = arith.constant 0 : index
    %317 = vector.load %arg9[%c224_290, %c0_291] : memref<448x32xf32, #tpu.memory_space<vmem>>, vector<192x32xf32>
    %c4_292 = arith.constant 4 : index
    %c0_293 = arith.constant 0 : index
    %c0_294 = arith.constant 0 : index
    %318 = vector.load %arg4[%c4_292, %c0_293, %c0_294] : memref<9x32x32xf32, #tpu.memory_space<vmem>>, vector<1x32x32xf32>
    %319 = vector.shape_cast %318 : vector<1x32x32xf32> to vector<32x32xf32>
    %cst_295 = arith.constant dense<0.000000e+00> : vector<192x32xf32>
    %320 = tpu.matmul %317, %319, %cst_295 {dimension_numbers = #tpu.dot_dimension_numbers<[1], [0], [0], [1], [0, 0, 1, 1], [], []>} : vector<192x32xf32>, vector<32x32xf32>, vector<192x32xf32> -> vector<192x32xf32>
    %321 = arith.addf %316, %320 : vector<192x32xf32>
    %c225_296 = arith.constant 225 : index
    %c0_297 = arith.constant 0 : index
    %322 = vector.load %arg9[%c225_296, %c0_297] : memref<448x32xf32, #tpu.memory_space<vmem>>, vector<192x32xf32>
    %c5_298 = arith.constant 5 : index
    %c0_299 = arith.constant 0 : index
    %c0_300 = arith.constant 0 : index
    %323 = vector.load %arg4[%c5_298, %c0_299, %c0_300] : memref<9x32x32xf32, #tpu.memory_space<vmem>>, vector<1x32x32xf32>
    %324 = vector.shape_cast %323 : vector<1x32x32xf32> to vector<32x32xf32>
    %cst_301 = arith.constant dense<0.000000e+00> : vector<192x32xf32>
    %325 = tpu.matmul %322, %324, %cst_301 {dimension_numbers = #tpu.dot_dimension_numbers<[1], [0], [0], [1], [0, 0, 1, 1], [], []>} : vector<192x32xf32>, vector<32x32xf32>, vector<192x32xf32> -> vector<192x32xf32>
    %326 = arith.addf %321, %325 : vector<192x32xf32>
    %c247_302 = arith.constant 247 : index
    %c0_303 = arith.constant 0 : index
    %327 = vector.load %arg9[%c247_302, %c0_303] : memref<448x32xf32, #tpu.memory_space<vmem>>, vector<192x32xf32>
    %c6_304 = arith.constant 6 : index
    %c0_305 = arith.constant 0 : index
    %c0_306 = arith.constant 0 : index
    %328 = vector.load %arg4[%c6_304, %c0_305, %c0_306] : memref<9x32x32xf32, #tpu.memory_space<vmem>>, vector<1x32x32xf32>
    %329 = vector.shape_cast %328 : vector<1x32x32xf32> to vector<32x32xf32>
    %cst_307 = arith.constant dense<0.000000e+00> : vector<192x32xf32>
    %330 = tpu.matmul %327, %329, %cst_307 {dimension_numbers = #tpu.dot_dimension_numbers<[1], [0], [0], [1], [0, 0, 1, 1], [], []>} : vector<192x32xf32>, vector<32x32xf32>, vector<192x32xf32> -> vector<192x32xf32>
    %331 = arith.addf %326, %330 : vector<192x32xf32>
    %c248_308 = arith.constant 248 : index
    %c0_309 = arith.constant 0 : index
    %332 = vector.load %arg9[%c248_308, %c0_309] : memref<448x32xf32, #tpu.memory_space<vmem>>, vector<192x32xf32>
    %c7_310 = arith.constant 7 : index
    %c0_311 = arith.constant 0 : index
    %c0_312 = arith.constant 0 : index
    %333 = vector.load %arg4[%c7_310, %c0_311, %c0_312] : memref<9x32x32xf32, #tpu.memory_space<vmem>>, vector<1x32x32xf32>
    %334 = vector.shape_cast %333 : vector<1x32x32xf32> to vector<32x32xf32>
    %cst_313 = arith.constant dense<0.000000e+00> : vector<192x32xf32>
    %335 = tpu.matmul %332, %334, %cst_313 {dimension_numbers = #tpu.dot_dimension_numbers<[1], [0], [0], [1], [0, 0, 1, 1], [], []>} : vector<192x32xf32>, vector<32x32xf32>, vector<192x32xf32> -> vector<192x32xf32>
    %336 = arith.addf %331, %335 : vector<192x32xf32>
    %c249_314 = arith.constant 249 : index
    %c0_315 = arith.constant 0 : index
    %337 = vector.load %arg9[%c249_314, %c0_315] : memref<448x32xf32, #tpu.memory_space<vmem>>, vector<192x32xf32>
    %c8_316 = arith.constant 8 : index
    %c0_317 = arith.constant 0 : index
    %c0_318 = arith.constant 0 : index
    %338 = vector.load %arg4[%c8_316, %c0_317, %c0_318] : memref<9x32x32xf32, #tpu.memory_space<vmem>>, vector<1x32x32xf32>
    %339 = vector.shape_cast %338 : vector<1x32x32xf32> to vector<32x32xf32>
    %cst_319 = arith.constant dense<0.000000e+00> : vector<192x32xf32>
    %340 = tpu.matmul %337, %339, %cst_319 {dimension_numbers = #tpu.dot_dimension_numbers<[1], [0], [0], [1], [0, 0, 1, 1], [], []>} : vector<192x32xf32>, vector<32x32xf32>, vector<192x32xf32> -> vector<192x32xf32>
    %341 = arith.addf %336, %340 : vector<192x32xf32>
    %342 = vector.broadcast %1 : vector<1x32xf32> to vector<192x32xf32>
    %343 = arith.addf %341, %342 : vector<192x32xf32>
    %cst_320 = arith.constant 0.000000e+00 : f32
    %344 = vector.broadcast %cst_320 : f32 to vector<192x32xf32>
    %345 = arith.maximumf %343, %344 : vector<192x32xf32>
    %346 = vector.shape_cast %345 : vector<192x32xf32> to vector<8x24x32xf32>
    %347 = vector.extract_strided_slice %346 {offsets = [0, 0, 0], sizes = [8, 16, 32], strides = [1, 1, 1]} : vector<8x24x32xf32> to vector<8x16x32xf32>
    %348 = vector.shape_cast %347 : vector<8x16x32xf32> to vector<128x32xf32>
    %cst_321 = arith.constant dense<0.000000e+00> : vector<128x128xf32>
    %349 = tpu.matmul %348, %4, %cst_321 {dimension_numbers = #tpu.dot_dimension_numbers<[1], [0], [0], [1], [0, 0, 1, 1], [], []>} : vector<128x32xf32>, vector<32x128xf32>, vector<128x128xf32> -> vector<128x128xf32>
    %350 = vector.broadcast %2 : vector<1x128xf32> to vector<128x128xf32>
    %351 = arith.addf %349, %350 : vector<128x128xf32>
    %c1_322 = arith.constant 1 : index
    %c8_323 = arith.constant 8 : index
    %c0_324 = arith.constant 0 : index
    %c0_325 = arith.constant 0 : index
    %352 = vector.load %arg1[%c1_322, %c8_323, %c0_324, %c0_325] : memref<2x16x16x128xf32, #tpu.memory_space<vmem>>, vector<1x8x16x128xf32>
    %353 = vector.shape_cast %352 : vector<1x8x16x128xf32> to vector<8x16x128xf32>
    %354 = vector.shape_cast %353 : vector<8x16x128xf32> to vector<128x128xf32>
    %355 = arith.addf %351, %354 : vector<128x128xf32>
    %cst_326 = arith.constant 0.000000e+00 : f32
    %356 = vector.broadcast %cst_326 : f32 to vector<128x128xf32>
    %357 = arith.maximumf %355, %356 : vector<128x128xf32>
    %358 = vector.shape_cast %357 : vector<128x128xf32> to vector<8x16x128xf32>
    %c1_327 = arith.constant 1 : index
    %c8_328 = arith.constant 8 : index
    %c0_329 = arith.constant 0 : index
    %c0_330 = arith.constant 0 : index
    %359 = vector.load %arg8[%c1_327, %c8_328, %c0_329, %c0_330] : memref<2x16x16x128xf32, #tpu.memory_space<vmem>>, vector<1x8x16x128xf32>
    %360 = vector.shape_cast %359 : vector<1x8x16x128xf32> to vector<8x16x128xf32>
    %361 = vector.shape_cast %358 : vector<8x16x128xf32> to vector<1x8x16x128xf32>
    tpu.vector_store %arg8[%c1_327, %c8_328, %c0_329, %c0_330], %361 {strides = array<i32>} : memref<2x16x16x128xf32, #tpu.memory_space<vmem>>, vector<1x8x16x128xf32>,
    return
  }
  func.func @transform_0(%arg0: i32) -> (i32, i32, i32, i32) {
    %c0_i32 = arith.constant 0 : i32
    %c0_i32_0 = arith.constant 0 : i32
    %c0_i32_1 = arith.constant 0 : i32
    %c0_i32_2 = arith.constant 0 : i32
    return %arg0, %c0_i32, %c0_i32_0, %c0_i32_1 : i32, i32, i32, i32
  }
  func.func @transform_1(%arg0: i32) -> (i32, i32) {
    %c0_i32 = arith.constant 0 : i32
    %c0_i32_0 = arith.constant 0 : i32
    %c0_i32_1 = arith.constant 0 : i32
    return %c0_i32, %c0_i32_0 : i32, i32
  }
  func.func @transform_2(%arg0: i32) -> (i32, i32) {
    %c0_i32 = arith.constant 0 : i32
    %c0_i32_0 = arith.constant 0 : i32
    %c0_i32_1 = arith.constant 0 : i32
    return %c0_i32, %c0_i32_0 : i32, i32
  }
  func.func @transform_3(%arg0: i32) -> (i32, i32, i32) {
    %c0_i32 = arith.constant 0 : i32
    %c0_i32_0 = arith.constant 0 : i32
    %c0_i32_1 = arith.constant 0 : i32
    %c0_i32_2 = arith.constant 0 : i32
    return %c0_i32, %c0_i32_0, %c0_i32_1 : i32, i32, i32
  }
  func.func @transform_4(%arg0: i32) -> (i32, i32) {
    %c0_i32 = arith.constant 0 : i32
    %c0_i32_0 = arith.constant 0 : i32
    %c0_i32_1 = arith.constant 0 : i32
    return %c0_i32, %c0_i32_0 : i32, i32
  }
  func.func @transform_5(%arg0: i32) -> (i32, i32) {
    %c0_i32 = arith.constant 0 : i32
    %c0_i32_0 = arith.constant 0 : i32
    %c0_i32_1 = arith.constant 0 : i32
    return %c0_i32, %c0_i32_0 : i32, i32
  }
  func.func @transform_6(%arg0: i32) -> (i32, i32) {
    %c0_i32 = arith.constant 0 : i32
    %c0_i32_0 = arith.constant 0 : i32
    %c0_i32_1 = arith.constant 0 : i32
    return %c0_i32, %c0_i32_0 : i32, i32
  }
  func.func @transform_7(%arg0: i32) -> (i32, i32, i32, i32) {
    %c0_i32 = arith.constant 0 : i32
    %c0_i32_0 = arith.constant 0 : i32
    %c0_i32_1 = arith.constant 0 : i32
    %c0_i32_2 = arith.constant 0 : i32
    return %arg0, %c0_i32, %c0_i32_0, %c0_i32_1 : i32, i32, i32, i32
  }
}

</mosaic_0001>

<bundles_post_ra>
// kernel: tpu_custom_call.1
= control target key start
LH: loop header
LB: loop body
LE: loop exit
PB: predicated region body
PF: predicated region fallthrough
CT: control target
= control target key end

     0   :  { %12 = vsyncpa [#allocation4], 0  ;;  %s21091_s0 = inlined_call_operand.hbm [shape: f32[4,16,16,128], index: 0, kind: input, shape index: {}]   ;;  %s21092_s1 = inlined_call_operand.vmem [shape: f32[128,32], index: 1, kind: input, shape index: {}]   ;;  %s21093_s2 = inlined_call_operand.vmem [shape: f32[1,32], index: 2, kind: input, shape index: {}]   ;;  %s21094_s3 = inlined_call_operand.hbm [shape: f32[9,32,32], index: 3, kind: input, shape index: {}]   ;;  %s21095_s4 = inlined_call_operand.vmem [shape: f32[1,32], index: 4, kind: input, shape index: {}]   ;;  %s21096_s5 = inlined_call_operand.vmem [shape: f32[32,128], index: 5, kind: input, shape index: {}]   ;;  %s21097_s6 = inlined_call_operand.vmem [shape: f32[1,128], index: 6, kind: input, shape index: {}]   ;;  %s21098_s7 = inlined_call_operand.hbm [shape: f32[4,16,16,128], index: 7, kind: output, shape index: {}]  }
   0x1   :  { %14 = vsyncpa [#allocation4 + $0x1], 0 }
   0x2   :  { %15 = vsyncpa [#allocation7], 0 }
   0x3   :  { %16 = vsyncpa [#allocation5], 0 }
   0x4   :  { %18 = vsyncpa [#allocation5 + $0x1], 0  ;;  %s17740_s24 = smov 0   ;;  %s17742_s25 = smov 0  }
   0x5   :  { %s17744_s26 = smov 0   ;;  %s17746_s27 = smov 0  }
   0x6 LB: > { %s17761_s28 = sadd.s32 4294967295, %s17690_s27   ;;  %s12711_s29 = sadd.s32 4294967294, %s17690_s27   ;;  %s17690_s27 = sphi %s17746_s27, %s21360_s27   ;;  %s17686_s26 = sphi %s17744_s26, %s21359_s26   ;;  %s17682_s25 = sphi %s17742_s25, %s21358_s25   ;;  %s17678_s24 = sphi %s17740_s24, %s21357_s24  }
   0x7   : > { %p44_p0 = scmp.ne.s32.totalorder %s17682_s25, %s17678_s24  ;;  %p21099_p1 = scmp.eq.s32.totalorder %s17761_s28, 0 }
   0x8   : > { %p200_p3 = scmp.eq.s32.totalorder %s12711_s29, 1  ;;  %p12712_p5 = scmp.ge.s32.totalorder %s17690_s27, 1 }
   0x9   : > { %p17770_p4 = por %p21099_p1, %p44_p0  ;;  %p207_p7 = scmp.lt.s32.totalorder %s17690_s27, 3 }
   0xa   : > { %p17775_p6 = por %p200_p3, %p44_p0  ;;  %s17692_s10 = smov [#allocation6]  }
   0xb   : > { %s21198_s30 = scalar_select %p17770_p4, 1, 0 }
   0xc   : > { %s21199_s8 = scalar_select %p17775_p6, 1, 0 }
   0xd   : > { %p17780_p8 = pnand %p12712_p5, %p207_p7  ;;  %s225_s11 = sshll.u32 %s17692_s10, 4  ;;  %s17784_s11 = int_to_ptr.vmem [resolvable:$true] %s225_s11 }
   0xe   : > { %s17796_s13 = sadd.s32 1, %s17690_s27   ;;  %s31_s14 = sadd.s32 1, %s17686_s26 }
   0xf   : > { %s21200_s9 = scalar_select %p17780_p8, 1, 0 }
  0x10   : > { %p17500_p9 = pneg %p17780_p8  ;;  %s28_s15 = ssub.s32 %s17690_s27, %s17796_s13 }
  0x11   : > { %s17562_s18 = scalar_lea.hbm %s21094_s3, 4608 }
  0x12   : > { %p17791_p11 = pnand %p17500_p9, %p21099_p1  ;;  %p17563_p12 = scmp.ne.s32.totalorder %s21094_s3, %s17562_s18 }
  0x13   : > { %p17569_p5 = scmp.lt.u32.totalorder %s17562_s18, %s21094_s3 }
  0x14   : > { %p17564_p13 = pneg %p17791_p11 }
  0x16   : > { %p17565_p0 = pnand %p17564_p13, %p17563_p12 }
  0x18   : > { %p17566_p3 = pneg %p17565_p0 }
  0x1a   : > { %p17571_p7 = pnand %p17569_p5, %p17566_p3 }
  0x1c   : > { %17574 = shalt.err (!%p17571_p7)
}
  0x1d   : > { %s17575_s23 = scalar_lea.vmem %s17784_s11, 4608  ;;  %p17583_p2 = scmp.lt.s32.totalorder %s17784_s11, %s17784_s11 }
  0x1e   : > { %p17576_p9 = scmp.ne.s32.totalorder %s17784_s11, %s17575_s23  ;;  %p17584_p6 = scmp.lt.s32.totalorder %s17575_s23, %s17575_s23 }
  0x20   : > { %p17578_p10 = pnand %p17576_p9, %p17564_p13  ;;  %p17585_p4 = por %p17584_p6, %p17583_p2 }
  0x22   : > { %p17579_p1 = pneg %p17578_p10 }
  0x24   : > { %p17586_p8 = pnand %p17585_p4, %p17579_p1 }
  0x26   : > { %17589 = shalt.err (!%p17586_p8)
}
  0x27   : > { %s21102_s29 = smov 128   ;;  %s17694_s10 = smov 8  }
  0x28   : > { %17503 = dma.hbm_to_vmem [thread:$0]  (!%p17791_p11), %s21094_s3, 4608, %s17784_s11, [#allocation7], %s21102_s29, %s21102_s29, %s17694_s10  }
  0x29   : > { %p29_p1 = scmp.eq.s32.totalorder %s28_s15, 0  ;;  %p38_p2 = scmp.ne.s32.totalorder %s17686_s26, %s17682_s25 }
  0x2a   : > { %p39_p4 = scmp.eq.s32.totalorder %s17690_s27, 0  ;;  %p17513_p6 = scmp.lt.s32.totalorder %s17690_s27, 2 }
  0x2b   : > { %s17830_s18 = scalar_select %p29_p1, %s17686_s26, %s31_s14  }
  0x2c   : > { %p40_p8 = por %p39_p4, %p38_p2  ;;  %p21202_p10 = scmp.eq.s32.totalorder %s17761_s28, 1 }
  0x2d   : > { %s248_s12 = sand.u32 1, %s17686_s26   ;;  %s13789_s20 = sshll.u32 %s17690_s27, 13 }
  0x2e   : > { %p17834_p12 = por %p21202_p10, %p38_p2  ;;  %s12715_s21 = sshll.u32 %s248_s12, 9 }
  0x2f   : > { %s17843_s16 = scalar_lea.hbm %s21091_s0, %s13789_s20  ;;  %s252_s11 = scalar_lea.vmem [#allocation3], %s12715_s21 }
  0x30   : > { %s260_s14 = sshll.u32 %s252_s11, 4  ;;  %p17845_p11 = pnand %p17513_p6, %p40_p8  ;;  %s17849_s14 = int_to_ptr.vmem [resolvable:$true] %s260_s14 }
  0x31   : > { %s17851_s17 = scalar_lea.sflag [#allocation4], %s248_s12  ;;  %s17590_s29 = scalar_lea.hbm %s17843_s16, 8192 }
  0x32   : > { %p17591_p13 = scmp.ne.s32.totalorder %s17843_s16, %s17590_s29  ;;  %p17592_p0 = pneg %p17845_p11 }
  0x33   : > { %s17595_s22 = scalar_lea.hbm %s21091_s0, 16384  ;;  %p17596_p7 = scmp.lt.u32.totalorder %s17843_s16, %s21091_s0 }
  0x34   : > { %p17593_p3 = pnand %p17592_p0, %p17591_p13  ;;  %p17597_p9 = scmp.lt.u32.totalorder %s17595_s22, %s17590_s29 }
  0x35   : > { %p17599_p2 = scmp.lt.u32.totalorder %s17590_s29, %s17843_s16 }
  0x36   : > { %p17594_p5 = pneg %p17593_p3  ;;  %p17598_p1 = por %p17597_p9, %p17596_p7 }
  0x38   : > { %p17600_p4 = por %p17599_p2, %p17598_p1 }
  0x3a   : > { %p17601_p6 = pnand %p17600_p4, %p17594_p5 }
  0x3c   : > { %17604 = shalt.err (!%p17601_p6)
}
  0x3d   : > { %s17605_s12 = scalar_lea.vmem %s17849_s14, 8192  ;;  %s17695_s20 = smov [#allocation3]  }
  0x3e   : > { %p17606_p8 = scmp.ne.s32.totalorder %s17849_s14, %s17605_s12  ;;  %s17610_s21 = sshll.u32 %s17695_s20, 4  ;;  %s17611_s21 = int_to_ptr.vmem [resolvable:$false] %s17610_s21 }
  0x3f   : > { %s17612_s23 = scalar_lea.vmem %s17611_s21, 16384  ;;  %p17613_p3 = scmp.lt.s32.totalorder %s17849_s14, %s17611_s21 }
  0x40   : > { %p17608_p10 = pnand %p17606_p8, %p17592_p0  ;;  %p17614_p7 = scmp.lt.s32.totalorder %s17612_s23, %s17605_s12 }
  0x42   : > { %p17609_p13 = pneg %p17608_p10  ;;  %p17615_p9 = por %p17614_p7, %p17613_p3 }
  0x44   : > { %p17616_p1 = pnand %p17615_p9, %p17609_p13 }
  0x46   : > { %17619 = shalt.err (!%p17616_p1)
}
  0x47   : > { %s21205_s29 = smov 128   ;;  %p21206_p0 = scmp.ne.s32.totalorder %s21200_s9, 0 }
  0x48   : > { %17507 = dma.hbm_to_vmem [thread:$0]  (!%p17845_p11), %s17843_s16, 8192, %s17849_s14, %s17851_s17, %s21205_s29, %s21205_s29, %s17694_s10  }
  0x49   : > { %272 = sbr.rel (%p21206_p0) target bundleno = 3378 (0xd32), region = 48 }
  0x50   : > { %s17885_s22 = sand.u32 1, %s17682_s25   ;;  %p21207_p5 = scmp.ne.s32.totalorder %s21198_s30, 0 }
  0x51   : > { %s12720_s11 = sshll.u32 %s17885_s22, 9  ;;  %s275_s12 = scalar_lea.sflag [#allocation4], %s17885_s22 }
  0x52   : > { %s17891_s15 = scalar_lea.vmem [#allocation3], %s12720_s11 }
  0x53   : > { %17665 = dma.done.wait (%p21207_p5), %s275_s12, 8192  }
  0x54   : > { %17667 = vsyncadd (%p21207_p5), %s275_s12, 4294959104  ;;  %p21208_p11 = scmp.eq.s32.totalorder %s17761_s28, 0 }
  0x56   : > { %17669 = dma.done.wait (%p21208_p11), [#allocation7], 4608   ;;  %p21209_p2 = pmov %p21208_p11 }
  0x57   : > { %v318_v0 = vld [vmem:[%s21092_s1] sm:$0xff]  ;;  %v319_v1 = vld [vmem:[%s21092_s1 + $0x8] sm:$0xff]  ;;  %v320_v2 = vld [vmem:[%s21092_s1 + $0x10] sm:$0xff]  ;;  %vm338_vm0 = vcmask 261120   ;;  %v17696_v43 = vmov 0.0   ;;  %s19143_s17 = scalar_lea.vmem [#allocation8], %s12720_s11 }
  0x58   : > { %17671 = vsyncadd (%p21209_p2), [#allocation7], 4294962688  ;;  %v17910_v3 = vpack.c.bf16 %v319_v1, %v318_v0  ;;  %v321_v4 = vld [vmem:[%s21092_s1 + $0x18] sm:$0xff]  ;;  %v322_v6 = vld [vmem:[%s21092_s1 + $0x20] sm:$0xff]  ;;  %340 = vst.msk [vmem:[#allocation2 + $0x8] sm:$0xff] %vm338_vm0, %v17696_v43  ;;  %s13791_s21 = sshll.u32 %s17761_s28, 13 }
  0x59   : > { %v17915_v5 = vpack.c.bf16 %v321_v4, %v320_v2  ;;  %v323_v7 = vld [vmem:[%s21092_s1 + $0x28] sm:$0xff]  ;;  %v363_v9 = vld [vmem:[%s17891_s15] sm:$0xff]  ;;  %v324_v10 = vld [vmem:[%s21092_s1 + $0x30] sm:$0xff]  ;;  %339 = vst.msk [vmem:[#allocation2] sm:$0xff] %vm338_vm0, %v17696_v43  ;;  %s12628_s23 = sshll.u32 %s19143_s17, 4  ;;  %s21043_s9 = scalar_lea.hbm %s21098_s7, %s13791_s21  ;;  %s21045_s23 = int_to_ptr.vmem [resolvable:$true] %s12628_s23 }
  0x5a   : > { %21210 = vst [vmem:[#allocation12_spill] sm:$0xff] %v17910_v3  ;;  %16849 = vmatprep.subr.bf16.mxu0 %v17910_v3  ;;  %v17926_v8 = vpack.c.bf16 %v323_v7, %v322_v6  ;;  %v325_v11 = vld [vmem:[%s21092_s1 + $0x38] sm:$0xff]  ;;  %15008 = vmatprep.mubr.f32.mxu0 %v363_v9  ;;  %v326_v13 = vld [vmem:[%s21092_s1 + $0x40] sm:$0xff]  ;;  %v327_v14 = vld [vmem:[%s21092_s1 + $0x48] sm:$0xff]  ;;  %s17620_s10 = scalar_lea.vmem %s21045_s23, 8192  ;;  %s17697_s28 = smov [#allocation8]  }
  0x5b   : > { %21211 = vst [vmem:[#allocation13_spill] sm:$0xff] %v17915_v5  ;;  %16851 = vmatpush3.bf16.msra.mxu0 %v17910_v3  ;;  %v17937_v12 = vpack.c.bf16 %v325_v11, %v324_v10  ;;  %v17947_v15 = vpack.c.bf16 %v327_v14, %v326_v13  ;;  %v328_v16 = vld [vmem:[%s21092_s1 + $0x50] sm:$0xff]  ;;  %v329_v17 = vld [vmem:[%s21092_s1 + $0x58] sm:$0xff]  ;;  %v330_v19 = vld [vmem:[%s21092_s1 + $0x60] sm:$0xff]  ;;  %p17621_p4 = scmp.ne.s32.totalorder %s21045_s23, %s17620_s10  ;;  %s17624_s16 = sshll.u32 %s17697_s28, 4  ;;  %s17625_s16 = int_to_ptr.vmem [resolvable:$false] %s17624_s16 }
  0x5c   : > { %16853 = vmatprep.subr.bf16.mxu0 %v17915_v5  ;;  %21212 = vst [vmem:[#allocation14_spill] sm:$0xff] %v17926_v8  ;;  %v17957_v18 = vpack.c.bf16 %v329_v17, %v328_v16  ;;  %v331_v20 = vld [vmem:[%s21092_s1 + $0x68] sm:$0xff]  ;;  %v332_v22 = vld [vmem:[%s21092_s1 + $0x70] sm:$0xff]  ;;  %v333_v23 = vld [vmem:[%s21092_s1 + $0x78] sm:$0xff]  ;;  %s17626_s14 = scalar_lea.vmem %s17625_s16, 16384  ;;  %p17627_p10 = scmp.lt.s32.totalorder %s21045_s23, %s17625_s16 }
  0x5d   : > { %21213 = vst [vmem:[#allocation15_spill] sm:$0xff] %v17937_v12  ;;  %21214 = vst [vmem:[#allocation16_spill] sm:$0xff] %v17947_v15  ;;  %v17967_v21 = vpack.c.bf16 %v331_v20, %v330_v19  ;;  %v17977_v24 = vpack.c.bf16 %v333_v23, %v332_v22  ;;  %v364_v25 = vld [vmem:[%s17891_s15 + $0x8] sm:$0xff]  ;;  %v365_v26 = vld [vmem:[%s17891_s15 + $0x10] sm:$0xff]  ;;  %p17622_p6 = pnand %p17621_p4, %p17834_p12  ;;  %p17628_p13 = scmp.lt.s32.totalorder %s17626_s14, %s17620_s10 }
  0x5e   : > { %21215 = vst [vmem:[#allocation17_spill] sm:$0xff] %v17957_v18  ;;  %v366_v27 = vld [vmem:[%s17891_s15 + $0x18] sm:$0xff]  ;;  %v367_v28 = vld [vmem:[%s17891_s15 + $0x20] sm:$0xff]  ;;  %v368_v29 = vld [vmem:[%s17891_s15 + $0x28] sm:$0xff] }
  0x5f   : > { %16855 = vmatpush3.bf16.msra.mxu0 %v17915_v5  ;;  %21216 = vst [vmem:[#allocation18_spill] sm:$0xff] %v17967_v21  ;;  %21217 = vst [vmem:[#allocation19_spill] sm:$0xff] %v17977_v24  ;;  %v369_v30 = vld [vmem:[%s17891_s15 + $0x30] sm:$0xff]  ;;  %v370_v31 = vld [vmem:[%s17891_s15 + $0x38] sm:$0xff]  ;;  %p17623_p8 = pneg %p17622_p6  ;;  %p17629_p3 = por %p17628_p13, %p17627_p10 }
  0x60   : > { %16857 = vmatprep.subr.bf16.mxu0 %v17926_v8  ;;  %v371_v32 = vld [vmem:[%s17891_s15 + $0x40] sm:$0xff]  ;;  %v372_v33 = vld [vmem:[%s17891_s15 + $0x48] sm:$0xff]  ;;  %v373_v34 = vld [vmem:[%s17891_s15 + $0x50] sm:$0xff]  ;;  %341 = vst.msk [vmem:[#allocation2 + $0x10] sm:$0xff] %vm338_vm0, %v17696_v43 }
  0x61   : > { %v374_v35 = vld [vmem:[%s17891_s15 + $0x58] sm:$0xff]  ;;  %v375_v36 = vld [vmem:[%s17891_s15 + $0x60] sm:$0xff]  ;;  %v376_v37 = vld [vmem:[%s17891_s15 + $0x68] sm:$0xff]  ;;  %342 = vst.msk [vmem:[#allocation2 + $0x18] sm:$0xff] %vm338_vm0, %v17696_v43  ;;  %p17630_p7 = pnand %p17629_p3, %p17623_p8 }
  0x62   : > { %v377_v38 = vld [vmem:[%s17891_s15 + $0x70] sm:$0xff]  ;;  %v378_v39 = vld [vmem:[%s17891_s15 + $0x78] sm:$0xff]  ;;  %v743_v40 = vld [vmem:[#allocation6 + $0x20] sm:$0xff]  ;;  %343 = vst.msk [vmem:[#allocation2 + $0x1a0] sm:$0xff] %vm338_vm0, %v17696_v43 }
  0x63   : > { %16859 = vmatpush3.bf16.msra.mxu0 %v17926_v8  ;;  %v744_v41 = vld [vmem:[#allocation6 + $0x28] sm:$0xff]  ;;  %344 = vst.msk [vmem:[#allocation2 + $0x1a8] sm:$0xff] %vm338_vm0, %v17696_v43  ;;  %345 = vst.msk [vmem:[#allocation2 + $0x1b0] sm:$0xff] %vm338_vm0, %v17696_v43  ;;  %v745_v44 = vld [vmem:[#allocation6 + $0x30] sm:$0xff] }
  0x64   : > { %16861 = vmatprep.subr.bf16.mxu0 %v17937_v12  ;;  %v16880_v42 = vpack.c.bf16 %v744_v41, %v743_v40  ;;  %346 = vst.msk [vmem:[#allocation2 + $0x1b8] sm:$0xff] %vm338_vm0, %v17696_v43  ;;  %347 = vst.msk [vmem:[#allocation2 + $0x30] sm:$0xff] %vm338_vm0, %v17696_v43  ;;  %v746_v45 = vld [vmem:[#allocation6 + $0x38] sm:$0xff]  ;;  %v718_v47 = vld [vmem:[#allocation2 + $0x8] sm:$0xff] }
  0x65   : > { %348 = vst.msk [vmem:[#allocation2 + $0x48] sm:$0xff] %vm338_vm0, %v17696_v43  ;;  %349 = vst.msk [vmem:[#allocation2 + $0x60] sm:$0xff] %vm338_vm0, %v17696_v43  ;;  %v16884_v46 = vpack.c.bf16 %v746_v45, %v745_v44  ;;  %15064 = vmatprep.mubr.msk.f32.mxu1 %vm338_vm0, %v718_v47  ;;  %v714_v49 = vld [vmem:[#allocation6] sm:$0xff]  ;;  %v715_v50 = vld [vmem:[#allocation6 + $0x8] sm:$0xff] }
  0x66   : > { %350 = vst.msk [vmem:[#allocation2 + $0x78] sm:$0xff] %vm338_vm0, %v17696_v43  ;;  %351 = vst.msk [vmem:[#allocation2 + $0x90] sm:$0xff] %vm338_vm0, %v17696_v43  ;;  %16881 = vmatprep.subr.bf16.mxu1 %v16880_v42  ;;  %v16888_v51 = vpack.c.bf16 %v715_v50, %v714_v49  ;;  %v716_v53 = vld [vmem:[#allocation6 + $0x10] sm:$0xff]  ;;  %v717_v54 = vld [vmem:[#allocation6 + $0x18] sm:$0xff] }
  0x67   : > { %16863 = vmatpush3.bf16.msra.mxu0 %v17937_v12  ;;  %352 = vst.msk [vmem:[#allocation2 + $0xa8] sm:$0xff] %vm338_vm0, %v17696_v43  ;;  %353 = vst.msk [vmem:[#allocation2 + $0xc0] sm:$0xff] %vm338_vm0, %v17696_v43  ;;  %16883 = vmatpush3.bf16.msra.mxu1 %v16880_v42  ;;  %v719_v48 = vld [vmem:[#allocation2 + $0x10] sm:$0xff]  ;;  %v16892_v55 = vpack.c.bf16 %v717_v54, %v716_v53  ;;  %v1270_v56 = vld [vmem:[#allocation6 + $0x40] sm:$0xff] }
  0x68   : > { %16865 = vmatprep.subr.bf16.mxu0 %v17947_v15  ;;  %354 = vst.msk [vmem:[#allocation2 + $0xd8] sm:$0xff] %vm338_vm0, %v17696_v43  ;;  %355 = vst.msk [vmem:[#allocation2 + $0xf0] sm:$0xff] %vm338_vm0, %v17696_v43  ;;  %16885 = vmatprep.subr.bf16.mxu1 %v16884_v46  ;;  %v720_v52 = vld [vmem:[#allocation2 + $0x18] sm:$0xff]  ;;  %v1271_v57 = vld [vmem:[#allocation6 + $0x48] sm:$0xff] }
  0x69   : > { %356 = vst.msk [vmem:[#allocation2 + $0x108] sm:$0xff] %vm338_vm0, %v17696_v43  ;;  %357 = vst.msk [vmem:[#allocation2 + $0x120] sm:$0xff] %vm338_vm0, %v17696_v43  ;;  %v18024_v58 = vpack.c.bf16 %v1271_v57, %v1270_v56  ;;  %v379_v59 = vld [vmem:[%s17891_s15 + $0x80] sm:$0xff]  ;;  %v380_v60 = vld [vmem:[%s17891_s15 + $0x88] sm:$0xff] }
  0x6a   : > { %358 = vst.msk [vmem:[#allocation2 + $0x138] sm:$0xff] %vm338_vm0, %v17696_v43  ;;  %359 = vst.msk [vmem:[#allocation2 + $0x150] sm:$0xff] %vm338_vm0, %v17696_v43  ;;  %v18032_v61 = vld [vmem:[%s21093_s2] ss:$0 sm:$0xff] }
  0x6b   : > { %16867 = vmatpush3.bf16.msra.mxu0 %v17947_v15  ;;  %360 = vst.msk [vmem:[#allocation2 + $0x168] sm:$0xff] %vm338_vm0, %v17696_v43  ;;  %361 = vst.msk [vmem:[#allocation2 + $0x180] sm:$0xff] %vm338_vm0, %v17696_v43  ;;  %16887 = vmatpush3.bf16.msra.mxu1 %v16884_v46 }
  0x6c   : > { %16869 = vmatprep.subr.bf16.mxu0 %v17957_v18  ;;  %362 = vst.msk [vmem:[#allocation2 + $0x198] sm:$0xff] %vm338_vm0, %v17696_v43  ;;  %16889 = vmatprep.subr.bf16.mxu1 %v16888_v51  ;;  %v18068_v40 = vld [vmem:[#allocation2 + $0x48] sm:$0xff]  ;;  %v18092_v54 = vld [vmem:[#allocation2 + $0x60] sm:$0xff] }
  0x6e   : > { %15065 = vmatmul.mubr.msk.f32.vlgmr.msra.gmra.mrb[0].mxu1 %vm338_vm0, %v719_v48 }
  0x6f   : > { %16871 = vmatpush3.bf16.msra.mxu0 %v17957_v18  ;;  %15067 = vmatprep.mubr.msk.f32.mxu1 %vm338_vm0, %v720_v52 }
  0x70   : > { %16873 = vmatprep.subr.bf16.mxu0 %v17967_v21  ;;  %16891 = vmatpush3.bf16.msra.mxu1 %v16888_v51 }
  0x71   : > { %16893 = vmatprep.subr.bf16.mxu1 %v16892_v55 }
  0x73   : > { %16875 = vmatpush3.bf16.msra.mxu0 %v17967_v21 }
  0x74   : > { %16877 = vmatprep.subr.bf16.mxu0 %v17977_v24  ;;  %16895 = vmatpush3.bf16.msra.mxu1 %v16892_v55 }
  0x75   : > { %16897 = vmatprep.subr.bf16.mxu1 %v18024_v58 }
  0x77   : > { %16879 = vmatpush3.bf16.msra.mxu0 %v17977_v24 }
  0x7a   : > { %15009 = vmatmul.mubr.f32.vlgmr.msra.gmra.mrb[0].mxu0 %v364_v25 }
  0x7b   : > { %15011 = vmatprep.mubr.f32.mxu0 %v365_v26 }
  0x7e   : > { %15012 = vmatmul.mubr.f32.gmra.mrb[2].mxu0 %v366_v27 }
  0x7f   : > { %15014 = vmatprep.mubr.f32.mxu0 %v367_v28 }
  0x82   : > { %15015 = vmatmul.mubr.f32.gmra.mrb[4].mxu0 %v368_v29 }
  0x83   : > { %15017 = vmatprep.mubr.f32.mxu0 %v369_v30 }
  0x86   : > { %15018 = vmatmul.mubr.f32.gmra.mrb[6].mxu0 %v370_v31  ;;  %v18056_v31 = vld [vmem:[#allocation2 + $0x30] sm:$0xff] }
  0x87   : > { %15020 = vmatprep.mubr.f32.mxu0 %v371_v32 }
  0x8a   : > { %15021 = vmatmul.mubr.f32.gmra.mrb[8].mxu0 %v372_v33 }
  0x8b   : > { %15023 = vmatprep.mubr.f32.mxu0 %v373_v34 }
  0x8e   : > { %15024 = vmatmul.mubr.f32.gmra.mrb[10].mxu0 %v374_v35 }
  0x8f   : > { %15026 = vmatprep.mubr.f32.mxu0 %v375_v36 }
  0x92   : > { %15027 = vmatmul.mubr.f32.gmra.mrb[12].mxu0 %v376_v37 }
  0x93   : > { %15029 = vmatprep.mubr.f32.mxu0 %v377_v38 }
  0x96   : > { %15030 = vmatmul.mubr.f32.gmra.mrb[14].mxu0 %v378_v39 }
  0x97   : > { %15032 = vmatprep.mubr.f32.mxu0 %v379_v59 }
  0x9a   : > { %15033 = vmatmul.mubr.f32.gmra.mrb[16].mxu0 %v380_v60 }
 0x14d   : > { %v15010_v62 = vpop.f32.mrb[0].mxu0 }
 0x14e   : > { %v473_v63 = vadd.f32 %v15010_v62, %v18032_v61  ;;  %v467_v0 = vpop.f32.mrb[1].mxu0 }
 0x14f   : > { %v468_v1 = vadd.f32 %v18032_v61, %v467_v0 }
 0x150   : > { %v627_v2 = vmax.f32 %v473_v63, 0.0 }
 0x151   : > { %v626_v4 = vmax.f32 %v468_v1, 0.0  ;;  %v15013_v6 = vpop.f32.mrb[2].mxu0  ;;  %v18104_v1 = vld [vmem:[#allocation2 + $0x78] sm:$0xff] }
 0x152   : > { %659 = vst.msk [vmem:[#allocation2 + $0x28] sm:$0xff] %vm338_vm0, %v627_v2  ;;  %v483_v7 = vadd.f32 %v15013_v6, %v18032_v61  ;;  %v477_v9 = vpop.f32.mrb[3].mxu0 }
 0x153   : > { %658 = vst.msk [vmem:[#allocation2 + $0x20] sm:$0xff] %vm338_vm0, %v626_v4  ;;  %v478_v10 = vadd.f32 %v18032_v61, %v477_v9  ;;  %v18122_v9 = vld [vmem:[#allocation2 + $0x90] sm:$0xff] }
 0x154   : > { %v629_v11 = vmax.f32 %v483_v7, 0.0 }
 0x155   : > { %v628_v13 = vmax.f32 %v478_v10, 0.0  ;;  %v15016_v14 = vpop.f32.mrb[4].mxu0 }
 0x156   : > { %661 = vst.msk [vmem:[#allocation2 + $0x40] sm:$0xff] %vm338_vm0, %v629_v11  ;;  %v493_v16 = vadd.f32 %v15016_v14, %v18032_v61  ;;  %v487_v17 = vpop.f32.mrb[5].mxu0  ;;  %v18130_v11 = vld [vmem:[#allocation2 + $0xa8] sm:$0xff] }
 0x157   : > { %660 = vst.msk [vmem:[#allocation2 + $0x38] sm:$0xff] %vm338_vm0, %v628_v13  ;;  %v488_v19 = vadd.f32 %v18032_v61, %v487_v17  ;;  %v18146_v17 = vld [vmem:[#allocation2 + $0xc0] sm:$0xff] }
 0x158   : > { %v631_v20 = vmax.f32 %v493_v16, 0.0 }
 0x159   : > { %v630_v22 = vmax.f32 %v488_v19, 0.0  ;;  %v15019_v23 = vpop.f32.mrb[6].mxu0  ;;  %v18051_v28 = vld [vmem:[#allocation2 + $0x28] sm:$0xff] }
 0x15a   : > { %663 = vst.msk [vmem:[#allocation2 + $0x58] sm:$0xff] %vm338_vm0, %v631_v20  ;;  %v18045_v25 = vld [vmem:[#allocation2 + $0x20] sm:$0xff]  ;;  %v503_v26 = vadd.f32 %v15019_v23, %v18032_v61  ;;  %v497_v27 = vpop.f32.mrb[7].mxu0  ;;  %v1272_v20 = vld [vmem:[#allocation6 + $0x50] sm:$0xff] }
 0x15b   : > { %662 = vst.msk [vmem:[#allocation2 + $0x50] sm:$0xff] %vm338_vm0, %v630_v22  ;;  %15068 = vmatmul.mubr.msk.f32.gmra.mrb[2].mxu1 %vm338_vm0, %v18045_v25  ;;  %v498_v29 = vadd.f32 %v18032_v61, %v497_v27  ;;  %v690_v19 = vld [vmem:[#allocation2 + $0x7] sm:$0xff]  ;;  %v1273_v22 = vld [vmem:[#allocation6 + $0x58] sm:$0xff]  ;;  %v691_v23 = vld [vmem:[#allocation2 + $0xf] sm:$0xff] }
 0x15c   : > { %15070 = vmatprep.mubr.msk.f32.mxu1 %vm338_vm0, %v18051_v28  ;;  %v633_v30 = vmax.f32 %v503_v26, 0.0  ;;  %v692_v26 = vld [vmem:[#allocation2 + $0x17] sm:$0xff]  ;;  %v16900_v27 = vpack.c.bf16 %v1273_v22, %v1272_v20 }
 0x15d   : > { %v632_v32 = vmax.f32 %v498_v29, 0.0  ;;  %v15022_v33 = vpop.f32.mrb[8].mxu0  ;;  %v18070_v42 = vld [vmem:[#allocation2 + $0x40] sm:$0xff]  ;;  %v1246_v20 = vld [vmem:[#allocation2 + $0x11] sm:$0xff] }
 0x15e   : > { %665 = vst.msk [vmem:[#allocation2 + $0x70] sm:$0xff] %vm338_vm0, %v633_v30  ;;  %v18059_v34 = vld [vmem:[#allocation2 + $0x38] sm:$0xff]  ;;  %v513_v35 = vadd.f32 %v15022_v33, %v18032_v61  ;;  %v507_v36 = vpop.f32.mrb[9].mxu0  ;;  %v1564_v29 = vld [vmem:[#allocation6 + $0x60] sm:$0xff]  ;;  %v1565_v30 = vld [vmem:[#allocation6 + $0x68] sm:$0xff] }
 0x15f   : > { %15071 = vmatmul.mubr.msk.f32.gmra.mrb[4].mxu1 %vm338_vm0, %v18056_v31  ;;  %664 = vst.msk [vmem:[#allocation2 + $0x68] sm:$0xff] %vm338_vm0, %v632_v32  ;;  %v508_v37 = vadd.f32 %v18032_v61, %v507_v36  ;;  %v16904_v32 = vpack.c.bf16 %v1565_v30, %v1564_v29  ;;  %v18154_v33 = vld [vmem:[#allocation2 + $0x1f] sm:$0xff]  ;;  %v18162_v36 = vld [vmem:[#allocation2 + $0x2f] sm:$0xff] }
 0x160   : > { %15073 = vmatprep.mubr.msk.f32.mxu1 %vm338_vm0, %v18059_v34  ;;  %v635_v38 = vmax.f32 %v513_v35, 0.0  ;;  %v18158_v35 = vld [vmem:[#allocation2 + $0x27] sm:$0xff] }
 0x161   : > { %v634_v39 = vmax.f32 %v508_v37, 0.0  ;;  %v15025_v41 = vpop.f32.mrb[10].mxu0  ;;  %v18086_v52 = vld [vmem:[#allocation2 + $0x58] sm:$0xff]  ;;  %v18243_v30 = vld [vmem:[#allocation2 + $0x21] sm:$0xff] }
 0x162   : > { %667 = vst.msk [vmem:[#allocation2 + $0x88] sm:$0xff] %vm338_vm0, %v635_v38  ;;  %v523_v43 = vadd.f32 %v15025_v41, %v18032_v61  ;;  %v517_v44 = vpop.f32.mrb[11].mxu0  ;;  %v18080_v46 = vld [vmem:[#allocation2 + $0x50] sm:$0xff]  ;;  %v18170_v37 = vld [vmem:[#allocation2 + $0x3f] sm:$0xff]  ;;  %v18174_v38 = vld [vmem:[#allocation2 + $0x47] sm:$0xff] }
 0x163   : > { %15074 = vmatmul.mubr.msk.f32.gmra.mrb[6].mxu1 %vm338_vm0, %v18070_v42  ;;  %666 = vst.msk [vmem:[#allocation2 + $0x80] sm:$0xff] %vm338_vm0, %v634_v39  ;;  %v518_v45 = vadd.f32 %v18032_v61, %v517_v44  ;;  %v18178_v39 = vld [vmem:[#allocation2 + $0x4f] sm:$0xff]  ;;  %v18182_v41 = vld [vmem:[#allocation2 + $0x57] sm:$0xff] }
 0x164   : > { %15076 = vmatprep.mubr.msk.f32.mxu1 %vm338_vm0, %v18068_v40  ;;  %v637_v47 = vmax.f32 %v523_v43, 0.0  ;;  %v18186_v43 = vld [vmem:[#allocation2 + $0x5f] sm:$0xff] }
 0x165   : > { %v636_v48 = vmax.f32 %v518_v45, 0.0  ;;  %v15028_v49 = vpop.f32.mrb[12].mxu0  ;;  %v18106_v4 = vld [vmem:[#allocation2 + $0x70] sm:$0xff] }
 0x166   : > { %669 = vst.msk [vmem:[#allocation2 + $0xa0] sm:$0xff] %vm338_vm0, %v637_v47  ;;  %v533_v50 = vadd.f32 %v15028_v49, %v18032_v61  ;;  %v527_v51 = vpop.f32.mrb[13].mxu0  ;;  %v18094_v56 = vld [vmem:[#allocation2 + $0x68] sm:$0xff]  ;;  %v18198_v47 = vld [vmem:[#allocation2 + $0x77] sm:$0xff] }
 0x167   : > { %15077 = vmatmul.mubr.msk.f32.gmra.mrb[8].mxu1 %vm338_vm0, %v18080_v46  ;;  %668 = vst.msk [vmem:[#allocation2 + $0x98] sm:$0xff] %vm338_vm0, %v636_v48  ;;  %v528_v53 = vadd.f32 %v18032_v61, %v527_v51  ;;  %v18190_v44 = vld [vmem:[#allocation2 + $0x67] sm:$0xff]  ;;  %v18194_v45 = vld [vmem:[#allocation2 + $0x6f] sm:$0xff]  ;;  %v382_v49 = vld [vmem:[%s17891_s15 + $0x98] sm:$0xff] }
 0x168   : > { %15079 = vmatprep.mubr.msk.f32.mxu1 %vm338_vm0, %v18086_v52  ;;  %v639_v55 = vmax.f32 %v533_v50, 0.0  ;;  %v381_v48 = vld [vmem:[%s17891_s15 + $0x90] sm:$0xff] }
 0x169   : > { %v638_v57 = vmax.f32 %v528_v53, 0.0  ;;  %v15031_v59 = vpop.f32.mrb[14].mxu0  ;;  %v18118_v7 = vld [vmem:[#allocation2 + $0x88] sm:$0xff]  ;;  %15035 = vmatprep.mubr.f32.mxu0 %v381_v48 }
 0x16a   : > { %671 = vst.msk [vmem:[#allocation2 + $0xb8] sm:$0xff] %vm338_vm0, %v639_v55  ;;  %v543_v60 = vadd.f32 %v15031_v59, %v18032_v61  ;;  %v537_v62 = vpop.f32.mrb[15].mxu0  ;;  %v18114_v6 = vld [vmem:[#allocation2 + $0x80] sm:$0xff]  ;;  %15036 = vmatmul.mubr.f32.gmra.mrb[18].mxu0 %v382_v49  ;;  %v18212_v53 = vld [vmem:[#allocation2 + $0x8f] sm:$0xff] }
 0x16b   : > { %15080 = vmatmul.mubr.msk.f32.gmra.mrb[10].mxu1 %vm338_vm0, %v18092_v54  ;;  %670 = vst.msk [vmem:[#allocation2 + $0xb0] sm:$0xff] %vm338_vm0, %v638_v57  ;;  %v538_v63 = vadd.f32 %v18032_v61, %v537_v62  ;;  %v18204_v50 = vld [vmem:[#allocation2 + $0x7f] sm:$0xff]  ;;  %v18208_v51 = vld [vmem:[#allocation2 + $0x87] sm:$0xff]  ;;  %v18251_v49 = vld [vmem:[#allocation2 + $0x31] sm:$0xff] }
 0x16c   : > { %15082 = vmatprep.mubr.msk.f32.mxu1 %vm338_vm0, %v18094_v56  ;;  %v641_v0 = vmax.f32 %v543_v60, 0.0  ;;  %v18247_v48 = vld [vmem:[#allocation2 + $0x29] sm:$0xff]  ;;  %v18291_v24 = vld [vmem:[#allocation2 + $0x81] sm:$0xff] }
 0x16d   : > { %v640_v2 = vmax.f32 %v538_v63, 0.0  ;;  %v18132_v13 = vld [vmem:[#allocation2 + $0xa0] sm:$0xff]  ;;  %v1245_v63 = vld [vmem:[#allocation2 + $0x9] sm:$0xff]  ;;  %21224 = vst [vmem:[#allocation26_spill] sm:$0xff] %v18291_v24 }
 0x16e   : > { %673 = vst.msk [vmem:[#allocation2 + $0xd0] sm:$0xff] %vm338_vm0, %v641_v0  ;;  %v18124_v10 = vld [vmem:[#allocation2 + $0x98] sm:$0xff]  ;;  %v18224_v59 = vld [vmem:[#allocation2 + $0xa7] sm:$0xff] }
 0x16f   : > { %15083 = vmatmul.mubr.msk.f32.gmra.mrb[12].mxu1 %vm338_vm0, %v18106_v4  ;;  %672 = vst.msk [vmem:[#allocation2 + $0xc8] sm:$0xff] %vm338_vm0, %v640_v2  ;;  %v18216_v55 = vld [vmem:[#allocation2 + $0x97] sm:$0xff]  ;;  %v18220_v57 = vld [vmem:[#allocation2 + $0x9f] sm:$0xff]  ;;  %v18295_v21 = vld [vmem:[#allocation2 + $0x89] sm:$0xff] }
 0x170   : > { %15085 = vmatprep.mubr.msk.f32.mxu1 %vm338_vm0, %v18104_v1  ;;  %v1566_v2 = vld [vmem:[#allocation6 + $0x70] sm:$0xff]  ;;  %21225 = vst [vmem:[#allocation27_spill] sm:$0xff] %v18295_v21  ;;  %v18303_v15 = vld [vmem:[#allocation2 + $0x99] sm:$0xff]  ;;  %v18307_v12 = vld [vmem:[#allocation2 + $0xa1] sm:$0xff] }
 0x171   : > { %v18142_v16 = vld [vmem:[#allocation2 + $0xb8] sm:$0xff]  ;;  %21227 = vst [vmem:[#allocation29_spill] sm:$0xff] %v18303_v15  ;;  %21228 = vst [vmem:[#allocation30_spill] sm:$0xff] %v18307_v12 }
 0x172   : > { %v18138_v14 = vld [vmem:[#allocation2 + $0xb0] sm:$0xff]  ;;  %v18236_v0 = vld [vmem:[#allocation2 + $0xbf] sm:$0xff] }
 0x173   : > { %15086 = vmatmul.mubr.msk.f32.gmra.mrb[14].mxu1 %vm338_vm0, %v18114_v6  ;;  %v18228_v60 = vld [vmem:[#allocation2 + $0xaf] sm:$0xff]  ;;  %v18232_v62 = vld [vmem:[#allocation2 + $0xb7] sm:$0xff] }
 0x174   : > { %15088 = vmatprep.mubr.msk.f32.mxu1 %vm338_vm0, %v18118_v7  ;;  %v18299_v18 = vld [vmem:[#allocation2 + $0x91] sm:$0xff]  ;;  %v18311_v8 = vld [vmem:[#allocation2 + $0xa9] sm:$0xff]  ;;  %v18319_v3 = vld [vmem:[#allocation2 + $0xb9] sm:$0xff] }
 0x175   : > { %21226 = vst [vmem:[#allocation28_spill] sm:$0xff] %v18299_v18  ;;  %21229 = vst [vmem:[#allocation31_spill] sm:$0xff] %v18311_v8  ;;  %v18315_v5 = vld [vmem:[#allocation2 + $0xb1] sm:$0xff] }
 0x176   : > { %21230 = vst [vmem:[#allocation32_spill] sm:$0xff] %v18315_v5  ;;  %21231 = vst [vmem:[#allocation33_spill] sm:$0xff] %v18319_v3 }
 0x177   : > { %15089 = vmatmul.mubr.msk.f32.gmra.mrb[16].mxu1 %vm338_vm0, %v18122_v9 }
 0x178   : > { %15091 = vmatprep.mubr.msk.f32.mxu1 %vm338_vm0, %v18124_v10 }
 0x17b   : > { %15092 = vmatmul.mubr.msk.f32.gmra.mrb[18].mxu1 %vm338_vm0, %v18132_v13 }
 0x17c   : > { %15094 = vmatprep.mubr.msk.f32.mxu1 %vm338_vm0, %v18130_v11 }
 0x17f   : > { %15095 = vmatmul.mubr.msk.f32.gmra.mrb[20].mxu1 %vm338_vm0, %v18138_v14 }
 0x180   : > { %15097 = vmatprep.mubr.msk.f32.mxu1 %vm338_vm0, %v18142_v16 }
 0x183   : > { %15098 = vmatmul.mubr.msk.f32.gmra.mrb[22].mxu1 %vm338_vm0, %v18146_v17 }
 0x184   : > { %15108 = vmatprep.mubr.msk.f32.mxu1 %vm338_vm0, %v690_v19  ;;  %v1567_v19 = vld [vmem:[#allocation6 + $0x78] sm:$0xff] }
 0x185   : > { %v16908_v22 = vpack.c.bf16 %v1567_v19, %v1566_v2  ;;  %v18263_v2 = vld [vmem:[#allocation2 + $0x49] sm:$0xff]  ;;  %v18267_v19 = vld [vmem:[#allocation2 + $0x51] sm:$0xff] }
 0x186   : > { %21218 = vst [vmem:[#allocation20_spill] sm:$0xff] %v18267_v19 }
 0x187   : > { %15109 = vmatmul.mubr.msk.f32.vlgmr.msra.gmra.mrb[0].mxu1 %vm338_vm0, %v691_v23  ;;  %v1858_v23 = vld [vmem:[#allocation6 + $0x80] sm:$0xff] }
 0x188   : > { %16899 = vmatpush3.bf16.msra.mxu1 %v18024_v58  ;;  %15111 = vmatprep.mubr.msk.f32.mxu1 %vm338_vm0, %v692_v26  ;;  %v18166_v58 = vld [vmem:[#allocation2 + $0x37] sm:$0xff]  ;;  %v1859_v26 = vld [vmem:[#allocation6 + $0x88] sm:$0xff] }
 0x189   : > { %16901 = vmatprep.subr.bf16.mxu1 %v16900_v27  ;;  %v16912_v29 = vpack.c.bf16 %v1859_v26, %v1858_v23  ;;  %v18279_v23 = vld [vmem:[#allocation2 + $0x69] sm:$0xff]  ;;  %v18283_v26 = vld [vmem:[#allocation2 + $0x71] sm:$0xff] }
 0x18a   : > { %21221 = vst [vmem:[#allocation23_spill] sm:$0xff] %v18279_v23  ;;  %21222 = vst [vmem:[#allocation24_spill] sm:$0xff] %v18283_v26 }
 0x18b   : > { %15112 = vmatmul.mubr.msk.f32.gmra.mrb[24].mxu1 %vm338_vm0, %v18154_v33 }
 0x18c   : > { %15114 = vmatprep.mubr.msk.f32.mxu1 %vm338_vm0, %v18158_v35  ;;  %16903 = vmatpush3.bf16.msra.mxu1 %v16900_v27  ;;  %v1247_v27 = vld [vmem:[#allocation2 + $0x19] sm:$0xff] }
 0x18d   : > { %16905 = vmatprep.subr.bf16.mxu1 %v16904_v32 }
 0x18f   : > { %15115 = vmatmul.mubr.msk.f32.gmra.mrb[26].mxu1 %vm338_vm0, %v18162_v36 }
 0x190   : > { %15117 = vmatprep.mubr.msk.f32.mxu1 %vm338_vm0, %v18166_v58 }
 0x193   : > { %15118 = vmatmul.mubr.msk.f32.gmra.mrb[6].mxu1 %vm338_vm0, %v18170_v37 }
 0x194   : > { %15120 = vmatprep.mubr.msk.f32.mxu1 %vm338_vm0, %v18174_v38 }
 0x197   : > { %15121 = vmatmul.mubr.msk.f32.gmra.mrb[28].mxu1 %vm338_vm0, %v18178_v39 }
 0x198   : > { %15123 = vmatprep.mubr.msk.f32.mxu1 %vm338_vm0, %v18182_v41 }
 0x19b   : > { %15124 = vmatmul.mubr.msk.f32.gmra.mrb[30].mxu1 %vm338_vm0, %v18186_v43 }
 0x19c   : > { %15126 = vmatprep.mubr.msk.f32.mxu1 %vm338_vm0, %v18190_v44 }
 0x19f   : > { %15127 = vmatmul.mubr.msk.f32.gmra.mrb[12].mxu1 %vm338_vm0, %v18194_v45 }
 0x1a0   : > { %15129 = vmatprep.mubr.msk.f32.mxu1 %vm338_vm0, %v18198_v47 }
 0x1a3   : > { %15130 = vmatmul.mubr.msk.f32.gmra.mrb[32].mxu1 %vm338_vm0, %v18204_v50 }
 0x1a4   : > { %15132 = vmatprep.mubr.msk.f32.mxu1 %vm338_vm0, %v18208_v51 }
 0x1a7   : > { %15133 = vmatmul.mubr.msk.f32.gmra.mrb[34].mxu1 %vm338_vm0, %v18212_v53 }
 0x1a8   : > { %15135 = vmatprep.mubr.msk.f32.mxu1 %vm338_vm0, %v18216_v55 }
 0x1ab   : > { %15136 = vmatmul.mubr.msk.f32.gmra.mrb[18].mxu1 %vm338_vm0, %v18220_v57 }
 0x1ac   : > { %15138 = vmatprep.mubr.msk.f32.mxu1 %vm338_vm0, %v18224_v59 }
 0x1af   : > { %15139 = vmatmul.mubr.msk.f32.gmra.mrb[36].mxu1 %vm338_vm0, %v18228_v60 }
 0x1b0   : > { %15141 = vmatprep.mubr.msk.f32.mxu1 %vm338_vm0, %v18232_v62 }
 0x1b3   : > { %15142 = vmatmul.mubr.msk.f32.gmra.mrb[38].mxu1 %vm338_vm0, %v18236_v0 }
 0x1b4   : > { %15152 = vmatprep.mubr.msk.f32.mxu1 %vm338_vm0, %v1245_v63  ;;  %v18259_v63 = vld [vmem:[#allocation2 + $0x41] sm:$0xff] }
 0x1b7   : > { %15153 = vmatmul.mubr.msk.f32.vlgmr.msra.gmra.mrb[0].mxu1 %vm338_vm0, %v1246_v20  ;;  %v18271_v20 = vld [vmem:[#allocation2 + $0x59] sm:$0xff] }
 0x1b8   : > { %16907 = vmatpush3.bf16.msra.mxu1 %v16904_v32  ;;  %15155 = vmatprep.mubr.msk.f32.mxu1 %vm338_vm0, %v1247_v27  ;;  %v18255_v32 = vld [vmem:[#allocation2 + $0x39] sm:$0xff]  ;;  %21219 = vst [vmem:[#allocation21_spill] sm:$0xff] %v18271_v20 }
 0x1b9   : > { %16909 = vmatprep.subr.bf16.mxu1 %v16908_v22  ;;  %v18287_v27 = vld [vmem:[#allocation2 + $0x79] sm:$0xff] }
 0x1ba   : > { %21223 = vst [vmem:[#allocation25_spill] sm:$0xff] %v18287_v27 }
 0x1bb   : > { %15156 = vmatmul.mubr.msk.f32.gmra.mrb[40].mxu1 %vm338_vm0, %v18243_v30 }
 0x1bc   : > { %15158 = vmatprep.mubr.msk.f32.mxu1 %vm338_vm0, %v18247_v48  ;;  %16911 = vmatpush3.bf16.msra.mxu1 %v16908_v22  ;;  %v18275_v22 = vld [vmem:[#allocation2 + $0x61] sm:$0xff] }
 0x1bd   : > { %16913 = vmatprep.subr.bf16.mxu1 %v16912_v29  ;;  %21220 = vst [vmem:[#allocation22_spill] sm:$0xff] %v18275_v22 }
 0x1bf   : > { %15159 = vmatmul.mubr.msk.f32.gmra.mrb[42].mxu1 %vm338_vm0, %v18251_v49 }
 0x1c0   : > { %15161 = vmatprep.mubr.msk.f32.mxu1 %vm338_vm0, %v18255_v32 }
 0x1c3   : > { %15162 = vmatmul.mubr.msk.f32.gmra.mrb[6].mxu1 %vm338_vm0, %v18259_v63 }
 0x1c4   : > { %15164 = vmatprep.mubr.msk.f32.mxu1 %vm338_vm0, %v18263_v2 }
 0x1c7   : > { %15165 = vmatmul.mubr.msk.f32.gmra.mrb[44].mxu1 %vm338_vm0, %v18267_v19 }
 0x1c8   : > { %15167 = vmatprep.mubr.msk.f32.mxu1 %vm338_vm0, %v18271_v20 }
 0x1cb   : > { %15168 = vmatmul.mubr.msk.f32.gmra.mrb[46].mxu1 %vm338_vm0, %v18275_v22 }
 0x1cc   : > { %15170 = vmatprep.mubr.msk.f32.mxu1 %vm338_vm0, %v18279_v23 }
 0x1cf   : > { %15171 = vmatmul.mubr.msk.f32.gmra.mrb[12].mxu1 %vm338_vm0, %v18283_v26  ;;  %v2153_v26 = vld [vmem:[#allocation6 + $0xa8] sm:$0xff] }
 0x1d0   : > { %15173 = vmatprep.mubr.msk.f32.mxu1 %vm338_vm0, %v18287_v27  ;;  %v2152_v27 = vld [vmem:[#allocation6 + $0xa0] sm:$0xff] }
 0x1d3   : > { %15174 = vmatmul.mubr.msk.f32.gmra.mrb[48].mxu1 %vm338_vm0, %v18291_v24 }
 0x1d4   : > { %15176 = vmatprep.mubr.msk.f32.mxu1 %vm338_vm0, %v18295_v21  ;;  %v1861_v21 = vld [vmem:[#allocation6 + $0x98] sm:$0xff] }
 0x1d7   : > { %15177 = vmatmul.mubr.msk.f32.gmra.mrb[50].mxu1 %vm338_vm0, %v18299_v18  ;;  %v1860_v18 = vld [vmem:[#allocation6 + $0x90] sm:$0xff] }
 0x1d8   : > { %15179 = vmatprep.mubr.msk.f32.mxu1 %vm338_vm0, %v18303_v15  ;;  %v18323_v15 = vld [vmem:[#allocation2 + $0xc1] sm:$0xff] }
 0x1d9   : > { %21232 = vst [vmem:[#allocation34_spill] sm:$0xff] %v18323_v15 }
 0x1db   : > { %15180 = vmatmul.mubr.msk.f32.gmra.mrb[18].mxu1 %vm338_vm0, %v18307_v12  ;;  %v16916_v12 = vpack.c.bf16 %v1861_v21, %v1860_v18  ;;  %v2446_v21 = vld [vmem:[#allocation6 + $0xc0] sm:$0xff] }
 0x1dc   : > { %15182 = vmatprep.mubr.msk.f32.mxu1 %vm338_vm0, %v18311_v8  ;;  %v15034_v8 = vpop.f32.mrb[16].mxu0 }
 0x1dd   : > { %v553_v24 = vadd.f32 %v15034_v8, %v18032_v61  ;;  %v18381_v8 = vld [vmem:[#allocation2 + $0xd7] sm:$0xff] }
 0x1df   : > { %15183 = vmatmul.mubr.msk.f32.gmra.mrb[52].mxu1 %vm338_vm0, %v18315_v5  ;;  %v547_v5 = vpop.f32.mrb[17].mxu0 }
 0x1e0   : > { %15185 = vmatprep.mubr.msk.f32.mxu1 %vm338_vm0, %v18319_v3  ;;  %v548_v23 = vadd.f32 %v18032_v61, %v547_v5  ;;  %v643_v3 = vmax.f32 %v553_v24, 0.0  ;;  %v18377_v5 = vld [vmem:[#allocation2 + $0xcf] sm:$0xff] }
 0x1e1   : > { %v2447_v24 = vld [vmem:[#allocation6 + $0xc8] sm:$0xff] }
 0x1e2   : > { %675 = vst.msk [vmem:[#allocation2 + $0xe8] sm:$0xff] %vm338_vm0, %v643_v3  ;;  %v18373_v3 = vld [vmem:[#allocation2 + $0xc7] sm:$0xff] }
 0x1e3   : > { %15186 = vmatmul.mubr.msk.f32.gmra.mrb[54].mxu1 %vm338_vm0, %v18323_v15  ;;  %v642_v15 = vmax.f32 %v548_v23, 0.0 }
 0x1e4   : > { %15196 = vmatprep.mubr.msk.f32.mxu1 %vm338_vm0, %v18154_v33  ;;  %v16920_v33 = vpack.c.bf16 %v2153_v26, %v2152_v27  ;;  %v18427_v27 = vld [vmem:[#allocation2 + $0xc8] sm:$0xff] }
 0x1e5   : > { %674 = vst.msk [vmem:[#allocation2 + $0xe0] sm:$0xff] %vm338_vm0, %v642_v15  ;;  %v2155_v15 = vld [vmem:[#allocation6 + $0xb8] sm:$0xff]  ;;  %21233 = vst [vmem:[#allocation35_spill] sm:$0xff] %v18427_v27 }
 0x1e7   : > { %15197 = vmatmul.mubr.msk.f32.vlgmr.msra.gmra.mrb[0].mxu1 %vm338_vm0, %v18158_v35  ;;  %v16928_v35 = vpack.c.bf16 %v2447_v24, %v2446_v21  ;;  %v2449_v21 = vld [vmem:[#allocation6 + $0xd8] sm:$0xff] }
 0x1e8   : > { %16915 = vmatpush3.bf16.msra.mxu1 %v16912_v29  ;;  %15199 = vmatprep.mubr.msk.f32.mxu1 %vm338_vm0, %v18162_v36 }
 0x1e9   : > { %16917 = vmatprep.subr.bf16.mxu1 %v16916_v12 }
 0x1eb   : > { %15200 = vmatmul.mubr.msk.f32.gmra.mrb[56].mxu1 %vm338_vm0, %v18166_v58 }
 0x1ec   : > { %15202 = vmatprep.mubr.msk.f32.mxu1 %vm338_vm0, %v18170_v37  ;;  %16919 = vmatpush3.bf16.msra.mxu1 %v16916_v12  ;;  %v2154_v12 = vld [vmem:[#allocation6 + $0xb0] sm:$0xff] }
 0x1ed   : > { %16921 = vmatprep.subr.bf16.mxu1 %v16920_v33  ;;  %v16924_v18 = vpack.c.bf16 %v2155_v15, %v2154_v12  ;;  %v18431_v12 = vld [vmem:[#allocation2 + $0xd0] sm:$0xff]  ;;  %v18435_v15 = vld [vmem:[#allocation2 + $0xd8] sm:$0xff] }
 0x1ee   : > { %21234 = vst [vmem:[#allocation36_spill] sm:$0xff] %v18431_v12  ;;  %21235 = vst [vmem:[#allocation37_spill] sm:$0xff] %v18435_v15 }
 0x1ef   : > { %15203 = vmatmul.mubr.msk.f32.gmra.mrb[58].mxu1 %vm338_vm0, %v18174_v38 }
 0x1f0   : > { %15205 = vmatprep.mubr.msk.f32.mxu1 %vm338_vm0, %v18178_v39 }
 0x1f3   : > { %15206 = vmatmul.mubr.msk.f32.gmra.mrb[6].mxu1 %vm338_vm0, %v18182_v41 }
 0x1f4   : > { %15208 = vmatprep.mubr.msk.f32.mxu1 %vm338_vm0, %v18186_v43 }
 0x1f7   : > { %15209 = vmatmul.mubr.msk.f32.gmra.mrb[60].mxu1 %vm338_vm0, %v18190_v44 }
 0x1f8   : > { %15211 = vmatprep.mubr.msk.f32.mxu1 %vm338_vm0, %v18194_v45 }
 0x1fb   : > { %15212 = vmatmul.mubr.msk.f32.gmra.mrb[62].mxu1 %vm338_vm0, %v18198_v47 }
 0x1fc   : > { %15214 = vmatprep.mubr.msk.f32.mxu1 %vm338_vm0, %v18204_v50 }
 0x1ff   : > { %15215 = vmatmul.mubr.msk.f32.gmra.mrb[12].mxu1 %vm338_vm0, %v18208_v51 }
 0x200   : > { %15217 = vmatprep.mubr.msk.f32.mxu1 %vm338_vm0, %v18212_v53 }
 0x203   : > { %15218 = vmatmul.mubr.msk.f32.gmra.mrb[64].mxu1 %vm338_vm0, %v18216_v55 }
 0x204   : > { %15220 = vmatprep.mubr.msk.f32.mxu1 %vm338_vm0, %v18220_v57 }
 0x207   : > { %15221 = vmatmul.mubr.msk.f32.gmra.mrb[66].mxu1 %vm338_vm0, %v18224_v59 }
 0x208   : > { %15223 = vmatprep.mubr.msk.f32.mxu1 %vm338_vm0, %v18228_v60 }
 0x20b   : > { %15224 = vmatmul.mubr.msk.f32.gmra.mrb[18].mxu1 %vm338_vm0, %v18232_v62 }
 0x20c   : > { %15226 = vmatprep.mubr.msk.f32.mxu1 %vm338_vm0, %v18236_v0 }
 0x20f   : > { %15227 = vmatmul.mubr.msk.f32.gmra.mrb[68].mxu1 %vm338_vm0, %v18373_v3 }
 0x210   : > { %15229 = vmatprep.mubr.msk.f32.mxu1 %vm338_vm0, %v18377_v5 }
 0x213   : > { %15230 = vmatmul.mubr.msk.f32.gmra.mrb[70].mxu1 %vm338_vm0, %v18381_v8 }
 0x214   : > { %15240 = vmatprep.mubr.msk.f32.mxu1 %vm338_vm0, %v18045_v25 }
 0x217   : > { %15241 = vmatmul.mubr.msk.f32.vlgmr.msra.gmra.mrb[0].mxu1 %vm338_vm0, %v18051_v28 }
 0x218   : > { %16923 = vmatpush3.bf16.msra.mxu1 %v16920_v33  ;;  %15243 = vmatprep.mubr.msk.f32.mxu1 %vm338_vm0, %v18056_v31 }
 0x219   : > { %16925 = vmatprep.subr.bf16.mxu1 %v16924_v18 }
 0x21b   : > { %15244 = vmatmul.mubr.msk.f32.gmra.mrb[72].mxu1 %vm338_vm0, %v18059_v34 }
 0x21c   : > { %15246 = vmatprep.mubr.msk.f32.mxu1 %vm338_vm0, %v18070_v42  ;;  %16927 = vmatpush3.bf16.msra.mxu1 %v16924_v18  ;;  %v2448_v18 = vld [vmem:[#allocation6 + $0xd0] sm:$0xff] }
 0x21d   : > { %16929 = vmatprep.subr.bf16.mxu1 %v16928_v35  ;;  %v16932_v24 = vpack.c.bf16 %v2449_v21, %v2448_v18  ;;  %v21237_v18 = vld [vmem:[#allocation24_spill] sm:$0xff]  ;;  %v21238_v21 = vld [vmem:[#allocation25_spill] sm:$0xff] }
 0x21f   : > { %15247 = vmatmul.mubr.msk.f32.gmra.mrb[74].mxu1 %vm338_vm0, %v18068_v40 }
 0x220   : > { %15249 = vmatprep.mubr.msk.f32.mxu1 %vm338_vm0, %v18080_v46 }
 0x223   : > { %15250 = vmatmul.mubr.msk.f32.gmra.mrb[6].mxu1 %vm338_vm0, %v18086_v52 }
 0x224   : > { %15252 = vmatprep.mubr.msk.f32.mxu1 %vm338_vm0, %v18092_v54 }
 0x227   : > { %15253 = vmatmul.mubr.msk.f32.gmra.mrb[76].mxu1 %vm338_vm0, %v18094_v56 }
 0x228   : > { %15255 = vmatprep.mubr.msk.f32.mxu1 %vm338_vm0, %v18106_v4 }
 0x22b   : > { %15256 = vmatmul.mubr.msk.f32.gmra.mrb[78].mxu1 %vm338_vm0, %v18104_v1 }
 0x22c   : > { %15258 = vmatprep.mubr.msk.f32.mxu1 %vm338_vm0, %v18114_v6 }
 0x22e   : > { %v15069_v25 = vpop.f32.mrb[2].mxu1 }
 0x22f   : > { %v895_v28 = vpop.f32.mrb[3].mxu1  ;;  %15259 = vmatmul.mubr.msk.f32.gmra.mrb[12].mxu1 %vm338_vm0, %v18118_v7 }
 0x230   : > { %15261 = vmatprep.mubr.msk.f32.mxu1 %vm338_vm0, %v18122_v9 }
 0x232   : > { %v15072_v31 = vpop.f32.mrb[4].mxu1 }
 0x233   : > { %v904_v36 = vpop.f32.mrb[5].mxu1  ;;  %15262 = vmatmul.mubr.msk.f32.gmra.mrb[80].mxu1 %vm338_vm0, %v18124_v10  ;;  %v2740_v31 = vld [vmem:[#allocation6 + $0xe0] sm:$0xff] }
 0x234   : > { %15264 = vmatprep.mubr.msk.f32.mxu1 %vm338_vm0, %v18132_v13 }
 0x237   : > { %15265 = vmatmul.mubr.msk.f32.gmra.mrb[82].mxu1 %vm338_vm0, %v18130_v11 }
 0x238   : > { %15267 = vmatprep.mubr.msk.f32.mxu1 %vm338_vm0, %v18138_v14 }
 0x23a   : > { %v15078_v29 = vpop.f32.mrb[8].mxu1 }
 0x23b   : > { %v923_v23 = vpop.f32.mrb[9].mxu1  ;;  %15268 = vmatmul.mubr.msk.f32.gmra.mrb[18].mxu1 %vm338_vm0, %v18142_v16 }
 0x23c   : > { %15270 = vmatprep.mubr.msk.f32.mxu1 %vm338_vm0, %v18146_v17  ;;  %v2741_v23 = vld [vmem:[#allocation6 + $0xe8] sm:$0xff] }
 0x23e   : > { %v15081_v26 = vpop.f32.mrb[10].mxu1 }
 0x23f   : > { %v932_v33 = vpop.f32.mrb[11].mxu1  ;;  %15271 = vmatmul.mubr.msk.f32.gmra.mrb[84].mxu1 %vm338_vm0, %v18427_v27 }
 0x240   : > { %15273 = vmatprep.mubr.msk.f32.mxu1 %vm338_vm0, %v18431_v12  ;;  %v16936_v12 = vpack.c.bf16 %v2741_v23, %v2740_v31 }
 0x243   : > { %15274 = vmatmul.mubr.msk.f32.gmra.mrb[86].mxu1 %vm338_vm0, %v18435_v15 }
 0x244   : > { %15284 = vmatprep.mubr.msk.f32.mxu1 %vm338_vm0, %v18243_v30 }
 0x246   : > { %v18441_v28 = vpop.f32.mrb[14].mxu1 }
 0x247   : > { %v951_v26 = vpop.f32.mrb[15].mxu1  ;;  %15285 = vmatmul.mubr.msk.f32.vlgmr.msra.gmra.mrb[0].mxu1 %vm338_vm0, %v18247_v48 }
 0x248   : > { %16931 = vmatpush3.bf16.msra.mxu1 %v16928_v35  ;;  %15287 = vmatprep.mubr.msk.f32.mxu1 %vm338_vm0, %v18251_v49 }
 0x249   : > { %16933 = vmatprep.subr.bf16.mxu1 %v16932_v24 }
 0x24a   : > { %v15090_v27 = vpop.f32.mrb[16].mxu1 }
 0x24b   : > { %v18447_v15 = vpop.f32.mrb[17].mxu1  ;;  %15288 = vmatmul.mubr.msk.f32.gmra.mrb[88].mxu1 %vm338_vm0, %v18255_v32  ;;  %v21236_v27 = vld [vmem:[#allocation23_spill] sm:$0xff] }
 0x24c   : > { %15290 = vmatprep.mubr.msk.f32.mxu1 %vm338_vm0, %v18259_v63  ;;  %16935 = vmatpush3.bf16.msra.mxu1 %v16932_v24  ;;  %v21239_v24 = vld [vmem:[#allocation26_spill] sm:$0xff] }
 0x24d   : > { %16937 = vmatprep.subr.bf16.mxu1 %v16936_v12 }
 0x24f   : > { %15291 = vmatmul.mubr.msk.f32.gmra.mrb[90].mxu1 %vm338_vm0, %v18263_v2 }
 0x250   : > { %15293 = vmatprep.mubr.msk.f32.mxu1 %vm338_vm0, %v18267_v19 }
 0x252   : > { %v18457_v30 = vpop.f32.mrb[20].mxu1 }
 0x253   : > { %v979_v48 = vpop.f32.mrb[21].mxu1  ;;  %15294 = vmatmul.mubr.msk.f32.gmra.mrb[6].mxu1 %vm338_vm0, %v18271_v20  ;;  %v21242_v20 = vld [vmem:[#allocation29_spill] sm:$0xff] }
 0x254   : > { %15296 = vmatprep.mubr.msk.f32.mxu1 %vm338_vm0, %v18275_v22  ;;  %v21240_v48 = vld [vmem:[#allocation27_spill] sm:$0xff] }
 0x256   : > { %v15099_v49 = vpop.f32.mrb[22].mxu1 }
 0x257   : > { %v18463_v35 = vpop.f32.mrb[23].mxu1  ;;  %15297 = vmatmul.mubr.msk.f32.gmra.mrb[92].mxu1 %vm338_vm0, %v21236_v27  ;;  %v21241_v49 = vld [vmem:[#allocation28_spill] sm:$0xff] }
 0x258   : > { %15299 = vmatprep.mubr.msk.f32.mxu1 %vm338_vm0, %v21237_v18 }
 0x25b   : > { %15300 = vmatmul.mubr.msk.f32.gmra.mrb[94].mxu1 %vm338_vm0, %v21238_v21  ;;  %v21243_v21 = vld [vmem:[#allocation30_spill] sm:$0xff] }
 0x25c   : > { %15302 = vmatprep.mubr.msk.f32.mxu1 %vm338_vm0, %v21239_v24  ;;  %v21244_v24 = vld [vmem:[#allocation31_spill] sm:$0xff] }
 0x25e   : > { %v15113_v31 = vpop.f32.mrb[24].mxu1 }
 0x25f   : > { %v18473_v23 = vadd.f32 %v15113_v31, %v15069_v25  ;;  %v1144_v26 = vpop.f32.mrb[25].mxu1  ;;  %15303 = vmatmul.mubr.msk.f32.gmra.mrb[12].mxu1 %vm338_vm0, %v21240_v48  ;;  %v21245_v25 = vld [vmem:[#allocation32_spill] sm:$0xff]  ;;  %v21247_v48 = vld [vmem:[#allocation34_spill] sm:$0xff] }
 0x260   : > { %15305 = vmatprep.mubr.msk.f32.mxu1 %vm338_vm0, %v21241_v49 }
 0x262   : > { %v15116_v27 = vpop.f32.mrb[26].mxu1 }
 0x263   : > { %v1153_v22 = vpop.f32.mrb[27].mxu1  ;;  %15306 = vmatmul.mubr.msk.f32.gmra.mrb[96].mxu1 %vm338_vm0, %v21242_v20  ;;  %v21246_v27 = vld [vmem:[#allocation33_spill] sm:$0xff] }
 0x264   : > { %v18481_v18 = vadd.f32 %v1153_v22, %v904_v36  ;;  %15308 = vmatprep.mubr.msk.f32.mxu1 %vm338_vm0, %v21243_v21  ;;  %v18495_v36 = vld [vmem:[#allocation2 + $0xc9] sm:$0xff] }
 0x265   : > { %21248 = vst [vmem:[#allocation38_spill] sm:$0xff] %v18495_v36  ;;  %v3035_v20 = vld [vmem:[#allocation6 + $0x108] sm:$0xff] }
 0x267   : > { %15309 = vmatmul.mubr.msk.f32.gmra.mrb[98].mxu1 %vm338_vm0, %v21244_v24  ;;  %v18499_v24 = vld [vmem:[#allocation2 + $0xd1] sm:$0xff] }
 0x268   : > { %15311 = vmatprep.mubr.msk.f32.mxu1 %vm338_vm0, %v21245_v25  ;;  %21249 = vst [vmem:[#allocation39_spill] sm:$0xff] %v18499_v24 }
 0x26a   : > { %v15122_v31 = vpop.f32.mrb[28].mxu1 }
 0x26b   : > { %v18489_v26 = vadd.f32 %v15122_v31, %v15078_v29  ;;  %v1172_v49 = vpop.f32.mrb[29].mxu1  ;;  %15312 = vmatmul.mubr.msk.f32.gmra.mrb[18].mxu1 %vm338_vm0, %v21246_v27  ;;  %v18505_v29 = vld [vmem:[#allocation2 + $0xd9] sm:$0xff] }
 0x26c   : > { %15314 = vmatprep.mubr.msk.f32.mxu1 %vm338_vm0, %v21247_v48  ;;  %21250 = vst [vmem:[#allocation40_spill] sm:$0xff] %v18505_v29  ;;  %v2742_v49 = vld [vmem:[#allocation6 + $0xf0] sm:$0xff]  ;;  %v2743_v31 = vld [vmem:[#allocation6 + $0xf8] sm:$0xff]  ;;  %v15037_v48 = vpop.f32.mrb[18].mxu0  ;;  %v3034_v27 = vld [vmem:[#allocation6 + $0x100] sm:$0xff] }
 0x26e   : > { %v15125_v22 = vpop.f32.mrb[30].mxu1 }
 0x26f   : > { %v1181_v21 = vpop.f32.mrb[31].mxu1  ;;  %15315 = vmatmul.mubr.msk.f32.gmra.mrb[100].mxu1 %vm338_vm0, %v18495_v36  ;;  %v16940_v22 = vpack.c.bf16 %v2743_v31, %v2742_v49  ;;  %v18520_v49 = vpack.c.bf16 %v3035_v20, %v3034_v27  ;;  %v386_v20 = vld [vmem:[%s17891_s15 + $0xb8] sm:$0xff]  ;;  %v388_v27 = vld [vmem:[%s17891_s15 + $0xc8] sm:$0xff] }
 0x270   : > { %v18501_v25 = vadd.f32 %v1181_v21, %v932_v33  ;;  %15317 = vmatprep.mubr.msk.f32.mxu1 %vm338_vm0, %v18499_v24  ;;  %v563_v33 = vadd.f32 %v15037_v48, %v18032_v61  ;;  %v557_v21 = vpop.f32.mrb[19].mxu0 }
 0x273   : > { %15318 = vmatmul.mubr.msk.f32.gmra.mrb[102].mxu1 %vm338_vm0, %v18505_v29  ;;  %v558_v29 = vadd.f32 %v18032_v61, %v557_v21  ;;  %v383_v61 = vld [vmem:[%s17891_s15 + $0xa0] sm:$0xff] }
 0x274   : > { %15328 = vmatprep.mubr.msk.f32.mxu1 %vm338_vm0, %v18166_v58  ;;  %v645_v58 = vmax.f32 %v563_v33, 0.0  ;;  %15038 = vmatprep.mubr.f32.mxu0 %v383_v61  ;;  %v3037_v33 = vld [vmem:[#allocation6 + $0x118] sm:$0xff]  ;;  %v21252_v61 = vld [vmem:[#allocation36_spill] sm:$0xff] }
 0x275   : > { %v644_v48 = vmax.f32 %v558_v29, 0.0 }
 0x276   : > { %v15131_v36 = vpop.f32.mrb[32].mxu1  ;;  %677 = vst.msk [vmem:[#allocation2 + $0x100] sm:$0xff] %vm338_vm0, %v645_v58 }
 0x277   : > { %v18513_v24 = vadd.f32 %v15131_v36, %v18441_v28  ;;  %v1200_v19 = vpop.f32.mrb[33].mxu1  ;;  %15329 = vmatmul.mubr.msk.f32.vlgmr.msra.gmra.mrb[0].mxu1 %vm338_vm0, %v18170_v37  ;;  %676 = vst.msk [vmem:[#allocation2 + $0xf8] sm:$0xff] %vm338_vm0, %v644_v48  ;;  %v384_v37 = vld [vmem:[%s17891_s15 + $0xa8] sm:$0xff] }
 0x278   : > { %16939 = vmatpush3.bf16.msra.mxu1 %v16936_v12  ;;  %15331 = vmatprep.mubr.msk.f32.mxu1 %vm338_vm0, %v18174_v38 }
 0x279   : > { %16941 = vmatprep.subr.bf16.mxu1 %v16940_v22  ;;  %15039 = vmatmul.mubr.f32.gmra.mrb[20].mxu0 %v384_v37  ;;  %v18643_v37 = vld [vmem:[#allocation2 + $0xe0] sm:$0xff] }
 0x27a   : > { %v15134_v31 = vpop.f32.mrb[34].mxu1 }
 0x27b   : > { %v1209_v19 = vpop.f32.mrb[35].mxu1  ;;  %15332 = vmatmul.mubr.msk.f32.gmra.mrb[104].mxu1 %vm338_vm0, %v18178_v39  ;;  %v385_v39 = vld [vmem:[%s17891_s15 + $0xb0] sm:$0xff] }
 0x27c   : > { %v18529_v38 = vadd.f32 %v1209_v19, %v18447_v15  ;;  %15334 = vmatprep.mubr.msk.f32.mxu1 %vm338_vm0, %v18182_v41  ;;  %16943 = vmatpush3.bf16.msra.mxu1 %v16940_v22 }
 0x27d   : > { %16945 = vmatprep.subr.bf16.mxu1 %v18520_v49  ;;  %15041 = vmatprep.mubr.f32.mxu0 %v385_v39  ;;  %v18651_v39 = vld [vmem:[#allocation2 + $0xf0] sm:$0xff] }
 0x27e   : > { %15042 = vmatmul.mubr.f32.gmra.mrb[22].mxu0 %v386_v20 }
 0x27f   : > { %15335 = vmatmul.mubr.msk.f32.gmra.mrb[106].mxu1 %vm338_vm0, %v18186_v43 }
 0x280   : > { %15337 = vmatprep.mubr.msk.f32.mxu1 %vm338_vm0, %v18190_v44  ;;  %v387_v44 = vld [vmem:[%s17891_s15 + $0xc0] sm:$0xff] }
 0x281   : > { %15044 = vmatprep.mubr.f32.mxu0 %v387_v44 }
 0x282   : > { %v15140_v12 = vpop.f32.mrb[36].mxu1  ;;  %15045 = vmatmul.mubr.f32.gmra.mrb[24].mxu0 %v388_v27  ;;  %v21255_v27 = vld [vmem:[#allocation21_spill] sm:$0xff] }
 0x283   : > { %v18541_v41 = vadd.f32 %v15140_v12, %v18457_v30  ;;  %v1228_v15 = vpop.f32.mrb[37].mxu1  ;;  %15338 = vmatmul.mubr.msk.f32.gmra.mrb[6].mxu1 %vm338_vm0, %v18194_v45  ;;  %v389_v45 = vld [vmem:[%s17891_s15 + $0xd0] sm:$0xff] }
 0x284   : > { %15340 = vmatprep.mubr.msk.f32.mxu1 %vm338_vm0, %v18198_v47  ;;  %v390_v47 = vld [vmem:[%s17891_s15 + $0xd8] sm:$0xff]  ;;  %15047 = vmatprep.mubr.f32.mxu0 %v389_v45 }
 0x286   : > { %v15143_v43 = vpop.f32.mrb[38].mxu1  ;;  %15048 = vmatmul.mubr.f32.gmra.mrb[26].mxu0 %v390_v47 }
 0x287   : > { %v1237_v28 = vpop.f32.mrb[39].mxu1  ;;  %15341 = vmatmul.mubr.msk.f32.gmra.mrb[108].mxu1 %vm338_vm0, %v18204_v50 }
 0x288   : > { %v18552_v36 = vadd.f32 %v1237_v28, %v18463_v35  ;;  %15343 = vmatprep.mubr.msk.f32.mxu1 %vm338_vm0, %v18208_v51  ;;  %v21254_v28 = vld [vmem:[#allocation20_spill] sm:$0xff] }
 0x28b   : > { %15344 = vmatmul.mubr.msk.f32.gmra.mrb[110].mxu1 %vm338_vm0, %v18212_v53  ;;  %v391_v53 = vld [vmem:[%s17891_s15 + $0xe0] sm:$0xff] }
 0x28c   : > { %15346 = vmatprep.mubr.msk.f32.mxu1 %vm338_vm0, %v18216_v55  ;;  %v392_v55 = vld [vmem:[%s17891_s15 + $0xe8] sm:$0xff]  ;;  %15050 = vmatprep.mubr.f32.mxu0 %v391_v53  ;;  %v21261_v53 = vld [vmem:[#allocation27_spill] sm:$0xff] }
 0x28d   : > { %15051 = vmatmul.mubr.f32.gmra.mrb[28].mxu0 %v392_v55  ;;  %v21262_v55 = vld [vmem:[#allocation28_spill] sm:$0xff] }
 0x28e   : > { %v15157_v50 = vpop.f32.mrb[40].mxu1 }
 0x28f   : > { %v1525_v30 = vadd.f32 %v15157_v50, %v18473_v23  ;;  %v1422_v35 = vpop.f32.mrb[41].mxu1  ;;  %15347 = vmatmul.mubr.msk.f32.gmra.mrb[12].mxu1 %vm338_vm0, %v18220_v57  ;;  %v21258_v50 = vld [vmem:[#allocation24_spill] sm:$0xff] }
 0x290   : > { %15349 = vmatprep.mubr.msk.f32.mxu1 %vm338_vm0, %v18224_v59 }
 0x292   : > { %v15160_v51 = vpop.f32.mrb[42].mxu1 }
 0x293   : > { %v1431_v29 = vpop.f32.mrb[43].mxu1  ;;  %15350 = vmatmul.mubr.msk.f32.gmra.mrb[112].mxu1 %vm338_vm0, %v18228_v60  ;;  %v21260_v51 = vld [vmem:[#allocation26_spill] sm:$0xff] }
 0x294   : > { %v1526_v22 = vadd.f32 %v1431_v29, %v18481_v18  ;;  %15352 = vmatprep.mubr.msk.f32.mxu1 %vm338_vm0, %v18232_v62  ;;  %v18583_v62 = vld [vmem:[#allocation2 + $0xdf] sm:$0xff] }
 0x297   : > { %15353 = vmatmul.mubr.msk.f32.gmra.mrb[114].mxu1 %vm338_vm0, %v18236_v0  ;;  %v18587_v0 = vld [vmem:[#allocation2 + $0xe7] sm:$0xff] }
 0x298   : > { %15355 = vmatprep.mubr.msk.f32.mxu1 %vm338_vm0, %v18373_v3 }
 0x29a   : > { %v15166_v57 = vpop.f32.mrb[44].mxu1 }
 0x29b   : > { %v1529_v59 = vadd.f32 %v15166_v57, %v18489_v26  ;;  %v1450_v23 = vpop.f32.mrb[45].mxu1  ;;  %15356 = vmatmul.mubr.msk.f32.gmra.mrb[18].mxu1 %vm338_vm0, %v18377_v5  ;;  %v18592_v26 = vld [vmem:[#allocation2 + $0xef] sm:$0xff] }
 0x29c   : > { %15358 = vmatprep.mubr.msk.f32.mxu1 %vm338_vm0, %v18381_v8  ;;  %v3036_v5 = vld [vmem:[#allocation6 + $0x110] sm:$0xff] }
 0x29d   : > { %v16948_v8 = vpack.c.bf16 %v3037_v33, %v3036_v5  ;;  %v21266_v33 = vld [vmem:[#allocation32_spill] sm:$0xff] }
 0x29e   : > { %v15169_v60 = vpop.f32.mrb[46].mxu1 }
 0x29f   : > { %v1459_v18 = vpop.f32.mrb[47].mxu1  ;;  %15359 = vmatmul.mubr.msk.f32.gmra.mrb[116].mxu1 %vm338_vm0, %v18583_v62  ;;  %v21264_v60 = vld [vmem:[#allocation30_spill] sm:$0xff] }
 0x2a0   : > { %v1530_v3 = vadd.f32 %v1459_v18, %v18501_v25  ;;  %15361 = vmatprep.mubr.msk.f32.mxu1 %vm338_vm0, %v18587_v0  ;;  %v21265_v18 = vld [vmem:[#allocation31_spill] sm:$0xff] }
 0x2a3   : > { %15362 = vmatmul.mubr.msk.f32.gmra.mrb[118].mxu1 %vm338_vm0, %v18592_v26 }
 0x2a4   : > { %15372 = vmatprep.mubr.msk.f32.mxu1 %vm338_vm0, %v18059_v34 }
 0x2a6   : > { %v15175_v21 = vpop.f32.mrb[48].mxu1 }
 0x2a7   : > { %v1533_v58 = vadd.f32 %v15175_v21, %v18513_v24  ;;  %v1478_v48 = vpop.f32.mrb[49].mxu1  ;;  %15373 = vmatmul.mubr.msk.f32.vlgmr.msra.gmra.mrb[0].mxu1 %vm338_vm0, %v18070_v42  ;;  %v21267_v21 = vld [vmem:[#allocation33_spill] sm:$0xff] }
 0x2a8   : > { %16947 = vmatpush3.bf16.msra.mxu1 %v18520_v49  ;;  %15375 = vmatprep.mubr.msk.f32.mxu1 %vm338_vm0, %v18068_v40  ;;  %v21268_v48 = vld [vmem:[#allocation34_spill] sm:$0xff] }
 0x2a9   : > { %16949 = vmatprep.subr.bf16.mxu1 %v16948_v8 }
 0x2aa   : > { %v15178_v25 = vpop.f32.mrb[50].mxu1 }
 0x2ab   : > { %v1487_v31 = vpop.f32.mrb[51].mxu1  ;;  %15376 = vmatmul.mubr.msk.f32.gmra.mrb[120].mxu1 %vm338_vm0, %v18080_v46  ;;  %v394_v25 = vld [vmem:[%s17891_s15 + $0xf8] sm:$0xff] }
 0x2ac   : > { %v1534_v34 = vadd.f32 %v1487_v31, %v18529_v38  ;;  %15378 = vmatprep.mubr.msk.f32.mxu1 %vm338_vm0, %v18086_v52  ;;  %16951 = vmatpush3.bf16.msra.mxu1 %v16948_v8  ;;  %v334_v31 = vld [vmem:[%s21096_s5] sm:$0xff] }
 0x2af   : > { %15379 = vmatmul.mubr.msk.f32.gmra.mrb[122].mxu1 %vm338_vm0, %v18092_v54 }
 0x2b0   : > { %15381 = vmatprep.mubr.msk.f32.mxu1 %vm338_vm0, %v18094_v56 }
 0x2b2   : > { %v15184_v42 = vpop.f32.mrb[52].mxu1 }
 0x2b3   : > { %v1537_v40 = vadd.f32 %v15184_v42, %v18541_v41  ;;  %v1506_v24 = vpop.f32.mrb[53].mxu1  ;;  %15382 = vmatmul.mubr.msk.f32.gmra.mrb[6].mxu1 %vm338_vm0, %v18106_v4  ;;  %v21269_v42 = vld [vmem:[#allocation38_spill] sm:$0xff] }
 0x2b4   : > { %15384 = vmatprep.mubr.msk.f32.mxu1 %vm338_vm0, %v18104_v1 }
 0x2b6   : > { %v15187_v46 = vpop.f32.mrb[54].mxu1 }
 0x2b7   : > { %v1515_v49 = vpop.f32.mrb[55].mxu1  ;;  %15385 = vmatmul.mubr.msk.f32.gmra.mrb[124].mxu1 %vm338_vm0, %v18114_v6 }
 0x2b8   : > { %v1538_v52 = vadd.f32 %v1515_v49, %v18552_v36  ;;  %15387 = vmatprep.mubr.msk.f32.mxu1 %vm338_vm0, %v18118_v7  ;;  %v21256_v36 = vld [vmem:[#allocation22_spill] sm:$0xff] }
 0x2bb   : > { %15388 = vmatmul.mubr.msk.f32.gmra.mrb[126].mxu1 %vm338_vm0, %v18122_v9  ;;  %v21251_v9 = vld [vmem:[#allocation35_spill] sm:$0xff] }
 0x2bc   : > { %15390 = vmatprep.mubr.msk.f32.mxu1 %vm338_vm0, %v18124_v10 }
 0x2be   : > { %v15201_v54 = vpop.f32.mrb[56].mxu1 }
 0x2bf   : > { %v1819_v56 = vadd.f32 %v15201_v54, %v1525_v30  ;;  %v1716_v4 = vpop.f32.mrb[57].mxu1  ;;  %15391 = vmatmul.mubr.msk.f32.gmra.mrb[12].mxu1 %vm338_vm0, %v18132_v13  ;;  %v21272_v54 = vld [vmem:[#allocation40_spill] sm:$0xff] }
 0x2c0   : > { %15393 = vmatprep.mubr.msk.f32.mxu1 %vm338_vm0, %v18130_v11  ;;  %v21253_v11 = vld [vmem:[#allocation37_spill] sm:$0xff] }
 0x2c1   : > { %v18711_v4 = vld [vmem:[#allocation2 + $0xe1] sm:$0xff] }
 0x2c2   : > { %v15204_v1 = vpop.f32.mrb[58].mxu1 }
 0x2c3   : > { %v1725_v6 = vpop.f32.mrb[59].mxu1  ;;  %15394 = vmatmul.mubr.msk.f32.gmra.mrb[128].mxu1 %vm338_vm0, %v18138_v14 }
 0x2c4   : > { %v1820_v7 = vadd.f32 %v1725_v6, %v1526_v22  ;;  %15396 = vmatprep.mubr.msk.f32.mxu1 %vm338_vm0, %v18142_v16  ;;  %v18647_v16 = vld [vmem:[#allocation2 + $0xe8] sm:$0xff] }
 0x2c5   : > { %v21263_v22 = vld [vmem:[#allocation29_spill] sm:$0xff] }
 0x2c6   : > { %v18715_v6 = vld [vmem:[#allocation2 + $0xe9] sm:$0xff] }
 0x2c7   : > { %15397 = vmatmul.mubr.msk.f32.gmra.mrb[130].mxu1 %vm338_vm0, %v18146_v17 }
 0x2c8   : > { %15399 = vmatprep.mubr.msk.f32.mxu1 %vm338_vm0, %v21251_v9  ;;  %v18719_v9 = vld [vmem:[#allocation2 + $0xf1] sm:$0xff] }
 0x2ca   : > { %v15210_v10 = vpop.f32.mrb[60].mxu1 }
 0x2cb   : > { %v1823_v13 = vadd.f32 %v15210_v10, %v1529_v59  ;;  %v1744_v19 = vpop.f32.mrb[61].mxu1  ;;  %15400 = vmatmul.mubr.msk.f32.gmra.mrb[18].mxu1 %vm338_vm0, %v21252_v61 }
 0x2cc   : > { %15402 = vmatprep.mubr.msk.f32.mxu1 %vm338_vm0, %v21253_v11 }
 0x2ce   : > { %v15213_v14 = vpop.f32.mrb[62].mxu1 }
 0x2cf   : > { %v1753_v38 = vpop.f32.mrb[63].mxu1  ;;  %15403 = vmatmul.mubr.msk.f32.gmra.mrb[132].mxu1 %vm338_vm0, %v18643_v37 }
 0x2d0   : > { %v1824_v17 = vadd.f32 %v1753_v38, %v1530_v3  ;;  %15405 = vmatprep.mubr.msk.f32.mxu1 %vm338_vm0, %v18647_v16 }
 0x2d3   : > { %15406 = vmatmul.mubr.msk.f32.gmra.mrb[134].mxu1 %vm338_vm0, %v18651_v39 }
 0x2d4   : > { %15416 = vmatprep.mubr.msk.f32.mxu1 %vm338_vm0, %v18255_v32  ;;  %v21257_v32 = vld [vmem:[#allocation23_spill] sm:$0xff] }
 0x2d6   : > { %v15219_v20 = vpop.f32.mrb[64].mxu1 }
 0x2d7   : > { %v1827_v12 = vadd.f32 %v15219_v20, %v1533_v58  ;;  %v1772_v41 = vpop.f32.mrb[65].mxu1  ;;  %15417 = vmatmul.mubr.msk.f32.vlgmr.msra.gmra.mrb[0].mxu1 %vm338_vm0, %v18259_v63  ;;  %v393_v58 = vld [vmem:[%s17891_s15 + $0xf0] sm:$0xff] }
 0x2d8   : > { %15419 = vmatprep.mubr.msk.f32.mxu1 %vm338_vm0, %v18263_v2  ;;  %v21259_v2 = vld [vmem:[#allocation25_spill] sm:$0xff]  ;;  %15053 = vmatprep.mubr.f32.mxu0 %v393_v58 }
 0x2d9   : > { %15054 = vmatmul.mubr.f32.gmra.mrb[30].mxu0 %v394_v25 }
 0x2da   : > { %v15222_v15 = vpop.f32.mrb[66].mxu1 }
 0x2db   : > { %v1781_v43 = vpop.f32.mrb[67].mxu1  ;;  %15420 = vmatmul.mubr.msk.f32.gmra.mrb[136].mxu1 %vm338_vm0, %v21254_v28  ;;  %v337_v28 = vld [vmem:[%s21096_s5 + $0x18] sm:$0xff] }
 0x2dc   : > { %v1828_v44 = vadd.f32 %v1781_v43, %v1534_v34  ;;  %15422 = vmatprep.mubr.msk.f32.mxu1 %vm338_vm0, %v21255_v27  ;;  %v335_v34 = vld [vmem:[%s21096_s5 + $0x8] sm:$0xff] }
 0x2df   : > { %15423 = vmatmul.mubr.msk.f32.gmra.mrb[138].mxu1 %vm338_vm0, %v21256_v36 }
 0x2e0   : > { %15425 = vmatprep.mubr.msk.f32.mxu1 %vm338_vm0, %v21257_v32 }
 0x2e2   : > { %v15228_v45 = vpop.f32.mrb[68].mxu1 }
 0x2e3   : > { %v1831_v63 = vadd.f32 %v15228_v45, %v1537_v40  ;;  %v1800_v47 = vpop.f32.mrb[69].mxu1  ;;  %15426 = vmatmul.mubr.msk.f32.gmra.mrb[6].mxu1 %vm338_vm0, %v21258_v50  ;;  %v18701_v40 = vpack.c.bf16 %v335_v34, %v334_v31 }
 0x2e4   : > { %15428 = vmatprep.mubr.msk.f32.mxu1 %vm338_vm0, %v21259_v2 }
 0x2e5   : > { %21270 = vst [vmem:[#allocation35_spill] sm:$0xff] %v18701_v40  ;;  %16953 = vmatprep.subr.bf16.mxu0 %v18701_v40  ;;  %17232 = vmatprep.subr.bf16.mxu1 %v18701_v40 }
 0x2e6   : > { %v15231_v30 = vpop.f32.mrb[70].mxu1  ;;  %16955 = vmatpush3.bf16.msra.mxu0 %v18701_v40  ;;  %17234 = vmatpush3.bf16.msra.mxu1 %v18701_v40 }
 0x2e7   : > { %v1809_v35 = vpop.f32.mrb[71].mxu1  ;;  %15429 = vmatmul.mubr.msk.f32.gmra.mrb[140].mxu1 %vm338_vm0, %v21260_v51 }
 0x2e8   : > { %v1832_v29 = vadd.f32 %v1809_v35, %v1538_v52  ;;  %15431 = vmatprep.mubr.msk.f32.mxu1 %vm338_vm0, %v21261_v53  ;;  %v21271_v52 = vld [vmem:[#allocation39_spill] sm:$0xff] }
 0x2eb   : > { %15432 = vmatmul.mubr.msk.f32.gmra.mrb[142].mxu1 %vm338_vm0, %v21262_v55 }
 0x2ec   : > { %15434 = vmatprep.mubr.msk.f32.mxu1 %vm338_vm0, %v21263_v22 }
 0x2ee   : > { %v15245_v57 = vpop.f32.mrb[72].mxu1 }
 0x2ef   : > { %v2113_v59 = vadd.f32 %v15245_v57, %v1819_v56  ;;  %v2010_v23 = vpop.f32.mrb[73].mxu1  ;;  %15435 = vmatmul.mubr.msk.f32.gmra.mrb[12].mxu1 %vm338_vm0, %v21264_v60  ;;  %v3657_v60 = vld [vmem:[#allocation6 + $0x28] sm:$0xff] }
 0x2f0   : > { %15437 = vmatprep.mubr.msk.f32.mxu1 %vm338_vm0, %v21265_v18  ;;  %v3656_v23 = vld [vmem:[#allocation6 + $0x20] sm:$0xff] }
 0x2f2   : > { %v15248_v3 = vpop.f32.mrb[74].mxu1 }
 0x2f3   : > { %v2019_v5 = vpop.f32.mrb[75].mxu1  ;;  %15438 = vmatmul.mubr.msk.f32.gmra.mrb[144].mxu1 %vm338_vm0, %v21266_v33  ;;  %v18736_v3 = vpack.c.bf16 %v3657_v60, %v3656_v23 }
 0x2f4   : > { %v2114_v8 = vadd.f32 %v2019_v5, %v1820_v7  ;;  %15440 = vmatprep.mubr.msk.f32.mxu1 %vm338_vm0, %v21267_v21 }
 0x2f7   : > { %15441 = vmatmul.mubr.msk.f32.gmra.mrb[146].mxu1 %vm338_vm0, %v21268_v48 }
 0x2f8   : > { %15443 = vmatprep.mubr.msk.f32.mxu1 %vm338_vm0, %v21269_v42 }
 0x2fa   : > { %v15254_v24 = vpop.f32.mrb[76].mxu1 }
 0x2fb   : > { %v2117_v46 = vadd.f32 %v15254_v24, %v1823_v13  ;;  %v2038_v49 = vpop.f32.mrb[77].mxu1  ;;  %15444 = vmatmul.mubr.msk.f32.gmra.mrb[18].mxu1 %vm338_vm0, %v21271_v52 }
 0x2fc   : > { %15446 = vmatprep.mubr.msk.f32.mxu1 %vm338_vm0, %v21272_v54 }
 0x2fe   : > { %v15257_v56 = vpop.f32.mrb[78].mxu1 }
 0x2ff   : > { %v2047_v1 = vpop.f32.mrb[79].mxu1  ;;  %15447 = vmatmul.mubr.msk.f32.gmra.mrb[148].mxu1 %vm338_vm0, %v18711_v4 }
 0x300   : > { %v2118_v7 = vadd.f32 %v2047_v1, %v1824_v17  ;;  %15449 = vmatprep.mubr.msk.f32.mxu1 %vm338_vm0, %v18715_v6  ;;  %v336_v17 = vld [vmem:[%s21096_s5 + $0x10] sm:$0xff] }
 0x301   : > { %v18729_v36 = vpack.c.bf16 %v337_v28, %v336_v17 }
 0x303   : > { %15450 = vmatmul.mubr.msk.f32.gmra.mrb[150].mxu1 %vm338_vm0, %v18719_v9  ;;  %21273 = vst [vmem:[#allocation36_spill] sm:$0xff] %v18729_v36  ;;  %16957 = vmatprep.subr.bf16.mxu0 %v18729_v36 }
 0x304   : > { %17233 = vmatprep.subr.bf16.mxu1 %v18729_v36  ;;  %16959 = vmatpush3.bf16.msra.mxu0 %v18729_v36 }
 0x305   : > { %17235 = vmatpush3.bf16.msra.mxu1 %v18729_v36  ;;  %16961 = vmatprep.subr.bf16.mxu0 %v18736_v3 }
 0x306   : > { %v15263_v10 = vpop.f32.mrb[80].mxu1  ;;  %17033 = vmatprep.subr.bf16.mxu1 %v18701_v40 }
 0x307   : > { %v2121_v13 = vadd.f32 %v15263_v10, %v1827_v12  ;;  %v2066_v19 = vpop.f32.mrb[81].mxu1 }
 0x30a   : > { %v15266_v61 = vpop.f32.mrb[82].mxu1 }
 0x30b   : > { %v2075_v11 = vpop.f32.mrb[83].mxu1 }
 0x30c   : > { %v2122_v14 = vadd.f32 %v2075_v11, %v1828_v44 }
 0x312   : > { %v15272_v38 = vpop.f32.mrb[84].mxu1 }
 0x313   : > { %v2125_v20 = vadd.f32 %v15272_v38, %v1831_v63  ;;  %v2094_v41 = vpop.f32.mrb[85].mxu1 }
 0x316   : > { %v15275_v15 = vpop.f32.mrb[86].mxu1 }
 0x317   : > { %v2103_v43 = vpop.f32.mrb[87].mxu1 }
 0x318   : > { %v2126_v27 = vadd.f32 %v2103_v43, %v1832_v29 }
 0x31e   : > { %v15289_v12 = vpop.f32.mrb[88].mxu1 }
 0x31f   : > { %v2407_v44 = vadd.f32 %v15289_v12, %v2113_v59  ;;  %v2304_v32 = vpop.f32.mrb[89].mxu1 }
 0x322   : > { %v15292_v45 = vpop.f32.mrb[90].mxu1 }
 0x323   : > { %v2313_v63 = vpop.f32.mrb[91].mxu1 }
 0x324   : > { %v2408_v47 = vadd.f32 %v2313_v63, %v2114_v8 }
 0x32a   : > { %v15298_v50 = vpop.f32.mrb[92].mxu1 }
 0x32b   : > { %v2411_v2 = vadd.f32 %v15298_v50, %v2117_v46  ;;  %v2332_v30 = vpop.f32.mrb[93].mxu1  ;;  %v18750_v46 = vld [vmem:[%s21093_s2] ss:$0 sm:$0xff] }
 0x32e   : > { %v15301_v35 = vpop.f32.mrb[94].mxu1 }
 0x32f   : > { %v2341_v51 = vpop.f32.mrb[95].mxu1 }
 0x330   : > { %v2412_v29 = vadd.f32 %v2341_v51, %v2118_v7 }
 0x336   : > { %v15307_v53 = vpop.f32.mrb[96].mxu1 }
 0x337   : > { %v2415_v55 = vadd.f32 %v15307_v53, %v2121_v13  ;;  %v2360_v22 = vpop.f32.mrb[97].mxu1 }
 0x33a   : > { %v15310_v57 = vpop.f32.mrb[98].mxu1 }
 0x33b   : > { %v2369_v18 = vpop.f32.mrb[99].mxu1 }
 0x33c   : > { %v18738_v59 = vadd.f32 %v2369_v18, %v2122_v14 }
 0x342   : > { %v15316_v5 = vpop.f32.mrb[100].mxu1 }
 0x343   : > { %v18741_v33 = vadd.f32 %v15316_v5, %v2125_v20  ;;  %v2388_v8 = vpop.f32.mrb[101].mxu1 }
 0x346   : > { %v15319_v21 = vpop.f32.mrb[102].mxu1 }
 0x347   : > { %v2397_v58 = vpop.f32.mrb[103].mxu1 }
 0x348   : > { %v18743_v48 = vadd.f32 %v2397_v58, %v2126_v27 }
 0x34c   : > { %v15040_v42 = vpop.f32.mrb[20].mxu0 }
 0x34d   : > { %v573_v49 = vadd.f32 %v18750_v46, %v15040_v42  ;;  %v567_v52 = vpop.f32.mrb[21].mxu0 }
 0x34e   : > { %v15333_v25 = vpop.f32.mrb[104].mxu1  ;;  %v568_v56 = vadd.f32 %v18750_v46, %v567_v52 }
 0x34f   : > { %v18745_v31 = vadd.f32 %v15333_v25, %v2407_v44  ;;  %v2598_v34 = vpop.f32.mrb[105].mxu1  ;;  %v647_v7 = vmax.f32 %v573_v49, 0.0 }
 0x350   : > { %v646_v10 = vmax.f32 %v568_v56, 0.0 }
 0x351   : > { %679 = vst.msk [vmem:[#allocation2 + $0x118] sm:$0xff] %vm338_vm0, %v647_v7  ;;  %v15043_v13 = vpop.f32.mrb[22].mxu0 }
 0x352   : > { %v15336_v24 = vpop.f32.mrb[106].mxu1  ;;  %678 = vst.msk [vmem:[#allocation2 + $0x110] sm:$0xff] %vm338_vm0, %v646_v10  ;;  %v583_v19 = vadd.f32 %v18750_v46, %v15043_v13  ;;  %v577_v61 = vpop.f32.mrb[23].mxu0 }
 0x353   : > { %v2607_v54 = vpop.f32.mrb[107].mxu1  ;;  %v578_v11 = vadd.f32 %v18750_v46, %v577_v61 }
 0x354   : > { %v2702_v1 = vadd.f32 %v2607_v54, %v2408_v47  ;;  %v649_v38 = vmax.f32 %v583_v19, 0.0 }
 0x355   : > { %v648_v15 = vmax.f32 %v578_v11, 0.0  ;;  %v15046_v43 = vpop.f32.mrb[24].mxu0 }
 0x356   : > { %681 = vst.msk [vmem:[#allocation2 + $0x130] sm:$0xff] %vm338_vm0, %v649_v38  ;;  %v593_v17 = vadd.f32 %v18750_v46, %v15046_v43  ;;  %v587_v28 = vpop.f32.mrb[25].mxu0 }
 0x357   : > { %680 = vst.msk [vmem:[#allocation2 + $0x128] sm:$0xff] %vm338_vm0, %v648_v15  ;;  %v588_v12 = vadd.f32 %v18750_v46, %v587_v28 }
 0x358   : > { %v651_v32 = vmax.f32 %v593_v17, 0.0 }
 0x359   : > { %v650_v63 = vmax.f32 %v588_v12, 0.0  ;;  %v15049_v47 = vpop.f32.mrb[26].mxu0 }
 0x35a   : > { %v15342_v14 = vpop.f32.mrb[108].mxu1  ;;  %683 = vst.msk [vmem:[#allocation2 + $0x148] sm:$0xff] %vm338_vm0, %v651_v32  ;;  %v603_v50 = vadd.f32 %v18750_v46, %v15049_v47 }
 0x35b   : > { %v2705_v20 = vadd.f32 %v15342_v14, %v2411_v2  ;;  %v2626_v41 = vpop.f32.mrb[109].mxu1  ;;  %682 = vst.msk [vmem:[#allocation2 + $0x140] sm:$0xff] %vm338_vm0, %v650_v63  ;;  %v597_v2 = vpop.f32.mrb[27].mxu0 }
 0x35c   : > { %v598_v30 = vadd.f32 %v18750_v46, %v597_v2  ;;  %v653_v35 = vmax.f32 %v603_v50, 0.0  ;;  %v3658_v2 = vld [vmem:[#allocation6 + $0x30] sm:$0xff] }
 0x35e   : > { %v15345_v27 = vpop.f32.mrb[110].mxu1  ;;  %v652_v51 = vmax.f32 %v598_v30, 0.0  ;;  %685 = vst.msk [vmem:[#allocation2 + $0x160] sm:$0xff] %vm338_vm0, %v653_v35  ;;  %v3659_v30 = vld [vmem:[#allocation6 + $0x38] sm:$0xff] }
 0x35f   : > { %v2635_v44 = vpop.f32.mrb[111].mxu1 }
 0x360   : > { %v2706_v45 = vadd.f32 %v2635_v44, %v2412_v29  ;;  %684 = vst.msk [vmem:[#allocation2 + $0x158] sm:$0xff] %vm338_vm0, %v652_v51  ;;  %v15052_v29 = vpop.f32.mrb[28].mxu0 }
 0x361   : > { %v613_v23 = vadd.f32 %v18750_v46, %v15052_v29  ;;  %v607_v60 = vpop.f32.mrb[29].mxu0  ;;  %v16964_v29 = vpack.c.bf16 %v3659_v30, %v3658_v2  ;;  %v3632_v2 = vld [vmem:[#allocation2 + $0xc8] sm:$0xff] }
 0x362   : > { %v608_v5 = vadd.f32 %v18750_v46, %v607_v60  ;;  %v3629_v60 = vld [vmem:[#allocation6 + $0x8] sm:$0xff] }
 0x363   : > { %v655_v21 = vmax.f32 %v613_v23, 0.0  ;;  %v3628_v23 = vld [vmem:[#allocation6] sm:$0xff] }
 0x364   : > { %v654_v25 = vmax.f32 %v608_v5, 0.0 }
 0x365   : > { %687 = vst.msk [vmem:[#allocation2 + $0x178] sm:$0xff] %vm338_vm0, %v655_v21 }
 0x366   : > { %v15351_v53 = vpop.f32.mrb[112].mxu1  ;;  %686 = vst.msk [vmem:[#allocation2 + $0x170] sm:$0xff] %vm338_vm0, %v654_v25 }
 0x367   : > { %v2654_v22 = vpop.f32.mrb[113].mxu1  ;;  %v2709_v57 = vadd.f32 %v15351_v53, %v2415_v55 }
 0x36a   : > { %v15354_v18 = vpop.f32.mrb[114].mxu1 }
 0x36b   : > { %v2663_v8 = vpop.f32.mrb[115].mxu1 }
 0x36c   : > { %v2710_v58 = vadd.f32 %v2663_v8, %v18738_v59 }
 0x372   : > { %v15360_v34 = vpop.f32.mrb[116].mxu1 }
 0x373   : > { %v2682_v55 = vpop.f32.mrb[117].mxu1  ;;  %v2713_v42 = vadd.f32 %v15360_v34, %v18741_v33 }
 0x376   : > { %v15363_v24 = vpop.f32.mrb[118].mxu1 }
 0x377   : > { %v2691_v49 = vpop.f32.mrb[119].mxu1 }
 0x378   : > { %v2714_v52 = vadd.f32 %v2691_v49, %v18743_v48 }
 0x37e   : > { %v15377_v54 = vpop.f32.mrb[120].mxu1 }
 0x37f   : > { %v2892_v56 = vpop.f32.mrb[121].mxu1  ;;  %v2995_v7 = vadd.f32 %v15377_v54, %v18745_v31 }
 0x382   : > { %v15380_v10 = vpop.f32.mrb[122].mxu1 }
 0x383   : > { %v2901_v13 = vpop.f32.mrb[123].mxu1 }
 0x384   : > { %v2996_v59 = vadd.f32 %v2901_v13, %v2702_v1 }
 0x38a   : > { %v15386_v19 = vpop.f32.mrb[124].mxu1 }
 0x38b   : > { %v2920_v61 = vpop.f32.mrb[125].mxu1  ;;  %v2999_v11 = vadd.f32 %v15386_v19, %v2705_v20  ;;  %v18787_v20 = vld [vmem:[%s21095_s4] ss:$0 sm:$0xff] }
 0x38e   : > { %v15389_v14 = vpop.f32.mrb[126].mxu1 }
 0x38f   : > { %v2929_v38 = vpop.f32.mrb[127].mxu1 }
 0x390   : > { %v3000_v41 = vadd.f32 %v2929_v38, %v2706_v45 }
 0x396   : > { %v15395_v15 = vpop.f32.mrb[128].mxu1 }
 0x397   : > { %v18776_v43 = vadd.f32 %v15395_v15, %v2709_v57  ;;  %v2948_v33 = vpop.f32.mrb[129].mxu1 }
 0x39a   : > { %v15398_v17 = vpop.f32.mrb[130].mxu1 }
 0x39b   : > { %v2957_v28 = vpop.f32.mrb[131].mxu1 }
 0x39c   : > { %v18778_v48 = vadd.f32 %v2957_v28, %v2710_v58  ;;  %v16968_v58 = vpack.c.bf16 %v3629_v60, %v3628_v23  ;;  %v3633_v23 = vld [vmem:[#allocation2 + $0xd0] sm:$0xff]  ;;  %v4182_v60 = vld [vmem:[#allocation6 + $0x40] sm:$0xff] }
 0x3a2   : > { %v15404_v27 = vpop.f32.mrb[132].mxu1 }
 0x3a3   : > { %v18780_v12 = vadd.f32 %v15404_v27, %v2713_v42  ;;  %v2976_v31 = vpop.f32.mrb[133].mxu1 }
 0x3a6   : > { %v15407_v44 = vpop.f32.mrb[134].mxu1 }
 0x3a7   : > { %v2985_v1 = vpop.f32.mrb[135].mxu1 }
 0x3a8   : > { %v18782_v32 = vadd.f32 %v2985_v1, %v2714_v52 }
 0x3aa   : > { %v15418_v45 = vpop.f32.mrb[0].mxu1 }
 0x3ab   : > { %v3310_v63 = vadd.f32 %v15418_v45, %v18787_v20  ;;  %v3176_v47 = vpop.f32.mrb[1].mxu1 }
 0x3ac   : > { %v3309_v50 = vadd.f32 %v18787_v20, %v3176_v47  ;;  %v3631_v47 = vld [vmem:[#allocation6 + $0x18] sm:$0xff] }
 0x3ad   : > { %v3326_v53 = vmax.f32 %v3310_v63, 0.0  ;;  %v3630_v63 = vld [vmem:[#allocation6 + $0x10] sm:$0xff] }
 0x3ae   : > { %v3325_v35 = vmax.f32 %v3309_v50, 0.0  ;;  %v15421_v51 = vpop.f32.mrb[136].mxu1 }
 0x3af   : > { %v3289_v22 = vadd.f32 %v15421_v51, %v2995_v7  ;;  %v3186_v57 = vpop.f32.mrb[137].mxu1  ;;  %v15055_v51 = vpop.f32.mrb[30].mxu0 }
 0x3b0   : > { %15460 = vmatprep.mubr.msk.f32.mxu0 %vm338_vm0, %v3325_v35  ;;  %v623_v57 = vadd.f32 %v18750_v46, %v15055_v51  ;;  %v4476_v51 = vld [vmem:[#allocation6 + $0x68] sm:$0xff] }
 0x3b1   : > { %v3311_v18 = vadd.f32 %v18787_v20, %v3289_v22  ;;  %15461 = vmatmul.mubr.msk.f32.vlgmr.msra.gmra.mrb[32].mxu0 %vm338_vm0, %v3326_v53  ;;  %v16972_v22 = vpack.c.bf16 %v3631_v47, %v3630_v63  ;;  %v4184_v63 = vld [vmem:[#allocation6 + $0x50] sm:$0xff]  ;;  %v4185_v47 = vld [vmem:[#allocation6 + $0x58] sm:$0xff] }
 0x3b2   : > { %v15424_v5 = vpop.f32.mrb[138].mxu1  ;;  %16963 = vmatpush3.bf16.msra.mxu0 %v18736_v3 }
 0x3b3   : > { %v3327_v8 = vmax.f32 %v3311_v18, 0.0  ;;  %v3195_v21 = vpop.f32.mrb[139].mxu1  ;;  %16965 = vmatprep.subr.bf16.mxu0 %v16964_v29  ;;  %v4183_v18 = vld [vmem:[#allocation6 + $0x48] sm:$0xff] }
 0x3b4   : > { %v3290_v25 = vadd.f32 %v3195_v21, %v2996_v59 }
 0x3b5   : > { %15463 = vmatprep.mubr.msk.f32.mxu0 %vm338_vm0, %v3327_v8 }
 0x3b6   : > { %v3312_v34 = vadd.f32 %v18787_v20, %v3290_v25  ;;  %v15427_v55 = vpop.f32.mrb[6].mxu1  ;;  %16967 = vmatpush3.bf16.msra.mxu0 %v16964_v29  ;;  %v617_v29 = vpop.f32.mrb[31].mxu0  ;;  %v657_v25 = vmax.f32 %v623_v57, 0.0  ;;  %v18932_v57 = vld [vmem:[#allocation2 + $0xff] sm:$0xff] }
 0x3b7   : > { %v3204_v42 = vpop.f32.mrb[7].mxu1  ;;  %16969 = vmatprep.subr.bf16.mxu0 %v16968_v58  ;;  %v3314_v49 = vadd.f32 %v15427_v55, %v18787_v20  ;;  %v618_v5 = vadd.f32 %v18750_v46, %v617_v29  ;;  %v18936_v29 = vld [vmem:[#allocation2 + $0x107] sm:$0xff] }
 0x3b8   : > { %v3328_v24 = vmax.f32 %v3312_v34, 0.0  ;;  %v3313_v52 = vadd.f32 %v18787_v20, %v3204_v42  ;;  %689 = vst.msk [vmem:[#allocation2 + $0x190] sm:$0xff] %vm338_vm0, %v657_v25  ;;  %v18976_v25 = vld [vmem:[#allocation2 + $0x157] sm:$0xff] }
 0x3b9   : > { %v3330_v10 = vmax.f32 %v3314_v49, 0.0  ;;  %v656_v34 = vmax.f32 %v618_v5, 0.0  ;;  %v18822_v49 = vpack.c.bf16 %v4183_v18, %v4182_v60  ;;  %v18956_v60 = vld [vmem:[#allocation2 + $0x12f] sm:$0xff]  ;;  %v18960_v18 = vld [vmem:[#allocation2 + $0x137] sm:$0xff]  ;;  %v18964_v5 = vld [vmem:[#allocation2 + $0x13f] sm:$0xff]  ;;  %21279 = vst [vmem:[#allocation23_spill] sm:$0xff] %v18976_v25 }
 0x3ba   : > { %v3329_v54 = vmax.f32 %v3313_v52, 0.0  ;;  %v15430_v3 = vpop.f32.mrb[140].mxu1  ;;  %15464 = vmatmul.mubr.msk.f32.gmra.mrb[34].mxu0 %vm338_vm0, %v3328_v24  ;;  %21275 = vst [vmem:[#allocation37_spill] sm:$0xff] %v18960_v18  ;;  %21276 = vst [vmem:[#allocation20_spill] sm:$0xff] %v18964_v5 }
 0x3bb   : > { %v3293_v56 = vadd.f32 %v15430_v3, %v2999_v11  ;;  %v3214_v7 = vpop.f32.mrb[141].mxu1  ;;  %688 = vst.msk [vmem:[#allocation2 + $0x188] sm:$0xff] %vm338_vm0, %v656_v34  ;;  %v18984_v34 = vld [vmem:[#allocation2 + $0x167] sm:$0xff] }
 0x3bc   : > { %15466 = vmatprep.mubr.msk.f32.mxu0 %vm338_vm0, %v3329_v54  ;;  %21281 = vst [vmem:[#allocation25_spill] sm:$0xff] %v18984_v34 }
 0x3bd   : > { %v3315_v13 = vadd.f32 %v18787_v20, %v3293_v56  ;;  %v18833_v56 = vld [vmem:[#allocation2 + $0xf8] sm:$0xff] }
 0x3be   : > { %v15433_v59 = vpop.f32.mrb[142].mxu1  ;;  %15467 = vmatmul.mubr.msk.f32.gmra.mrb[36].mxu0 %vm338_vm0, %v3330_v10 }
 0x3bf   : > { %v3331_v19 = vmax.f32 %v3315_v13, 0.0  ;;  %v3223_v61 = vpop.f32.mrb[143].mxu1  ;;  %v18845_v13 = vld [vmem:[#allocation2 + $0x108] sm:$0xff]  ;;  %v18848_v59 = vld [vmem:[#allocation2 + $0x100] sm:$0xff] }
 0x3c0   : > { %v3294_v14 = vadd.f32 %v3223_v61, %v3000_v41  ;;  %v18857_v61 = vld [vmem:[#allocation2 + $0x110] sm:$0xff] }
 0x3c1   : > { %15469 = vmatprep.mubr.msk.f32.mxu0 %vm338_vm0, %v3331_v19 }
 0x3c2   : > { %v3316_v38 = vadd.f32 %v18787_v20, %v3294_v14  ;;  %v15436_v15 = vpop.f32.mrb[12].mxu1  ;;  %v18862_v14 = vld [vmem:[#allocation2 + $0x118] sm:$0xff] }
 0x3c3   : > { %v3232_v33 = vpop.f32.mrb[13].mxu1  ;;  %v3318_v11 = vadd.f32 %v15436_v15, %v18787_v20  ;;  %v18874_v15 = vld [vmem:[#allocation2 + $0x138] sm:$0xff] }
 0x3c4   : > { %v3332_v17 = vmax.f32 %v3316_v38, 0.0  ;;  %v3317_v28 = vadd.f32 %v18787_v20, %v3232_v33  ;;  %v18868_v38 = vld [vmem:[#allocation2 + $0x128] sm:$0xff]  ;;  %v18876_v33 = vld [vmem:[#allocation2 + $0x130] sm:$0xff] }
 0x3c5   : > { %v3334_v45 = vmax.f32 %v3318_v11, 0.0  ;;  %v18886_v11 = vld [vmem:[#allocation2 + $0x148] sm:$0xff] }
 0x3c6   : > { %v3333_v27 = vmax.f32 %v3317_v28, 0.0  ;;  %v15439_v31 = vpop.f32.mrb[144].mxu1  ;;  %15470 = vmatmul.mubr.msk.f32.gmra.mrb[38].mxu0 %vm338_vm0, %v3332_v17  ;;  %v18882_v17 = vld [vmem:[#allocation2 + $0x140] sm:$0xff]  ;;  %v18890_v28 = vld [vmem:[#allocation2 + $0x150] sm:$0xff] }
 0x3c7   : > { %v3297_v44 = vadd.f32 %v15439_v31, %v18776_v43  ;;  %v3242_v1 = vpop.f32.mrb[145].mxu1  ;;  %v3634_v43 = vld [vmem:[#allocation2 + $0xd8] sm:$0xff]  ;;  %v18898_v31 = vld [vmem:[#allocation2 + $0x168] sm:$0xff] }
 0x3c8   : > { %15472 = vmatprep.mubr.msk.f32.mxu0 %vm338_vm0, %v3333_v27  ;;  %v18892_v27 = vld [vmem:[#allocation2 + $0x158] sm:$0xff]  ;;  %v18906_v1 = vld [vmem:[#allocation2 + $0x170] sm:$0xff] }
 0x3c9   : > { %v3319_v41 = vadd.f32 %v18787_v20, %v3297_v44  ;;  %v18900_v44 = vld [vmem:[#allocation2 + $0x160] sm:$0xff] }
 0x3ca   : > { %v15442_v50 = vpop.f32.mrb[146].mxu1  ;;  %15473 = vmatmul.mubr.msk.f32.gmra.mrb[40].mxu0 %vm338_vm0, %v3334_v45  ;;  %v18910_v45 = vld [vmem:[#allocation2 + $0x178] sm:$0xff] }
 0x3cb   : > { %v3335_v30 = vmax.f32 %v3319_v41, 0.0  ;;  %v3251_v35 = vpop.f32.mrb[147].mxu1  ;;  %15492 = vmatprep.mubr.msk.f32.mxu0 %vm338_vm0, %v3632_v2  ;;  %v18914_v41 = vld [vmem:[#allocation2 + $0x180] sm:$0xff]  ;;  %v16980_v2 = vpack.c.bf16 %v4185_v47, %v4184_v63  ;;  %v19037_v63 = vld [vmem:[#allocation2 + $0x131] sm:$0xff] }
 0x3cc   : > { %v3298_v53 = vadd.f32 %v3251_v35, %v18778_v48  ;;  %v3604_v50 = vld [vmem:[#allocation2 + $0xc7] sm:$0xff]  ;;  %v19041_v47 = vld [vmem:[#allocation2 + $0x139] sm:$0xff] }
 0x3cd   : > { %15475 = vmatprep.mubr.msk.f32.mxu1 %vm338_vm0, %v3335_v30  ;;  %v3605_v30 = vld [vmem:[#allocation2 + $0xcf] sm:$0xff]  ;;  %v4475_v35 = vld [vmem:[#allocation6 + $0x60] sm:$0xff] }
 0x3ce   : > { %v3320_v8 = vadd.f32 %v18787_v20, %v3298_v53  ;;  %v15445_v21 = vpop.f32.mrb[18].mxu1  ;;  %15493 = vmatmul.mubr.msk.f32.vlgmr.msra.gmra.mrb[42].mxu0 %vm338_vm0, %v3633_v23  ;;  %v3606_v53 = vld [vmem:[#allocation2 + $0xd7] sm:$0xff]  ;;  %v18952_v23 = vld [vmem:[#allocation2 + $0x127] sm:$0xff] }
 0x3cf   : > { %16971 = vmatpush3.bf16.msra.mxu0 %v16968_v58  ;;  %v3260_v48 = vpop.f32.mrb[19].mxu1  ;;  %15495 = vmatprep.mubr.msk.f32.mxu0 %vm338_vm0, %v3634_v43  ;;  %v3322_v42 = vadd.f32 %v15445_v21, %v18787_v20  ;;  %v16984_v43 = vpack.c.bf16 %v4476_v51, %v4475_v35  ;;  %v18972_v21 = vld [vmem:[#allocation2 + $0x14f] sm:$0xff]  ;;  %v19057_v35 = vld [vmem:[#allocation2 + $0x159] sm:$0xff]  ;;  %v19061_v51 = vld [vmem:[#allocation2 + $0x161] sm:$0xff] }
 0x3d0   : > { %v3336_v55 = vmax.f32 %v3320_v8, 0.0  ;;  %v3321_v24 = vadd.f32 %v18787_v20, %v3260_v48  ;;  %16973 = vmatprep.subr.bf16.mxu0 %v16972_v22  ;;  %v18968_v8 = vld [vmem:[#allocation2 + $0x147] sm:$0xff]  ;;  %21278 = vst [vmem:[#allocation22_spill] sm:$0xff] %v18972_v21  ;;  %v18980_v48 = vld [vmem:[#allocation2 + $0x15f] sm:$0xff] }
 0x3d1   : > { %v3338_v3 = vmax.f32 %v3322_v42, 0.0  ;;  %21277 = vst [vmem:[#allocation21_spill] sm:$0xff] %v18968_v8  ;;  %21280 = vst [vmem:[#allocation24_spill] sm:$0xff] %v18980_v48  ;;  %v18992_v42 = vld [vmem:[#allocation2 + $0x177] sm:$0xff] }
 0x3d2   : > { %v3337_v46 = vmax.f32 %v3321_v24, 0.0  ;;  %v15448_v52 = vpop.f32.mrb[148].mxu1  ;;  %15476 = vmatmul.mubr.msk.f32.vlgmr.msra.gmra.mrb[152].mxu1 %vm338_vm0, %v3336_v55  ;;  %15496 = vmatmul.mubr.msk.f32.gmra.mrb[44].mxu0 %vm338_vm0, %v18643_v37  ;;  %v18988_v55 = vld [vmem:[#allocation2 + $0x16f] sm:$0xff]  ;;  %21283 = vst [vmem:[#allocation27_spill] sm:$0xff] %v18992_v42  ;;  %v18996_v24 = vld [vmem:[#allocation2 + $0x17f] sm:$0xff] }
 0x3d3   : > { %v3301_v58 = vadd.f32 %v15448_v52, %v18780_v12  ;;  %v3270_v54 = vpop.f32.mrb[149].mxu1  ;;  %15498 = vmatprep.mubr.msk.f32.mxu0 %vm338_vm0, %v18647_v16  ;;  %16975 = vmatpush3.bf16.msra.mxu0 %v16972_v22  ;;  %v18928_v22 = vld [vmem:[#allocation2 + $0xf7] sm:$0xff]  ;;  %21282 = vst [vmem:[#allocation26_spill] sm:$0xff] %v18988_v55  ;;  %21284 = vst [vmem:[#allocation28_spill] sm:$0xff] %v18996_v24  ;;  %v4158_v52 = vld [vmem:[#allocation2 + $0xc9] sm:$0xff] }
 0x3d4   : > { %15478 = vmatprep.mubr.msk.f32.mxu1 %vm338_vm0, %v3337_v46  ;;  %16977 = vmatprep.subr.bf16.mxu0 %v18822_v49  ;;  %v4478_v46 = vld [vmem:[#allocation6 + $0x78] sm:$0xff] }
 0x3d5   : > { %v3323_v7 = vadd.f32 %v18787_v20, %v3301_v58  ;;  %17035 = vmatpush3.bf16.msra.mxu1 %v18701_v40  ;;  %v4159_v54 = vld [vmem:[#allocation2 + $0xd1] sm:$0xff] }
 0x3d6   : > { %v15451_v10 = vpop.f32.mrb[150].mxu1  ;;  %15479 = vmatmul.mubr.msk.f32.gmra.mrb[154].mxu1 %vm338_vm0, %v3338_v3  ;;  %15499 = vmatmul.mubr.msk.f32.gmra.mrb[46].mxu0 %vm338_vm0, %v18651_v39  ;;  %v21274_v39 = vld [vmem:[#allocation12_spill] sm:$0xff] }
 0x3d7   : > { %v3339_v37 = vmax.f32 %v3323_v7, 0.0  ;;  %v3279_v16 = vpop.f32.mrb[151].mxu1  ;;  %15501 = vmatprep.mubr.msk.f32.mxu0 %vm338_vm0, %v18833_v56  ;;  %17037 = vmatprep.subr.bf16.mxu1 %v18729_v36  ;;  %v4768_v3 = vld [vmem:[#allocation6 + $0x80] sm:$0xff]  ;;  %v4769_v7 = vld [vmem:[#allocation6 + $0x88] sm:$0xff] }
 0x3d8   : > { %v3302_v12 = vadd.f32 %v3279_v16, %v18782_v32  ;;  %v4160_v10 = vld [vmem:[#allocation2 + $0xd9] sm:$0xff] }
 0x3d9   : > { %15481 = vmatprep.mubr.msk.f32.mxu1 %vm338_vm0, %v3339_v37  ;;  %17039 = vmatpush3.bf16.msra.mxu1 %v18729_v36  ;;  %v16992_v37 = vpack.c.bf16 %v4769_v7, %v4768_v3  ;;  %v19009_v16 = vld [vmem:[#allocation2 + $0xf9] sm:$0xff]  ;;  %v4452_v7 = vld [vmem:[#allocation2 + $0xe7] sm:$0xff]  ;;  %v4453_v36 = vld [vmem:[#allocation2 + $0xef] sm:$0xff] }
 0x3da   : > { %v3324_v19 = vadd.f32 %v18787_v20, %v3302_v12  ;;  %15502 = vmatmul.mubr.msk.f32.gmra.mrb[48].mxu0 %vm338_vm0, %v18848_v59  ;;  %17041 = vmatprep.subr.bf16.mxu1 %v21274_v39  ;;  %v18866_v20 = vld [vmem:[#allocation2 + $0x120] sm:$0xff]  ;;  %v5062_v39 = vld [vmem:[#allocation6 + $0xa8] sm:$0xff] }
 0x3db   : > { %15504 = vmatprep.mubr.msk.f32.mxu0 %vm338_vm0, %v18845_v13  ;;  %v19013_v12 = vld [vmem:[#allocation2 + $0x101] sm:$0xff] }
 0x3dc   : > { %v3340_v32 = vmax.f32 %v3324_v19, 0.0  ;;  %v19017_v19 = vld [vmem:[#allocation2 + $0x109] sm:$0xff] }
 0x3de   : > { %15482 = vmatmul.mubr.msk.f32.gmra.mrb[156].mxu1 %vm338_vm0, %v3340_v32  ;;  %15505 = vmatmul.mubr.msk.f32.gmra.mrb[50].mxu0 %vm338_vm0, %v18857_v61  ;;  %v19033_v32 = vld [vmem:[#allocation2 + $0x129] sm:$0xff] }
 0x3df   : > { %15507 = vmatprep.mubr.msk.f32.mxu0 %vm338_vm0, %v18862_v14 }
 0x3e2   : > { %15508 = vmatmul.mubr.msk.f32.gmra.mrb[52].mxu0 %vm338_vm0, %v18866_v20 }
 0x3e3   : > { %15510 = vmatprep.mubr.msk.f32.mxu0 %vm338_vm0, %v18868_v38 }
 0x3e6   : > { %15511 = vmatmul.mubr.msk.f32.gmra.mrb[54].mxu0 %vm338_vm0, %v18876_v33 }
 0x3e7   : > { %15513 = vmatprep.mubr.msk.f32.mxu0 %vm338_vm0, %v18874_v15 }
 0x3ea   : > { %15514 = vmatmul.mubr.msk.f32.gmra.mrb[56].mxu0 %vm338_vm0, %v18882_v17 }
 0x3eb   : > { %15516 = vmatprep.mubr.msk.f32.mxu0 %vm338_vm0, %v18886_v11 }
 0x3ee   : > { %15517 = vmatmul.mubr.msk.f32.gmra.mrb[58].mxu0 %vm338_vm0, %v18890_v28 }
 0x3ef   : > { %15519 = vmatprep.mubr.msk.f32.mxu0 %vm338_vm0, %v18892_v27 }
 0x3f2   : > { %15520 = vmatmul.mubr.msk.f32.gmra.mrb[60].mxu0 %vm338_vm0, %v18900_v44 }
 0x3f3   : > { %15522 = vmatprep.mubr.msk.f32.mxu0 %vm338_vm0, %v18898_v31 }
 0x3f6   : > { %15523 = vmatmul.mubr.msk.f32.gmra.mrb[62].mxu0 %vm338_vm0, %v18906_v1 }
 0x3f7   : > { %15525 = vmatprep.mubr.msk.f32.mxu0 %vm338_vm0, %v18910_v45 }
 0x3fa   : > { %15526 = vmatmul.mubr.msk.f32.gmra.mrb[64].mxu0 %vm338_vm0, %v18914_v41 }
 0x3fb   : > { %15536 = vmatprep.mubr.msk.f32.mxu0 %vm338_vm0, %v3604_v50  ;;  %v19045_v50 = vld [vmem:[#allocation2 + $0x141] sm:$0xff] }
 0x3fe   : > { %15537 = vmatmul.mubr.msk.f32.vlgmr.msra.gmra.mrb[42].mxu0 %vm338_vm0, %v3605_v30  ;;  %v19053_v30 = vld [vmem:[#allocation2 + $0x151] sm:$0xff] }
 0x3ff   : > { %16979 = vmatpush3.bf16.msra.mxu0 %v18822_v49  ;;  %15539 = vmatprep.mubr.msk.f32.mxu0 %vm338_vm0, %v3606_v53  ;;  %v4477_v49 = vld [vmem:[#allocation6 + $0x70] sm:$0xff] }
 0x400   : > { %16981 = vmatprep.subr.bf16.mxu0 %v16980_v2  ;;  %v16988_v58 = vpack.c.bf16 %v4478_v46, %v4477_v49  ;;  %v19065_v53 = vld [vmem:[#allocation2 + $0x169] sm:$0xff]  ;;  %v19073_v49 = vld [vmem:[#allocation2 + $0x179] sm:$0xff]  ;;  %v19077_v46 = vld [vmem:[#allocation2 + $0x181] sm:$0xff] }
 0x402   : > { %15540 = vmatmul.mubr.msk.f32.gmra.mrb[66].mxu0 %vm338_vm0, %v18583_v62  ;;  %v18940_v62 = vld [vmem:[#allocation2 + $0x10f] sm:$0xff] }
 0x403   : > { %15542 = vmatprep.mubr.msk.f32.mxu0 %vm338_vm0, %v18587_v0  ;;  %16983 = vmatpush3.bf16.msra.mxu0 %v16980_v2  ;;  %v18944_v0 = vld [vmem:[#allocation2 + $0x117] sm:$0xff]  ;;  %v19049_v2 = vld [vmem:[#allocation2 + $0x149] sm:$0xff] }
 0x404   : > { %16985 = vmatprep.subr.bf16.mxu0 %v16984_v43 }
 0x406   : > { %15543 = vmatmul.mubr.msk.f32.gmra.mrb[68].mxu0 %vm338_vm0, %v18592_v26  ;;  %v18948_v26 = vld [vmem:[#allocation2 + $0x11f] sm:$0xff] }
 0x407   : > { %15545 = vmatprep.mubr.msk.f32.mxu0 %vm338_vm0, %v18928_v22 }
 0x40a   : > { %15546 = vmatmul.mubr.msk.f32.gmra.mrb[48].mxu0 %vm338_vm0, %v18932_v57 }
 0x40b   : > { %15548 = vmatprep.mubr.msk.f32.mxu0 %vm338_vm0, %v18936_v29 }
 0x40e   : > { %15549 = vmatmul.mubr.msk.f32.gmra.mrb[70].mxu0 %vm338_vm0, %v18940_v62 }
 0x40f   : > { %15551 = vmatprep.mubr.msk.f32.mxu0 %vm338_vm0, %v18944_v0 }
 0x412   : > { %15552 = vmatmul.mubr.msk.f32.gmra.mrb[72].mxu0 %vm338_vm0, %v18948_v26 }
 0x413   : > { %15554 = vmatprep.mubr.msk.f32.mxu0 %vm338_vm0, %v18952_v23 }
 0x416   : > { %15555 = vmatmul.mubr.msk.f32.gmra.mrb[54].mxu0 %vm338_vm0, %v18956_v60 }
 0x417   : > { %15557 = vmatprep.mubr.msk.f32.mxu0 %vm338_vm0, %v18960_v18 }
 0x41a   : > { %15558 = vmatmul.mubr.msk.f32.gmra.mrb[74].mxu0 %vm338_vm0, %v18964_v5 }
 0x41b   : > { %15560 = vmatprep.mubr.msk.f32.mxu0 %vm338_vm0, %v18968_v8 }
 0x41e   : > { %15561 = vmatmul.mubr.msk.f32.gmra.mrb[76].mxu0 %vm338_vm0, %v18972_v21 }
 0x41f   : > { %15563 = vmatprep.mubr.msk.f32.mxu0 %vm338_vm0, %v18976_v25 }
 0x422   : > { %15564 = vmatmul.mubr.msk.f32.gmra.mrb[60].mxu0 %vm338_vm0, %v18980_v48 }
 0x423   : > { %15566 = vmatprep.mubr.msk.f32.mxu0 %vm338_vm0, %v18984_v34 }
 0x426   : > { %15567 = vmatmul.mubr.msk.f32.gmra.mrb[78].mxu0 %vm338_vm0, %v18988_v55 }
 0x427   : > { %15569 = vmatprep.mubr.msk.f32.mxu0 %vm338_vm0, %v18992_v42 }
 0x42a   : > { %15570 = vmatmul.mubr.msk.f32.gmra.mrb[80].mxu0 %vm338_vm0, %v18996_v24 }
 0x42b   : > { %15580 = vmatprep.mubr.msk.f32.mxu0 %vm338_vm0, %v4158_v52  ;;  %v4770_v52 = vld [vmem:[#allocation6 + $0x90] sm:$0xff] }
 0x42e   : > { %15581 = vmatmul.mubr.msk.f32.vlgmr.msra.gmra.mrb[42].mxu0 %vm338_vm0, %v4159_v54  ;;  %v4451_v54 = vld [vmem:[#allocation2 + $0xdf] sm:$0xff] }
 0x42f   : > { %16987 = vmatpush3.bf16.msra.mxu0 %v16984_v43  ;;  %15583 = vmatprep.mubr.msk.f32.mxu0 %vm338_vm0, %v4160_v10  ;;  %v19069_v43 = vld [vmem:[#allocation2 + $0x171] sm:$0xff]  ;;  %v5061_v10 = vld [vmem:[#allocation6 + $0xa0] sm:$0xff] }
 0x430   : > { %16989 = vmatprep.subr.bf16.mxu0 %v16988_v58  ;;  %v17000_v40 = vpack.c.bf16 %v5062_v39, %v5061_v10  ;;  %v19133_v10 = vld [vmem:[#allocation2 + $0x18f] sm:$0xff] }
 0x431   : > { %21286 = vst [vmem:[#allocation30_spill] sm:$0xff] %v19133_v10 }
 0x432   : > { %15584 = vmatmul.mubr.msk.f32.gmra.mrb[82].mxu0 %vm338_vm0, %v18711_v4  ;;  %v19021_v4 = vld [vmem:[#allocation2 + $0x111] sm:$0xff] }
 0x433   : > { %15586 = vmatprep.mubr.msk.f32.mxu0 %vm338_vm0, %v18715_v6  ;;  %16991 = vmatpush3.bf16.msra.mxu0 %v16988_v58  ;;  %v19025_v6 = vld [vmem:[#allocation2 + $0x119] sm:$0xff] }
 0x434   : > { %16993 = vmatprep.subr.bf16.mxu0 %v16992_v37  ;;  %v4771_v58 = vld [vmem:[#allocation6 + $0x98] sm:$0xff] }
 0x435   : > { %v16996_v3 = vpack.c.bf16 %v4771_v58, %v4770_v52 }
 0x436   : > { %15587 = vmatmul.mubr.msk.f32.gmra.mrb[84].mxu0 %vm338_vm0, %v18719_v9  ;;  %v19029_v9 = vld [vmem:[#allocation2 + $0x121] sm:$0xff] }
 0x437   : > { %15589 = vmatprep.mubr.msk.f32.mxu0 %vm338_vm0, %v19009_v16 }
 0x43a   : > { %15590 = vmatmul.mubr.msk.f32.gmra.mrb[48].mxu0 %vm338_vm0, %v19013_v12 }
 0x43b   : > { %15592 = vmatprep.mubr.msk.f32.mxu0 %vm338_vm0, %v19017_v19 }
 0x43e   : > { %15593 = vmatmul.mubr.msk.f32.gmra.mrb[86].mxu0 %vm338_vm0, %v19021_v4 }
 0x43f   : > { %15595 = vmatprep.mubr.msk.f32.mxu0 %vm338_vm0, %v19025_v6 }
 0x442   : > { %15596 = vmatmul.mubr.msk.f32.gmra.mrb[88].mxu0 %vm338_vm0, %v19029_v9 }
 0x443   : > { %15598 = vmatprep.mubr.msk.f32.mxu0 %vm338_vm0, %v19033_v32 }
 0x446   : > { %15599 = vmatmul.mubr.msk.f32.gmra.mrb[54].mxu0 %vm338_vm0, %v19037_v63 }
 0x447   : > { %15601 = vmatprep.mubr.msk.f32.mxu0 %vm338_vm0, %v19041_v47 }
 0x44a   : > { %15602 = vmatmul.mubr.msk.f32.gmra.mrb[90].mxu0 %vm338_vm0, %v19045_v50 }
 0x44b   : > { %15604 = vmatprep.mubr.msk.f32.mxu0 %vm338_vm0, %v19049_v2 }
 0x44e   : > { %15605 = vmatmul.mubr.msk.f32.gmra.mrb[92].mxu0 %vm338_vm0, %v19053_v30 }
 0x44f   : > { %15607 = vmatprep.mubr.msk.f32.mxu0 %vm338_vm0, %v19057_v35 }
 0x452   : > { %15608 = vmatmul.mubr.msk.f32.gmra.mrb[60].mxu0 %vm338_vm0, %v19061_v51 }
 0x453   : > { %15610 = vmatprep.mubr.msk.f32.mxu0 %vm338_vm0, %v19065_v53 }
 0x456   : > { %15611 = vmatmul.mubr.msk.f32.gmra.mrb[94].mxu0 %vm338_vm0, %v19069_v43 }
 0x457   : > { %15613 = vmatprep.mubr.msk.f32.mxu0 %vm338_vm0, %v19073_v49 }
 0x45a   : > { %15614 = vmatmul.mubr.msk.f32.gmra.mrb[96].mxu0 %vm338_vm0, %v19077_v46 }
 0x45b   : > { %15624 = vmatprep.mubr.msk.f32.mxu0 %vm338_vm0, %v4451_v54  ;;  %v3540_v54 = vld [vmem:[%s17891_s15] sm:$0xff] }
 0x45e   : > { %15625 = vmatmul.mubr.msk.f32.vlgmr.msra.gmra.mrb[42].mxu0 %vm338_vm0, %v4452_v7 }
 0x45f   : > { %16995 = vmatpush3.bf16.msra.mxu0 %v16992_v37  ;;  %15627 = vmatprep.mubr.msk.f32.mxu0 %vm338_vm0, %v4453_v36  ;;  %v19121_v36 = vld [vmem:[%s21097_s6] ss:$0 sm:$0xff]  ;;  %v3541_v37 = vld [vmem:[%s17891_s15 + $0x8] sm:$0xff] }
 0x460   : > { %16997 = vmatprep.subr.bf16.mxu0 %v16996_v3 }
 0x462   : > { %15628 = vmatmul.mubr.msk.f32.gmra.mrb[98].mxu0 %vm338_vm0, %v18928_v22 }
 0x463   : > { %15630 = vmatprep.mubr.msk.f32.mxu0 %vm338_vm0, %v18932_v57  ;;  %16999 = vmatpush3.bf16.msra.mxu0 %v16996_v3  ;;  %v19128_v3 = vld [vmem:[#allocation2 + $0x187] sm:$0xff] }
 0x464   : > { %17001 = vmatprep.subr.bf16.mxu0 %v17000_v40  ;;  %21285 = vst [vmem:[#allocation29_spill] sm:$0xff] %v19128_v3 }
 0x466   : > { %15631 = vmatmul.mubr.msk.f32.gmra.mrb[100].mxu0 %vm338_vm0, %v18936_v29 }
 0x467   : > { %15633 = vmatprep.mubr.msk.f32.mxu0 %vm338_vm0, %v18940_v62 }
 0x46a   : > { %15634 = vmatmul.mubr.msk.f32.gmra.mrb[48].mxu0 %vm338_vm0, %v18944_v0 }
 0x46b   : > { %15636 = vmatprep.mubr.msk.f32.mxu0 %vm338_vm0, %v18948_v26 }
 0x46e   : > { %15637 = vmatmul.mubr.msk.f32.gmra.mrb[102].mxu0 %vm338_vm0, %v18952_v23 }
 0x46f   : > { %15639 = vmatprep.mubr.msk.f32.mxu0 %vm338_vm0, %v18956_v60 }
 0x472   : > { %15640 = vmatmul.mubr.msk.f32.gmra.mrb[104].mxu0 %vm338_vm0, %v18960_v18 }
 0x473   : > { %15642 = vmatprep.mubr.msk.f32.mxu0 %vm338_vm0, %v18964_v5 }
 0x476   : > { %15643 = vmatmul.mubr.msk.f32.gmra.mrb[54].mxu0 %vm338_vm0, %v18968_v8  ;;  %v3545_v8 = vld [vmem:[%s17891_s15 + $0x28] sm:$0xff] }
 0x477   : > { %15645 = vmatprep.mubr.msk.f32.mxu0 %vm338_vm0, %v18972_v21  ;;  %v3542_v21 = vld [vmem:[%s17891_s15 + $0x10] sm:$0xff] }
 0x47a   : > { %15646 = vmatmul.mubr.msk.f32.gmra.mrb[106].mxu0 %vm338_vm0, %v18976_v25 }
 0x47b   : > { %15648 = vmatprep.mubr.msk.f32.mxu0 %vm338_vm0, %v18980_v48  ;;  %v5064_v48 = vld [vmem:[#allocation6 + $0xb8] sm:$0xff] }
 0x47e   : > { %15649 = vmatmul.mubr.msk.f32.gmra.mrb[108].mxu0 %vm338_vm0, %v18984_v34  ;;  %v5063_v34 = vld [vmem:[#allocation6 + $0xb0] sm:$0xff] }
 0x47f   : > { %15651 = vmatprep.mubr.msk.f32.mxu0 %vm338_vm0, %v18988_v55 }
 0x482   : > { %15652 = vmatmul.mubr.msk.f32.gmra.mrb[60].mxu0 %vm338_vm0, %v18992_v42 }
 0x483   : > { %15654 = vmatprep.mubr.msk.f32.mxu0 %vm338_vm0, %v18996_v24 }
 0x484   : > { %v15462_v39 = vpop.f32.mrb[32].mxu0 }
 0x485   : > { %v3467_v52 = vadd.f32 %v15462_v39, %v19121_v36  ;;  %v3461_v58 = vpop.f32.mrb[33].mxu0  ;;  %v19137_v39 = vld [vmem:[#allocation2 + $0x197] sm:$0xff] }
 0x486   : > { %v3462_v7 = vadd.f32 %v19121_v36, %v3461_v58  ;;  %15655 = vmatmul.mubr.msk.f32.gmra.mrb[110].mxu0 %vm338_vm0, %v19128_v3  ;;  %21287 = vst [vmem:[#allocation31_spill] sm:$0xff] %v19137_v39  ;;  %v4744_v58 = vld [vmem:[#allocation2 + $0xe0] sm:$0xff] }
 0x487   : > { %v3557_v42 = vadd.f32 %v3541_v37, %v3467_v52  ;;  %15657 = vmatprep.mubr.msk.f32.mxu0 %vm338_vm0, %v19133_v10  ;;  %v4746_v37 = vld [vmem:[#allocation2 + $0xf0] sm:$0xff]  ;;  %v17004_v52 = vpack.c.bf16 %v5064_v48, %v5063_v34  ;;  %v5355_v10 = vld [vmem:[#allocation6 + $0xc8] sm:$0xff] }
 0x488   : > { %v3556_v24 = vadd.f32 %v3540_v54, %v3462_v7  ;;  %v5354_v7 = vld [vmem:[#allocation6 + $0xc0] sm:$0xff] }
 0x489   : > { %v3573_v55 = vmax.f32 %v3557_v42, 0.0  ;;  %v4745_v42 = vld [vmem:[#allocation2 + $0xe8] sm:$0xff]  ;;  %v19154_v48 = vpack.c.bf16 %v5355_v10, %v5354_v7 }
 0x48a   : > { %v3572_v25 = vmax.f32 %v3556_v24, 0.0  ;;  %15658 = vmatmul.mubr.msk.f32.gmra.mrb[112].mxu0 %vm338_vm0, %v19137_v39  ;;  %v3543_v24 = vld [vmem:[%s17891_s15 + $0x18] sm:$0xff]  ;;  %v3549_v7 = vld [vmem:[%s17891_s15 + $0x48] sm:$0xff] }
 0x48b   : > { %3589 = vst [vmem:[%s19143_s17 + $0x8] sm:$0xff] %v3573_v55  ;;  %15668 = vmatprep.mubr.msk.f32.mxu0 %vm338_vm0, %v4744_v58 }
 0x48c   : > { %3588 = vst [vmem:[%s19143_s17] sm:$0xff] %v3572_v25 }
 0x48d   : > { %v15465_v54 = vpop.f32.mrb[34].mxu0 }
 0x48e   : > { %v3477_v39 = vadd.f32 %v15465_v54, %v19121_v36  ;;  %v3471_v3 = vpop.f32.mrb[35].mxu0  ;;  %15669 = vmatmul.mubr.msk.f32.vlgmr.msra.gmra.mrb[42].mxu0 %vm338_vm0, %v4745_v42  ;;  %v3544_v42 = vld [vmem:[%s17891_s15 + $0x20] sm:$0xff] }
 0x48f   : > { %v3472_v55 = vadd.f32 %v19121_v36, %v3471_v3  ;;  %17003 = vmatpush3.bf16.msra.mxu0 %v17000_v40  ;;  %15671 = vmatprep.mubr.msk.f32.mxu0 %vm338_vm0, %v4746_v37  ;;  %v3546_v37 = vld [vmem:[%s17891_s15 + $0x30] sm:$0xff] }
 0x490   : > { %v3559_v25 = vadd.f32 %v3543_v24, %v3477_v39  ;;  %17005 = vmatprep.subr.bf16.mxu0 %v17004_v52 }
 0x491   : > { %v3558_v34 = vadd.f32 %v3542_v21, %v3472_v55  ;;  %v15468_v58 = vpop.f32.mrb[36].mxu0 }
 0x492   : > { %v3575_v54 = vmax.f32 %v3559_v25, 0.0  ;;  %v3487_v5 = vadd.f32 %v15468_v58, %v19121_v36  ;;  %v3481_v18 = vpop.f32.mrb[37].mxu0  ;;  %15672 = vmatmul.mubr.msk.f32.gmra.mrb[114].mxu0 %vm338_vm0, %v18833_v56  ;;  %v3548_v58 = vld [vmem:[%s17891_s15 + $0x40] sm:$0xff] }
 0x493   : > { %v3574_v40 = vmax.f32 %v3558_v34, 0.0  ;;  %v3482_v3 = vadd.f32 %v19121_v36, %v3481_v18  ;;  %15674 = vmatprep.mubr.msk.f32.mxu0 %vm338_vm0, %v18848_v59  ;;  %17007 = vmatpush3.bf16.msra.mxu0 %v17004_v52  ;;  %v3547_v18 = vld [vmem:[%s17891_s15 + $0x38] sm:$0xff] }
 0x494   : > { %3591 = vst [vmem:[%s19143_s17 + $0x18] sm:$0xff] %v3575_v54  ;;  %v3561_v21 = vadd.f32 %v3545_v8, %v3487_v5  ;;  %17009 = vmatprep.subr.bf16.mxu0 %v19154_v48 }
 0x495   : > { %3590 = vst [vmem:[%s19143_s17 + $0x10] sm:$0xff] %v3574_v40  ;;  %v3560_v10 = vadd.f32 %v3544_v42, %v3482_v3 }
 0x496   : > { %v3577_v39 = vmax.f32 %v3561_v21, 0.0  ;;  %15675 = vmatmul.mubr.msk.f32.gmra.mrb[116].mxu0 %vm338_vm0, %v18845_v13  ;;  %v3551_v21 = vld [vmem:[%s17891_s15 + $0x58] sm:$0xff] }
 0x497   : > { %v3576_v56 = vmax.f32 %v3560_v10, 0.0  ;;  %15677 = vmatprep.mubr.msk.f32.mxu0 %vm338_vm0, %v18857_v61 }
 0x498   : > { %3593 = vst [vmem:[%s19143_s17 + $0x28] sm:$0xff] %v3577_v39 }
 0x499   : > { %3592 = vst [vmem:[%s19143_s17 + $0x20] sm:$0xff] %v3576_v56  ;;  %v15471_v59 = vpop.f32.mrb[38].mxu0  ;;  %v3550_v56 = vld [vmem:[%s17891_s15 + $0x50] sm:$0xff] }
 0x49a   : > { %v3497_v5 = vadd.f32 %v15471_v59, %v19121_v36  ;;  %v3491_v8 = vpop.f32.mrb[39].mxu0  ;;  %15678 = vmatmul.mubr.msk.f32.gmra.mrb[48].mxu0 %vm338_vm0, %v18862_v14 }
 0x49b   : > { %v3492_v13 = vadd.f32 %v19121_v36, %v3491_v8  ;;  %15680 = vmatprep.mubr.msk.f32.mxu0 %vm338_vm0, %v18866_v20  ;;  %v3553_v8 = vld [vmem:[%s17891_s15 + $0x68] sm:$0xff] }
 0x49c   : > { %v3563_v61 = vadd.f32 %v3547_v18, %v3497_v5 }
 0x49d   : > { %v3562_v52 = vadd.f32 %v3546_v37, %v3492_v13  ;;  %v15474_v24 = vpop.f32.mrb[40].mxu0 }
 0x49e   : > { %v3579_v55 = vmax.f32 %v3563_v61, 0.0  ;;  %v3507_v25 = vadd.f32 %v15474_v24, %v19121_v36  ;;  %v3501_v34 = vpop.f32.mrb[41].mxu0  ;;  %15681 = vmatmul.mubr.msk.f32.gmra.mrb[118].mxu0 %vm338_vm0, %v18868_v38  ;;  %v3552_v24 = vld [vmem:[%s17891_s15 + $0x60] sm:$0xff] }
 0x49f   : > { %v3578_v14 = vmax.f32 %v3562_v52, 0.0  ;;  %v3502_v54 = vadd.f32 %v19121_v36, %v3501_v34  ;;  %15683 = vmatprep.mubr.msk.f32.mxu0 %vm338_vm0, %v18876_v33 }
 0x4a0   : > { %3595 = vst [vmem:[%s19143_s17 + $0x38] sm:$0xff] %v3579_v55  ;;  %v3565_v20 = vadd.f32 %v3549_v7, %v3507_v25 }
 0x4a1   : > { %3594 = vst [vmem:[%s19143_s17 + $0x30] sm:$0xff] %v3578_v14  ;;  %v3564_v42 = vadd.f32 %v3548_v58, %v3502_v54  ;;  %v3555_v14 = vld [vmem:[%s17891_s15 + $0x78] sm:$0xff] }
 0x4a2   : > { %v3581_v40 = vmax.f32 %v3565_v20, 0.0  ;;  %15684 = vmatmul.mubr.msk.f32.gmra.mrb[120].mxu0 %vm338_vm0, %v18874_v15 }
 0x4a3   : > { %v3580_v3 = vmax.f32 %v3564_v42, 0.0  ;;  %15686 = vmatprep.mubr.msk.f32.mxu0 %vm338_vm0, %v18882_v17  ;;  %v3554_v42 = vld [vmem:[%s17891_s15 + $0x70] sm:$0xff] }
 0x4a4   : > { %3597 = vst [vmem:[%s19143_s17 + $0x48] sm:$0xff] %v3581_v40 }
 0x4a5   : > { %3596 = vst [vmem:[%s19143_s17 + $0x40] sm:$0xff] %v3580_v3  ;;  %v15477_v38 = vpop.f32.mrb[152].mxu1  ;;  %v19198_v10 = vpop.f32.mrb[44].mxu0 }
 0x4a6   : > { %v3517_v33 = vadd.f32 %v15477_v38, %v19121_v36  ;;  %v3511_v39 = vpop.f32.mrb[153].mxu1  ;;  %v3808_v59 = vpop.f32.mrb[45].mxu0  ;;  %15687 = vmatmul.mubr.msk.f32.gmra.mrb[54].mxu0 %vm338_vm0, %v18886_v11 }
 0x4a7   : > { %v3512_v15 = vadd.f32 %v19121_v36, %v3511_v39  ;;  %15689 = vmatprep.mubr.msk.f32.mxu0 %vm338_vm0, %v18890_v28 }
 0x4a8   : > { %v3567_v17 = vadd.f32 %v3551_v21, %v3517_v33  ;;  %v19235_v21 = vld [vmem:[#allocation2 + $0x188] sm:$0xff] }
 0x4a9   : > { %v3566_v18 = vadd.f32 %v3550_v56, %v3512_v15  ;;  %v15480_v5 = vpop.f32.mrb[154].mxu1  ;;  %v15500_v37 = vpop.f32.mrb[46].mxu0  ;;  %v19241_v56 = vld [vmem:[#allocation2 + $0x190] sm:$0xff]  ;;  %v5037_v15 = vld [vmem:[#allocation2 + $0xe1] sm:$0xff] }
 0x4aa   : > { %v3583_v13 = vmax.f32 %v3567_v17, 0.0  ;;  %v3527_v61 = vadd.f32 %v15480_v5, %v19121_v36  ;;  %v3521_v52 = vpop.f32.mrb[155].mxu1  ;;  %v19210_v11 = vpop.f32.mrb[47].mxu0  ;;  %15690 = vmatmul.mubr.msk.f32.gmra.mrb[122].mxu0 %vm338_vm0, %v18892_v27  ;;  %v5038_v5 = vld [vmem:[#allocation2 + $0xe9] sm:$0xff] }
 0x4ab   : > { %v3582_v28 = vmax.f32 %v3566_v18, 0.0  ;;  %v3522_v7 = vadd.f32 %v19121_v36, %v3521_v52  ;;  %15692 = vmatprep.mubr.msk.f32.mxu0 %vm338_vm0, %v18900_v44  ;;  %v5648_v37 = vld [vmem:[#allocation6 + $0xe8] sm:$0xff] }
 0x4ac   : > { %3599 = vst [vmem:[%s19143_s17 + $0x58] sm:$0xff] %v3583_v13  ;;  %v3569_v55 = vadd.f32 %v3553_v8, %v3527_v61  ;;  %v5647_v8 = vld [vmem:[#allocation6 + $0xe0] sm:$0xff]  ;;  %v5039_v61 = vld [vmem:[#allocation2 + $0xf1] sm:$0xff] }
 0x4ad   : > { %3598 = vst [vmem:[%s19143_s17 + $0x50] sm:$0xff] %v3582_v28  ;;  %v3568_v25 = vadd.f32 %v3552_v24, %v3522_v7  ;;  %v17016_v52 = vpack.c.bf16 %v5648_v37, %v5647_v8  ;;  %v21289_v8 = vld [vmem:[#allocation20_spill] sm:$0xff] }
 0x4ae   : > { %v3585_v34 = vmax.f32 %v3569_v55, 0.0  ;;  %15693 = vmatmul.mubr.msk.f32.gmra.mrb[124].mxu0 %vm338_vm0, %v18898_v31 }
 0x4af   : > { %v3584_v58 = vmax.f32 %v3568_v25, 0.0  ;;  %15695 = vmatprep.mubr.msk.f32.mxu0 %vm338_vm0, %v18906_v1 }
 0x4b0   : > { %3601 = vst [vmem:[%s19143_s17 + $0x68] sm:$0xff] %v3585_v34 }
 0x4b1   : > { %3600 = vst [vmem:[%s19143_s17 + $0x60] sm:$0xff] %v3584_v58  ;;  %v15483_v27 = vpop.f32.mrb[156].mxu1  ;;  %v19226_v54 = vpop.f32.mrb[50].mxu0 }
 0x4b2   : > { %v3537_v44 = vadd.f32 %v15483_v27, %v19121_v36  ;;  %v3531_v20 = vpop.f32.mrb[157].mxu1  ;;  %v3836_v40 = vpop.f32.mrb[51].mxu0  ;;  %15696 = vmatmul.mubr.msk.f32.gmra.mrb[60].mxu0 %vm338_vm0, %v18910_v45  ;;  %v19245_v45 = vld [vmem:[#allocation2 + $0x198] sm:$0xff] }
 0x4b3   : > { %v3532_v31 = vadd.f32 %v19121_v36, %v3531_v20  ;;  %15698 = vmatprep.mubr.msk.f32.mxu0 %vm338_vm0, %v18914_v41  ;;  %v5356_v41 = vld [vmem:[#allocation6 + $0xd0] sm:$0xff]  ;;  %v5357_v36 = vld [vmem:[#allocation6 + $0xd8] sm:$0xff] }
 0x4b4   : > { %v3571_v1 = vadd.f32 %v3555_v14, %v3537_v44  ;;  %v17012_v17 = vpack.c.bf16 %v5357_v36, %v5356_v41  ;;  %v19294_v44 = vld [vmem:[#allocation2 + $0x189] sm:$0xff] }
 0x4b5   : > { %v3570_v3 = vadd.f32 %v3554_v42, %v3532_v31  ;;  %v15509_v38 = vpop.f32.mrb[52].mxu0  ;;  %v19298_v42 = vld [vmem:[#allocation2 + $0x191] sm:$0xff] }
 0x4b6   : > { %v3587_v33 = vmax.f32 %v3571_v1, 0.0  ;;  %v19237_v39 = vpop.f32.mrb[53].mxu0  ;;  %15699 = vmatmul.mubr.msk.f32.gmra.mrb[126].mxu0 %vm338_vm0, %v19235_v21  ;;  %v5649_v31 = vld [vmem:[#allocation6 + $0xf0] sm:$0xff]  ;;  %v5650_v1 = vld [vmem:[#allocation6 + $0xf8] sm:$0xff] }
 0x4b7   : > { %v3586_v59 = vmax.f32 %v3570_v3, 0.0  ;;  %15701 = vmatprep.mubr.msk.f32.mxu0 %vm338_vm0, %v19241_v56  ;;  %v17020_v3 = vpack.c.bf16 %v5650_v1, %v5649_v31 }
 0x4b8   : > { %3603 = vst [vmem:[%s19143_s17 + $0x78] sm:$0xff] %v3587_v33  ;;  %v5940_v33 = vld [vmem:[#allocation6 + $0x100] sm:$0xff] }
 0x4b9   : > { %3602 = vst [vmem:[%s19143_s17 + $0x70] sm:$0xff] %v3586_v59  ;;  %v5941_v59 = vld [vmem:[#allocation6 + $0x108] sm:$0xff] }
 0x4ba   : > { %15702 = vmatmul.mubr.msk.f32.gmra.mrb[128].mxu0 %vm338_vm0, %v19245_v45 }
 0x4bb   : > { %15712 = vmatprep.mubr.msk.f32.mxu0 %vm338_vm0, %v5037_v15 }
 0x4bd   : > { %v15515_v18 = vpop.f32.mrb[56].mxu0 }
 0x4be   : > { %v3864_v13 = vpop.f32.mrb[57].mxu0  ;;  %15713 = vmatmul.mubr.msk.f32.vlgmr.msra.gmra.mrb[42].mxu0 %vm338_vm0, %v5038_v5 }
 0x4bf   : > { %17011 = vmatpush3.bf16.msra.mxu0 %v19154_v48  ;;  %15715 = vmatprep.mubr.msk.f32.mxu0 %vm338_vm0, %v5039_v61  ;;  %v21292_v13 = vld [vmem:[#allocation23_spill] sm:$0xff] }
 0x4c0   : > { %17013 = vmatprep.subr.bf16.mxu0 %v17012_v17 }
 0x4c1   : > { %v15518_v24 = vpop.f32.mrb[58].mxu0 }
 0x4c2   : > { %v3873_v28 = vpop.f32.mrb[59].mxu0  ;;  %15716 = vmatmul.mubr.msk.f32.gmra.mrb[130].mxu0 %vm338_vm0, %v19009_v16  ;;  %v21293_v24 = vld [vmem:[#allocation24_spill] sm:$0xff] }
 0x4c3   : > { %15718 = vmatprep.mubr.msk.f32.mxu0 %vm338_vm0, %v19013_v12  ;;  %17015 = vmatpush3.bf16.msra.mxu0 %v17012_v17 }
 0x4c4   : > { %17017 = vmatprep.subr.bf16.mxu0 %v17016_v52 }
 0x4c6   : > { %15719 = vmatmul.mubr.msk.f32.gmra.mrb[132].mxu0 %vm338_vm0, %v19017_v19 }
 0x4c7   : > { %15721 = vmatprep.mubr.msk.f32.mxu0 %vm338_vm0, %v19021_v4 }
 0x4c9   : > { %v15524_v48 = vpop.f32.mrb[62].mxu0 }
 0x4ca   : > { %v3892_v7 = vpop.f32.mrb[63].mxu0  ;;  %15722 = vmatmul.mubr.msk.f32.gmra.mrb[48].mxu0 %vm338_vm0, %v19025_v6 }
 0x4cb   : > { %15724 = vmatprep.mubr.msk.f32.mxu0 %vm338_vm0, %v19029_v9 }
 0x4cd   : > { %v15527_v55 = vpop.f32.mrb[64].mxu0 }
 0x4ce   : > { %v3901_v25 = vpop.f32.mrb[65].mxu0  ;;  %15725 = vmatmul.mubr.msk.f32.gmra.mrb[134].mxu0 %vm338_vm0, %v19033_v32  ;;  %v21295_v55 = vld [vmem:[#allocation26_spill] sm:$0xff] }
 0x4cf   : > { %15727 = vmatprep.mubr.msk.f32.mxu0 %vm338_vm0, %v19037_v63 }
 0x4d2   : > { %15728 = vmatmul.mubr.msk.f32.gmra.mrb[136].mxu0 %vm338_vm0, %v19041_v47 }
 0x4d3   : > { %15730 = vmatprep.mubr.msk.f32.mxu0 %vm338_vm0, %v19045_v50 }
 0x4d5   : > { %v15541_v4 = vpop.f32.mrb[66].mxu0 }
 0x4d6   : > { %v4062_v6 = vadd.f32 %v15541_v4, %v19198_v10  ;;  %v4057_v34 = vpop.f32.mrb[67].mxu0  ;;  %15731 = vmatmul.mubr.msk.f32.gmra.mrb[54].mxu0 %vm338_vm0, %v19049_v2  ;;  %v21296_v4 = vld [vmem:[#allocation27_spill] sm:$0xff] }
 0x4d7   : > { %15733 = vmatprep.mubr.msk.f32.mxu0 %vm338_vm0, %v19053_v30  ;;  %v21297_v34 = vld [vmem:[#allocation28_spill] sm:$0xff] }
 0x4d9   : > { %v15544_v9 = vpop.f32.mrb[68].mxu0 }
 0x4da   : > { %v4066_v32 = vpop.f32.mrb[69].mxu0  ;;  %15734 = vmatmul.mubr.msk.f32.gmra.mrb[138].mxu0 %vm338_vm0, %v19057_v35 }
 0x4db   : > { %v4067_v58 = vadd.f32 %v4066_v32, %v19210_v11  ;;  %15736 = vmatprep.mubr.msk.f32.mxu0 %vm338_vm0, %v19061_v51 }
 0x4de   : > { %15737 = vmatmul.mubr.msk.f32.gmra.mrb[140].mxu0 %vm338_vm0, %v19065_v53 }
 0x4df   : > { %15739 = vmatprep.mubr.msk.f32.mxu0 %vm338_vm0, %v19069_v43 }
 0x4e1   : > { %v15550_v10 = vpop.f32.mrb[70].mxu0 }
 0x4e2   : > { %v4090_v27 = vadd.f32 %v15550_v10, %v19226_v54  ;;  %v4085_v14 = vpop.f32.mrb[71].mxu0  ;;  %15740 = vmatmul.mubr.msk.f32.gmra.mrb[60].mxu0 %vm338_vm0, %v19073_v49  ;;  %v19303_v54 = vld [vmem:[#allocation2 + $0x199] sm:$0xff] }
 0x4e3   : > { %15742 = vmatprep.mubr.msk.f32.mxu0 %vm338_vm0, %v19077_v46  ;;  %v21299_v14 = vld [vmem:[#allocation30_spill] sm:$0xff] }
 0x4e5   : > { %v15553_v11 = vpop.f32.mrb[72].mxu0 }
 0x4e6   : > { %v4094_v20 = vpop.f32.mrb[73].mxu0  ;;  %15743 = vmatmul.mubr.msk.f32.gmra.mrb[142].mxu0 %vm338_vm0, %v19294_v44  ;;  %v21300_v11 = vld [vmem:[#allocation31_spill] sm:$0xff] }
 0x4e7   : > { %v4095_v40 = vadd.f32 %v4094_v20, %v19237_v39  ;;  %15745 = vmatprep.mubr.msk.f32.mxu0 %vm338_vm0, %v19298_v42  ;;  %v17024_v39 = vpack.c.bf16 %v5941_v59, %v5940_v33  ;;  %v5352_v20 = vld [vmem:[#allocation2 + $0x1a7] sm:$0xff]  ;;  %v5943_v33 = vld [vmem:[#allocation6 + $0x118] sm:$0xff] }
 0x4e8   : > { %v5623_v59 = vld [vmem:[#allocation2 + $0xf8] sm:$0xff] }
 0x4ea   : > { %15746 = vmatmul.mubr.msk.f32.gmra.mrb[144].mxu0 %vm338_vm0, %v19303_v54 }
 0x4eb   : > { %15756 = vmatprep.mubr.msk.f32.mxu0 %vm338_vm0, %v18928_v22 }
 0x4ed   : > { %v15559_v38 = vpop.f32.mrb[74].mxu0 }
 0x4ee   : > { %v4118_v41 = vadd.f32 %v15559_v38, %v15515_v18  ;;  %v4113_v36 = vpop.f32.mrb[75].mxu0  ;;  %15757 = vmatmul.mubr.msk.f32.vlgmr.msra.gmra.mrb[42].mxu0 %vm338_vm0, %v18932_v57  ;;  %v5353_v38 = vld [vmem:[#allocation2 + $0x1af] sm:$0xff] }
 0x4ef   : > { %17019 = vmatpush3.bf16.msra.mxu0 %v17016_v52  ;;  %15759 = vmatprep.mubr.msk.f32.mxu0 %vm338_vm0, %v18936_v29  ;;  %v5625_v36 = vld [vmem:[#allocation2 + $0x108] sm:$0xff] }
 0x4f0   : > { %17021 = vmatprep.subr.bf16.mxu0 %v17020_v3 }
 0x4f1   : > { %v15562_v15 = vpop.f32.mrb[76].mxu0 }
 0x4f2   : > { %v4122_v17 = vpop.f32.mrb[77].mxu0  ;;  %15760 = vmatmul.mubr.msk.f32.gmra.mrb[146].mxu0 %vm338_vm0, %v18940_v62  ;;  %v21288_v62 = vld [vmem:[#allocation37_spill] sm:$0xff] }
 0x4f3   : > { %v19315_v22 = vadd.f32 %v4122_v17, %v3873_v28  ;;  %15762 = vmatprep.mubr.msk.f32.mxu0 %vm338_vm0, %v18944_v0  ;;  %17023 = vmatpush3.bf16.msra.mxu0 %v17020_v3  ;;  %v21294_v28 = vld [vmem:[#allocation25_spill] sm:$0xff] }
 0x4f4   : > { %17025 = vmatprep.subr.bf16.mxu0 %v17024_v39 }
 0x4f6   : > { %15763 = vmatmul.mubr.msk.f32.gmra.mrb[148].mxu0 %vm338_vm0, %v18948_v26  ;;  %v21290_v26 = vld [vmem:[#allocation21_spill] sm:$0xff] }
 0x4f7   : > { %15765 = vmatprep.mubr.msk.f32.mxu0 %vm338_vm0, %v18952_v23  ;;  %v21291_v23 = vld [vmem:[#allocation22_spill] sm:$0xff] }
 0x4f9   : > { %v15568_v57 = vpop.f32.mrb[78].mxu0 }
 0x4fa   : > { %v19323_v29 = vadd.f32 %v15568_v57, %v15524_v48  ;;  %v4141_v18 = vpop.f32.mrb[79].mxu0  ;;  %15766 = vmatmul.mubr.msk.f32.gmra.mrb[48].mxu0 %vm338_vm0, %v18956_v60  ;;  %v5624_v57 = vld [vmem:[#allocation2 + $0x100] sm:$0xff] }
 0x4fb   : > { %15768 = vmatprep.mubr.msk.f32.mxu0 %vm338_vm0, %v21288_v62 }
 0x4fd   : > { %v15571_v5 = vpop.f32.mrb[80].mxu0 }
 0x4fe   : > { %v4150_v0 = vpop.f32.mrb[81].mxu0  ;;  %15769 = vmatmul.mubr.msk.f32.gmra.mrb[150].mxu0 %vm338_vm0, %v21289_v8  ;;  %v5626_v5 = vld [vmem:[#allocation2 + $0x110] sm:$0xff]  ;;  %v5627_v8 = vld [vmem:[#allocation2 + $0x118] sm:$0xff] }
 0x4ff   : > { %v19331_v37 = vadd.f32 %v4150_v0, %v3901_v25  ;;  %15771 = vmatprep.mubr.msk.f32.mxu0 %vm338_vm0, %v21290_v26 }
 0x502   : > { %15772 = vmatmul.mubr.msk.f32.gmra.mrb[152].mxu0 %vm338_vm0, %v21291_v23  ;;  %v21301_v23 = vld [vmem:[#allocation35_spill] sm:$0xff] }
 0x503   : > { %15774 = vmatprep.mubr.msk.f32.mxu0 %vm338_vm0, %v21292_v13  ;;  %v5631_v13 = vld [vmem:[#allocation2 + $0x138] sm:$0xff] }
 0x505   : > { %v15585_v60 = vpop.f32.mrb[82].mxu0 }
 0x506   : > { %v19339_v61 = vadd.f32 %v15585_v60, %v4062_v6  ;;  %v4334_v52 = vpop.f32.mrb[83].mxu0  ;;  %15775 = vmatmul.mubr.msk.f32.gmra.mrb[54].mxu0 %vm338_vm0, %v21293_v24  ;;  %v21298_v6 = vld [vmem:[#allocation29_spill] sm:$0xff] }
 0x507   : > { %15777 = vmatprep.mubr.msk.f32.mxu0 %vm338_vm0, %v21294_v28  ;;  %v5630_v52 = vld [vmem:[#allocation2 + $0x130] sm:$0xff] }
 0x509   : > { %v15588_v48 = vpop.f32.mrb[84].mxu0 }
 0x50a   : > { %v4343_v7 = vpop.f32.mrb[85].mxu0  ;;  %15778 = vmatmul.mubr.msk.f32.gmra.mrb[154].mxu0 %vm338_vm0, %v21295_v55  ;;  %v5632_v48 = vld [vmem:[#allocation2 + $0x140] sm:$0xff]  ;;  %v5633_v55 = vld [vmem:[#allocation2 + $0x148] sm:$0xff] }
 0x50b   : > { %v19347_v25 = vadd.f32 %v4343_v7, %v4067_v58  ;;  %15780 = vmatprep.mubr.msk.f32.mxu0 %vm338_vm0, %v21296_v4  ;;  %v5351_v58 = vld [vmem:[#allocation2 + $0x19f] sm:$0xff] }
 0x50e   : > { %15781 = vmatmul.mubr.msk.f32.gmra.mrb[156].mxu0 %vm338_vm0, %v21297_v34  ;;  %v5634_v34 = vld [vmem:[#allocation2 + $0x150] sm:$0xff] }
 0x50f   : > { %15783 = vmatprep.mubr.msk.f32.mxu0 %vm338_vm0, %v21298_v6  ;;  %v5637_v6 = vld [vmem:[#allocation2 + $0x168] sm:$0xff] }
 0x511   : > { %v15594_v9 = vpop.f32.mrb[86].mxu0 }
 0x512   : > { %v19355_v32 = vadd.f32 %v15594_v9, %v4090_v27  ;;  %v4362_v10 = vpop.f32.mrb[87].mxu0  ;;  %15784 = vmatmul.mubr.msk.f32.gmra.mrb[60].mxu0 %vm338_vm0, %v21299_v14  ;;  %v5942_v27 = vld [vmem:[#allocation6 + $0x110] sm:$0xff] }
 0x513   : > { %15786 = vmatprep.mubr.msk.f32.mxu0 %vm338_vm0, %v21300_v11  ;;  %v17028_v15 = vpack.c.bf16 %v5943_v33, %v5942_v27  ;;  %v5636_v10 = vld [vmem:[#allocation2 + $0x160] sm:$0xff] }
 0x515   : > { %v15597_v31 = vpop.f32.mrb[88].mxu0 }
 0x516   : > { %v4371_v1 = vpop.f32.mrb[89].mxu0  ;;  %15787 = vmatmul.mubr.msk.f32.gmra.mrb[158].mxu0 %vm338_vm0, %v5351_v58  ;;  %v5638_v58 = vld [vmem:[#allocation2 + $0x170] sm:$0xff]  ;;  %v5639_v31 = vld [vmem:[#allocation2 + $0x178] sm:$0xff] }
 0x517   : > { %v19362_v3 = vadd.f32 %v4371_v1, %v4095_v40  ;;  %15789 = vmatprep.mubr.msk.f32.mxu0 %vm338_vm0, %v5352_v20  ;;  %v5640_v1 = vld [vmem:[#allocation2 + $0x180] sm:$0xff] }
 0x51a   : > { %15790 = vmatmul.mubr.msk.f32.gmra.mrb[160].mxu0 %vm338_vm0, %v5353_v38 }
 0x51b   : > { %15800 = vmatprep.mubr.msk.f32.mxu0 %vm338_vm0, %v5623_v59  ;;  %v5644_v59 = vld [vmem:[#allocation2 + $0x1a0] sm:$0xff] }
 0x51d   : > { %v15603_v17 = vpop.f32.mrb[90].mxu0 }
 0x51e   : > { %v19367_v18 = vadd.f32 %v15603_v17, %v4118_v41  ;;  %v4390_v62 = vpop.f32.mrb[91].mxu0  ;;  %15801 = vmatmul.mubr.msk.f32.vlgmr.msra.gmra.mrb[42].mxu0 %vm338_vm0, %v5624_v57  ;;  %v5628_v41 = vld [vmem:[#allocation2 + $0x120] sm:$0xff] }
 0x51f   : > { %17027 = vmatpush3.bf16.msra.mxu0 %v17024_v39  ;;  %15803 = vmatprep.mubr.msk.f32.mxu0 %vm338_vm0, %v5625_v36  ;;  %v5629_v39 = vld [vmem:[#allocation2 + $0x128] sm:$0xff]  ;;  %v21302_v57 = vld [vmem:[#allocation36_spill] sm:$0xff]  ;;  %v5919_v62 = vld [vmem:[#allocation2 + $0x111] sm:$0xff] }
 0x520   : > { %17029 = vmatprep.subr.bf16.mxu0 %v17028_v15  ;;  %v5645_v36 = vld [vmem:[#allocation2 + $0x1a8] sm:$0xff] }
 0x521   : > { %v15606_v40 = vpop.f32.mrb[92].mxu0 }
 0x522   : > { %v4399_v0 = vpop.f32.mrb[93].mxu0  ;;  %15804 = vmatmul.mubr.msk.f32.gmra.mrb[162].mxu0 %vm338_vm0, %v5626_v5 }
 0x523   : > { %v19373_v26 = vadd.f32 %v4399_v0, %v19315_v22  ;;  %15806 = vmatprep.mubr.msk.f32.mxu0 %vm338_vm0, %v5627_v8  ;;  %17031 = vmatpush3.bf16.msra.mxu0 %v17028_v15 }
 0x524   : > { %17145 = vmatprep.subr.bf16.mxu0 %v21301_v23 }
 0x526   : > { %15807 = vmatmul.mubr.msk.f32.gmra.mrb[164].mxu0 %vm338_vm0, %v5628_v41 }
 0x527   : > { %15809 = vmatprep.mubr.msk.f32.mxu0 %vm338_vm0, %v5629_v39 }
 0x529   : > { %v15612_v60 = vpop.f32.mrb[94].mxu0 }
 0x52a   : > { %v19380_v24 = vadd.f32 %v15612_v60, %v19323_v29  ;;  %v4418_v28 = vpop.f32.mrb[95].mxu0  ;;  %15810 = vmatmul.mubr.msk.f32.gmra.mrb[48].mxu0 %vm338_vm0, %v5630_v52  ;;  %v5635_v29 = vld [vmem:[#allocation2 + $0x158] sm:$0xff] }
 0x52b   : > { %15812 = vmatprep.mubr.msk.f32.mxu0 %vm338_vm0, %v5631_v13 }
 0x52d   : > { %v15615_v22 = vpop.f32.mrb[96].mxu0 }
 0x52e   : > { %v4427_v7 = vpop.f32.mrb[97].mxu0  ;;  %15813 = vmatmul.mubr.msk.f32.gmra.mrb[166].mxu0 %vm338_vm0, %v5632_v48 }
 0x52f   : > { %v19386_v4 = vadd.f32 %v4427_v7, %v19331_v37  ;;  %15815 = vmatprep.mubr.msk.f32.mxu0 %vm338_vm0, %v5633_v55 }
 0x532   : > { %15816 = vmatmul.mubr.msk.f32.gmra.mrb[168].mxu0 %vm338_vm0, %v5634_v34 }
 0x533   : > { %15818 = vmatprep.mubr.msk.f32.mxu0 %vm338_vm0, %v5635_v29 }
 0x535   : > { %v15629_v9 = vpop.f32.mrb[98].mxu0 }
 0x536   : > { %v4627_v14 = vpop.f32.mrb[99].mxu0  ;;  %15819 = vmatmul.mubr.msk.f32.gmra.mrb[54].mxu0 %vm338_vm0, %v5636_v10  ;;  %v4730_v11 = vadd.f32 %v15629_v9, %v19339_v61 }
 0x537   : > { %15821 = vmatprep.mubr.msk.f32.mxu0 %vm338_vm0, %v5637_v6 }
 0x539   : > { %v15632_v37 = vpop.f32.mrb[100].mxu0 }
 0x53a   : > { %v4636_v20 = vpop.f32.mrb[101].mxu0  ;;  %15822 = vmatmul.mubr.msk.f32.gmra.mrb[170].mxu0 %vm338_vm0, %v5638_v58 }
 0x53b   : > { %15824 = vmatprep.mubr.msk.f32.mxu0 %vm338_vm0, %v5639_v31  ;;  %v4731_v38 = vadd.f32 %v4636_v20, %v19347_v25  ;;  %v5646_v25 = vld [vmem:[#allocation2 + $0x1b0] sm:$0xff] }
 0x53e   : > { %15825 = vmatmul.mubr.msk.f32.gmra.mrb[172].mxu0 %vm338_vm0, %v5640_v1 }
 0x53f   : > { %15827 = vmatprep.mubr.msk.f32.mxu0 %vm338_vm0, %v19235_v21 }
 0x541   : > { %v15638_v27 = vpop.f32.mrb[102].mxu0 }
 0x542   : > { %v4655_v61 = vpop.f32.mrb[103].mxu0  ;;  %15828 = vmatmul.mubr.msk.f32.gmra.mrb[60].mxu0 %vm338_vm0, %v19241_v56  ;;  %v4734_v33 = vadd.f32 %v15638_v27, %v19355_v32 }
 0x543   : > { %15830 = vmatprep.mubr.msk.f32.mxu0 %vm338_vm0, %v19245_v45 }
 0x545   : > { %v15641_v15 = vpop.f32.mrb[104].mxu0 }
 0x546   : > { %v4664_v17 = vpop.f32.mrb[105].mxu0  ;;  %15831 = vmatmul.mubr.msk.f32.gmra.mrb[174].mxu0 %vm338_vm0, %v5644_v59 }
 0x547   : > { %15833 = vmatprep.mubr.msk.f32.mxu0 %vm338_vm0, %v5645_v36  ;;  %v4735_v21 = vadd.f32 %v4664_v17, %v19362_v3 }
 0x54a   : > { %15834 = vmatmul.mubr.msk.f32.gmra.mrb[176].mxu0 %vm338_vm0, %v5646_v25 }
 0x54b   : > { %15844 = vmatprep.mubr.msk.f32.mxu0 %vm338_vm0, %v19009_v16  ;;  %v5920_v16 = vld [vmem:[#allocation2 + $0x119] sm:$0xff] }
 0x54d   : > { %v15647_v56 = vpop.f32.mrb[106].mxu0 }
 0x54e   : > { %v4683_v32 = vpop.f32.mrb[107].mxu0  ;;  %15845 = vmatmul.mubr.msk.f32.vlgmr.msra.gmra.mrb[42].mxu0 %vm338_vm0, %v19013_v12  ;;  %v4738_v45 = vadd.f32 %v15647_v56, %v19367_v18  ;;  %v5921_v12 = vld [vmem:[#allocation2 + $0x121] sm:$0xff] }
 0x54f   : > { %15847 = vmatprep.mubr.msk.f32.mxu0 %vm338_vm0, %v19017_v19  ;;  %17147 = vmatpush3.bf16.msra.mxu0 %v21301_v23  ;;  %v5922_v19 = vld [vmem:[#allocation2 + $0x129] sm:$0xff] }
 0x550   : > { %17149 = vmatprep.subr.bf16.mxu0 %v21302_v57 }
 0x551   : > { %v15650_v3 = vpop.f32.mrb[108].mxu0 }
 0x552   : > { %v4692_v40 = vpop.f32.mrb[109].mxu0  ;;  %15848 = vmatmul.mubr.msk.f32.gmra.mrb[178].mxu0 %vm338_vm0, %v5919_v62 }
 0x553   : > { %15850 = vmatprep.mubr.msk.f32.mxu0 %vm338_vm0, %v5920_v16  ;;  %v4739_v5 = vadd.f32 %v4692_v40, %v19373_v26  ;;  %17151 = vmatpush3.bf16.msra.mxu0 %v21302_v57 }
 0x556   : > { %15851 = vmatmul.mubr.msk.f32.gmra.mrb[180].mxu0 %vm338_vm0, %v5921_v12 }
 0x557   : > { %15853 = vmatprep.mubr.msk.f32.mxu0 %vm338_vm0, %v5922_v19 }
 0x559   : > { %v15656_v18 = vpop.f32.mrb[110].mxu0 }
 0x55a   : > { %v4711_v0 = vpop.f32.mrb[111].mxu0  ;;  %15854 = vmatmul.mubr.msk.f32.gmra.mrb[48].mxu0 %vm338_vm0, %v19037_v63  ;;  %v4742_v8 = vadd.f32 %v15656_v18, %v19380_v24 }
 0x55b   : > { %15856 = vmatprep.mubr.msk.f32.mxu0 %vm338_vm0, %v19041_v47 }
 0x55d   : > { %v15659_v41 = vpop.f32.mrb[112].mxu0 }
 0x55e   : > { %v4720_v26 = vpop.f32.mrb[113].mxu0  ;;  %15857 = vmatmul.mubr.msk.f32.gmra.mrb[182].mxu0 %vm338_vm0, %v19045_v50 }
 0x55f   : > { %15859 = vmatprep.mubr.msk.f32.mxu0 %vm338_vm0, %v19049_v2  ;;  %v4743_v39 = vadd.f32 %v4720_v26, %v19386_v4 }
 0x562   : > { %15860 = vmatmul.mubr.msk.f32.gmra.mrb[184].mxu0 %vm338_vm0, %v19053_v30 }
 0x563   : > { %15862 = vmatprep.mubr.msk.f32.mxu0 %vm338_vm0, %v19057_v35 }
 0x565   : > { %v15673_v63 = vpop.f32.mrb[114].mxu0 }
 0x566   : > { %v5023_v13 = vadd.f32 %v15673_v63, %v4730_v11  ;;  %v4920_v60 = vpop.f32.mrb[115].mxu0  ;;  %15863 = vmatmul.mubr.msk.f32.gmra.mrb[54].mxu0 %vm338_vm0, %v19061_v51 }
 0x567   : > { %15865 = vmatprep.mubr.msk.f32.mxu0 %vm338_vm0, %v19065_v53  ;;  %v5937_v53 = vld [vmem:[#allocation2 + $0x1a1] sm:$0xff] }
 0x569   : > { %v15676_v47 = vpop.f32.mrb[116].mxu0 }
 0x56a   : > { %v4929_v50 = vpop.f32.mrb[117].mxu0  ;;  %15866 = vmatmul.mubr.msk.f32.gmra.mrb[186].mxu0 %vm338_vm0, %v19069_v43  ;;  %v5938_v43 = vld [vmem:[#allocation2 + $0x1a9] sm:$0xff] }
 0x56b   : > { %v5024_v2 = vadd.f32 %v4929_v50, %v4731_v38  ;;  %15868 = vmatprep.mubr.msk.f32.mxu0 %vm338_vm0, %v19073_v49 }
 0x56e   : > { %15869 = vmatmul.mubr.msk.f32.gmra.mrb[188].mxu0 %vm338_vm0, %v19077_v46  ;;  %v5939_v46 = vld [vmem:[#allocation2 + $0x1b1] sm:$0xff] }
 0x56f   : > { %15871 = vmatprep.mubr.msk.f32.mxu0 %vm338_vm0, %v19294_v44 }
 0x571   : > { %v15682_v30 = vpop.f32.mrb[118].mxu0 }
 0x572   : > { %v5027_v35 = vadd.f32 %v15682_v30, %v4734_v33  ;;  %v4948_v51 = vpop.f32.mrb[119].mxu0  ;;  %15872 = vmatmul.mubr.msk.f32.gmra.mrb[60].mxu0 %vm338_vm0, %v19298_v42 }
 0x573   : > { %15874 = vmatprep.mubr.msk.f32.mxu0 %vm338_vm0, %v19303_v54 }
 0x575   : > { %v15685_v52 = vpop.f32.mrb[120].mxu0 }
 0x576   : > { %v4957_v24 = vpop.f32.mrb[121].mxu0  ;;  %15875 = vmatmul.mubr.msk.f32.gmra.mrb[190].mxu0 %vm338_vm0, %v5937_v53 }
 0x577   : > { %v5028_v49 = vadd.f32 %v4957_v24, %v4735_v21  ;;  %15877 = vmatprep.mubr.msk.f32.mxu0 %vm338_vm0, %v5938_v43 }
 0x57a   : > { %15878 = vmatmul.mubr.msk.f32.gmra.mrb[192].mxu0 %vm338_vm0, %v5939_v46 }
 0x57d   : > { %v15691_v44 = vpop.f32.mrb[122].mxu0 }
 0x57e   : > { %v5031_v28 = vadd.f32 %v15691_v44, %v4738_v45  ;;  %v4976_v22 = vpop.f32.mrb[123].mxu0 }
 0x581   : > { %v15694_v48 = vpop.f32.mrb[124].mxu0 }
 0x582   : > { %v4985_v42 = vpop.f32.mrb[125].mxu0 }
 0x583   : > { %v5032_v7 = vadd.f32 %v4985_v42, %v4739_v5 }
 0x589   : > { %v15700_v55 = vpop.f32.mrb[126].mxu0 }
 0x58a   : > { %v5035_v54 = vadd.f32 %v15700_v55, %v4742_v8  ;;  %v5004_v4 = vpop.f32.mrb[127].mxu0 }
 0x58d   : > { %v15703_v34 = vpop.f32.mrb[128].mxu0 }
 0x58e   : > { %v5013_v29 = vpop.f32.mrb[129].mxu0 }
 0x58f   : > { %v5036_v6 = vadd.f32 %v5013_v29, %v4743_v39 }
 0x595   : > { %v15717_v9 = vpop.f32.mrb[130].mxu0 }
 0x596   : > { %v5316_v10 = vadd.f32 %v15717_v9, %v5023_v13  ;;  %v5213_v14 = vpop.f32.mrb[131].mxu0 }
 0x599   : > { %v15720_v11 = vpop.f32.mrb[132].mxu0 }
 0x59a   : > { %v5222_v37 = vpop.f32.mrb[133].mxu0 }
 0x59b   : > { %v5317_v58 = vadd.f32 %v5222_v37, %v5024_v2 }
 0x5a1   : > { %v15726_v20 = vpop.f32.mrb[134].mxu0 }
 0x5a2   : > { %v5320_v31 = vadd.f32 %v15726_v20, %v5027_v35  ;;  %v5241_v1 = vpop.f32.mrb[135].mxu0 }
 0x5a5   : > { %v15729_v38 = vpop.f32.mrb[136].mxu0 }
 0x5a6   : > { %v5250_v27 = vpop.f32.mrb[137].mxu0 }
 0x5a7   : > { %v5321_v61 = vadd.f32 %v5250_v27, %v5028_v49 }
 0x5ad   : > { %v15735_v33 = vpop.f32.mrb[138].mxu0 }
 0x5ae   : > { %v5324_v59 = vadd.f32 %v15735_v33, %v5031_v28  ;;  %v5269_v36 = vpop.f32.mrb[139].mxu0 }
 0x5b1   : > { %v15738_v15 = vpop.f32.mrb[140].mxu0 }
 0x5b2   : > { %v5278_v17 = vpop.f32.mrb[141].mxu0 }
 0x5b3   : > { %v5325_v25 = vadd.f32 %v5278_v17, %v5032_v7 }
 0x5b9   : > { %v15744_v21 = vpop.f32.mrb[142].mxu0 }
 0x5ba   : > { %v5328_v56 = vadd.f32 %v15744_v21, %v5035_v54  ;;  %v5297_v32 = vpop.f32.mrb[143].mxu0 }
 0x5bd   : > { %v15747_v45 = vpop.f32.mrb[144].mxu0 }
 0x5be   : > { %v5306_v3 = vpop.f32.mrb[145].mxu0 }
 0x5bf   : > { %v5329_v62 = vadd.f32 %v5306_v3, %v5036_v6  ;;  %v21303_v3 = vld [vmem:[#allocation12_spill] sm:$0xff] }
 0x5c5   : > { %v15761_v40 = vpop.f32.mrb[146].mxu0 }
 0x5c6   : > { %v5609_v16 = vadd.f32 %v15761_v40, %v5316_v10  ;;  %v5506_v5 = vpop.f32.mrb[147].mxu0 }
 0x5c9   : > { %v15764_v12 = vpop.f32.mrb[148].mxu0 }
 0x5ca   : > { %v5515_v19 = vpop.f32.mrb[149].mxu0 }
 0x5cb   : > { %v5610_v18 = vadd.f32 %v5515_v19, %v5317_v58 }
 0x5d1   : > { %v15770_v0 = vpop.f32.mrb[150].mxu0 }
 0x5d2   : > { %v5613_v8 = vadd.f32 %v15770_v0, %v5320_v31  ;;  %v5534_v41 = vpop.f32.mrb[151].mxu0  ;;  %v21305_v0 = vld [vmem:[#allocation14_spill] sm:$0xff] }
 0x5d5   : > { %v15773_v26 = vpop.f32.mrb[152].mxu0 }
 0x5d6   : > { %v5543_v39 = vpop.f32.mrb[153].mxu0 }
 0x5d7   : > { %v5614_v63 = vadd.f32 %v5543_v39, %v5321_v61  ;;  %v19468_v61 = vld [vmem:[%s21095_s4] ss:$0 sm:$0xff] }
 0x5dd   : > { %v15779_v13 = vpop.f32.mrb[154].mxu0 }
 0x5de   : > { %v5617_v60 = vadd.f32 %v15779_v13, %v5324_v59  ;;  %v5562_v47 = vpop.f32.mrb[155].mxu0 }
 0x5e1   : > { %v15782_v50 = vpop.f32.mrb[156].mxu0 }
 0x5e2   : > { %v5571_v2 = vpop.f32.mrb[157].mxu0  ;;  %v21306_v50 = vld [vmem:[#allocation15_spill] sm:$0xff] }
 0x5e3   : > { %v5618_v30 = vadd.f32 %v5571_v2, %v5325_v25 }
 0x5e9   : > { %v15788_v35 = vpop.f32.mrb[158].mxu0 }
 0x5ea   : > { %v5621_v51 = vadd.f32 %v15788_v35, %v5328_v56  ;;  %v5590_v53 = vpop.f32.mrb[159].mxu0 }
 0x5ed   : > { %v15791_v43 = vpop.f32.mrb[160].mxu0 }
 0x5ee   : > { %v5599_v52 = vpop.f32.mrb[161].mxu0  ;;  %v21307_v43 = vld [vmem:[#allocation16_spill] sm:$0xff] }
 0x5ef   : > { %v5622_v24 = vadd.f32 %v5599_v52, %v5329_v62 }
 0x5f5   : > { %v15805_v49 = vpop.f32.mrb[162].mxu0 }
 0x5f6   : > { %v5902_v46 = vadd.f32 %v15805_v49, %v5609_v16  ;;  %v5799_v44 = vpop.f32.mrb[163].mxu0  ;;  %v21304_v16 = vld [vmem:[#allocation13_spill] sm:$0xff] }
 0x5f9   : > { %v15808_v28 = vpop.f32.mrb[164].mxu0 }
 0x5fa   : > { %v5808_v22 = vpop.f32.mrb[165].mxu0 }
 0x5fb   : > { %v5903_v48 = vadd.f32 %v5808_v22, %v5610_v18  ;;  %v21308_v22 = vld [vmem:[#allocation17_spill] sm:$0xff] }
 0x601   : > { %v15814_v42 = vpop.f32.mrb[166].mxu0 }
 0x602   : > { %v5906_v7 = vadd.f32 %v15814_v42, %v5613_v8  ;;  %v5827_v55 = vpop.f32.mrb[167].mxu0 }
 0x605   : > { %v15817_v54 = vpop.f32.mrb[168].mxu0 }
 0x606   : > { %v5836_v4 = vpop.f32.mrb[169].mxu0 }
 0x607   : > { %v5907_v34 = vadd.f32 %v5836_v4, %v5614_v63  ;;  %v21309_v4 = vld [vmem:[#allocation18_spill] sm:$0xff] }
 0x60d   : > { %v15823_v29 = vpop.f32.mrb[170].mxu0 }
 0x60e   : > { %v19457_v6 = vadd.f32 %v15823_v29, %v5617_v60  ;;  %v5855_v9 = vpop.f32.mrb[171].mxu0  ;;  %v6874_v29 = vld [vmem:[#allocation6 + $0x20] sm:$0xff] }
 0x60f   : > { %v6875_v9 = vld [vmem:[#allocation6 + $0x28] sm:$0xff] }
 0x611   : > { %v15826_v10 = vpop.f32.mrb[172].mxu0 }
 0x612   : > { %v5864_v14 = vpop.f32.mrb[173].mxu0 }
 0x613   : > { %v19459_v11 = vadd.f32 %v5864_v14, %v5618_v30 }
 0x619   : > { %v15832_v37 = vpop.f32.mrb[174].mxu0 }
 0x61a   : > { %v19461_v58 = vadd.f32 %v15832_v37, %v5621_v51  ;;  %v5883_v20 = vpop.f32.mrb[175].mxu0 }
 0x61b   : > { %v21310_v20 = vld [vmem:[#allocation19_spill] sm:$0xff] }
 0x61d   : > { %v15835_v31 = vpop.f32.mrb[176].mxu0 }
 0x61e   : > { %v5892_v1 = vpop.f32.mrb[177].mxu0  ;;  %v17072_v31 = vpack.c.bf16 %v6875_v9, %v6874_v29  ;;  %v6846_v29 = vld [vmem:[#allocation6] sm:$0xff]  ;;  %v6847_v9 = vld [vmem:[#allocation6 + $0x8] sm:$0xff] }
 0x61f   : > { %v19463_v38 = vadd.f32 %v5892_v1, %v5622_v24 }
 0x621   : > { %v15846_v27 = vpop.f32.mrb[42].mxu0 }
 0x622   : > { %v6210_v33 = vadd.f32 %v19468_v61, %v15846_v27  ;;  %v6082_v59 = vpop.f32.mrb[43].mxu0 }
 0x623   : > { %v6209_v36 = vadd.f32 %v19468_v61, %v6082_v59 }
 0x624   : > { %v6226_v25 = vmax.f32 %v6210_v33, 0.0 }
 0x625   : > { %v6225_v15 = vmax.f32 %v6209_v36, 0.0  ;;  %v15849_v17 = vpop.f32.mrb[178].mxu0 }
 0x626   : > { %v6195_v21 = vadd.f32 %v15849_v17, %v5902_v46  ;;  %v6092_v56 = vpop.f32.mrb[179].mxu0 }
 0x627   : > { %15888 = vmatprep.mubr.msk.f32.mxu1 %vm338_vm0, %v6225_v15 }
 0x628   : > { %v6211_v32 = vadd.f32 %v19468_v61, %v6195_v21  ;;  %15889 = vmatmul.mubr.msk.f32.vlgmr.msra.gmra.mrb[158].mxu1 %vm338_vm0, %v6226_v25 }
 0x629   : > { %v15852_v45 = vpop.f32.mrb[180].mxu0  ;;  %17043 = vmatpush3.bf16.msra.mxu1 %v21303_v3 }
 0x62a   : > { %v6227_v62 = vmax.f32 %v6211_v32, 0.0  ;;  %v6101_v40 = vpop.f32.mrb[181].mxu0  ;;  %17045 = vmatprep.subr.bf16.mxu1 %v21304_v16 }
 0x62b   : > { %v6196_v5 = vadd.f32 %v6101_v40, %v5903_v48 }
 0x62c   : > { %15891 = vmatprep.mubr.msk.f32.mxu1 %vm338_vm0, %v6227_v62 }
 0x62d   : > { %v6212_v12 = vadd.f32 %v19468_v61, %v6196_v5  ;;  %v15855_v19 = vpop.f32.mrb[48].mxu0  ;;  %17047 = vmatpush3.bf16.msra.mxu1 %v21304_v16  ;;  %v13222_v5 = vld [vmem:[%s17891_s15 + $0x100] sm:$0xff] }
 0x62e   : > { %v6110_v18 = vpop.f32.mrb[49].mxu0  ;;  %17049 = vmatprep.subr.bf16.mxu1 %v21305_v0  ;;  %v6214_v41 = vadd.f32 %v19468_v61, %v15855_v19  ;;  %v13224_v19 = vld [vmem:[%s17891_s15 + $0x110] sm:$0xff] }
 0x62f   : > { %v6228_v8 = vmax.f32 %v6212_v12, 0.0  ;;  %v6213_v26 = vadd.f32 %v19468_v61, %v6110_v18  ;;  %v13223_v12 = vld [vmem:[%s17891_s15 + $0x108] sm:$0xff]  ;;  %v13226_v18 = vld [vmem:[%s17891_s15 + $0x120] sm:$0xff] }
 0x630   : > { %v6230_v47 = vmax.f32 %v6214_v41, 0.0  ;;  %v13230_v41 = vld [vmem:[%s17891_s15 + $0x140] sm:$0xff] }
 0x631   : > { %v6229_v39 = vmax.f32 %v6213_v26, 0.0  ;;  %v15858_v63 = vpop.f32.mrb[182].mxu0  ;;  %15892 = vmatmul.mubr.msk.f32.gmra.mrb[160].mxu1 %vm338_vm0, %v6228_v8  ;;  %v13229_v8 = vld [vmem:[%s17891_s15 + $0x138] sm:$0xff]  ;;  %v13231_v26 = vld [vmem:[%s17891_s15 + $0x148] sm:$0xff] }
 0x632   : > { %v6199_v13 = vadd.f32 %v15858_v63, %v5906_v7  ;;  %v6120_v60 = vpop.f32.mrb[183].mxu0  ;;  %17051 = vmatpush3.bf16.msra.mxu1 %v21305_v0  ;;  %v13228_v0 = vld [vmem:[%s17891_s15 + $0x130] sm:$0xff]  ;;  %v13233_v63 = vld [vmem:[%s17891_s15 + $0x158] sm:$0xff] }
 0x633   : > { %15894 = vmatprep.mubr.msk.f32.mxu1 %vm338_vm0, %v6229_v39  ;;  %17053 = vmatprep.subr.bf16.mxu1 %v21306_v50  ;;  %v13232_v39 = vld [vmem:[%s17891_s15 + $0x150] sm:$0xff]  ;;  %v13235_v60 = vld [vmem:[%s17891_s15 + $0x168] sm:$0xff] }
 0x634   : > { %v6215_v2 = vadd.f32 %v19468_v61, %v6199_v13  ;;  %v13234_v13 = vld [vmem:[%s17891_s15 + $0x160] sm:$0xff] }
 0x635   : > { %v15861_v30 = vpop.f32.mrb[184].mxu0  ;;  %15895 = vmatmul.mubr.msk.f32.gmra.mrb[162].mxu1 %vm338_vm0, %v6230_v47  ;;  %v13236_v47 = vld [vmem:[%s17891_s15 + $0x170] sm:$0xff] }
 0x636   : > { %v6231_v35 = vmax.f32 %v6215_v2, 0.0  ;;  %v6129_v51 = vpop.f32.mrb[185].mxu0  ;;  %17055 = vmatpush3.bf16.msra.mxu1 %v21306_v50  ;;  %v13237_v50 = vld [vmem:[%s17891_s15 + $0x178] sm:$0xff]  ;;  %v13238_v2 = vld [vmem:[%s17891_s15 + $0x180] sm:$0xff]  ;;  %v13239_v30 = vld [vmem:[%s17891_s15 + $0x188] sm:$0xff] }
 0x637   : > { %v6200_v53 = vadd.f32 %v6129_v51, %v5907_v34  ;;  %17057 = vmatprep.subr.bf16.mxu1 %v21307_v43  ;;  %v13241_v51 = vld [vmem:[%s17891_s15 + $0x198] sm:$0xff] }
 0x638   : > { %15897 = vmatprep.mubr.msk.f32.mxu1 %vm338_vm0, %v6231_v35  ;;  %v13240_v35 = vld [vmem:[%s17891_s15 + $0x190] sm:$0xff] }
 0x639   : > { %v6216_v52 = vadd.f32 %v19468_v61, %v6200_v53  ;;  %v15864_v24 = vpop.f32.mrb[54].mxu0  ;;  %v6876_v53 = vld [vmem:[#allocation6 + $0x30] sm:$0xff] }
 0x63a   : > { %v6138_v49 = vpop.f32.mrb[55].mxu0  ;;  %17059 = vmatpush3.bf16.msra.mxu1 %v21307_v43  ;;  %v6218_v44 = vadd.f32 %v19468_v61, %v15864_v24  ;;  %v6877_v43 = vld [vmem:[#allocation6 + $0x38] sm:$0xff] }
 0x63b   : > { %v6232_v46 = vmax.f32 %v6216_v52, 0.0  ;;  %v6217_v28 = vadd.f32 %v19468_v61, %v6138_v49  ;;  %17061 = vmatprep.subr.bf16.mxu1 %v21308_v22  ;;  %v13242_v52 = vld [vmem:[%s17891_s15 + $0x1a0] sm:$0xff]  ;;  %v17076_v24 = vpack.c.bf16 %v6877_v43, %v6876_v53  ;;  %v13243_v49 = vld [vmem:[%s17891_s15 + $0x1a8] sm:$0xff]  ;;  %v13196_v53 = vld [vmem:[%s17891_s15 + $0xb0] sm:$0xff] }
 0x63c   : > { %v6234_v54 = vmax.f32 %v6218_v44, 0.0  ;;  %v13245_v44 = vld [vmem:[%s17891_s15 + $0x1b8] sm:$0xff] }
 0x63d   : > { %v6233_v48 = vmax.f32 %v6217_v28, 0.0  ;;  %v15867_v42 = vpop.f32.mrb[186].mxu0  ;;  %15898 = vmatmul.mubr.msk.f32.gmra.mrb[164].mxu1 %vm338_vm0, %v6232_v46  ;;  %v13244_v46 = vld [vmem:[%s17891_s15 + $0x1b0] sm:$0xff]  ;;  %v13246_v28 = vld [vmem:[%s17891_s15 + $0x1c0] sm:$0xff] }
 0x63e   : > { %v6203_v7 = vadd.f32 %v15867_v42, %v19457_v6  ;;  %v6148_v55 = vpop.f32.mrb[187].mxu0  ;;  %17063 = vmatpush3.bf16.msra.mxu1 %v21308_v22  ;;  %v13247_v22 = vld [vmem:[%s17891_s15 + $0x1c8] sm:$0xff]  ;;  %v13249_v42 = vld [vmem:[%s17891_s15 + $0x1d8] sm:$0xff] }
 0x63f   : > { %15900 = vmatprep.mubr.msk.f32.mxu1 %vm338_vm0, %v6233_v48  ;;  %17065 = vmatprep.subr.bf16.mxu1 %v21309_v4  ;;  %v13248_v48 = vld [vmem:[%s17891_s15 + $0x1d0] sm:$0xff]  ;;  %v13251_v55 = vld [vmem:[%s17891_s15 + $0x1e8] sm:$0xff] }
 0x640   : > { %v6219_v34 = vadd.f32 %v19468_v61, %v6203_v7  ;;  %v13250_v7 = vld [vmem:[%s17891_s15 + $0x1e0] sm:$0xff] }
 0x641   : > { %v15870_v10 = vpop.f32.mrb[188].mxu0  ;;  %15901 = vmatmul.mubr.msk.f32.gmra.mrb[166].mxu1 %vm338_vm0, %v6234_v54  ;;  %v13252_v54 = vld [vmem:[%s17891_s15 + $0x1f0] sm:$0xff] }
 0x642   : > { %v6235_v14 = vmax.f32 %v6219_v34, 0.0  ;;  %v6157_v37 = vpop.f32.mrb[189].mxu0  ;;  %17067 = vmatpush3.bf16.msra.mxu1 %v21309_v4  ;;  %v13253_v4 = vld [vmem:[%s17891_s15 + $0x1f8] sm:$0xff]  ;;  %v6850_v34 = vld [vmem:[#allocation2 + $0x8] sm:$0xff]  ;;  %v6851_v10 = vld [vmem:[#allocation2 + $0x10] sm:$0xff] }
 0x643   : > { %v6204_v6 = vadd.f32 %v6157_v37, %v19459_v11  ;;  %17069 = vmatprep.subr.bf16.mxu1 %v21310_v20  ;;  %v6852_v37 = vld [vmem:[#allocation2 + $0x18] sm:$0xff] }
 0x644   : > { %15903 = vmatprep.mubr.msk.f32.mxu1 %vm338_vm0, %v6235_v14  ;;  %v17080_v14 = vpack.c.bf16 %v6847_v9, %v6846_v29  ;;  %v13201_v9 = vld [vmem:[%s17891_s15 + $0xd8] sm:$0xff] }
 0x645   : > { %v6220_v1 = vadd.f32 %v19468_v61, %v6204_v6  ;;  %v15873_v27 = vpop.f32.mrb[60].mxu0  ;;  %v6848_v6 = vld [vmem:[#allocation6 + $0x10] sm:$0xff] }
 0x646   : > { %v6166_v33 = vpop.f32.mrb[61].mxu0  ;;  %17071 = vmatpush3.bf16.msra.mxu1 %v21310_v20  ;;  %v6222_v36 = vadd.f32 %v19468_v61, %v15873_v27  ;;  %v6849_v20 = vld [vmem:[#allocation6 + $0x18] sm:$0xff]  ;;  %v7401_v27 = vld [vmem:[#allocation6 + $0x48] sm:$0xff] }
 0x647   : > { %v6236_v59 = vmax.f32 %v6220_v1, 0.0  ;;  %v6221_v15 = vadd.f32 %v19468_v61, %v6166_v33  ;;  %17073 = vmatprep.subr.bf16.mxu1 %v17072_v31  ;;  %v7400_v1 = vld [vmem:[#allocation6 + $0x40] sm:$0xff] }
 0x648   : > { %v6238_v56 = vmax.f32 %v6222_v36, 0.0  ;;  %v19556_v33 = vpack.c.bf16 %v7401_v27, %v7400_v1  ;;  %v13191_v36 = vld [vmem:[%s17891_s15 + $0x88] sm:$0xff] }
 0x649   : > { %v6237_v17 = vmax.f32 %v6221_v15, 0.0  ;;  %v15876_v11 = vpop.f32.mrb[190].mxu0  ;;  %15904 = vmatmul.mubr.msk.f32.gmra.mrb[168].mxu1 %vm338_vm0, %v6236_v59  ;;  %v19563_v15 = vld [vmem:[%s21097_s6] ss:$0 sm:$0xff]  ;;  %v13203_v27 = vld [vmem:[%s17891_s15 + $0xe8] sm:$0xff] }
 0x64a   : > { %v6207_v25 = vadd.f32 %v15876_v11, %v19461_v58  ;;  %v6176_v21 = vpop.f32.mrb[191].mxu0 }
 0x64b   : > { %15906 = vmatprep.mubr.msk.f32.mxu1 %vm338_vm0, %v6237_v17 }
 0x64c   : > { %v6223_v32 = vadd.f32 %v19468_v61, %v6207_v25  ;;  %v13190_v25 = vld [vmem:[%s17891_s15 + $0x80] sm:$0xff] }
 0x64d   : > { %v15879_v45 = vpop.f32.mrb[192].mxu0  ;;  %15907 = vmatmul.mubr.msk.f32.gmra.mrb[170].mxu1 %vm338_vm0, %v6238_v56 }
 0x64e   : > { %v6239_v3 = vmax.f32 %v6223_v32, 0.0  ;;  %v6185_v62 = vpop.f32.mrb[193].mxu0 }
 0x64f   : > { %v6208_v40 = vadd.f32 %v6185_v62, %v19463_v38  ;;  %v13225_v38 = vld [vmem:[%s17891_s15 + $0x118] sm:$0xff] }
 0x650   : > { %15909 = vmatprep.mubr.msk.f32.mxu1 %vm338_vm0, %v6239_v3 }
 0x651   : > { %v6224_v58 = vadd.f32 %v19468_v61, %v6208_v40  ;;  %v13227_v61 = vld [vmem:[%s17891_s15 + $0x128] sm:$0xff]  ;;  %v13193_v40 = vld [vmem:[%s17891_s15 + $0x98] sm:$0xff] }
 0x653   : > { %v6240_v16 = vmax.f32 %v6224_v58, 0.0 }
 0x655   : > { %15910 = vmatmul.mubr.msk.f32.gmra.mrb[172].mxu1 %vm338_vm0, %v6240_v16 }
 0x656   : > { %15944 = vmatprep.mubr.f32.mxu1 %v13222_v5  ;;  %v13192_v5 = vld [vmem:[%s17891_s15 + $0x90] sm:$0xff] }
 0x659   : > { %15945 = vmatmul.mubr.f32.vlgmr.msra.gmra.mrb[174].mxu1 %v13223_v12 }
 0x65a   : > { %15947 = vmatprep.mubr.f32.mxu1 %v13224_v19  ;;  %17075 = vmatpush3.bf16.msra.mxu1 %v17072_v31  ;;  %v17084_v31 = vpack.c.bf16 %v6849_v20, %v6848_v6 }
 0x65b   : > { %17077 = vmatprep.subr.bf16.mxu1 %v17076_v24 }
 0x65d   : > { %15948 = vmatmul.mubr.f32.gmra.mrb[176].mxu1 %v13225_v38 }
 0x65e   : > { %15950 = vmatprep.mubr.f32.mxu1 %v13226_v18  ;;  %17079 = vmatpush3.bf16.msra.mxu1 %v17076_v24 }
 0x65f   : > { %17081 = vmatprep.subr.bf16.mxu1 %v17080_v14 }
 0x661   : > { %15951 = vmatmul.mubr.f32.gmra.mrb[178].mxu1 %v13227_v61  ;;  %v13195_v61 = vld [vmem:[%s17891_s15 + $0xa8] sm:$0xff] }
 0x662   : > { %15953 = vmatprep.mubr.f32.mxu1 %v13228_v0 }
 0x665   : > { %15954 = vmatmul.mubr.f32.gmra.mrb[180].mxu1 %v13229_v8 }
 0x666   : > { %15956 = vmatprep.mubr.f32.mxu1 %v13230_v41 }
 0x669   : > { %15957 = vmatmul.mubr.f32.gmra.mrb[182].mxu1 %v13231_v26  ;;  %v13194_v26 = vld [vmem:[%s17891_s15 + $0xa0] sm:$0xff] }
 0x66a   : > { %15959 = vmatprep.mubr.f32.mxu1 %v13232_v39 }
 0x66d   : > { %15960 = vmatmul.mubr.f32.gmra.mrb[184].mxu1 %v13233_v63 }
 0x66e   : > { %15962 = vmatprep.mubr.f32.mxu1 %v13234_v13 }
 0x671   : > { %15963 = vmatmul.mubr.f32.gmra.mrb[186].mxu1 %v13235_v60 }
 0x672   : > { %15965 = vmatprep.mubr.f32.mxu1 %v13236_v47 }
 0x675   : > { %15966 = vmatmul.mubr.f32.gmra.mrb[188].mxu1 %v13237_v50 }
 0x676   : > { %15968 = vmatprep.mubr.f32.mxu1 %v13238_v2 }
 0x679   : > { %15969 = vmatmul.mubr.f32.gmra.mrb[190].mxu1 %v13239_v30  ;;  %v13197_v30 = vld [vmem:[%s17891_s15 + $0xb8] sm:$0xff] }
 0x67a   : > { %15971 = vmatprep.mubr.f32.mxu1 %v13240_v35 }
 0x67d   : > { %15972 = vmatmul.mubr.f32.gmra.mrb[192].mxu1 %v13241_v51 }
 0x67e   : > { %15974 = vmatprep.mubr.f32.mxu1 %v13242_v52 }
 0x681   : > { %15975 = vmatmul.mubr.f32.gmra.mrb[194].mxu1 %v13243_v49 }
 0x682   : > { %15977 = vmatprep.mubr.f32.mxu1 %v13244_v46  ;;  %v13199_v46 = vld [vmem:[%s17891_s15 + $0xc8] sm:$0xff] }
 0x685   : > { %15978 = vmatmul.mubr.f32.gmra.mrb[196].mxu1 %v13245_v44 }
 0x686   : > { %15980 = vmatprep.mubr.f32.mxu1 %v13246_v28 }
 0x689   : > { %15981 = vmatmul.mubr.f32.gmra.mrb[198].mxu1 %v13247_v22 }
 0x68a   : > { %15983 = vmatprep.mubr.f32.mxu1 %v13248_v48  ;;  %v13198_v48 = vld [vmem:[%s17891_s15 + $0xc0] sm:$0xff] }
 0x68d   : > { %15984 = vmatmul.mubr.f32.gmra.mrb[200].mxu1 %v13249_v42 }
 0x68e   : > { %15986 = vmatprep.mubr.f32.mxu1 %v13250_v7 }
 0x691   : > { %15987 = vmatmul.mubr.f32.gmra.mrb[202].mxu1 %v13251_v55 }
 0x692   : > { %15989 = vmatprep.mubr.f32.mxu1 %v13252_v54 }
 0x695   : > { %15990 = vmatmul.mubr.f32.gmra.mrb[204].mxu1 %v13253_v4 }
 0x696   : > { %16000 = vmatprep.mubr.msk.f32.mxu1 %vm338_vm0, %v6850_v34 }
 0x699   : > { %16001 = vmatmul.mubr.msk.f32.vlgmr.msra.gmra.mrb[206].mxu1 %vm338_vm0, %v6851_v10 }
 0x69a   : > { %17083 = vmatpush3.bf16.msra.mxu1 %v17080_v14  ;;  %16003 = vmatprep.mubr.msk.f32.mxu1 %vm338_vm0, %v6852_v37  ;;  %v13200_v37 = vld [vmem:[%s17891_s15 + $0xd0] sm:$0xff] }
 0x69b   : > { %17085 = vmatprep.subr.bf16.mxu1 %v17084_v31 }
 0x69e   : > { %17087 = vmatpush3.bf16.msra.mxu1 %v17084_v31 }
 0x69f   : > { %17089 = vmatprep.subr.bf16.mxu1 %v19556_v33 }
 0x6fb   : > { %v15890_v59 = vpop.f32.mrb[158].mxu1 }
 0x6fc   : > { %v6361_v17 = vadd.f32 %v19563_v15, %v15890_v59  ;;  %v6355_v11 = vpop.f32.mrb[159].mxu1 }
 0x6fd   : > { %v6356_v21 = vadd.f32 %v19563_v15, %v6355_v11  ;;  %v13202_v11 = vld [vmem:[%s17891_s15 + $0xe0] sm:$0xff] }
 0x6fe   : > { %v6452_v56 = vadd.f32 %v13191_v36, %v6361_v17 }
 0x6ff   : > { %v6451_v32 = vadd.f32 %v13190_v25, %v6356_v21 }
 0x700   : > { %v6468_v45 = vmax.f32 %v6452_v56, 0.0 }
 0x701   : > { %v6467_v3 = vmax.f32 %v6451_v32, 0.0 }
 0x702   : > { %13207 = vst [vmem:[%s19143_s17 + $0x88] sm:$0xff] %v6468_v45 }
 0x703   : > { %13206 = vst [vmem:[%s19143_s17 + $0x80] sm:$0xff] %v6467_v3 }
 0x704   : > { %v15893_v62 = vpop.f32.mrb[160].mxu1 }
 0x705   : > { %v6371_v58 = vadd.f32 %v19563_v15, %v15893_v62  ;;  %v6365_v16 = vpop.f32.mrb[161].mxu1 }
 0x706   : > { %v6366_v12 = vadd.f32 %v19563_v15, %v6365_v16 }
 0x707   : > { %v6454_v19 = vadd.f32 %v13193_v40, %v6371_v58  ;;  %v13205_v40 = vld [vmem:[%s17891_s15 + $0xf8] sm:$0xff] }
 0x708   : > { %v6453_v38 = vadd.f32 %v13192_v5, %v6366_v12  ;;  %v15896_v18 = vpop.f32.mrb[162].mxu1  ;;  %v13204_v5 = vld [vmem:[%s17891_s15 + $0xf0] sm:$0xff] }
 0x709   : > { %v6470_v0 = vmax.f32 %v6454_v19, 0.0  ;;  %v6381_v8 = vadd.f32 %v19563_v15, %v15896_v18  ;;  %v6375_v41 = vpop.f32.mrb[163].mxu1 }
 0x70a   : > { %v6469_v39 = vmax.f32 %v6453_v38, 0.0  ;;  %v6376_v63 = vadd.f32 %v19563_v15, %v6375_v41 }
 0x70b   : > { %13209 = vst [vmem:[%s19143_s17 + $0x98] sm:$0xff] %v6470_v0  ;;  %v6456_v13 = vadd.f32 %v13195_v61, %v6381_v8  ;;  %v19613_v0 = vld [vmem:[%s21093_s2] ss:$0 sm:$0xff] }
 0x70c   : > { %13208 = vst [vmem:[%s19143_s17 + $0x90] sm:$0xff] %v6469_v39  ;;  %v6455_v60 = vadd.f32 %v13194_v26, %v6376_v63 }
 0x70d   : > { %v6472_v47 = vmax.f32 %v6456_v13, 0.0 }
 0x70e   : > { %v6471_v50 = vmax.f32 %v6455_v60, 0.0 }
 0x70f   : > { %13211 = vst [vmem:[%s19143_s17 + $0xa8] sm:$0xff] %v6472_v47 }
 0x710   : > { %13210 = vst [vmem:[%s19143_s17 + $0xa0] sm:$0xff] %v6471_v50  ;;  %v15899_v2 = vpop.f32.mrb[164].mxu1 }
 0x711   : > { %v6391_v35 = vadd.f32 %v19563_v15, %v15899_v2  ;;  %v6385_v51 = vpop.f32.mrb[165].mxu1 }
 0x712   : > { %v6386_v43 = vadd.f32 %v19563_v15, %v6385_v51 }
 0x713   : > { %v6458_v52 = vadd.f32 %v13197_v30, %v6391_v35 }
 0x714   : > { %v6457_v24 = vadd.f32 %v13196_v53, %v6386_v43  ;;  %v15902_v49 = vpop.f32.mrb[166].mxu1 }
 0x715   : > { %v6474_v44 = vmax.f32 %v6458_v52, 0.0  ;;  %v6401_v28 = vadd.f32 %v19563_v15, %v15902_v49  ;;  %v6395_v22 = vpop.f32.mrb[167].mxu1 }
 0x716   : > { %v6473_v42 = vmax.f32 %v6457_v24, 0.0  ;;  %v6396_v7 = vadd.f32 %v19563_v15, %v6395_v22 }
 0x717   : > { %13213 = vst [vmem:[%s19143_s17 + $0xb8] sm:$0xff] %v6474_v44  ;;  %v6460_v55 = vadd.f32 %v13199_v46, %v6401_v28 }
 0x718   : > { %13212 = vst [vmem:[%s19143_s17 + $0xb0] sm:$0xff] %v6473_v42  ;;  %v6459_v54 = vadd.f32 %v13198_v48, %v6396_v7  ;;  %v19639_v7 = vld [vmem:[#allocation2 + $0x30] sm:$0xff] }
 0x719   : > { %v6476_v4 = vmax.f32 %v6460_v55, 0.0 }
 0x71a   : > { %v6475_v34 = vmax.f32 %v6459_v54, 0.0 }
 0x71b   : > { %13215 = vst [vmem:[%s19143_s17 + $0xc8] sm:$0xff] %v6476_v4 }
 0x71c   : > { %13214 = vst [vmem:[%s19143_s17 + $0xc0] sm:$0xff] %v6475_v34  ;;  %v15905_v29 = vpop.f32.mrb[168].mxu1 }
 0x71d   : > { %v6411_v10 = vadd.f32 %v19563_v15, %v15905_v29  ;;  %v6405_v14 = vpop.f32.mrb[169].mxu1 }
 0x71e   : > { %v6406_v6 = vadd.f32 %v19563_v15, %v6405_v14 }
 0x71f   : > { %v6462_v20 = vadd.f32 %v13201_v9, %v6411_v10 }
 0x720   : > { %v6461_v31 = vadd.f32 %v13200_v37, %v6406_v6  ;;  %v15908_v1 = vpop.f32.mrb[170].mxu1  ;;  %v19651_v37 = vld [vmem:[#allocation2 + $0x48] sm:$0xff] }
 0x721   : > { %v6478_v59 = vmax.f32 %v6462_v20, 0.0  ;;  %v6421_v36 = vadd.f32 %v19563_v15, %v15908_v1  ;;  %v6415_v17 = vpop.f32.mrb[171].mxu1 }
 0x722   : > { %v6477_v25 = vmax.f32 %v6461_v31, 0.0  ;;  %v6416_v21 = vadd.f32 %v19563_v15, %v6415_v17 }
 0x723   : > { %13217 = vst [vmem:[%s19143_s17 + $0xd8] sm:$0xff] %v6478_v59  ;;  %v6464_v56 = vadd.f32 %v13203_v27, %v6421_v36 }
 0x724   : > { %13216 = vst [vmem:[%s19143_s17 + $0xd0] sm:$0xff] %v6477_v25  ;;  %v6463_v32 = vadd.f32 %v13202_v11, %v6416_v21 }
 0x725   : > { %v6480_v45 = vmax.f32 %v6464_v56, 0.0 }
 0x726   : > { %v6479_v3 = vmax.f32 %v6463_v32, 0.0 }
 0x727   : > { %13219 = vst [vmem:[%s19143_s17 + $0xe8] sm:$0xff] %v6480_v45  ;;  %v19675_v45 = vld [vmem:[#allocation2 + $0x60] sm:$0xff] }
 0x728   : > { %13218 = vst [vmem:[%s19143_s17 + $0xe0] sm:$0xff] %v6479_v3  ;;  %v15911_v62 = vpop.f32.mrb[172].mxu1 }
 0x729   : > { %v6431_v58 = vadd.f32 %v19563_v15, %v15911_v62  ;;  %v6425_v16 = vpop.f32.mrb[173].mxu1 }
 0x72a   : > { %v6426_v12 = vadd.f32 %v19563_v15, %v6425_v16 }
 0x72b   : > { %v6466_v19 = vadd.f32 %v13205_v40, %v6431_v58 }
 0x72c   : > { %v6465_v38 = vadd.f32 %v13204_v5, %v6426_v12  ;;  %v15946_v18 = vpop.f32.mrb[174].mxu1 }
 0x72d   : > { %v6482_v61 = vmax.f32 %v6466_v19, 0.0  ;;  %v6605_v8 = vadd.f32 %v19613_v0, %v15946_v18  ;;  %v6599_v41 = vpop.f32.mrb[175].mxu1 }
 0x72e   : > { %v6481_v26 = vmax.f32 %v6465_v38, 0.0  ;;  %v6600_v39 = vadd.f32 %v19613_v0, %v6599_v41  ;;  %v19687_v38 = vld [vmem:[#allocation2 + $0x78] sm:$0xff] }
 0x72f   : > { %13221 = vst [vmem:[%s19143_s17 + $0xf8] sm:$0xff] %v6482_v61  ;;  %v6759_v63 = vmax.f32 %v6605_v8, 0.0 }
 0x730   : > { %13220 = vst [vmem:[%s19143_s17 + $0xf0] sm:$0xff] %v6481_v26  ;;  %v6758_v13 = vmax.f32 %v6600_v39, 0.0  ;;  %v15949_v15 = vpop.f32.mrb[176].mxu1  ;;  %v19705_v26 = vld [vmem:[#allocation2 + $0x90] sm:$0xff] }
 0x731   : > { %6791 = vst.msk [vmem:[#allocation2 + $0x28] sm:$0xff] %vm338_vm0, %v6759_v63  ;;  %v6615_v60 = vadd.f32 %v19613_v0, %v15949_v15  ;;  %v6609_v47 = vpop.f32.mrb[177].mxu1  ;;  %v19713_v63 = vld [vmem:[#allocation2 + $0xa8] sm:$0xff] }
 0x732   : > { %6790 = vst.msk [vmem:[#allocation2 + $0x20] sm:$0xff] %vm338_vm0, %v6758_v13  ;;  %v6610_v50 = vadd.f32 %v19613_v0, %v6609_v47  ;;  %v19729_v47 = vld [vmem:[#allocation2 + $0xc0] sm:$0xff] }
 0x733   : > { %v6761_v2 = vmax.f32 %v6615_v60, 0.0 }
 0x734   : > { %v6760_v30 = vmax.f32 %v6610_v50, 0.0  ;;  %v15952_v35 = vpop.f32.mrb[178].mxu1  ;;  %v6822_v50 = vld [vmem:[#allocation2 + $0x7] sm:$0xff] }
 0x735   : > { %6793 = vst.msk [vmem:[#allocation2 + $0x40] sm:$0xff] %vm338_vm0, %v6761_v2  ;;  %v6625_v51 = vadd.f32 %v19613_v0, %v15952_v35  ;;  %v6619_v53 = vpop.f32.mrb[179].mxu1  ;;  %v7402_v2 = vld [vmem:[#allocation6 + $0x50] sm:$0xff] }
 0x736   : > { %6792 = vst.msk [vmem:[#allocation2 + $0x38] sm:$0xff] %vm338_vm0, %v6760_v30  ;;  %v6620_v43 = vadd.f32 %v19613_v0, %v6619_v53  ;;  %v7403_v30 = vld [vmem:[#allocation6 + $0x58] sm:$0xff]  ;;  %v6823_v35 = vld [vmem:[#allocation2 + $0xf] sm:$0xff] }
 0x737   : > { %v6763_v52 = vmax.f32 %v6625_v51, 0.0  ;;  %v6824_v51 = vld [vmem:[#allocation2 + $0x17] sm:$0xff]  ;;  %v17092_v53 = vpack.c.bf16 %v7403_v30, %v7402_v2 }
 0x738   : > { %v6762_v24 = vmax.f32 %v6620_v43, 0.0  ;;  %v15955_v49 = vpop.f32.mrb[180].mxu1  ;;  %v19634_v22 = vld [vmem:[#allocation2 + $0x28] sm:$0xff]  ;;  %v7693_v43 = vld [vmem:[#allocation6 + $0x60] sm:$0xff] }
 0x739   : > { %6795 = vst.msk [vmem:[#allocation2 + $0x58] sm:$0xff] %vm338_vm0, %v6763_v52  ;;  %v19628_v46 = vld [vmem:[#allocation2 + $0x20] sm:$0xff]  ;;  %v6635_v44 = vadd.f32 %v19613_v0, %v15955_v49  ;;  %v6629_v28 = vpop.f32.mrb[181].mxu1  ;;  %v7694_v52 = vld [vmem:[#allocation6 + $0x68] sm:$0xff] }
 0x73a   : > { %6794 = vst.msk [vmem:[#allocation2 + $0x50] sm:$0xff] %vm338_vm0, %v6762_v24  ;;  %16004 = vmatmul.mubr.msk.f32.gmra.mrb[208].mxu1 %vm338_vm0, %v19628_v46  ;;  %v6630_v48 = vadd.f32 %v19613_v0, %v6629_v28  ;;  %v19737_v24 = vpack.c.bf16 %v7694_v52, %v7693_v43  ;;  %v19739_v49 = vld [vmem:[#allocation2 + $0x1f] sm:$0xff]  ;;  %v19743_v28 = vld [vmem:[#allocation2 + $0x27] sm:$0xff] }
 0x73b   : > { %16006 = vmatprep.mubr.msk.f32.mxu1 %vm338_vm0, %v19634_v22  ;;  %v6765_v42 = vmax.f32 %v6635_v44, 0.0 }
 0x73c   : > { %v6764_v55 = vmax.f32 %v6630_v48, 0.0  ;;  %v15958_v54 = vpop.f32.mrb[182].mxu1  ;;  %v19653_v20 = vld [vmem:[#allocation2 + $0x40] sm:$0xff] }
 0x73d   : > { %6797 = vst.msk [vmem:[#allocation2 + $0x70] sm:$0xff] %vm338_vm0, %v6765_v42  ;;  %v19642_v4 = vld [vmem:[#allocation2 + $0x38] sm:$0xff]  ;;  %v6645_v34 = vadd.f32 %v19613_v0, %v15958_v54  ;;  %v6639_v29 = vpop.f32.mrb[183].mxu1  ;;  %v19750_v54 = vld [vmem:[#allocation2 + $0x2f] sm:$0xff] }
 0x73e   : > { %16007 = vmatmul.mubr.msk.f32.gmra.mrb[210].mxu1 %vm338_vm0, %v19639_v7  ;;  %6796 = vst.msk [vmem:[#allocation2 + $0x68] sm:$0xff] %vm338_vm0, %v6764_v55  ;;  %v6640_v9 = vadd.f32 %v19613_v0, %v6639_v29 }
 0x73f   : > { %16009 = vmatprep.mubr.msk.f32.mxu1 %vm338_vm0, %v19642_v4  ;;  %v6767_v10 = vmax.f32 %v6645_v34, 0.0 }
 0x740   : > { %v6766_v14 = vmax.f32 %v6640_v9, 0.0  ;;  %v15961_v6 = vpop.f32.mrb[184].mxu1  ;;  %v19669_v56 = vld [vmem:[#allocation2 + $0x58] sm:$0xff] }
 0x741   : > { %6799 = vst.msk [vmem:[#allocation2 + $0x88] sm:$0xff] %vm338_vm0, %v6767_v10  ;;  %v6655_v31 = vadd.f32 %v19613_v0, %v15961_v6  ;;  %v6649_v1 = vpop.f32.mrb[185].mxu1  ;;  %v19663_v59 = vld [vmem:[#allocation2 + $0x50] sm:$0xff] }
 0x742   : > { %16010 = vmatmul.mubr.msk.f32.gmra.mrb[212].mxu1 %vm338_vm0, %v19653_v20  ;;  %6798 = vst.msk [vmem:[#allocation2 + $0x80] sm:$0xff] %vm338_vm0, %v6766_v14  ;;  %v6650_v27 = vadd.f32 %v19613_v0, %v6649_v1  ;;  %v19754_v9 = vld [vmem:[#allocation2 + $0x37] sm:$0xff]  ;;  %v19762_v1 = vld [vmem:[#allocation2 + $0x3f] sm:$0xff] }
 0x743   : > { %16012 = vmatprep.mubr.msk.f32.mxu1 %vm338_vm0, %v19651_v37  ;;  %v6769_v36 = vmax.f32 %v6655_v31, 0.0 }
 0x744   : > { %v6768_v17 = vmax.f32 %v6650_v27, 0.0  ;;  %v15964_v11 = vpop.f32.mrb[186].mxu1  ;;  %v19689_v61 = vld [vmem:[#allocation2 + $0x70] sm:$0xff] }
 0x745   : > { %6801 = vst.msk [vmem:[#allocation2 + $0xa0] sm:$0xff] %vm338_vm0, %v6769_v36  ;;  %v6665_v25 = vadd.f32 %v19613_v0, %v15964_v11  ;;  %v6659_v21 = vpop.f32.mrb[187].mxu1  ;;  %v19677_v62 = vld [vmem:[#allocation2 + $0x68] sm:$0xff] }
 0x746   : > { %16013 = vmatmul.mubr.msk.f32.gmra.mrb[214].mxu1 %vm338_vm0, %v19663_v59  ;;  %6800 = vst.msk [vmem:[#allocation2 + $0x98] sm:$0xff] %vm338_vm0, %v6768_v17  ;;  %v6660_v32 = vadd.f32 %v19613_v0, %v6659_v21  ;;  %v19766_v17 = vld [vmem:[#allocation2 + $0x47] sm:$0xff] }
 0x747   : > { %16015 = vmatprep.mubr.msk.f32.mxu1 %vm338_vm0, %v19669_v56  ;;  %v6771_v3 = vmax.f32 %v6665_v25, 0.0 }
 0x748   : > { %v6770_v40 = vmax.f32 %v6660_v32, 0.0  ;;  %v15967_v58 = vpop.f32.mrb[188].mxu1  ;;  %v19701_v41 = vld [vmem:[#allocation2 + $0x88] sm:$0xff] }
 0x749   : > { %6803 = vst.msk [vmem:[#allocation2 + $0xb8] sm:$0xff] %vm338_vm0, %v6771_v3  ;;  %v6675_v16 = vadd.f32 %v19613_v0, %v15967_v58  ;;  %v6669_v5 = vpop.f32.mrb[189].mxu1  ;;  %v19697_v8 = vld [vmem:[#allocation2 + $0x80] sm:$0xff]  ;;  %v19774_v3 = vld [vmem:[#allocation2 + $0x4f] sm:$0xff] }
 0x74a   : > { %16016 = vmatmul.mubr.msk.f32.gmra.mrb[216].mxu1 %vm338_vm0, %v19675_v45  ;;  %6802 = vst.msk [vmem:[#allocation2 + $0xb0] sm:$0xff] %vm338_vm0, %v6770_v40  ;;  %v6670_v12 = vadd.f32 %v19613_v0, %v6669_v5 }
 0x74b   : > { %16018 = vmatprep.mubr.msk.f32.mxu1 %vm338_vm0, %v19677_v62  ;;  %v6773_v19 = vmax.f32 %v6675_v16, 0.0  ;;  %v19778_v16 = vld [vmem:[#allocation2 + $0x57] sm:$0xff] }
 0x74c   : > { %v6772_v18 = vmax.f32 %v6670_v12, 0.0  ;;  %v19715_v13 = vld [vmem:[#allocation2 + $0xa0] sm:$0xff]  ;;  %v15970_v44 = vpop.f32.mrb[190].mxu1 }
 0x74d   : > { %6805 = vst.msk [vmem:[#allocation2 + $0xd0] sm:$0xff] %vm338_vm0, %v6773_v19  ;;  %v19707_v39 = vld [vmem:[#allocation2 + $0x98] sm:$0xff]  ;;  %v6685_v48 = vadd.f32 %v19613_v0, %v15970_v44  ;;  %v6679_v42 = vpop.f32.mrb[191].mxu1  ;;  %v19798_v44 = vld [vmem:[#allocation2 + $0x6f] sm:$0xff] }
 0x74e   : > { %16019 = vmatmul.mubr.msk.f32.gmra.mrb[218].mxu1 %vm338_vm0, %v19689_v61  ;;  %6804 = vst.msk [vmem:[#allocation2 + $0xc8] sm:$0xff] %vm338_vm0, %v6772_v18 }
 0x74f   : > { %16021 = vmatprep.mubr.msk.f32.mxu1 %vm338_vm0, %v19687_v38  ;;  %v6775_v55 = vmax.f32 %v6685_v48, 0.0 }
 0x750   : > { %v19725_v60 = vld [vmem:[#allocation2 + $0xb8] sm:$0xff]  ;;  %v15973_v29 = vpop.f32.mrb[192].mxu1 }
 0x751   : > { %v19721_v15 = vld [vmem:[#allocation2 + $0xb0] sm:$0xff]  ;;  %6807 = vst.msk [vmem:[#allocation2 + $0xe8] sm:$0xff] %vm338_vm0, %v6775_v55  ;;  %v6695_v10 = vadd.f32 %v19613_v0, %v15973_v29  ;;  %v6689_v14 = vpop.f32.mrb[193].mxu1  ;;  %v19936_v57 = vld [vmem:[#allocation2 + $0xb9] sm:$0xff] }
 0x752   : > { %16022 = vmatmul.mubr.msk.f32.gmra.mrb[220].mxu1 %vm338_vm0, %v19697_v8  ;;  %v6690_v6 = vadd.f32 %v19613_v0, %v6689_v14  ;;  %v19810_v14 = vld [vmem:[#allocation2 + $0x7f] sm:$0xff]  ;;  %21316 = vst [vmem:[#allocation40_spill] sm:$0xff] %v19936_v57 }
 0x753   : > { %16024 = vmatprep.mubr.msk.f32.mxu1 %vm338_vm0, %v19701_v41  ;;  %v6777_v31 = vmax.f32 %v6695_v10, 0.0 }
 0x754   : > { %v6776_v27 = vmax.f32 %v6690_v6, 0.0  ;;  %v15976_v36 = vpop.f32.mrb[194].mxu1 }
 0x755   : > { %6809 = vst.msk [vmem:[#allocation2 + $0x100] sm:$0xff] %vm338_vm0, %v6777_v31  ;;  %v6705_v11 = vadd.f32 %v19613_v0, %v15976_v36  ;;  %v6699_v25 = vpop.f32.mrb[195].mxu1  ;;  %v19940_v23 = vld [vmem:[#allocation2 + $0xc1] sm:$0xff] }
 0x756   : > { %16025 = vmatmul.mubr.msk.f32.gmra.mrb[222].mxu1 %vm338_vm0, %v19705_v26  ;;  %6808 = vst.msk [vmem:[#allocation2 + $0xf8] sm:$0xff] %vm338_vm0, %v6776_v27  ;;  %v6700_v21 = vadd.f32 %v19613_v0, %v6699_v25  ;;  %v19814_v27 = vld [vmem:[#allocation2 + $0x87] sm:$0xff] }
 0x757   : > { %16027 = vmatprep.mubr.msk.f32.mxu1 %vm338_vm0, %v19707_v39  ;;  %v6779_v32 = vmax.f32 %v6705_v11, 0.0 }
 0x758   : > { %v6778_v40 = vmax.f32 %v6700_v21, 0.0  ;;  %v15979_v58 = vpop.f32.mrb[196].mxu1 }
 0x759   : > { %6811 = vst.msk [vmem:[#allocation2 + $0x118] sm:$0xff] %vm338_vm0, %v6779_v32  ;;  %v6715_v5 = vadd.f32 %v19613_v0, %v15979_v58  ;;  %v6709_v12 = vpop.f32.mrb[197].mxu1  ;;  %v19822_v32 = vld [vmem:[#allocation2 + $0x8f] sm:$0xff] }
 0x75a   : > { %16028 = vmatmul.mubr.msk.f32.gmra.mrb[224].mxu1 %vm338_vm0, %v19715_v13  ;;  %6810 = vst.msk [vmem:[#allocation2 + $0x110] sm:$0xff] %vm338_vm0, %v6778_v40  ;;  %v6710_v19 = vadd.f32 %v19613_v0, %v6709_v12 }
 0x75b   : > { %16030 = vmatprep.mubr.msk.f32.mxu1 %vm338_vm0, %v19713_v63  ;;  %v6781_v18 = vmax.f32 %v6715_v5, 0.0  ;;  %v19826_v5 = vld [vmem:[#allocation2 + $0x97] sm:$0xff] }
 0x75c   : > { %v6780_v2 = vmax.f32 %v6710_v19, 0.0  ;;  %v15982_v30 = vpop.f32.mrb[198].mxu1 }
 0x75d   : > { %6813 = vst.msk [vmem:[#allocation2 + $0x130] sm:$0xff] %vm338_vm0, %v6781_v18 }
 0x75e   : > { %16031 = vmatmul.mubr.msk.f32.gmra.mrb[226].mxu1 %vm338_vm0, %v19721_v15  ;;  %6812 = vst.msk [vmem:[#allocation2 + $0x128] sm:$0xff] %vm338_vm0, %v6780_v2 }
 0x75f   : > { %16033 = vmatprep.mubr.msk.f32.mxu1 %vm338_vm0, %v19725_v60 }
 0x762   : > { %16034 = vmatmul.mubr.msk.f32.gmra.mrb[228].mxu1 %vm338_vm0, %v19729_v47 }
 0x763   : > { %16044 = vmatprep.mubr.msk.f32.mxu1 %vm338_vm0, %v6822_v50  ;;  %v19786_v50 = vld [vmem:[#allocation2 + $0x5f] sm:$0xff] }
 0x766   : > { %16045 = vmatmul.mubr.msk.f32.vlgmr.msra.gmra.mrb[206].mxu1 %vm338_vm0, %v6823_v35  ;;  %v19790_v35 = vld [vmem:[#allocation2 + $0x67] sm:$0xff] }
 0x767   : > { %17091 = vmatpush3.bf16.msra.mxu1 %v19556_v33  ;;  %16047 = vmatprep.mubr.msk.f32.mxu1 %vm338_vm0, %v6824_v51  ;;  %v6680_v33 = vadd.f32 %v19613_v0, %v6679_v42  ;;  %v6725_v51 = vadd.f32 %v19613_v0, %v15982_v30  ;;  %v19834_v30 = vld [vmem:[#allocation2 + $0x9f] sm:$0xff] }
 0x768   : > { %17093 = vmatprep.subr.bf16.mxu1 %v17092_v53 }
 0x769   : > { %v6774_v34 = vmax.f32 %v6680_v33, 0.0  ;;  %v6783_v52 = vmax.f32 %v6725_v51, 0.0  ;;  %v19802_v33 = vld [vmem:[#allocation2 + $0x77] sm:$0xff] }
 0x76a   : > { %16048 = vmatmul.mubr.msk.f32.gmra.mrb[230].mxu1 %vm338_vm0, %v19739_v49 }
 0x76b   : > { %16050 = vmatprep.mubr.msk.f32.mxu1 %vm338_vm0, %v19743_v28  ;;  %17095 = vmatpush3.bf16.msra.mxu1 %v17092_v53  ;;  %6806 = vst.msk [vmem:[#allocation2 + $0xe0] sm:$0xff] %vm338_vm0, %v6774_v34  ;;  %v6719_v53 = vpop.f32.mrb[199].mxu1  ;;  %6815 = vst.msk [vmem:[#allocation2 + $0x148] sm:$0xff] %vm338_vm0, %v6783_v52  ;;  %v7376_v52 = vld [vmem:[#allocation2 + $0x9] sm:$0xff] }
 0x76c   : > { %17097 = vmatprep.subr.bf16.mxu1 %v19737_v24  ;;  %v6720_v43 = vadd.f32 %v19613_v0, %v6719_v53  ;;  %v15985_v42 = vpop.f32.mrb[200].mxu1  ;;  %v19838_v53 = vld [vmem:[#allocation2 + $0xa7] sm:$0xff] }
 0x76d   : > { %v6735_v55 = vadd.f32 %v19613_v0, %v15985_v42  ;;  %v6729_v34 = vpop.f32.mrb[201].mxu1  ;;  %v7695_v42 = vld [vmem:[#allocation6 + $0x70] sm:$0xff] }
 0x76e   : > { %16051 = vmatmul.mubr.msk.f32.gmra.mrb[232].mxu1 %vm338_vm0, %v19750_v54  ;;  %v6782_v48 = vmax.f32 %v6720_v43, 0.0  ;;  %v6730_v29 = vadd.f32 %v19613_v0, %v6729_v34  ;;  %v15988_v31 = vpop.f32.mrb[202].mxu1  ;;  %v19844_v43 = vld [vmem:[#allocation2 + $0xaf] sm:$0xff] }
 0x76f   : > { %16053 = vmatprep.mubr.msk.f32.mxu1 %vm338_vm0, %v19754_v9  ;;  %v6785_v10 = vmax.f32 %v6735_v55, 0.0  ;;  %v6745_v36 = vadd.f32 %v19613_v0, %v15988_v31  ;;  %v6739_v11 = vpop.f32.mrb[203].mxu1  ;;  %v7696_v55 = vld [vmem:[#allocation6 + $0x78] sm:$0xff] }
 0x770   : > { %6814 = vst.msk [vmem:[#allocation2 + $0x140] sm:$0xff] %vm338_vm0, %v6782_v48  ;;  %v6784_v6 = vmax.f32 %v6730_v29, 0.0  ;;  %v6740_v25 = vadd.f32 %v19613_v0, %v6739_v11  ;;  %v15991_v58 = vpop.f32.mrb[204].mxu1  ;;  %v19852_v48 = vld [vmem:[#allocation2 + $0xbf] sm:$0xff]  ;;  %v7377_v34 = vld [vmem:[#allocation2 + $0x11] sm:$0xff]  ;;  %v17100_v29 = vpack.c.bf16 %v7696_v55, %v7695_v42  ;;  %v19912_v55 = vld [vmem:[#allocation2 + $0x89] sm:$0xff] }
 0x771   : > { %6817 = vst.msk [vmem:[#allocation2 + $0x160] sm:$0xff] %vm338_vm0, %v6785_v10  ;;  %v6787_v21 = vmax.f32 %v6745_v36, 0.0  ;;  %v6755_v12 = vadd.f32 %v19613_v0, %v15991_v58  ;;  %v6749_v19 = vpop.f32.mrb[205].mxu1  ;;  %v7986_v10 = vld [vmem:[#allocation6 + $0x80] sm:$0xff]  ;;  %v19880_v58 = vld [vmem:[#allocation2 + $0x49] sm:$0xff]  ;;  %21311 = vst [vmem:[#allocation32_spill] sm:$0xff] %v19912_v55 }
 0x772   : > { %16054 = vmatmul.mubr.msk.f32.gmra.mrb[212].mxu1 %vm338_vm0, %v19762_v1  ;;  %6816 = vst.msk [vmem:[#allocation2 + $0x158] sm:$0xff] %vm338_vm0, %v6784_v6  ;;  %v6786_v40 = vmax.f32 %v6740_v25, 0.0  ;;  %v6750_v18 = vadd.f32 %v19613_v0, %v6749_v19  ;;  %v19848_v0 = vld [vmem:[#allocation2 + $0xb7] sm:$0xff]  ;;  %v7987_v6 = vld [vmem:[#allocation6 + $0x88] sm:$0xff] }
 0x773   : > { %16056 = vmatprep.mubr.msk.f32.mxu1 %vm338_vm0, %v19766_v17  ;;  %6819 = vst.msk [vmem:[#allocation2 + $0x178] sm:$0xff] %vm338_vm0, %v6787_v21  ;;  %v6789_v2 = vmax.f32 %v6755_v12, 0.0  ;;  %v7378_v31 = vld [vmem:[#allocation2 + $0x19] sm:$0xff]  ;;  %v17104_v36 = vpack.c.bf16 %v7987_v6, %v7986_v10  ;;  %v19860_v11 = vld [vmem:[#allocation2 + $0x21] sm:$0xff]  ;;  %v19864_v25 = vld [vmem:[#allocation2 + $0x29] sm:$0xff] }
 0x774   : > { %6818 = vst.msk [vmem:[#allocation2 + $0x170] sm:$0xff] %vm338_vm0, %v6786_v40  ;;  %v6788_v51 = vmax.f32 %v6750_v18, 0.0  ;;  %v19868_v21 = vld [vmem:[#allocation2 + $0x31] sm:$0xff]  ;;  %v19876_v40 = vld [vmem:[#allocation2 + $0x41] sm:$0xff]  ;;  %v19888_v19 = vld [vmem:[#allocation2 + $0x59] sm:$0xff] }
 0x775   : > { %6821 = vst.msk [vmem:[#allocation2 + $0x190] sm:$0xff] %vm338_vm0, %v6789_v2  ;;  %v19884_v12 = vld [vmem:[#allocation2 + $0x51] sm:$0xff]  ;;  %v19892_v18 = vld [vmem:[#allocation2 + $0x61] sm:$0xff]  ;;  %v19896_v2 = vld [vmem:[#allocation2 + $0x69] sm:$0xff] }
 0x776   : > { %16057 = vmatmul.mubr.msk.f32.gmra.mrb[234].mxu1 %vm338_vm0, %v19774_v3  ;;  %6820 = vst.msk [vmem:[#allocation2 + $0x188] sm:$0xff] %vm338_vm0, %v6788_v51  ;;  %v19900_v51 = vld [vmem:[#allocation2 + $0x71] sm:$0xff]  ;;  %v19908_v42 = vld [vmem:[#allocation2 + $0x81] sm:$0xff]  ;;  %v19928_v6 = vld [vmem:[#allocation2 + $0xa9] sm:$0xff] }
 0x777   : > { %16059 = vmatprep.mubr.msk.f32.mxu1 %vm338_vm0, %v19778_v16  ;;  %v19924_v10 = vld [vmem:[#allocation2 + $0xa1] sm:$0xff]  ;;  %21315 = vst [vmem:[#allocation39_spill] sm:$0xff] %v19928_v6 }
 0x778   : > { %21314 = vst [vmem:[#allocation38_spill] sm:$0xff] %v19924_v10 }
 0x77a   : > { %16060 = vmatmul.mubr.msk.f32.gmra.mrb[236].mxu1 %vm338_vm0, %v19786_v50 }
 0x77b   : > { %16062 = vmatprep.mubr.msk.f32.mxu1 %vm338_vm0, %v19790_v35 }
 0x77e   : > { %16063 = vmatmul.mubr.msk.f32.gmra.mrb[218].mxu1 %vm338_vm0, %v19798_v44 }
 0x77f   : > { %16065 = vmatprep.mubr.msk.f32.mxu1 %vm338_vm0, %v19802_v33 }
 0x782   : > { %16066 = vmatmul.mubr.msk.f32.gmra.mrb[238].mxu1 %vm338_vm0, %v19810_v14 }
 0x783   : > { %16068 = vmatprep.mubr.msk.f32.mxu1 %vm338_vm0, %v19814_v27 }
 0x786   : > { %16069 = vmatmul.mubr.msk.f32.gmra.mrb[240].mxu1 %vm338_vm0, %v19822_v32 }
 0x787   : > { %16071 = vmatprep.mubr.msk.f32.mxu1 %vm338_vm0, %v19826_v5 }
 0x78a   : > { %16072 = vmatmul.mubr.msk.f32.gmra.mrb[224].mxu1 %vm338_vm0, %v19834_v30 }
 0x78b   : > { %16074 = vmatprep.mubr.msk.f32.mxu1 %vm338_vm0, %v19838_v53 }
 0x78e   : > { %16075 = vmatmul.mubr.msk.f32.gmra.mrb[242].mxu1 %vm338_vm0, %v19844_v43 }
 0x78f   : > { %16077 = vmatprep.mubr.msk.f32.mxu1 %vm338_vm0, %v19848_v0 }
 0x792   : > { %16078 = vmatmul.mubr.msk.f32.gmra.mrb[244].mxu1 %vm338_vm0, %v19852_v48 }
 0x793   : > { %16088 = vmatprep.mubr.msk.f32.mxu1 %vm338_vm0, %v7376_v52  ;;  %v19904_v52 = vld [vmem:[#allocation2 + $0x79] sm:$0xff] }
 0x796   : > { %16089 = vmatmul.mubr.msk.f32.vlgmr.msra.gmra.mrb[206].mxu1 %vm338_vm0, %v7377_v34  ;;  %v19916_v34 = vld [vmem:[#allocation2 + $0x91] sm:$0xff] }
 0x797   : > { %17099 = vmatpush3.bf16.msra.mxu1 %v19737_v24  ;;  %16091 = vmatprep.mubr.msk.f32.mxu1 %vm338_vm0, %v7378_v31  ;;  %v19872_v24 = vld [vmem:[#allocation2 + $0x39] sm:$0xff]  ;;  %21312 = vst [vmem:[#allocation33_spill] sm:$0xff] %v19916_v34  ;;  %v19932_v31 = vld [vmem:[#allocation2 + $0xb1] sm:$0xff] }
 0x798   : > { %17101 = vmatprep.subr.bf16.mxu1 %v17100_v29 }
 0x79a   : > { %16092 = vmatmul.mubr.msk.f32.gmra.mrb[246].mxu1 %vm338_vm0, %v19860_v11 }
 0x79b   : > { %16094 = vmatprep.mubr.msk.f32.mxu1 %vm338_vm0, %v19864_v25  ;;  %17103 = vmatpush3.bf16.msra.mxu1 %v17100_v29  ;;  %v19920_v29 = vld [vmem:[#allocation2 + $0x99] sm:$0xff] }
 0x79c   : > { %17105 = vmatprep.subr.bf16.mxu1 %v17104_v36  ;;  %21313 = vst [vmem:[#allocation34_spill] sm:$0xff] %v19920_v29 }
 0x79e   : > { %16095 = vmatmul.mubr.msk.f32.gmra.mrb[248].mxu1 %vm338_vm0, %v19868_v21 }
 0x79f   : > { %16097 = vmatprep.mubr.msk.f32.mxu1 %vm338_vm0, %v19872_v24 }
 0x7a2   : > { %16098 = vmatmul.mubr.msk.f32.gmra.mrb[212].mxu1 %vm338_vm0, %v19876_v40 }
 0x7a3   : > { %16100 = vmatprep.mubr.msk.f32.mxu1 %vm338_vm0, %v19880_v58 }
 0x7a6   : > { %16101 = vmatmul.mubr.msk.f32.gmra.mrb[250].mxu1 %vm338_vm0, %v19884_v12 }
 0x7a7   : > { %16103 = vmatprep.mubr.msk.f32.mxu1 %vm338_vm0, %v19888_v19 }
 0x7aa   : > { %16104 = vmatmul.mubr.msk.f32.gmra.mrb[252].mxu1 %vm338_vm0, %v19892_v18 }
 0x7ab   : > { %16106 = vmatprep.mubr.msk.f32.mxu1 %vm338_vm0, %v19896_v2 }
 0x7ae   : > { %16107 = vmatmul.mubr.msk.f32.gmra.mrb[218].mxu1 %vm338_vm0, %v19900_v51 }
 0x7af   : > { %16109 = vmatprep.mubr.msk.f32.mxu1 %vm338_vm0, %v19904_v52 }
 0x7b2   : > { %16110 = vmatmul.mubr.msk.f32.gmra.mrb[254].mxu1 %vm338_vm0, %v19908_v42 }
 0x7b3   : > { %16112 = vmatprep.mubr.msk.f32.mxu1 %vm338_vm0, %v19912_v55  ;;  %v8280_v55 = vld [vmem:[#allocation6 + $0xa8] sm:$0xff] }
 0x7b6   : > { %16113 = vmatmul.mubr.msk.f32.gmra.mrb[2].mxu1 %vm338_vm0, %v19916_v34  ;;  %v7989_v34 = vld [vmem:[#allocation6 + $0x98] sm:$0xff] }
 0x7b7   : > { %16115 = vmatprep.mubr.msk.f32.mxu1 %vm338_vm0, %v19920_v29  ;;  %v7988_v29 = vld [vmem:[#allocation6 + $0x90] sm:$0xff] }
 0x7ba   : > { %16116 = vmatmul.mubr.msk.f32.gmra.mrb[224].mxu1 %vm338_vm0, %v19924_v10  ;;  %v8279_v10 = vld [vmem:[#allocation6 + $0xa0] sm:$0xff] }
 0x7bb   : > { %16118 = vmatprep.mubr.msk.f32.mxu1 %vm338_vm0, %v19928_v6  ;;  %v17108_v6 = vpack.c.bf16 %v7989_v34, %v7988_v29  ;;  %v8572_v29 = vld [vmem:[#allocation6 + $0xc0] sm:$0xff] }
 0x7be   : > { %16119 = vmatmul.mubr.msk.f32.gmra.mrb[4].mxu1 %vm338_vm0, %v19932_v31 }
 0x7bf   : > { %16121 = vmatprep.mubr.msk.f32.mxu1 %vm338_vm0, %v19936_v57  ;;  %v17112_v57 = vpack.c.bf16 %v8280_v55, %v8279_v10  ;;  %v8282_v55 = vld [vmem:[#allocation6 + $0xb8] sm:$0xff]  ;;  %v8573_v10 = vld [vmem:[#allocation6 + $0xc8] sm:$0xff] }
 0x7c2   : > { %16122 = vmatmul.mubr.msk.f32.gmra.mrb[8].mxu1 %vm338_vm0, %v19940_v23 }
 0x7c3   : > { %16132 = vmatprep.mubr.msk.f32.mxu1 %vm338_vm0, %v19739_v49  ;;  %v19986_v49 = vld [vmem:[#allocation2 + $0xc7] sm:$0xff] }
 0x7c6   : > { %16133 = vmatmul.mubr.msk.f32.vlgmr.msra.gmra.mrb[206].mxu1 %vm338_vm0, %v19743_v28  ;;  %v19990_v28 = vld [vmem:[#allocation2 + $0xcf] sm:$0xff] }
 0x7c7   : > { %17107 = vmatpush3.bf16.msra.mxu1 %v17104_v36  ;;  %16135 = vmatprep.mubr.msk.f32.mxu1 %vm338_vm0, %v19750_v54  ;;  %v19994_v54 = vld [vmem:[#allocation2 + $0xd7] sm:$0xff] }
 0x7c8   : > { %17109 = vmatprep.subr.bf16.mxu1 %v17108_v6  ;;  %v8281_v36 = vld [vmem:[#allocation6 + $0xb0] sm:$0xff] }
 0x7c9   : > { %v17116_v34 = vpack.c.bf16 %v8282_v55, %v8281_v36 }
 0x7ca   : > { %16136 = vmatmul.mubr.msk.f32.gmra.mrb[10].mxu1 %vm338_vm0, %v19754_v9 }
 0x7cb   : > { %16138 = vmatprep.mubr.msk.f32.mxu1 %vm338_vm0, %v19762_v1  ;;  %17111 = vmatpush3.bf16.msra.mxu1 %v17108_v6  ;;  %v17120_v6 = vpack.c.bf16 %v8573_v10, %v8572_v29  ;;  %v21317_v29 = vld [vmem:[#allocation32_spill] sm:$0xff]  ;;  %v21318_v10 = vld [vmem:[#allocation33_spill] sm:$0xff] }
 0x7cc   : > { %17113 = vmatprep.subr.bf16.mxu1 %v17112_v57 }
 0x7ce   : > { %16139 = vmatmul.mubr.msk.f32.gmra.mrb[14].mxu1 %vm338_vm0, %v19766_v17 }
 0x7cf   : > { %16141 = vmatprep.mubr.msk.f32.mxu1 %vm338_vm0, %v19774_v3 }
 0x7d2   : > { %16142 = vmatmul.mubr.msk.f32.gmra.mrb[212].mxu1 %vm338_vm0, %v19778_v16 }
 0x7d3   : > { %16144 = vmatprep.mubr.msk.f32.mxu1 %vm338_vm0, %v19786_v50 }
 0x7d6   : > { %16145 = vmatmul.mubr.msk.f32.gmra.mrb[16].mxu1 %vm338_vm0, %v19790_v35 }
 0x7d7   : > { %16147 = vmatprep.mubr.msk.f32.mxu1 %vm338_vm0, %v19798_v44 }
 0x7da   : > { %16148 = vmatmul.mubr.msk.f32.gmra.mrb[20].mxu1 %vm338_vm0, %v19802_v33 }
 0x7db   : > { %16150 = vmatprep.mubr.msk.f32.mxu1 %vm338_vm0, %v19810_v14 }
 0x7de   : > { %16151 = vmatmul.mubr.msk.f32.gmra.mrb[218].mxu1 %vm338_vm0, %v19814_v27 }
 0x7df   : > { %16153 = vmatprep.mubr.msk.f32.mxu1 %vm338_vm0, %v19822_v32 }
 0x7e2   : > { %16154 = vmatmul.mubr.msk.f32.gmra.mrb[22].mxu1 %vm338_vm0, %v19826_v5 }
 0x7e3   : > { %16156 = vmatprep.mubr.msk.f32.mxu1 %vm338_vm0, %v19834_v30 }
 0x7e6   : > { %16157 = vmatmul.mubr.msk.f32.gmra.mrb[24].mxu1 %vm338_vm0, %v19838_v53 }
 0x7e7   : > { %16159 = vmatprep.mubr.msk.f32.mxu1 %vm338_vm0, %v19844_v43 }
 0x7ea   : > { %16160 = vmatmul.mubr.msk.f32.gmra.mrb[224].mxu1 %vm338_vm0, %v19848_v0 }
 0x7eb   : > { %16162 = vmatprep.mubr.msk.f32.mxu1 %vm338_vm0, %v19852_v48 }
 0x7ee   : > { %16163 = vmatmul.mubr.msk.f32.gmra.mrb[26].mxu1 %vm338_vm0, %v19986_v49 }
 0x7ef   : > { %16165 = vmatprep.mubr.msk.f32.mxu1 %vm338_vm0, %v19990_v28 }
 0x7f2   : > { %16166 = vmatmul.mubr.msk.f32.gmra.mrb[28].mxu1 %vm338_vm0, %v19994_v54 }
 0x7f3   : > { %16176 = vmatprep.mubr.msk.f32.mxu1 %vm338_vm0, %v19628_v46 }
 0x7f6   : > { %16177 = vmatmul.mubr.msk.f32.vlgmr.msra.gmra.mrb[206].mxu1 %vm338_vm0, %v19634_v22 }
 0x7f7   : > { %17115 = vmatpush3.bf16.msra.mxu1 %v17112_v57  ;;  %16179 = vmatprep.mubr.msk.f32.mxu1 %vm338_vm0, %v19639_v7 }
 0x7f8   : > { %17117 = vmatprep.subr.bf16.mxu1 %v17116_v34 }
 0x7fa   : > { %16180 = vmatmul.mubr.msk.f32.gmra.mrb[30].mxu1 %vm338_vm0, %v19642_v4 }
 0x7fb   : > { %16182 = vmatprep.mubr.msk.f32.mxu1 %vm338_vm0, %v19653_v20  ;;  %17119 = vmatpush3.bf16.msra.mxu1 %v17116_v34 }
 0x7fc   : > { %17121 = vmatprep.subr.bf16.mxu1 %v17120_v6 }
 0x7fe   : > { %16183 = vmatmul.mubr.msk.f32.gmra.mrb[32].mxu1 %vm338_vm0, %v19651_v37 }
 0x7ff   : > { %16185 = vmatprep.mubr.msk.f32.mxu1 %vm338_vm0, %v19663_v59  ;;  %v20040_v59 = vld [vmem:[#allocation2 + $0xc8] sm:$0xff] }
 0x802   : > { %16186 = vmatmul.mubr.msk.f32.gmra.mrb[212].mxu1 %vm338_vm0, %v19669_v56 }
 0x803   : > { %16188 = vmatprep.mubr.msk.f32.mxu1 %vm338_vm0, %v19675_v45  ;;  %v20044_v45 = vld [vmem:[#allocation2 + $0xd0] sm:$0xff] }
 0x806   : > { %16189 = vmatmul.mubr.msk.f32.gmra.mrb[34].mxu1 %vm338_vm0, %v19677_v62  ;;  %v20048_v62 = vld [vmem:[#allocation2 + $0xd8] sm:$0xff] }
 0x807   : > { %16191 = vmatprep.mubr.msk.f32.mxu1 %vm338_vm0, %v19689_v61  ;;  %v8575_v61 = vld [vmem:[#allocation6 + $0xd8] sm:$0xff] }
 0x80a   : > { %16192 = vmatmul.mubr.msk.f32.gmra.mrb[36].mxu1 %vm338_vm0, %v19687_v38  ;;  %v8574_v38 = vld [vmem:[#allocation6 + $0xd0] sm:$0xff] }
 0x80b   : > { %16194 = vmatprep.mubr.msk.f32.mxu1 %vm338_vm0, %v19697_v8  ;;  %v17124_v8 = vpack.c.bf16 %v8575_v61, %v8574_v38  ;;  %v21321_v38 = vld [vmem:[#allocation39_spill] sm:$0xff] }
 0x80d   : > { %v16005_v57 = vpop.f32.mrb[208].mxu1 }
 0x80e   : > { %v7026_v46 = vpop.f32.mrb[209].mxu1  ;;  %16195 = vmatmul.mubr.msk.f32.gmra.mrb[218].mxu1 %vm338_vm0, %v19701_v41 }
 0x80f   : > { %16197 = vmatprep.mubr.msk.f32.mxu1 %vm338_vm0, %v19705_v26  ;;  %v8865_v26 = vld [vmem:[#allocation6 + $0xe0] sm:$0xff] }
 0x811   : > { %v16008_v22 = vpop.f32.mrb[210].mxu1 }
 0x812   : > { %v7035_v7 = vpop.f32.mrb[211].mxu1  ;;  %16198 = vmatmul.mubr.msk.f32.gmra.mrb[38].mxu1 %vm338_vm0, %v19707_v39  ;;  %v8866_v39 = vld [vmem:[#allocation6 + $0xe8] sm:$0xff]  ;;  %v21319_v22 = vld [vmem:[#allocation34_spill] sm:$0xff] }
 0x813   : > { %16200 = vmatprep.mubr.msk.f32.mxu1 %vm338_vm0, %v19715_v13  ;;  %v17128_v13 = vpack.c.bf16 %v8866_v39, %v8865_v26  ;;  %v21322_v26 = vld [vmem:[#allocation40_spill] sm:$0xff] }
 0x816   : > { %16201 = vmatmul.mubr.msk.f32.gmra.mrb[40].mxu1 %vm338_vm0, %v19713_v63 }
 0x817   : > { %16203 = vmatprep.mubr.msk.f32.mxu1 %vm338_vm0, %v19721_v15 }
 0x819   : > { %v16014_v4 = vpop.f32.mrb[214].mxu1 }
 0x81a   : > { %v7054_v37 = vpop.f32.mrb[215].mxu1  ;;  %16204 = vmatmul.mubr.msk.f32.gmra.mrb[224].mxu1 %vm338_vm0, %v19725_v60 }
 0x81b   : > { %16206 = vmatprep.mubr.msk.f32.mxu1 %vm338_vm0, %v19729_v47 }
 0x81d   : > { %v16017_v20 = vpop.f32.mrb[216].mxu1 }
 0x81e   : > { %v7063_v56 = vpop.f32.mrb[217].mxu1  ;;  %16207 = vmatmul.mubr.msk.f32.gmra.mrb[42].mxu1 %vm338_vm0, %v20040_v59  ;;  %v21320_v20 = vld [vmem:[#allocation38_spill] sm:$0xff] }
 0x81f   : > { %16209 = vmatprep.mubr.msk.f32.mxu1 %vm338_vm0, %v20044_v45 }
 0x822   : > { %16210 = vmatmul.mubr.msk.f32.gmra.mrb[44].mxu1 %vm338_vm0, %v20048_v62 }
 0x823   : > { %16220 = vmatprep.mubr.msk.f32.mxu1 %vm338_vm0, %v19860_v11 }
 0x825   : > { %v16023_v41 = vpop.f32.mrb[220].mxu1 }
 0x826   : > { %v7082_v63 = vpop.f32.mrb[221].mxu1  ;;  %16221 = vmatmul.mubr.msk.f32.vlgmr.msra.gmra.mrb[206].mxu1 %vm338_vm0, %v19864_v25 }
 0x827   : > { %17123 = vmatpush3.bf16.msra.mxu1 %v17120_v6  ;;  %16223 = vmatprep.mubr.msk.f32.mxu1 %vm338_vm0, %v19868_v21 }
 0x828   : > { %17125 = vmatprep.subr.bf16.mxu1 %v17124_v8 }
 0x829   : > { %v16026_v15 = vpop.f32.mrb[222].mxu1 }
 0x82a   : > { %v7091_v60 = vpop.f32.mrb[223].mxu1  ;;  %16224 = vmatmul.mubr.msk.f32.gmra.mrb[46].mxu1 %vm338_vm0, %v19872_v24  ;;  %v20098_v15 = vld [vmem:[#allocation2 + $0xd1] sm:$0xff] }
 0x82b   : > { %16226 = vmatprep.mubr.msk.f32.mxu1 %vm338_vm0, %v19876_v40  ;;  %17127 = vmatpush3.bf16.msra.mxu1 %v17124_v8 }
 0x82c   : > { %17129 = vmatprep.subr.bf16.mxu1 %v17128_v13 }
 0x82e   : > { %16227 = vmatmul.mubr.msk.f32.gmra.mrb[48].mxu1 %vm338_vm0, %v19880_v58 }
 0x82f   : > { %16229 = vmatprep.mubr.msk.f32.mxu1 %vm338_vm0, %v19884_v12 }
 0x831   : > { %v16032_v47 = vpop.f32.mrb[226].mxu1 }
 0x832   : > { %v7110_v11 = vpop.f32.mrb[227].mxu1  ;;  %16230 = vmatmul.mubr.msk.f32.gmra.mrb[212].mxu1 %vm338_vm0, %v19888_v19 }
 0x833   : > { %16232 = vmatprep.mubr.msk.f32.mxu1 %vm338_vm0, %v19892_v18 }
 0x835   : > { %v16035_v25 = vpop.f32.mrb[228].mxu1 }
 0x836   : > { %v7119_v21 = vpop.f32.mrb[229].mxu1  ;;  %16233 = vmatmul.mubr.msk.f32.gmra.mrb[50].mxu1 %vm338_vm0, %v19896_v2  ;;  %v8867_v25 = vld [vmem:[#allocation6 + $0xf0] sm:$0xff] }
 0x837   : > { %16235 = vmatprep.mubr.msk.f32.mxu1 %vm338_vm0, %v19900_v51 }
 0x83a   : > { %16236 = vmatmul.mubr.msk.f32.gmra.mrb[52].mxu1 %vm338_vm0, %v19904_v52 }
 0x83b   : > { %16238 = vmatprep.mubr.msk.f32.mxu1 %vm338_vm0, %v19908_v42 }
 0x83d   : > { %v16049_v36 = vpop.f32.mrb[230].mxu1 }
 0x83e   : > { %v7280_v55 = vadd.f32 %v16049_v36, %v16005_v57  ;;  %v7275_v34 = vpop.f32.mrb[231].mxu1  ;;  %16239 = vmatmul.mubr.msk.f32.gmra.mrb[218].mxu1 %vm338_vm0, %v21317_v29  ;;  %v8868_v36 = vld [vmem:[#allocation6 + $0xf8] sm:$0xff] }
 0x83f   : > { %16241 = vmatprep.mubr.msk.f32.mxu1 %vm338_vm0, %v21318_v10  ;;  %v17132_v34 = vpack.c.bf16 %v8868_v36, %v8867_v25  ;;  %v8844_v36 = vld [vmem:[#allocation2 + $0x50] sm:$0xff] }
 0x841   : > { %v16052_v6 = vpop.f32.mrb[232].mxu1 }
 0x842   : > { %v7284_v46 = vpop.f32.mrb[233].mxu1  ;;  %16242 = vmatmul.mubr.msk.f32.gmra.mrb[54].mxu1 %vm338_vm0, %v21319_v22 }
 0x843   : > { %v7285_v37 = vadd.f32 %v7284_v46, %v7035_v7  ;;  %16244 = vmatprep.mubr.msk.f32.mxu1 %vm338_vm0, %v21320_v20  ;;  %v20094_v7 = vld [vmem:[#allocation2 + $0xc9] sm:$0xff]  ;;  %v9158_v46 = vld [vmem:[#allocation6 + $0x100] sm:$0xff] }
 0x846   : > { %16245 = vmatmul.mubr.msk.f32.gmra.mrb[56].mxu1 %vm338_vm0, %v21321_v38 }
 0x847   : > { %16247 = vmatprep.mubr.msk.f32.mxu1 %vm338_vm0, %v19932_v31 }
 0x849   : > { %v16058_v57 = vpop.f32.mrb[234].mxu1 }
 0x84a   : > { %v7308_v61 = vadd.f32 %v16058_v57, %v16014_v4  ;;  %v7303_v8 = vpop.f32.mrb[235].mxu1  ;;  %16248 = vmatmul.mubr.msk.f32.gmra.mrb[224].mxu1 %vm338_vm0, %v21322_v26  ;;  %v20102_v4 = vld [vmem:[#allocation2 + $0xd9] sm:$0xff]  ;;  %v9159_v57 = vld [vmem:[#allocation6 + $0x108] sm:$0xff] }
 0x84b   : > { %16250 = vmatprep.mubr.msk.f32.mxu1 %vm338_vm0, %v19940_v23  ;;  %21323 = vst [vmem:[#allocation37_spill] sm:$0xff] %v20102_v4 }
 0x84d   : > { %v16061_v39 = vpop.f32.mrb[236].mxu1 }
 0x84e   : > { %v7312_v63 = vpop.f32.mrb[237].mxu1  ;;  %16251 = vmatmul.mubr.msk.f32.gmra.mrb[58].mxu1 %vm338_vm0, %v20094_v7 }
 0x84f   : > { %v7313_v11 = vadd.f32 %v7312_v63, %v7063_v56  ;;  %16253 = vmatprep.mubr.msk.f32.mxu1 %vm338_vm0, %v20098_v15  ;;  %v17136_v56 = vpack.c.bf16 %v9159_v57, %v9158_v46  ;;  %v8846_v57 = vld [vmem:[#allocation2 + $0x60] sm:$0xff] }
 0x852   : > { %16254 = vmatmul.mubr.msk.f32.gmra.mrb[60].mxu1 %vm338_vm0, %v20102_v4 }
 0x853   : > { %16264 = vmatprep.mubr.msk.f32.mxu1 %vm338_vm0, %v19754_v9 }
 0x855   : > { %v16067_v6 = vpop.f32.mrb[238].mxu1 }
 0x856   : > { %v7336_v8 = vadd.f32 %v16067_v6, %v16023_v41  ;;  %v7331_v39 = vpop.f32.mrb[239].mxu1  ;;  %16265 = vmatmul.mubr.msk.f32.vlgmr.msra.gmra.mrb[206].mxu1 %vm338_vm0, %v19762_v1  ;;  %v8845_v6 = vld [vmem:[#allocation2 + $0x58] sm:$0xff] }
 0x857   : > { %17131 = vmatpush3.bf16.msra.mxu1 %v17128_v13  ;;  %16267 = vmatprep.mubr.msk.f32.mxu1 %vm338_vm0, %v19766_v17  ;;  %v8847_v39 = vld [vmem:[#allocation2 + $0x68] sm:$0xff] }
 0x858   : > { %17133 = vmatprep.subr.bf16.mxu1 %v17132_v34 }
 0x859   : > { %v16070_v63 = vpop.f32.mrb[240].mxu1 }
 0x85a   : > { %v7340_v4 = vpop.f32.mrb[241].mxu1  ;;  %16268 = vmatmul.mubr.msk.f32.gmra.mrb[62].mxu1 %vm338_vm0, %v19774_v3 }
 0x85b   : > { %v20114_v9 = vadd.f32 %v7340_v4, %v7091_v60  ;;  %16270 = vmatprep.mubr.msk.f32.mxu1 %vm338_vm0, %v19778_v16  ;;  %17135 = vmatpush3.bf16.msra.mxu1 %v17132_v34  ;;  %v20170_v60 = vld [vmem:[#allocation2 + $0xef] sm:$0xff] }
 0x85c   : > { %17137 = vmatprep.subr.bf16.mxu1 %v17136_v56 }
 0x85e   : > { %16271 = vmatmul.mubr.msk.f32.gmra.mrb[64].mxu1 %vm338_vm0, %v19786_v50 }
 0x85f   : > { %16273 = vmatprep.mubr.msk.f32.mxu1 %vm338_vm0, %v19790_v35 }
 0x861   : > { %v16076_v1 = vpop.f32.mrb[242].mxu1 }
 0x862   : > { %v20122_v17 = vadd.f32 %v16076_v1, %v16032_v47  ;;  %v7359_v41 = vpop.f32.mrb[243].mxu1  ;;  %16274 = vmatmul.mubr.msk.f32.gmra.mrb[212].mxu1 %vm338_vm0, %v19798_v44  ;;  %v9161_v47 = vld [vmem:[#allocation6 + $0x118] sm:$0xff]  ;;  %v8848_v1 = vld [vmem:[#allocation2 + $0x70] sm:$0xff] }
 0x863   : > { %16276 = vmatprep.mubr.msk.f32.mxu1 %vm338_vm0, %v19802_v33 }
 0x865   : > { %v16079_v3 = vpop.f32.mrb[244].mxu1 }
 0x866   : > { %v7368_v16 = vpop.f32.mrb[245].mxu1  ;;  %16277 = vmatmul.mubr.msk.f32.gmra.mrb[66].mxu1 %vm338_vm0, %v19810_v14 }
 0x867   : > { %v20130_v13 = vadd.f32 %v7368_v16, %v7119_v21  ;;  %16279 = vmatprep.mubr.msk.f32.mxu1 %vm338_vm0, %v19814_v27  ;;  %v8843_v21 = vld [vmem:[#allocation2 + $0x48] sm:$0xff]  ;;  %v8850_v16 = vld [vmem:[#allocation2 + $0x80] sm:$0xff] }
 0x86a   : > { %16280 = vmatmul.mubr.msk.f32.gmra.mrb[68].mxu1 %vm338_vm0, %v19822_v32 }
 0x86b   : > { %16282 = vmatprep.mubr.msk.f32.mxu1 %vm338_vm0, %v19826_v5 }
 0x86d   : > { %v16093_v50 = vpop.f32.mrb[246].mxu1 }
 0x86e   : > { %v20138_v35 = vadd.f32 %v16093_v50, %v7280_v55  ;;  %v7552_v44 = vpop.f32.mrb[247].mxu1  ;;  %16283 = vmatmul.mubr.msk.f32.gmra.mrb[218].mxu1 %vm338_vm0, %v19834_v30 }
 0x86f   : > { %16285 = vmatprep.mubr.msk.f32.mxu1 %vm338_vm0, %v19838_v53  ;;  %v8851_v44 = vld [vmem:[#allocation2 + $0x88] sm:$0xff] }
 0x871   : > { %v16096_v33 = vpop.f32.mrb[248].mxu1 }
 0x872   : > { %v7561_v14 = vpop.f32.mrb[249].mxu1  ;;  %16286 = vmatmul.mubr.msk.f32.gmra.mrb[70].mxu1 %vm338_vm0, %v19844_v43  ;;  %v20160_v43 = vld [vmem:[#allocation2 + $0xdf] sm:$0xff] }
 0x873   : > { %v20146_v27 = vadd.f32 %v7561_v14, %v7285_v37  ;;  %16288 = vmatprep.mubr.msk.f32.mxu1 %vm338_vm0, %v19848_v0  ;;  %v8852_v14 = vld [vmem:[#allocation2 + $0x90] sm:$0xff] }
 0x876   : > { %16289 = vmatmul.mubr.msk.f32.gmra.mrb[72].mxu1 %vm338_vm0, %v19852_v48  ;;  %v20164_v48 = vld [vmem:[#allocation2 + $0xe7] sm:$0xff] }
 0x877   : > { %16291 = vmatprep.mubr.msk.f32.mxu1 %vm338_vm0, %v19986_v49 }
 0x879   : > { %v16102_v32 = vpop.f32.mrb[250].mxu1 }
 0x87a   : > { %v20154_v5 = vadd.f32 %v16102_v32, %v7308_v61  ;;  %v7580_v30 = vpop.f32.mrb[251].mxu1  ;;  %16292 = vmatmul.mubr.msk.f32.gmra.mrb[224].mxu1 %vm338_vm0, %v19990_v28  ;;  %v9160_v28 = vld [vmem:[#allocation6 + $0x110] sm:$0xff]  ;;  %v8842_v61 = vld [vmem:[#allocation2 + $0x40] sm:$0xff]  ;;  %v8855_v32 = vld [vmem:[#allocation2 + $0xa8] sm:$0xff] }
 0x87b   : > { %16294 = vmatprep.mubr.msk.f32.mxu1 %vm338_vm0, %v19994_v54  ;;  %v8841_v54 = vld [vmem:[#allocation2 + $0x38] sm:$0xff]  ;;  %v17140_v55 = vpack.c.bf16 %v9161_v47, %v9160_v28 }
 0x87d   : > { %v16105_v53 = vpop.f32.mrb[252].mxu1 }
 0x87e   : > { %v7589_v0 = vpop.f32.mrb[253].mxu1  ;;  %16295 = vmatmul.mubr.msk.f32.gmra.mrb[74].mxu1 %vm338_vm0, %v20160_v43  ;;  %v8854_v53 = vld [vmem:[#allocation2 + $0xa0] sm:$0xff] }
 0x87f   : > { %v20166_v49 = vadd.f32 %v7589_v0, %v7313_v11  ;;  %16297 = vmatprep.mubr.msk.f32.mxu1 %vm338_vm0, %v20164_v48 }
 0x882   : > { %16298 = vmatmul.mubr.msk.f32.gmra.mrb[76].mxu1 %vm338_vm0, %v20170_v60 }
 0x883   : > { %16308 = vmatprep.mubr.msk.f32.mxu1 %vm338_vm0, %v8841_v54 }
 0x885   : > { %v16111_v37 = vpop.f32.mrb[254].mxu1 }
 0x886   : > { %v20175_v4 = vadd.f32 %v16111_v37, %v7336_v8  ;;  %v7608_v11 = vpop.f32.mrb[255].mxu1  ;;  %16309 = vmatmul.mubr.msk.f32.vlgmr.msra.gmra.mrb[206].mxu1 %vm338_vm0, %v8842_v61  ;;  %v21324_v8 = vld [vmem:[#allocation35_spill] sm:$0xff]  ;;  %v8858_v37 = vld [vmem:[#allocation2 + $0xc0] sm:$0xff] }
 0x887   : > { %17139 = vmatpush3.bf16.msra.mxu1 %v17136_v56  ;;  %16311 = vmatprep.mubr.msk.f32.mxu1 %vm338_vm0, %v8843_v21  ;;  %v8849_v56 = vld [vmem:[#allocation2 + $0x78] sm:$0xff] }
 0x888   : > { %17141 = vmatprep.subr.bf16.mxu1 %v17140_v55  ;;  %v8857_v21 = vld [vmem:[#allocation2 + $0xb8] sm:$0xff] }
 0x889   : > { %v16114_v25 = vpop.f32.mrb[2].mxu1 }
 0x88a   : > { %v7617_v34 = vpop.f32.mrb[3].mxu1  ;;  %16312 = vmatmul.mubr.msk.f32.gmra.mrb[78].mxu1 %vm338_vm0, %v8844_v36 }
 0x88b   : > { %v20181_v46 = vadd.f32 %v7617_v34, %v20114_v9  ;;  %16314 = vmatprep.mubr.msk.f32.mxu1 %vm338_vm0, %v8845_v6  ;;  %17143 = vmatpush3.bf16.msra.mxu1 %v17140_v55  ;;  %v20215_v34 = vld [vmem:[#allocation2 + $0xe8] sm:$0xff] }
 0x88c   : > { %17225 = vmatprep.subr.bf16.mxu1 %v21324_v8 }
 0x88e   : > { %16315 = vmatmul.mubr.msk.f32.gmra.mrb[80].mxu1 %vm338_vm0, %v8846_v57 }
 0x88f   : > { %16317 = vmatprep.mubr.msk.f32.mxu1 %vm338_vm0, %v8847_v39 }
 0x891   : > { %v16120_v63 = vpop.f32.mrb[4].mxu1 }
 0x892   : > { %v20188_v41 = vadd.f32 %v16120_v63, %v20122_v17  ;;  %v7636_v3 = vpop.f32.mrb[5].mxu1  ;;  %16318 = vmatmul.mubr.msk.f32.gmra.mrb[212].mxu1 %vm338_vm0, %v8848_v1  ;;  %v8853_v17 = vld [vmem:[#allocation2 + $0x98] sm:$0xff] }
 0x893   : > { %16320 = vmatprep.mubr.msk.f32.mxu1 %vm338_vm0, %v8849_v56 }
 0x895   : > { %v16123_v9 = vpop.f32.mrb[8].mxu1 }
 0x896   : > { %v7645_v50 = vpop.f32.mrb[9].mxu1  ;;  %16321 = vmatmul.mubr.msk.f32.gmra.mrb[82].mxu1 %vm338_vm0, %v8850_v16 }
 0x897   : > { %v7668_v33 = vadd.f32 %v7645_v50, %v20130_v13  ;;  %16323 = vmatprep.mubr.msk.f32.mxu1 %vm338_vm0, %v8851_v44  ;;  %v8856_v13 = vld [vmem:[#allocation2 + $0xb0] sm:$0xff] }
 0x89a   : > { %16324 = vmatmul.mubr.msk.f32.gmra.mrb[84].mxu1 %vm338_vm0, %v8852_v14 }
 0x89b   : > { %16326 = vmatprep.mubr.msk.f32.mxu1 %vm338_vm0, %v8853_v17 }
 0x89d   : > { %v16137_v30 = vpop.f32.mrb[10].mxu1 }
 0x89e   : > { %v7948_v0 = vadd.f32 %v16137_v30, %v20138_v35  ;;  %v7845_v28 = vpop.f32.mrb[11].mxu1  ;;  %16327 = vmatmul.mubr.msk.f32.gmra.mrb[218].mxu1 %vm338_vm0, %v8854_v53 }
 0x89f   : > { %16329 = vmatprep.mubr.msk.f32.mxu1 %vm338_vm0, %v8855_v32 }
 0x8a1   : > { %v16140_v47 = vpop.f32.mrb[14].mxu1 }
 0x8a2   : > { %v7854_v54 = vpop.f32.mrb[15].mxu1  ;;  %16330 = vmatmul.mubr.msk.f32.gmra.mrb[86].mxu1 %vm338_vm0, %v8856_v13 }
 0x8a3   : > { %v7949_v55 = vadd.f32 %v7854_v54, %v20146_v27  ;;  %16332 = vmatprep.mubr.msk.f32.mxu1 %vm338_vm0, %v8857_v21  ;;  %v20211_v27 = vld [vmem:[#allocation2 + $0xe0] sm:$0xff] }
 0x8a6   : > { %16333 = vmatmul.mubr.msk.f32.gmra.mrb[88].mxu1 %vm338_vm0, %v8858_v37 }
 0x8a7   : > { %16335 = vmatprep.mubr.msk.f32.mxu1 %vm338_vm0, %v20040_v59 }
 0x8a9   : > { %v16146_v35 = vpop.f32.mrb[16].mxu1 }
 0x8aa   : > { %v7952_v61 = vadd.f32 %v16146_v35, %v20154_v5  ;;  %v7873_v11 = vpop.f32.mrb[17].mxu1  ;;  %16336 = vmatmul.mubr.msk.f32.gmra.mrb[224].mxu1 %vm338_vm0, %v20044_v45  ;;  %v20220_v5 = vld [vmem:[#allocation2 + $0xf0] sm:$0xff] }
 0x8ab   : > { %16338 = vmatprep.mubr.msk.f32.mxu1 %vm338_vm0, %v20048_v62 }
 0x8ad   : > { %v16149_v25 = vpop.f32.mrb[20].mxu1 }
 0x8ae   : > { %v7882_v36 = vpop.f32.mrb[21].mxu1  ;;  %16339 = vmatmul.mubr.msk.f32.gmra.mrb[90].mxu1 %vm338_vm0, %v20211_v27 }
 0x8af   : > { %v7953_v6 = vadd.f32 %v7882_v36, %v20166_v49  ;;  %16341 = vmatprep.mubr.msk.f32.mxu1 %vm338_vm0, %v20215_v34  ;;  %v21325_v49 = vld [vmem:[#allocation36_spill] sm:$0xff] }
 0x8b2   : > { %16342 = vmatmul.mubr.msk.f32.gmra.mrb[92].mxu1 %vm338_vm0, %v20220_v5 }
 0x8b3   : > { %16352 = vmatprep.mubr.msk.f32.mxu1 %vm338_vm0, %v19872_v24 }
 0x8b5   : > { %v16155_v57 = vpop.f32.mrb[22].mxu1 }
 0x8b6   : > { %v7956_v39 = vadd.f32 %v16155_v57, %v20175_v4  ;;  %v7901_v56 = vpop.f32.mrb[23].mxu1  ;;  %16353 = vmatmul.mubr.msk.f32.vlgmr.msra.gmra.mrb[206].mxu1 %vm338_vm0, %v19876_v40 }
 0x8b7   : > { %16355 = vmatprep.mubr.msk.f32.mxu1 %vm338_vm0, %v19880_v58  ;;  %17227 = vmatpush3.bf16.msra.mxu1 %v21324_v8  ;;  %v20272_v8 = vld [vmem:[#allocation2 + $0xe1] sm:$0xff] }
 0x8b8   : > { %17229 = vmatprep.subr.bf16.mxu1 %v21325_v49 }
 0x8b9   : > { %v16158_v63 = vpop.f32.mrb[24].mxu1 }
 0x8ba   : > { %v7910_v1 = vpop.f32.mrb[25].mxu1  ;;  %16356 = vmatmul.mubr.msk.f32.gmra.mrb[94].mxu1 %vm338_vm0, %v19884_v12 }
 0x8bb   : > { %v7957_v24 = vadd.f32 %v7910_v1, %v20181_v46  ;;  %16358 = vmatprep.mubr.msk.f32.mxu1 %vm338_vm0, %v19888_v19  ;;  %17231 = vmatpush3.bf16.msra.mxu1 %v21325_v49 }
 0x8be   : > { %16359 = vmatmul.mubr.msk.f32.gmra.mrb[96].mxu1 %vm338_vm0, %v19892_v18 }
 0x8bf   : > { %16361 = vmatprep.mubr.msk.f32.mxu1 %vm338_vm0, %v19896_v2 }
 0x8c1   : > { %v16164_v40 = vpop.f32.mrb[26].mxu1 }
 0x8c2   : > { %v7960_v58 = vadd.f32 %v16164_v40, %v20188_v41  ;;  %v7929_v4 = vpop.f32.mrb[27].mxu1  ;;  %16362 = vmatmul.mubr.msk.f32.gmra.mrb[212].mxu1 %vm338_vm0, %v19900_v51  ;;  %v9769_v40 = vld [vmem:[#allocation6 + $0x20] sm:$0xff] }
 0x8c3   : > { %16364 = vmatprep.mubr.msk.f32.mxu1 %vm338_vm0, %v19904_v52 }
 0x8c5   : > { %v16167_v12 = vpop.f32.mrb[28].mxu1 }
 0x8c6   : > { %v7938_v19 = vpop.f32.mrb[29].mxu1  ;;  %16365 = vmatmul.mubr.msk.f32.gmra.mrb[98].mxu1 %vm338_vm0, %v19908_v42 }
 0x8c7   : > { %v7961_v46 = vadd.f32 %v7938_v19, %v7668_v33  ;;  %16367 = vmatprep.mubr.msk.f32.mxu1 %vm338_vm0, %v21317_v29 }
 0x8ca   : > { %16368 = vmatmul.mubr.msk.f32.gmra.mrb[100].mxu1 %vm338_vm0, %v21318_v10 }
 0x8cb   : > { %16370 = vmatprep.mubr.msk.f32.mxu1 %vm338_vm0, %v21319_v22 }
 0x8cd   : > { %v16181_v18 = vpop.f32.mrb[30].mxu1 }
 0x8ce   : > { %v8241_v2 = vadd.f32 %v16181_v18, %v7948_v0  ;;  %v8138_v51 = vpop.f32.mrb[31].mxu1  ;;  %16371 = vmatmul.mubr.msk.f32.gmra.mrb[218].mxu1 %vm338_vm0, %v21320_v20 }
 0x8cf   : > { %16373 = vmatprep.mubr.msk.f32.mxu1 %vm338_vm0, %v21321_v38  ;;  %v21326_v38 = vld [vmem:[#allocation37_spill] sm:$0xff] }
 0x8d1   : > { %v16184_v52 = vpop.f32.mrb[32].mxu1 }
 0x8d2   : > { %v8147_v42 = vpop.f32.mrb[33].mxu1  ;;  %16374 = vmatmul.mubr.msk.f32.gmra.mrb[102].mxu1 %vm338_vm0, %v19932_v31 }
 0x8d3   : > { %v8242_v29 = vadd.f32 %v8147_v42, %v7949_v55  ;;  %16376 = vmatprep.mubr.msk.f32.mxu1 %vm338_vm0, %v21322_v26 }
 0x8d6   : > { %16377 = vmatmul.mubr.msk.f32.gmra.mrb[104].mxu1 %vm338_vm0, %v19940_v23  ;;  %v20276_v23 = vld [vmem:[#allocation2 + $0xe9] sm:$0xff] }
 0x8d7   : > { %16379 = vmatprep.mubr.msk.f32.mxu1 %vm338_vm0, %v20094_v7  ;;  %v20280_v7 = vld [vmem:[#allocation2 + $0xf1] sm:$0xff] }
 0x8d9   : > { %v16190_v10 = vpop.f32.mrb[34].mxu1 }
 0x8da   : > { %v8245_v22 = vadd.f32 %v16190_v10, %v7952_v61  ;;  %v8166_v20 = vpop.f32.mrb[35].mxu1  ;;  %16380 = vmatmul.mubr.msk.f32.gmra.mrb[224].mxu1 %vm338_vm0, %v20098_v15 }
 0x8db   : > { %16382 = vmatprep.mubr.msk.f32.mxu1 %vm338_vm0, %v21326_v38 }
 0x8dd   : > { %v16193_v31 = vpop.f32.mrb[36].mxu1 }
 0x8de   : > { %v8175_v41 = vpop.f32.mrb[37].mxu1  ;;  %16383 = vmatmul.mubr.msk.f32.gmra.mrb[106].mxu1 %vm338_vm0, %v20272_v8 }
 0x8df   : > { %v8246_v26 = vadd.f32 %v8175_v41, %v7953_v6  ;;  %16385 = vmatprep.mubr.msk.f32.mxu1 %vm338_vm0, %v20276_v23 }
 0x8e2   : > { %16386 = vmatmul.mubr.msk.f32.gmra.mrb[108].mxu1 %vm338_vm0, %v20280_v7 }
 0x8e5   : > { %v16199_v15 = vpop.f32.mrb[38].mxu1 }
 0x8e6   : > { %v8249_v3 = vadd.f32 %v16199_v15, %v7956_v39  ;;  %v8194_v9 = vpop.f32.mrb[39].mxu1 }
 0x8e9   : > { %v16202_v16 = vpop.f32.mrb[40].mxu1 }
 0x8ea   : > { %v8203_v50 = vpop.f32.mrb[41].mxu1 }
 0x8eb   : > { %v8250_v44 = vadd.f32 %v8203_v50, %v7957_v24 }
 0x8f1   : > { %v16208_v33 = vpop.f32.mrb[42].mxu1 }
 0x8f2   : > { %v8253_v14 = vadd.f32 %v16208_v33, %v7960_v58  ;;  %v8222_v17 = vpop.f32.mrb[43].mxu1  ;;  %v9770_v58 = vld [vmem:[#allocation6 + $0x28] sm:$0xff] }
 0x8f3   : > { %v20284_v4 = vpack.c.bf16 %v9770_v58, %v9769_v40 }
 0x8f5   : > { %v16211_v32 = vpop.f32.mrb[44].mxu1  ;;  %17153 = vmatprep.subr.bf16.mxu0 %v20284_v4 }
 0x8f6   : > { %v8231_v30 = vpop.f32.mrb[45].mxu1 }
 0x8f7   : > { %v8254_v53 = vadd.f32 %v8231_v30, %v7961_v46 }
 0x8fd   : > { %v16225_v0 = vpop.f32.mrb[46].mxu1 }
 0x8fe   : > { %v8534_v28 = vadd.f32 %v16225_v0, %v8241_v2  ;;  %v8431_v47 = vpop.f32.mrb[47].mxu1 }
 0x901   : > { %v16228_v13 = vpop.f32.mrb[48].mxu1 }
 0x902   : > { %v8440_v54 = vpop.f32.mrb[49].mxu1 }
 0x903   : > { %v8535_v21 = vadd.f32 %v8440_v54, %v8242_v29 }
 0x909   : > { %v16234_v55 = vpop.f32.mrb[50].mxu1 }
 0x90a   : > { %v8538_v37 = vadd.f32 %v16234_v55, %v8245_v22  ;;  %v8459_v35 = vpop.f32.mrb[51].mxu1 }
 0x90d   : > { %v16237_v61 = vpop.f32.mrb[52].mxu1 }
 0x90e   : > { %v8468_v11 = vpop.f32.mrb[53].mxu1 }
 0x90f   : > { %v8539_v25 = vadd.f32 %v8468_v11, %v8246_v26 }
 0x915   : > { %v16243_v36 = vpop.f32.mrb[54].mxu1 }
 0x916   : > { %v8542_v6 = vadd.f32 %v16243_v36, %v8249_v3  ;;  %v8487_v57 = vpop.f32.mrb[55].mxu1 }
 0x919   : > { %v16246_v39 = vpop.f32.mrb[56].mxu1 }
 0x91a   : > { %v8496_v56 = vpop.f32.mrb[57].mxu1 }
 0x91b   : > { %v8543_v49 = vadd.f32 %v8496_v56, %v8250_v44 }
 0x921   : > { %v16252_v63 = vpop.f32.mrb[58].mxu1 }
 0x922   : > { %v8546_v1 = vadd.f32 %v16252_v63, %v8253_v14  ;;  %v8515_v24 = vpop.f32.mrb[59].mxu1 }
 0x925   : > { %v16255_v12 = vpop.f32.mrb[60].mxu1 }
 0x926   : > { %v8524_v19 = vpop.f32.mrb[61].mxu1 }
 0x927   : > { %v8547_v46 = vadd.f32 %v8524_v19, %v8254_v53  ;;  %v20298_v19 = vld [vmem:[%s21095_s4] ss:$0 sm:$0xff] }
 0x92d   : > { %v16269_v18 = vpop.f32.mrb[62].mxu1 }
 0x92e   : > { %v8827_v2 = vadd.f32 %v16269_v18, %v8534_v28  ;;  %v8724_v51 = vpop.f32.mrb[63].mxu1 }
 0x92f   : > { %v9771_v51 = vld [vmem:[#allocation6 + $0x30] sm:$0xff] }
 0x931   : > { %v16272_v52 = vpop.f32.mrb[64].mxu1 }
 0x932   : > { %v8733_v42 = vpop.f32.mrb[65].mxu1  ;;  %v9772_v52 = vld [vmem:[#allocation6 + $0x38] sm:$0xff] }
 0x933   : > { %v8828_v29 = vadd.f32 %v8733_v42, %v8535_v21 }
 0x939   : > { %v16278_v10 = vpop.f32.mrb[66].mxu1 }
 0x93a   : > { %v8831_v22 = vadd.f32 %v16278_v10, %v8538_v37  ;;  %v8752_v20 = vpop.f32.mrb[67].mxu1 }
 0x93d   : > { %v16281_v38 = vpop.f32.mrb[68].mxu1 }
 0x93e   : > { %v8761_v31 = vpop.f32.mrb[69].mxu1  ;;  %v17156_v38 = vpack.c.bf16 %v9772_v52, %v9771_v51 }
 0x93f   : > { %v8832_v41 = vadd.f32 %v8761_v31, %v8539_v25  ;;  %v9741_v31 = vld [vmem:[#allocation6] sm:$0xff] }
 0x945   : > { %v16287_v26 = vpop.f32.mrb[70].mxu1 }
 0x946   : > { %v8835_v15 = vadd.f32 %v16287_v26, %v8542_v6  ;;  %v8780_v3 = vpop.f32.mrb[71].mxu1 }
 0x949   : > { %v16290_v9 = vpop.f32.mrb[72].mxu1 }
 0x94a   : > { %v8789_v16 = vpop.f32.mrb[73].mxu1 }
 0x94b   : > { %v8836_v50 = vadd.f32 %v8789_v16, %v8543_v49 }
 0x951   : > { %v16296_v44 = vpop.f32.mrb[74].mxu1 }
 0x952   : > { %v8839_v33 = vadd.f32 %v16296_v44, %v8546_v1  ;;  %v8808_v14 = vpop.f32.mrb[75].mxu1 }
 0x955   : > { %v16299_v17 = vpop.f32.mrb[76].mxu1 }
 0x956   : > { %v8817_v32 = vpop.f32.mrb[77].mxu1 }
 0x957   : > { %v8840_v30 = vadd.f32 %v8817_v32, %v8547_v46 }
 0x95d   : > { %v16313_v53 = vpop.f32.mrb[78].mxu1 }
 0x95e   : > { %v9120_v0 = vadd.f32 %v16313_v53, %v8827_v2  ;;  %v9017_v28 = vpop.f32.mrb[79].mxu1 }
 0x961   : > { %v16316_v47 = vpop.f32.mrb[80].mxu1 }
 0x962   : > { %v9026_v13 = vpop.f32.mrb[81].mxu1 }
 0x963   : > { %v9121_v54 = vadd.f32 %v9026_v13, %v8828_v29 }
 0x969   : > { %v16322_v21 = vpop.f32.mrb[82].mxu1 }
 0x96a   : > { %v9124_v55 = vadd.f32 %v16322_v21, %v8831_v22  ;;  %v9045_v37 = vpop.f32.mrb[83].mxu1 }
 0x96d   : > { %v16325_v35 = vpop.f32.mrb[84].mxu1 }
 0x96e   : > { %v9054_v61 = vpop.f32.mrb[85].mxu1 }
 0x96f   : > { %v9125_v11 = vadd.f32 %v9054_v61, %v8832_v41  ;;  %v9742_v41 = vld [vmem:[#allocation6 + $0x8] sm:$0xff] }
 0x970   : > { %v20306_v16 = vpack.c.bf16 %v9742_v41, %v9741_v31 }
 0x975   : > { %v16331_v25 = vpop.f32.mrb[86].mxu1 }
 0x976   : > { %v20287_v36 = vadd.f32 %v16331_v25, %v8835_v15  ;;  %v9073_v6 = vpop.f32.mrb[87].mxu1 }
 0x979   : > { %v16334_v57 = vpop.f32.mrb[88].mxu1 }
 0x97a   : > { %v9082_v39 = vpop.f32.mrb[89].mxu1 }
 0x97b   : > { %v20289_v56 = vadd.f32 %v9082_v39, %v8836_v50 }
 0x981   : > { %v16340_v49 = vpop.f32.mrb[90].mxu1 }
 0x982   : > { %v20291_v63 = vadd.f32 %v16340_v49, %v8839_v33  ;;  %v9101_v1 = vpop.f32.mrb[91].mxu1 }
 0x985   : > { %v16343_v24 = vpop.f32.mrb[92].mxu1 }
 0x986   : > { %v9110_v40 = vpop.f32.mrb[93].mxu1 }
 0x987   : > { %v20293_v58 = vadd.f32 %v9110_v40, %v8840_v30 }
 0x989   : > { %v16354_v12 = vpop.f32.mrb[206].mxu1 }
 0x98a   : > { %v9428_v46 = vadd.f32 %v20298_v19, %v16354_v12  ;;  %v9300_v18 = vpop.f32.mrb[207].mxu1 }
 0x98b   : > { %v9427_v2 = vadd.f32 %v20298_v19, %v9300_v18 }
 0x98c   : > { %v9444_v10 = vmax.f32 %v9428_v46, 0.0 }
 0x98d   : > { %v9443_v42 = vmax.f32 %v9427_v2, 0.0  ;;  %v16357_v29 = vpop.f32.mrb[94].mxu1 }
 0x98e   : > { %v9413_v22 = vadd.f32 %v16357_v29, %v9120_v0  ;;  %v9310_v20 = vpop.f32.mrb[95].mxu1 }
 0x98f   : > { %16396 = vmatprep.mubr.msk.f32.mxu0 %vm338_vm0, %v9443_v42 }
 0x990   : > { %v9429_v26 = vadd.f32 %v20298_v19, %v9413_v22  ;;  %16397 = vmatmul.mubr.msk.f32.vlgmr.msra.gmra.mrb[194].mxu0 %vm338_vm0, %v9444_v10 }
 0x991   : > { %v16360_v15 = vpop.f32.mrb[96].mxu1  ;;  %17155 = vmatpush3.bf16.msra.mxu0 %v20284_v4 }
 0x992   : > { %v9445_v3 = vmax.f32 %v9429_v26, 0.0  ;;  %v9319_v9 = vpop.f32.mrb[97].mxu1  ;;  %17157 = vmatprep.subr.bf16.mxu0 %v17156_v38 }
 0x993   : > { %v9414_v50 = vadd.f32 %v9319_v9, %v9121_v54 }
 0x994   : > { %16399 = vmatprep.mubr.msk.f32.mxu0 %vm338_vm0, %v9445_v3 }
 0x995   : > { %v9430_v44 = vadd.f32 %v20298_v19, %v9414_v50  ;;  %v16363_v33 = vpop.f32.mrb[212].mxu1  ;;  %17159 = vmatpush3.bf16.msra.mxu0 %v17156_v38 }
 0x996   : > { %v9328_v14 = vpop.f32.mrb[213].mxu1  ;;  %17161 = vmatprep.subr.bf16.mxu0 %v20306_v16  ;;  %v9432_v32 = vadd.f32 %v20298_v19, %v16363_v33 }
 0x997   : > { %v9446_v17 = vmax.f32 %v9430_v44, 0.0  ;;  %v9431_v4 = vadd.f32 %v20298_v19, %v9328_v14  ;;  %v9743_v14 = vld [vmem:[#allocation6 + $0x10] sm:$0xff] }
 0x998   : > { %v9448_v47 = vmax.f32 %v9432_v32, 0.0  ;;  %v10295_v32 = vld [vmem:[#allocation6 + $0x40] sm:$0xff] }
 0x999   : > { %v9447_v30 = vmax.f32 %v9431_v4, 0.0  ;;  %v16366_v53 = vpop.f32.mrb[98].mxu1  ;;  %16400 = vmatmul.mubr.msk.f32.gmra.mrb[196].mxu0 %vm338_vm0, %v9446_v17  ;;  %v10296_v4 = vld [vmem:[#allocation6 + $0x48] sm:$0xff] }
 0x99a   : > { %v9417_v0 = vadd.f32 %v16366_v53, %v9124_v55  ;;  %v9338_v28 = vpop.f32.mrb[99].mxu1  ;;  %v20389_v53 = vld [vmem:[#allocation2 + $0x140] sm:$0xff] }
 0x99b   : > { %16402 = vmatprep.mubr.msk.f32.mxu0 %vm338_vm0, %v9447_v30  ;;  %v20383_v30 = vld [vmem:[#allocation2 + $0x130] sm:$0xff] }
 0x99c   : > { %v9433_v13 = vadd.f32 %v20298_v19, %v9417_v0  ;;  %v20393_v0 = vld [vmem:[#allocation2 + $0x148] sm:$0xff]  ;;  %v20397_v28 = vld [vmem:[#allocation2 + $0x150] sm:$0xff] }
 0x99d   : > { %v16369_v54 = vpop.f32.mrb[100].mxu1  ;;  %16403 = vmatmul.mubr.msk.f32.gmra.mrb[198].mxu0 %vm338_vm0, %v9448_v47  ;;  %v20401_v47 = vld [vmem:[#allocation2 + $0x158] sm:$0xff] }
 0x99e   : > { %v9449_v21 = vmax.f32 %v9433_v13, 0.0  ;;  %v9347_v37 = vpop.f32.mrb[101].mxu1  ;;  %v20405_v13 = vld [vmem:[#allocation2 + $0x168] sm:$0xff]  ;;  %v20407_v54 = vld [vmem:[#allocation2 + $0x160] sm:$0xff] }
 0x99f   : > { %v9418_v35 = vadd.f32 %v9347_v37, %v9125_v11  ;;  %v20417_v37 = vld [vmem:[#allocation2 + $0x178] sm:$0xff] }
 0x9a0   : > { %16405 = vmatprep.mubr.msk.f32.mxu0 %vm338_vm0, %v9449_v21  ;;  %v20413_v21 = vld [vmem:[#allocation2 + $0x170] sm:$0xff] }
 0x9a1   : > { %v9434_v61 = vadd.f32 %v20298_v19, %v9418_v35  ;;  %v16372_v25 = vpop.f32.mrb[218].mxu1  ;;  %v20421_v35 = vld [vmem:[#allocation2 + $0x180] sm:$0xff] }
 0x9a2   : > { %v9356_v6 = vpop.f32.mrb[219].mxu1  ;;  %v9436_v55 = vadd.f32 %v20298_v19, %v16372_v25  ;;  %v10298_v25 = vld [vmem:[#allocation6 + $0x58] sm:$0xff] }
 0x9a3   : > { %v9450_v57 = vmax.f32 %v9434_v61, 0.0  ;;  %v9435_v39 = vadd.f32 %v20298_v19, %v9356_v6  ;;  %v10297_v61 = vld [vmem:[#allocation6 + $0x50] sm:$0xff]  ;;  %v9717_v6 = vld [vmem:[#allocation2 + $0xc7] sm:$0xff] }
 0x9a4   : > { %v9452_v12 = vmax.f32 %v9436_v55, 0.0  ;;  %v9718_v55 = vld [vmem:[#allocation2 + $0xcf] sm:$0xff] }
 0x9a5   : > { %v9451_v49 = vmax.f32 %v9435_v39, 0.0  ;;  %v16375_v1 = vpop.f32.mrb[102].mxu1  ;;  %16406 = vmatmul.mubr.msk.f32.gmra.mrb[200].mxu0 %vm338_vm0, %v9450_v57  ;;  %v17172_v57 = vpack.c.bf16 %v10298_v25, %v10297_v61  ;;  %v10588_v39 = vld [vmem:[#allocation6 + $0x60] sm:$0xff]  ;;  %v20555_v25 = vld [vmem:[#allocation2 + $0x149] sm:$0xff] }
 0x9a6   : > { %v9421_v24 = vadd.f32 %v16375_v1, %v20287_v36  ;;  %v9366_v40 = vpop.f32.mrb[103].mxu1  ;;  %v9719_v1 = vld [vmem:[#allocation2 + $0xd7] sm:$0xff]  ;;  %v20551_v61 = vld [vmem:[#allocation2 + $0x141] sm:$0xff] }
 0x9a7   : > { %16408 = vmatprep.mubr.msk.f32.mxu0 %vm338_vm0, %v9451_v49  ;;  %v10589_v49 = vld [vmem:[#allocation6 + $0x68] sm:$0xff]  ;;  %v20434_v40 = vld [vmem:[#allocation2 + $0xf7] sm:$0xff] }
 0x9a8   : > { %v9437_v11 = vadd.f32 %v20298_v19, %v9421_v24  ;;  %v17176_v24 = vpack.c.bf16 %v10589_v49, %v10588_v39  ;;  %v20571_v39 = vld [vmem:[#allocation2 + $0x169] sm:$0xff]  ;;  %v20575_v49 = vld [vmem:[#allocation2 + $0x171] sm:$0xff] }
 0x9a9   : > { %v16378_v46 = vpop.f32.mrb[104].mxu1  ;;  %16409 = vmatmul.mubr.msk.f32.gmra.mrb[202].mxu0 %vm338_vm0, %v9452_v12  ;;  %v20438_v12 = vld [vmem:[#allocation2 + $0xff] sm:$0xff] }
 0x9aa   : > { %v9453_v18 = vmax.f32 %v9437_v11, 0.0  ;;  %v9375_v2 = vpop.f32.mrb[105].mxu1  ;;  %v20442_v11 = vld [vmem:[#allocation2 + $0x107] sm:$0xff]  ;;  %v20454_v46 = vld [vmem:[#allocation2 + $0x11f] sm:$0xff] }
 0x9ab   : > { %v9422_v51 = vadd.f32 %v9375_v2, %v20289_v56  ;;  %v20462_v2 = vld [vmem:[#allocation2 + $0x12f] sm:$0xff] }
 0x9ac   : > { %16411 = vmatprep.mubr.msk.f32.mxu0 %vm338_vm0, %v9453_v18  ;;  %v20458_v18 = vld [vmem:[#allocation2 + $0x127] sm:$0xff]  ;;  %21328 = vst [vmem:[#allocation21_spill] sm:$0xff] %v20462_v2 }
 0x9ad   : > { %v9438_v52 = vadd.f32 %v20298_v19, %v9422_v51  ;;  %v16381_v42 = vpop.f32.mrb[224].mxu1  ;;  %21327 = vst [vmem:[#allocation20_spill] sm:$0xff] %v20458_v18  ;;  %v20466_v51 = vld [vmem:[#allocation2 + $0x137] sm:$0xff] }
 0x9ae   : > { %v9384_v29 = vpop.f32.mrb[225].mxu1  ;;  %v9440_v10 = vadd.f32 %v20298_v19, %v16381_v42  ;;  %21329 = vst [vmem:[#allocation22_spill] sm:$0xff] %v20466_v51  ;;  %v20474_v42 = vld [vmem:[#allocation2 + $0x147] sm:$0xff] }
 0x9af   : > { %v9454_v36 = vmax.f32 %v9438_v52, 0.0  ;;  %v9439_v22 = vadd.f32 %v20298_v19, %v9384_v29  ;;  %v20470_v52 = vld [vmem:[#allocation2 + $0x13f] sm:$0xff]  ;;  %21330 = vst [vmem:[#allocation23_spill] sm:$0xff] %v20474_v42  ;;  %v20478_v29 = vld [vmem:[#allocation2 + $0x14f] sm:$0xff] }
 0x9b0   : > { %v9456_v26 = vmax.f32 %v9440_v10, 0.0  ;;  %21331 = vst [vmem:[#allocation24_spill] sm:$0xff] %v20478_v29  ;;  %v20486_v10 = vld [vmem:[#allocation2 + $0x15f] sm:$0xff] }
 0x9b1   : > { %v9455_v20 = vmax.f32 %v9439_v22, 0.0  ;;  %v16384_v38 = vpop.f32.mrb[106].mxu1  ;;  %16412 = vmatmul.mubr.msk.f32.gmra.mrb[204].mxu0 %vm338_vm0, %v9454_v36  ;;  %v20482_v36 = vld [vmem:[#allocation2 + $0x157] sm:$0xff]  ;;  %21333 = vst [vmem:[#allocation26_spill] sm:$0xff] %v20486_v10  ;;  %v20490_v22 = vld [vmem:[#allocation2 + $0x167] sm:$0xff] }
 0x9b2   : > { %v9425_v31 = vadd.f32 %v16384_v38, %v20291_v63  ;;  %v9394_v41 = vpop.f32.mrb[107].mxu1  ;;  %v9744_v63 = vld [vmem:[#allocation6 + $0x18] sm:$0xff]  ;;  %21332 = vst [vmem:[#allocation25_spill] sm:$0xff] %v20482_v36  ;;  %21334 = vst [vmem:[#allocation27_spill] sm:$0xff] %v20490_v22 }
 0x9b3   : > { %16414 = vmatprep.mubr.msk.f32.mxu0 %vm338_vm0, %v9455_v20  ;;  %v17164_v17 = vpack.c.bf16 %v9744_v63, %v9743_v14  ;;  %v20494_v20 = vld [vmem:[#allocation2 + $0x16f] sm:$0xff]  ;;  %v20498_v38 = vld [vmem:[#allocation2 + $0x177] sm:$0xff]  ;;  %v20519_v63 = vld [vmem:[#allocation2 + $0x101] sm:$0xff] }
 0x9b4   : > { %v9441_v56 = vadd.f32 %v20298_v19, %v9425_v31  ;;  %21335 = vst [vmem:[#allocation28_spill] sm:$0xff] %v20494_v20  ;;  %21336 = vst [vmem:[#allocation29_spill] sm:$0xff] %v20498_v38  ;;  %v20502_v31 = vld [vmem:[#allocation2 + $0x17f] sm:$0xff]  ;;  %v10590_v41 = vld [vmem:[#allocation6 + $0x70] sm:$0xff] }
 0x9b5   : > { %v16387_v15 = vpop.f32.mrb[108].mxu1  ;;  %16415 = vmatmul.mubr.msk.f32.gmra.mrb[206].mxu0 %vm338_vm0, %v9456_v26  ;;  %21337 = vst [vmem:[#allocation30_spill] sm:$0xff] %v20502_v31  ;;  %v10591_v26 = vld [vmem:[#allocation6 + $0x78] sm:$0xff] }
 0x9b6   : > { %v9457_v3 = vmax.f32 %v9441_v56, 0.0  ;;  %v9403_v9 = vpop.f32.mrb[109].mxu1  ;;  %v10271_v56 = vld [vmem:[#allocation2 + $0xc9] sm:$0xff]  ;;  %v17180_v15 = vpack.c.bf16 %v10591_v26, %v10590_v41  ;;  %v20515_v14 = vld [vmem:[#allocation2 + $0xf9] sm:$0xff] }
 0x9b7   : > { %v9426_v50 = vadd.f32 %v9403_v9, %v20293_v58  ;;  %v17168_v58 = vpack.c.bf16 %v10296_v4, %v10295_v32  ;;  %v10881_v9 = vld [vmem:[#allocation6 + $0x80] sm:$0xff]  ;;  %v20539_v32 = vld [vmem:[#allocation2 + $0x129] sm:$0xff]  ;;  %v20543_v4 = vld [vmem:[#allocation2 + $0x131] sm:$0xff] }
 0x9b8   : > { %16417 = vmatprep.mubr.msk.f32.mxu0 %vm338_vm0, %v9457_v3  ;;  %v10272_v3 = vld [vmem:[#allocation2 + $0xd1] sm:$0xff] }
 0x9b9   : > { %v9442_v44 = vadd.f32 %v20298_v19, %v9426_v50  ;;  %v20377_v19 = vld [vmem:[#allocation2 + $0x128] sm:$0xff]  ;;  %v10883_v41 = vld [vmem:[#allocation6 + $0x90] sm:$0xff]  ;;  %v10884_v26 = vld [vmem:[#allocation6 + $0x98] sm:$0xff] }
 0x9ba   : > { %v10882_v50 = vld [vmem:[#allocation6 + $0x88] sm:$0xff] }
 0x9bb   : > { %v9458_v33 = vmax.f32 %v9442_v44, 0.0  ;;  %v10273_v44 = vld [vmem:[#allocation2 + $0xd9] sm:$0xff] }
 0x9bd   : > { %16418 = vmatmul.mubr.msk.f32.gmra.mrb[208].mxu0 %vm338_vm0, %v9458_v33  ;;  %v17184_v33 = vpack.c.bf16 %v10882_v50, %v10881_v9  ;;  %v11175_v9 = vld [vmem:[#allocation6 + $0xa8] sm:$0xff] }
 0x9be   : > { %16428 = vmatprep.mubr.msk.f32.mxu0 %vm338_vm0, %v20040_v59  ;;  %v20353_v59 = vld [vmem:[#allocation2 + $0xf8] sm:$0xff]  ;;  %v10566_v50 = vld [vmem:[#allocation2 + $0xef] sm:$0xff] }
 0x9c1   : > { %16429 = vmatmul.mubr.msk.f32.vlgmr.msra.gmra.mrb[210].mxu0 %vm338_vm0, %v20044_v45  ;;  %v20357_v45 = vld [vmem:[#allocation2 + $0x108] sm:$0xff] }
 0x9c2   : > { %17163 = vmatpush3.bf16.msra.mxu0 %v20306_v16  ;;  %16431 = vmatprep.mubr.msk.f32.mxu0 %vm338_vm0, %v20048_v62  ;;  %v20359_v62 = vld [vmem:[#allocation2 + $0x100] sm:$0xff]  ;;  %v20381_v16 = vld [vmem:[#allocation2 + $0x138] sm:$0xff] }
 0x9c3   : > { %17165 = vmatprep.subr.bf16.mxu0 %v17164_v17 }
 0x9c5   : > { %16432 = vmatmul.mubr.msk.f32.gmra.mrb[212].mxu0 %vm338_vm0, %v20211_v27  ;;  %v20365_v27 = vld [vmem:[#allocation2 + $0x110] sm:$0xff] }
 0x9c6   : > { %16434 = vmatprep.mubr.msk.f32.mxu0 %vm338_vm0, %v20215_v34  ;;  %17167 = vmatpush3.bf16.msra.mxu0 %v17164_v17  ;;  %v20369_v34 = vld [vmem:[#allocation2 + $0x118] sm:$0xff]  ;;  %v20523_v17 = vld [vmem:[#allocation2 + $0x109] sm:$0xff] }
 0x9c7   : > { %17169 = vmatprep.subr.bf16.mxu0 %v17168_v58 }
 0x9c9   : > { %16435 = vmatmul.mubr.msk.f32.gmra.mrb[214].mxu0 %vm338_vm0, %v20220_v5  ;;  %v20373_v5 = vld [vmem:[#allocation2 + $0x120] sm:$0xff] }
 0x9ca   : > { %16437 = vmatprep.mubr.msk.f32.mxu0 %vm338_vm0, %v20353_v59 }
 0x9cd   : > { %16438 = vmatmul.mubr.msk.f32.gmra.mrb[216].mxu0 %vm338_vm0, %v20359_v62 }
 0x9ce   : > { %16440 = vmatprep.mubr.msk.f32.mxu0 %vm338_vm0, %v20357_v45 }
 0x9d1   : > { %16441 = vmatmul.mubr.msk.f32.gmra.mrb[218].mxu0 %vm338_vm0, %v20365_v27 }
 0x9d2   : > { %16443 = vmatprep.mubr.msk.f32.mxu0 %vm338_vm0, %v20369_v34 }
 0x9d5   : > { %16444 = vmatmul.mubr.msk.f32.gmra.mrb[220].mxu0 %vm338_vm0, %v20373_v5 }
 0x9d6   : > { %16446 = vmatprep.mubr.msk.f32.mxu0 %vm338_vm0, %v20377_v19 }
 0x9d9   : > { %16447 = vmatmul.mubr.msk.f32.gmra.mrb[222].mxu0 %vm338_vm0, %v20383_v30 }
 0x9da   : > { %16449 = vmatprep.mubr.msk.f32.mxu0 %vm338_vm0, %v20381_v16 }
 0x9dd   : > { %16450 = vmatmul.mubr.msk.f32.gmra.mrb[224].mxu0 %vm338_vm0, %v20389_v53 }
 0x9de   : > { %16452 = vmatprep.mubr.msk.f32.mxu0 %vm338_vm0, %v20393_v0 }
 0x9e1   : > { %16453 = vmatmul.mubr.msk.f32.gmra.mrb[226].mxu0 %vm338_vm0, %v20397_v28 }
 0x9e2   : > { %16455 = vmatprep.mubr.msk.f32.mxu0 %vm338_vm0, %v20401_v47 }
 0x9e5   : > { %16456 = vmatmul.mubr.msk.f32.gmra.mrb[228].mxu0 %vm338_vm0, %v20407_v54 }
 0x9e6   : > { %16458 = vmatprep.mubr.msk.f32.mxu0 %vm338_vm0, %v20405_v13 }
 0x9e9   : > { %16459 = vmatmul.mubr.msk.f32.gmra.mrb[230].mxu0 %vm338_vm0, %v20413_v21 }
 0x9ea   : > { %16461 = vmatprep.mubr.msk.f32.mxu0 %vm338_vm0, %v20417_v37 }
 0x9ed   : > { %16462 = vmatmul.mubr.msk.f32.gmra.mrb[232].mxu0 %vm338_vm0, %v20421_v35 }
 0x9ee   : > { %16472 = vmatprep.mubr.msk.f32.mxu0 %vm338_vm0, %v9717_v6  ;;  %v20559_v6 = vld [vmem:[#allocation2 + $0x151] sm:$0xff] }
 0x9f1   : > { %16473 = vmatmul.mubr.msk.f32.vlgmr.msra.gmra.mrb[210].mxu0 %vm338_vm0, %v9718_v55  ;;  %v20567_v55 = vld [vmem:[#allocation2 + $0x161] sm:$0xff] }
 0x9f2   : > { %17171 = vmatpush3.bf16.msra.mxu0 %v17168_v58  ;;  %16475 = vmatprep.mubr.msk.f32.mxu0 %vm338_vm0, %v9719_v1  ;;  %v20547_v58 = vld [vmem:[#allocation2 + $0x139] sm:$0xff] }
 0x9f3   : > { %17173 = vmatprep.subr.bf16.mxu0 %v17172_v57  ;;  %v20579_v1 = vld [vmem:[#allocation2 + $0x179] sm:$0xff] }
 0x9f5   : > { %16476 = vmatmul.mubr.msk.f32.gmra.mrb[234].mxu0 %vm338_vm0, %v20160_v43 }
 0x9f6   : > { %16478 = vmatprep.mubr.msk.f32.mxu0 %vm338_vm0, %v20164_v48  ;;  %17175 = vmatpush3.bf16.msra.mxu0 %v17172_v57  ;;  %v20446_v48 = vld [vmem:[#allocation2 + $0x10f] sm:$0xff]  ;;  %v20563_v57 = vld [vmem:[#allocation2 + $0x159] sm:$0xff] }
 0x9f7   : > { %17177 = vmatprep.subr.bf16.mxu0 %v17176_v24 }
 0x9f9   : > { %16479 = vmatmul.mubr.msk.f32.gmra.mrb[236].mxu0 %vm338_vm0, %v20170_v60  ;;  %v20450_v60 = vld [vmem:[#allocation2 + $0x117] sm:$0xff] }
 0x9fa   : > { %16481 = vmatprep.mubr.msk.f32.mxu0 %vm338_vm0, %v20434_v40 }
 0x9fd   : > { %16482 = vmatmul.mubr.msk.f32.gmra.mrb[216].mxu0 %vm338_vm0, %v20438_v12 }
 0x9fe   : > { %16484 = vmatprep.mubr.msk.f32.mxu0 %vm338_vm0, %v20442_v11 }
 0xa01   : > { %16485 = vmatmul.mubr.msk.f32.gmra.mrb[238].mxu0 %vm338_vm0, %v20446_v48 }
 0xa02   : > { %16487 = vmatprep.mubr.msk.f32.mxu0 %vm338_vm0, %v20450_v60 }
 0xa05   : > { %16488 = vmatmul.mubr.msk.f32.gmra.mrb[240].mxu0 %vm338_vm0, %v20454_v46 }
 0xa06   : > { %16490 = vmatprep.mubr.msk.f32.mxu0 %vm338_vm0, %v20458_v18 }
 0xa09   : > { %16491 = vmatmul.mubr.msk.f32.gmra.mrb[222].mxu0 %vm338_vm0, %v20462_v2 }
 0xa0a   : > { %16493 = vmatprep.mubr.msk.f32.mxu0 %vm338_vm0, %v20466_v51 }
 0xa0d   : > { %16494 = vmatmul.mubr.msk.f32.gmra.mrb[242].mxu0 %vm338_vm0, %v20470_v52 }
 0xa0e   : > { %16496 = vmatprep.mubr.msk.f32.mxu0 %vm338_vm0, %v20474_v42 }
 0xa11   : > { %16497 = vmatmul.mubr.msk.f32.gmra.mrb[244].mxu0 %vm338_vm0, %v20478_v29 }
 0xa12   : > { %16499 = vmatprep.mubr.msk.f32.mxu0 %vm338_vm0, %v20482_v36 }
 0xa15   : > { %16500 = vmatmul.mubr.msk.f32.gmra.mrb[228].mxu0 %vm338_vm0, %v20486_v10 }
 0xa16   : > { %16502 = vmatprep.mubr.msk.f32.mxu0 %vm338_vm0, %v20490_v22 }
 0xa19   : > { %16503 = vmatmul.mubr.msk.f32.gmra.mrb[246].mxu0 %vm338_vm0, %v20494_v20 }
 0xa1a   : > { %16505 = vmatprep.mubr.msk.f32.mxu0 %vm338_vm0, %v20498_v38 }
 0xa1d   : > { %16506 = vmatmul.mubr.msk.f32.gmra.mrb[248].mxu0 %vm338_vm0, %v20502_v31 }
 0xa1e   : > { %16516 = vmatprep.mubr.msk.f32.mxu0 %vm338_vm0, %v10271_v56  ;;  %v17188_v56 = vpack.c.bf16 %v10884_v26, %v10883_v41  ;;  %v20614_v41 = vld [vmem:[%s21097_s6] ss:$0 sm:$0xff] }
 0xa21   : > { %16517 = vmatmul.mubr.msk.f32.vlgmr.msra.gmra.mrb[210].mxu0 %vm338_vm0, %v10272_v3  ;;  %v11174_v3 = vld [vmem:[#allocation6 + $0xa0] sm:$0xff] }
 0xa22   : > { %17179 = vmatpush3.bf16.msra.mxu0 %v17176_v24  ;;  %16519 = vmatprep.mubr.msk.f32.mxu0 %vm338_vm0, %v10273_v44  ;;  %v20583_v24 = vld [vmem:[#allocation2 + $0x181] sm:$0xff]  ;;  %v20591_v44 = vpack.c.bf16 %v11175_v9, %v11174_v3 }
 0xa23   : > { %17181 = vmatprep.subr.bf16.mxu0 %v17180_v15 }
 0xa25   : > { %16520 = vmatmul.mubr.msk.f32.gmra.mrb[250].mxu0 %vm338_vm0, %v20272_v8  ;;  %v20527_v8 = vld [vmem:[#allocation2 + $0x111] sm:$0xff] }
 0xa26   : > { %16522 = vmatprep.mubr.msk.f32.mxu0 %vm338_vm0, %v20276_v23  ;;  %17183 = vmatpush3.bf16.msra.mxu0 %v17180_v15  ;;  %v20531_v23 = vld [vmem:[#allocation2 + $0x119] sm:$0xff]  ;;  %v10565_v15 = vld [vmem:[#allocation2 + $0xe7] sm:$0xff] }
 0xa27   : > { %17185 = vmatprep.subr.bf16.mxu0 %v17184_v33 }
 0xa29   : > { %16523 = vmatmul.mubr.msk.f32.gmra.mrb[252].mxu0 %vm338_vm0, %v20280_v7  ;;  %v20535_v7 = vld [vmem:[#allocation2 + $0x121] sm:$0xff] }
 0xa2a   : > { %16525 = vmatprep.mubr.msk.f32.mxu0 %vm338_vm0, %v20515_v14 }
 0xa2d   : > { %16526 = vmatmul.mubr.msk.f32.gmra.mrb[216].mxu0 %vm338_vm0, %v20519_v63 }
 0xa2e   : > { %16528 = vmatprep.mubr.msk.f32.mxu0 %vm338_vm0, %v20523_v17 }
 0xa31   : > { %16529 = vmatmul.mubr.msk.f32.gmra.mrb[254].mxu0 %vm338_vm0, %v20527_v8 }
 0xa32   : > { %16531 = vmatprep.mubr.msk.f32.mxu0 %vm338_vm0, %v20531_v23 }
 0xa35   : > { %16532 = vmatmul.mubr.msk.f32.gmra.mrb[0].mxu0 %vm338_vm0, %v20535_v7 }
 0xa36   : > { %16534 = vmatprep.mubr.msk.f32.mxu0 %vm338_vm0, %v20539_v32 }
 0xa39   : > { %16535 = vmatmul.mubr.msk.f32.gmra.mrb[222].mxu0 %vm338_vm0, %v20543_v4 }
 0xa3a   : > { %16537 = vmatprep.mubr.msk.f32.mxu0 %vm338_vm0, %v20547_v58 }
 0xa3d   : > { %16538 = vmatmul.mubr.msk.f32.gmra.mrb[2].mxu0 %vm338_vm0, %v20551_v61 }
 0xa3e   : > { %16540 = vmatprep.mubr.msk.f32.mxu0 %vm338_vm0, %v20555_v25 }
 0xa41   : > { %16541 = vmatmul.mubr.msk.f32.gmra.mrb[4].mxu0 %vm338_vm0, %v20559_v6 }
 0xa42   : > { %16543 = vmatprep.mubr.msk.f32.mxu0 %vm338_vm0, %v20563_v57 }
 0xa45   : > { %16544 = vmatmul.mubr.msk.f32.gmra.mrb[228].mxu0 %vm338_vm0, %v20567_v55 }
 0xa46   : > { %16546 = vmatprep.mubr.msk.f32.mxu0 %vm338_vm0, %v20571_v39 }
 0xa49   : > { %16547 = vmatmul.mubr.msk.f32.gmra.mrb[6].mxu0 %vm338_vm0, %v20575_v49 }
 0xa4a   : > { %16549 = vmatprep.mubr.msk.f32.mxu0 %vm338_vm0, %v20579_v1 }
 0xa4d   : > { %16550 = vmatmul.mubr.msk.f32.gmra.mrb[8].mxu0 %vm338_vm0, %v20583_v24 }
 0xa4e   : > { %16560 = vmatprep.mubr.msk.f32.mxu0 %vm338_vm0, %v20160_v43 }
 0xa51   : > { %16561 = vmatmul.mubr.msk.f32.vlgmr.msra.gmra.mrb[210].mxu0 %vm338_vm0, %v10565_v15  ;;  %v13486_v15 = vld [vmem:[%s17891_s15 + $0x100] sm:$0xff] }
 0xa52   : > { %17187 = vmatpush3.bf16.msra.mxu0 %v17184_v33  ;;  %16563 = vmatprep.mubr.msk.f32.mxu0 %vm338_vm0, %v10566_v50  ;;  %v13487_v33 = vld [vmem:[%s17891_s15 + $0x108] sm:$0xff] }
 0xa53   : > { %17189 = vmatprep.subr.bf16.mxu0 %v17188_v56 }
 0xa55   : > { %16564 = vmatmul.mubr.msk.f32.gmra.mrb[10].mxu0 %vm338_vm0, %v20434_v40 }
 0xa56   : > { %16566 = vmatprep.mubr.msk.f32.mxu0 %vm338_vm0, %v20438_v12  ;;  %17191 = vmatpush3.bf16.msra.mxu0 %v17188_v56 }
 0xa57   : > { %17193 = vmatprep.subr.bf16.mxu0 %v20591_v44 }
 0xa59   : > { %16567 = vmatmul.mubr.msk.f32.gmra.mrb[12].mxu0 %vm338_vm0, %v20442_v11 }
 0xa5a   : > { %16569 = vmatprep.mubr.msk.f32.mxu0 %vm338_vm0, %v20446_v48 }
 0xa5d   : > { %16570 = vmatmul.mubr.msk.f32.gmra.mrb[216].mxu0 %vm338_vm0, %v20450_v60 }
 0xa5e   : > { %16572 = vmatprep.mubr.msk.f32.mxu0 %vm338_vm0, %v20454_v46 }
 0xa61   : > { %16573 = vmatmul.mubr.msk.f32.gmra.mrb[14].mxu0 %vm338_vm0, %v20458_v18 }
 0xa62   : > { %16575 = vmatprep.mubr.msk.f32.mxu0 %vm338_vm0, %v20462_v2 }
 0xa63   : > { %v16398_v43 = vpop.f32.mrb[194].mxu0 }
 0xa64   : > { %v9579_v26 = vadd.f32 %v20614_v41, %v16398_v43  ;;  %v9573_v56 = vpop.f32.mrb[195].mxu0 }
 0xa65   : > { %v9574_v3 = vadd.f32 %v20614_v41, %v9573_v56  ;;  %16576 = vmatmul.mubr.msk.f32.gmra.mrb[16].mxu0 %vm338_vm0, %v20466_v51  ;;  %v13489_v56 = vld [vmem:[%s17891_s15 + $0x118] sm:$0xff]  ;;  %v13488_v51 = vld [vmem:[%s17891_s15 + $0x110] sm:$0xff] }
 0xa66   : > { %v9669_v9 = vadd.f32 %v13487_v33, %v9579_v26  ;;  %16578 = vmatprep.mubr.msk.f32.mxu0 %vm338_vm0, %v20470_v52 }
 0xa67   : > { %v9668_v50 = vadd.f32 %v13486_v15, %v9574_v3 }
 0xa68   : > { %v9685_v2 = vmax.f32 %v9669_v9, 0.0  ;;  %v13491_v9 = vld [vmem:[%s17891_s15 + $0x128] sm:$0xff] }
 0xa69   : > { %v9684_v18 = vmax.f32 %v9668_v50, 0.0  ;;  %16579 = vmatmul.mubr.msk.f32.gmra.mrb[222].mxu0 %vm338_vm0, %v20474_v42  ;;  %v13490_v42 = vld [vmem:[%s17891_s15 + $0x120] sm:$0xff] }
 0xa6a   : > { %13503 = vst [vmem:[%s19143_s17 + $0x108] sm:$0xff] %v9685_v2  ;;  %16581 = vmatprep.mubr.msk.f32.mxu0 %vm338_vm0, %v20478_v29 }
 0xa6b   : > { %13502 = vst [vmem:[%s19143_s17 + $0x100] sm:$0xff] %v9684_v18 }
 0xa6c   : > { %v16401_v43 = vpop.f32.mrb[196].mxu0 }
 0xa6d   : > { %v9589_v33 = vadd.f32 %v20614_v41, %v16401_v43  ;;  %v9583_v26 = vpop.f32.mrb[197].mxu0  ;;  %16582 = vmatmul.mubr.msk.f32.gmra.mrb[18].mxu0 %vm338_vm0, %v20482_v36 }
 0xa6e   : > { %v9584_v15 = vadd.f32 %v20614_v41, %v9583_v26  ;;  %16584 = vmatprep.mubr.msk.f32.mxu0 %vm338_vm0, %v20486_v10  ;;  %v11468_v10 = vld [vmem:[#allocation6 + $0xc8] sm:$0xff] }
 0xa6f   : > { %v9671_v2 = vadd.f32 %v13489_v56, %v9589_v33 }
 0xa70   : > { %v9670_v3 = vadd.f32 %v13488_v51, %v9584_v15  ;;  %v16404_v18 = vpop.f32.mrb[198].mxu0 }
 0xa71   : > { %v9687_v50 = vmax.f32 %v9671_v2, 0.0  ;;  %v9599_v43 = vadd.f32 %v20614_v41, %v16404_v18  ;;  %v9593_v29 = vpop.f32.mrb[199].mxu0  ;;  %16585 = vmatmul.mubr.msk.f32.gmra.mrb[20].mxu0 %vm338_vm0, %v20490_v22  ;;  %v13493_v2 = vld [vmem:[%s17891_s15 + $0x138] sm:$0xff]  ;;  %v11467_v22 = vld [vmem:[#allocation6 + $0xc0] sm:$0xff] }
 0xa72   : > { %v9686_v26 = vmax.f32 %v9670_v3, 0.0  ;;  %v9594_v36 = vadd.f32 %v20614_v41, %v9593_v29  ;;  %16587 = vmatprep.mubr.msk.f32.mxu0 %vm338_vm0, %v20494_v20  ;;  %v20654_v3 = vld [vmem:[#allocation2 + $0x187] sm:$0xff] }
 0xa73   : > { %13505 = vst [vmem:[%s19143_s17 + $0x118] sm:$0xff] %v9687_v50  ;;  %v9673_v51 = vadd.f32 %v13491_v9, %v9599_v43  ;;  %21338 = vst [vmem:[#allocation31_spill] sm:$0xff] %v20654_v3  ;;  %v13494_v20 = vld [vmem:[%s17891_s15 + $0x140] sm:$0xff] }
 0xa74   : > { %13504 = vst [vmem:[%s19143_s17 + $0x110] sm:$0xff] %v9686_v26  ;;  %v9672_v56 = vadd.f32 %v13490_v42, %v9594_v36  ;;  %v13492_v42 = vld [vmem:[%s17891_s15 + $0x130] sm:$0xff] }
 0xa75   : > { %v9689_v33 = vmax.f32 %v9673_v51, 0.0  ;;  %16588 = vmatmul.mubr.msk.f32.gmra.mrb[228].mxu0 %vm338_vm0, %v20498_v38  ;;  %v20660_v36 = vld [vmem:[#allocation2 + $0x18f] sm:$0xff]  ;;  %v20665_v26 = vld [vmem:[#allocation2 + $0x197] sm:$0xff] }
 0xa76   : > { %v9688_v15 = vmax.f32 %v9672_v56, 0.0  ;;  %16590 = vmatprep.mubr.msk.f32.mxu0 %vm338_vm0, %v20502_v31  ;;  %21339 = vst [vmem:[#allocation12_spill] sm:$0xff] %v20660_v36  ;;  %21340 = vst [vmem:[#allocation13_spill] sm:$0xff] %v20665_v26 }
 0xa77   : > { %13507 = vst [vmem:[%s19143_s17 + $0x128] sm:$0xff] %v9689_v33  ;;  %v13495_v33 = vld [vmem:[%s17891_s15 + $0x148] sm:$0xff] }
 0xa78   : > { %13506 = vst [vmem:[%s19143_s17 + $0x120] sm:$0xff] %v9688_v15  ;;  %v16407_v29 = vpop.f32.mrb[200].mxu0  ;;  %v11176_v15 = vld [vmem:[#allocation6 + $0xb0] sm:$0xff] }
 0xa79   : > { %v9609_v18 = vadd.f32 %v20614_v41, %v16407_v29  ;;  %v9603_v9 = vpop.f32.mrb[201].mxu0  ;;  %16591 = vmatmul.mubr.msk.f32.gmra.mrb[22].mxu0 %vm338_vm0, %v20654_v3  ;;  %v11177_v29 = vld [vmem:[#allocation6 + $0xb8] sm:$0xff] }
 0xa7a   : > { %v9604_v50 = vadd.f32 %v20614_v41, %v9603_v9  ;;  %16593 = vmatprep.mubr.msk.f32.mxu0 %vm338_vm0, %v20660_v36  ;;  %v10857_v9 = vld [vmem:[#allocation2 + $0xe0] sm:$0xff] }
 0xa7b   : > { %v9675_v43 = vadd.f32 %v13493_v2, %v9609_v18 }
 0xa7c   : > { %v9674_v51 = vadd.f32 %v13492_v42, %v9604_v50  ;;  %v16410_v56 = vpop.f32.mrb[202].mxu0  ;;  %v10859_v42 = vld [vmem:[#allocation2 + $0xf0] sm:$0xff]  ;;  %v17196_v50 = vpack.c.bf16 %v11177_v29, %v11176_v15  ;;  %v13499_v15 = vld [vmem:[%s17891_s15 + $0x168] sm:$0xff] }
 0xa7d   : > { %v9691_v31 = vmax.f32 %v9675_v43, 0.0  ;;  %v9619_v3 = vadd.f32 %v20614_v41, %v16410_v56  ;;  %v9613_v38 = vpop.f32.mrb[203].mxu0  ;;  %16594 = vmatmul.mubr.msk.f32.gmra.mrb[24].mxu0 %vm338_vm0, %v20665_v26  ;;  %v10858_v56 = vld [vmem:[#allocation2 + $0xe8] sm:$0xff] }
 0xa7e   : > { %v9690_v36 = vmax.f32 %v9674_v51, 0.0  ;;  %v9614_v2 = vadd.f32 %v20614_v41, %v9613_v38  ;;  %16604 = vmatprep.mubr.msk.f32.mxu0 %vm338_vm0, %v10857_v9  ;;  %v20680_v38 = vpack.c.bf16 %v11468_v10, %v11467_v22 }
 0xa7f   : > { %13509 = vst [vmem:[%s19143_s17 + $0x138] sm:$0xff] %v9691_v31  ;;  %v9677_v18 = vadd.f32 %v13495_v33, %v9619_v3  ;;  %v13496_v33 = vld [vmem:[%s17891_s15 + $0x150] sm:$0xff] }
 0xa80   : > { %13508 = vst [vmem:[%s19143_s17 + $0x130] sm:$0xff] %v9690_v36  ;;  %v9676_v43 = vadd.f32 %v13494_v20, %v9614_v2  ;;  %v13497_v20 = vld [vmem:[%s17891_s15 + $0x158] sm:$0xff]  ;;  %v13498_v2 = vld [vmem:[%s17891_s15 + $0x160] sm:$0xff] }
 0xa81   : > { %v9693_v26 = vmax.f32 %v9677_v18, 0.0  ;;  %16605 = vmatmul.mubr.msk.f32.vlgmr.msra.gmra.mrb[210].mxu0 %vm338_vm0, %v10858_v56 }
 0xa82   : > { %v9692_v51 = vmax.f32 %v9676_v43, 0.0  ;;  %17195 = vmatpush3.bf16.msra.mxu0 %v20591_v44  ;;  %16607 = vmatprep.mubr.msk.f32.mxu0 %vm338_vm0, %v10859_v42 }
 0xa83   : > { %13511 = vst [vmem:[%s19143_s17 + $0x148] sm:$0xff] %v9693_v26  ;;  %17197 = vmatprep.subr.bf16.mxu0 %v17196_v50 }
 0xa84   : > { %13510 = vst [vmem:[%s19143_s17 + $0x140] sm:$0xff] %v9692_v51  ;;  %v16413_v31 = vpop.f32.mrb[204].mxu0  ;;  %v13501_v51 = vld [vmem:[%s17891_s15 + $0x178] sm:$0xff] }
 0xa85   : > { %v9629_v3 = vadd.f32 %v20614_v41, %v16413_v31  ;;  %v9623_v36 = vpop.f32.mrb[205].mxu0  ;;  %16608 = vmatmul.mubr.msk.f32.gmra.mrb[26].mxu0 %vm338_vm0, %v20353_v59 }
 0xa86   : > { %v9624_v44 = vadd.f32 %v20614_v41, %v9623_v36  ;;  %16610 = vmatprep.mubr.msk.f32.mxu0 %vm338_vm0, %v20359_v62  ;;  %17199 = vmatpush3.bf16.msra.mxu0 %v17196_v50 }
 0xa87   : > { %v9679_v10 = vadd.f32 %v13497_v20, %v9629_v3  ;;  %17201 = vmatprep.subr.bf16.mxu0 %v20680_v38  ;;  %v13500_v20 = vld [vmem:[%s17891_s15 + $0x170] sm:$0xff] }
 0xa88   : > { %v9678_v22 = vadd.f32 %v13496_v33, %v9624_v44  ;;  %v16416_v26 = vpop.f32.mrb[206].mxu0 }
 0xa89   : > { %v9695_v29 = vmax.f32 %v9679_v10, 0.0  ;;  %v9639_v9 = vadd.f32 %v20614_v41, %v16416_v26  ;;  %v9633_v59 = vpop.f32.mrb[207].mxu0  ;;  %16611 = vmatmul.mubr.msk.f32.gmra.mrb[28].mxu0 %vm338_vm0, %v20357_v45  ;;  %v11151_v26 = vld [vmem:[#allocation2 + $0xe9] sm:$0xff] }
 0xa8a   : > { %v9694_v62 = vmax.f32 %v9678_v22, 0.0  ;;  %v9634_v18 = vadd.f32 %v20614_v41, %v9633_v59  ;;  %16613 = vmatprep.mubr.msk.f32.mxu0 %vm338_vm0, %v20365_v27  ;;  %v11152_v59 = vld [vmem:[#allocation2 + $0xf1] sm:$0xff] }
 0xa8b   : > { %13513 = vst [vmem:[%s19143_s17 + $0x158] sm:$0xff] %v9695_v29  ;;  %v9681_v42 = vadd.f32 %v13499_v15, %v9639_v9  ;;  %v11760_v15 = vld [vmem:[#allocation6 + $0xe0] sm:$0xff]  ;;  %v11761_v29 = vld [vmem:[#allocation6 + $0xe8] sm:$0xff] }
 0xa8c   : > { %13512 = vst [vmem:[%s19143_s17 + $0x150] sm:$0xff] %v9694_v62  ;;  %v9680_v50 = vadd.f32 %v13498_v2, %v9634_v18  ;;  %v17208_v2 = vpack.c.bf16 %v11761_v29, %v11760_v15  ;;  %v21345_v29 = vld [vmem:[#allocation24_spill] sm:$0xff] }
 0xa8d   : > { %v9697_v43 = vmax.f32 %v9681_v42, 0.0  ;;  %16614 = vmatmul.mubr.msk.f32.gmra.mrb[216].mxu0 %vm338_vm0, %v20369_v34 }
 0xa8e   : > { %v9696_v56 = vmax.f32 %v9680_v50, 0.0  ;;  %16616 = vmatprep.mubr.msk.f32.mxu0 %vm338_vm0, %v20373_v5 }
 0xa8f   : > { %13515 = vst [vmem:[%s19143_s17 + $0x168] sm:$0xff] %v9697_v43 }
 0xa90   : > { %13514 = vst [vmem:[%s19143_s17 + $0x160] sm:$0xff] %v9696_v56  ;;  %v16419_v45 = vpop.f32.mrb[208].mxu0 }
 0xa91   : > { %v9649_v27 = vadd.f32 %v20614_v41, %v16419_v45  ;;  %v9643_v31 = vpop.f32.mrb[209].mxu0  ;;  %16617 = vmatmul.mubr.msk.f32.gmra.mrb[30].mxu0 %vm338_vm0, %v20377_v19 }
 0xa92   : > { %v9644_v3 = vadd.f32 %v20614_v41, %v9643_v31  ;;  %16619 = vmatprep.mubr.msk.f32.mxu0 %vm338_vm0, %v20383_v30  ;;  %v11470_v41 = vld [vmem:[#allocation6 + $0xd8] sm:$0xff] }
 0xa93   : > { %v9683_v34 = vadd.f32 %v13501_v51, %v9649_v27 }
 0xa94   : > { %v9682_v5 = vadd.f32 %v13500_v20, %v9644_v3 }
 0xa95   : > { %v9699_v36 = vmax.f32 %v9683_v34, 0.0  ;;  %16620 = vmatmul.mubr.msk.f32.gmra.mrb[32].mxu0 %vm338_vm0, %v20381_v16 }
 0xa96   : > { %v9698_v33 = vmax.f32 %v9682_v5, 0.0  ;;  %16622 = vmatprep.mubr.msk.f32.mxu0 %vm338_vm0, %v20389_v53 }
 0xa97   : > { %13517 = vst [vmem:[%s19143_s17 + $0x178] sm:$0xff] %v9699_v36 }
 0xa98   : > { %13516 = vst [vmem:[%s19143_s17 + $0x170] sm:$0xff] %v9698_v33  ;;  %v16433_v44 = vpop.f32.mrb[212].mxu0  ;;  %v20790_v33 = vld [vmem:[#allocation2 + $0x189] sm:$0xff] }
 0xa99   : > { %v9921_v10 = vpop.f32.mrb[213].mxu0  ;;  %16623 = vmatmul.mubr.msk.f32.gmra.mrb[222].mxu0 %vm338_vm0, %v20393_v0 }
 0xa9a   : > { %16625 = vmatprep.mubr.msk.f32.mxu0 %vm338_vm0, %v20397_v28  ;;  %v20738_v28 = vld [vmem:[#allocation2 + $0x188] sm:$0xff]  ;;  %v11762_v10 = vld [vmem:[#allocation6 + $0xf0] sm:$0xff] }
 0xa9c   : > { %v16436_v19 = vpop.f32.mrb[214].mxu0 }
 0xa9d   : > { %v9930_v30 = vpop.f32.mrb[215].mxu0  ;;  %16626 = vmatmul.mubr.msk.f32.gmra.mrb[34].mxu0 %vm338_vm0, %v20401_v47 }
 0xa9e   : > { %16628 = vmatprep.mubr.msk.f32.mxu0 %vm338_vm0, %v20407_v54  ;;  %v20742_v54 = vld [vmem:[#allocation2 + $0x190] sm:$0xff] }
 0xaa1   : > { %16629 = vmatmul.mubr.msk.f32.gmra.mrb[36].mxu0 %vm338_vm0, %v20405_v13  ;;  %v20746_v13 = vld [vmem:[#allocation2 + $0x198] sm:$0xff] }
 0xaa2   : > { %16631 = vmatprep.mubr.msk.f32.mxu0 %vm338_vm0, %v20413_v21  ;;  %v11469_v21 = vld [vmem:[#allocation6 + $0xd0] sm:$0xff] }
 0xaa4   : > { %v16442_v16 = vpop.f32.mrb[218].mxu0 }
 0xaa5   : > { %v9949_v53 = vpop.f32.mrb[219].mxu0  ;;  %16632 = vmatmul.mubr.msk.f32.gmra.mrb[228].mxu0 %vm338_vm0, %v20417_v37  ;;  %v11150_v37 = vld [vmem:[#allocation2 + $0xe1] sm:$0xff] }
 0xaa6   : > { %16634 = vmatprep.mubr.msk.f32.mxu0 %vm338_vm0, %v20421_v35  ;;  %v17204_v35 = vpack.c.bf16 %v11470_v41, %v11469_v21 }
 0xaa8   : > { %v16445_v0 = vpop.f32.mrb[220].mxu0 }
 0xaa9   : > { %v9958_v47 = vpop.f32.mrb[221].mxu0  ;;  %16635 = vmatmul.mubr.msk.f32.gmra.mrb[38].mxu0 %vm338_vm0, %v20738_v28 }
 0xaaa   : > { %16637 = vmatprep.mubr.msk.f32.mxu0 %vm338_vm0, %v20742_v54 }
 0xaad   : > { %16638 = vmatmul.mubr.msk.f32.gmra.mrb[40].mxu0 %vm338_vm0, %v20746_v13 }
 0xaae   : > { %16648 = vmatprep.mubr.msk.f32.mxu0 %vm338_vm0, %v11150_v37 }
 0xab0   : > { %v16451_v22 = vpop.f32.mrb[224].mxu0 }
 0xab1   : > { %v9977_v9 = vpop.f32.mrb[225].mxu0  ;;  %16649 = vmatmul.mubr.msk.f32.vlgmr.msra.gmra.mrb[210].mxu0 %vm338_vm0, %v11151_v26 }
 0xab2   : > { %17203 = vmatpush3.bf16.msra.mxu0 %v20680_v38  ;;  %16651 = vmatprep.mubr.msk.f32.mxu0 %vm338_vm0, %v11152_v59  ;;  %v21346_v9 = vld [vmem:[#allocation25_spill] sm:$0xff] }
 0xab3   : > { %17205 = vmatprep.subr.bf16.mxu0 %v17204_v35 }
 0xab4   : > { %v16454_v62 = vpop.f32.mrb[226].mxu0 }
 0xab5   : > { %v9986_v18 = vpop.f32.mrb[227].mxu0  ;;  %16652 = vmatmul.mubr.msk.f32.gmra.mrb[44].mxu0 %vm338_vm0, %v20515_v14 }
 0xab6   : > { %16654 = vmatprep.mubr.msk.f32.mxu0 %vm338_vm0, %v20519_v63  ;;  %17207 = vmatpush3.bf16.msra.mxu0 %v17204_v35 }
 0xab7   : > { %17209 = vmatprep.subr.bf16.mxu0 %v17208_v2 }
 0xab9   : > { %16655 = vmatmul.mubr.msk.f32.gmra.mrb[46].mxu0 %vm338_vm0, %v20523_v17 }
 0xaba   : > { %16657 = vmatprep.mubr.msk.f32.mxu0 %vm338_vm0, %v20527_v8 }
 0xabc   : > { %v16460_v38 = vpop.f32.mrb[230].mxu0 }
 0xabd   : > { %v10005_v42 = vpop.f32.mrb[231].mxu0  ;;  %16658 = vmatmul.mubr.msk.f32.gmra.mrb[216].mxu0 %vm338_vm0, %v20531_v23 }
 0xabe   : > { %16660 = vmatprep.mubr.msk.f32.mxu0 %vm338_vm0, %v20535_v7 }
 0xac0   : > { %v16463_v50 = vpop.f32.mrb[232].mxu0 }
 0xac1   : > { %v10014_v43 = vpop.f32.mrb[233].mxu0  ;;  %16661 = vmatmul.mubr.msk.f32.gmra.mrb[50].mxu0 %vm338_vm0, %v20539_v32  ;;  %v21349_v50 = vld [vmem:[#allocation28_spill] sm:$0xff] }
 0xac2   : > { %16663 = vmatprep.mubr.msk.f32.mxu0 %vm338_vm0, %v20543_v4 }
 0xac5   : > { %16664 = vmatmul.mubr.msk.f32.gmra.mrb[52].mxu0 %vm338_vm0, %v20547_v58 }
 0xac6   : > { %16666 = vmatprep.mubr.msk.f32.mxu0 %vm338_vm0, %v20551_v61 }
 0xac8   : > { %v16477_v56 = vpop.f32.mrb[234].mxu0 }
 0xac9   : > { %v10175_v45 = vadd.f32 %v16477_v56, %v16433_v44  ;;  %v10170_v51 = vpop.f32.mrb[235].mxu0  ;;  %16667 = vmatmul.mubr.msk.f32.gmra.mrb[222].mxu0 %vm338_vm0, %v20555_v25  ;;  %v21350_v56 = vld [vmem:[#allocation29_spill] sm:$0xff] }
 0xaca   : > { %16669 = vmatprep.mubr.msk.f32.mxu0 %vm338_vm0, %v20559_v6  ;;  %v21351_v51 = vld [vmem:[#allocation30_spill] sm:$0xff] }
 0xacc   : > { %v16480_v27 = vpop.f32.mrb[236].mxu0 }
 0xacd   : > { %v10179_v31 = vpop.f32.mrb[237].mxu0  ;;  %16670 = vmatmul.mubr.msk.f32.gmra.mrb[56].mxu0 %vm338_vm0, %v20563_v57 }
 0xace   : > { %v10180_v20 = vadd.f32 %v10179_v31, %v9930_v30  ;;  %16672 = vmatprep.mubr.msk.f32.mxu0 %vm338_vm0, %v20567_v55  ;;  %v20794_v55 = vld [vmem:[#allocation2 + $0x191] sm:$0xff]  ;;  %v12053_v30 = vld [vmem:[#allocation6 + $0x100] sm:$0xff] }
 0xad1   : > { %16673 = vmatmul.mubr.msk.f32.gmra.mrb[58].mxu0 %vm338_vm0, %v20571_v39 }
 0xad2   : > { %16675 = vmatprep.mubr.msk.f32.mxu0 %vm338_vm0, %v20575_v49  ;;  %v20798_v49 = vld [vmem:[#allocation2 + $0x199] sm:$0xff] }
 0xad4   : > { %v16486_v3 = vpop.f32.mrb[238].mxu0 }
 0xad5   : > { %v10203_v34 = vadd.f32 %v16486_v3, %v16442_v16  ;;  %v10198_v5 = vpop.f32.mrb[239].mxu0  ;;  %16676 = vmatmul.mubr.msk.f32.gmra.mrb[228].mxu0 %vm338_vm0, %v20579_v1  ;;  %v11763_v1 = vld [vmem:[#allocation6 + $0xf8] sm:$0xff]  ;;  %v12054_v16 = vld [vmem:[#allocation6 + $0x108] sm:$0xff] }
 0xad6   : > { %16678 = vmatprep.mubr.msk.f32.mxu0 %vm338_vm0, %v20583_v24  ;;  %v17212_v24 = vpack.c.bf16 %v11763_v1, %v11762_v10  ;;  %v21353_v5 = vld [vmem:[#allocation12_spill] sm:$0xff] }
 0xad8   : > { %v16489_v36 = vpop.f32.mrb[240].mxu0 }
 0xad9   : > { %v10207_v44 = vpop.f32.mrb[241].mxu0  ;;  %16679 = vmatmul.mubr.msk.f32.gmra.mrb[62].mxu0 %vm338_vm0, %v20790_v33  ;;  %v21354_v36 = vld [vmem:[#allocation13_spill] sm:$0xff] }
 0xada   : > { %v10208_v39 = vadd.f32 %v10207_v44, %v9958_v47  ;;  %16681 = vmatprep.mubr.msk.f32.mxu0 %vm338_vm0, %v20794_v55  ;;  %v17216_v47 = vpack.c.bf16 %v12054_v16, %v12053_v30  ;;  %v11465_v44 = vld [vmem:[#allocation2 + $0x1a7] sm:$0xff]  ;;  %v12056_v30 = vld [vmem:[#allocation6 + $0x118] sm:$0xff] }
 0xadb   : > { %v11736_v16 = vld [vmem:[#allocation2 + $0xf8] sm:$0xff] }
 0xadd   : > { %16682 = vmatmul.mubr.msk.f32.gmra.mrb[64].mxu0 %vm338_vm0, %v20798_v49 }
 0xade   : > { %16692 = vmatprep.mubr.msk.f32.mxu0 %vm338_vm0, %v20434_v40 }
 0xae0   : > { %v16495_v19 = vpop.f32.mrb[242].mxu0 }
 0xae1   : > { %v10231_v53 = vadd.f32 %v16495_v19, %v16451_v22  ;;  %v10226_v0 = vpop.f32.mrb[243].mxu0  ;;  %16693 = vmatmul.mubr.msk.f32.vlgmr.msra.gmra.mrb[210].mxu0 %vm338_vm0, %v20438_v12  ;;  %v21341_v12 = vld [vmem:[#allocation20_spill] sm:$0xff]  ;;  %v21342_v22 = vld [vmem:[#allocation21_spill] sm:$0xff] }
 0xae2   : > { %17211 = vmatpush3.bf16.msra.mxu0 %v17208_v2  ;;  %16695 = vmatprep.mubr.msk.f32.mxu0 %vm338_vm0, %v20442_v11  ;;  %v11466_v19 = vld [vmem:[#allocation2 + $0x1af] sm:$0xff] }
 0xae3   : > { %17213 = vmatprep.subr.bf16.mxu0 %v17212_v24  ;;  %v11738_v0 = vld [vmem:[#allocation2 + $0x108] sm:$0xff] }
 0xae4   : > { %v16498_v21 = vpop.f32.mrb[244].mxu0 }
 0xae5   : > { %v10235_v41 = vpop.f32.mrb[245].mxu0  ;;  %16696 = vmatmul.mubr.msk.f32.gmra.mrb[66].mxu0 %vm338_vm0, %v20446_v48  ;;  %v21343_v48 = vld [vmem:[#allocation22_spill] sm:$0xff] }
 0xae6   : > { %v20810_v40 = vadd.f32 %v10235_v41, %v9986_v18  ;;  %16698 = vmatprep.mubr.msk.f32.mxu0 %vm338_vm0, %v20450_v60  ;;  %17215 = vmatpush3.bf16.msra.mxu0 %v17212_v24  ;;  %v21347_v18 = vld [vmem:[#allocation26_spill] sm:$0xff] }
 0xae7   : > { %17217 = vmatprep.subr.bf16.mxu0 %v17216_v47 }
 0xae9   : > { %16699 = vmatmul.mubr.msk.f32.gmra.mrb[68].mxu0 %vm338_vm0, %v20454_v46  ;;  %v21344_v46 = vld [vmem:[#allocation23_spill] sm:$0xff] }
 0xaea   : > { %16701 = vmatprep.mubr.msk.f32.mxu0 %vm338_vm0, %v21341_v12  ;;  %v11737_v12 = vld [vmem:[#allocation2 + $0x100] sm:$0xff] }
 0xaec   : > { %v16504_v11 = vpop.f32.mrb[246].mxu0 }
 0xaed   : > { %v20818_v37 = vadd.f32 %v16504_v11, %v16460_v38  ;;  %v10254_v35 = vpop.f32.mrb[247].mxu0  ;;  %16702 = vmatmul.mubr.msk.f32.gmra.mrb[216].mxu0 %vm338_vm0, %v21342_v22  ;;  %v21348_v38 = vld [vmem:[#allocation27_spill] sm:$0xff]  ;;  %v11739_v22 = vld [vmem:[#allocation2 + $0x110] sm:$0xff] }
 0xaee   : > { %16704 = vmatprep.mubr.msk.f32.mxu0 %vm338_vm0, %v21343_v48 }
 0xaf0   : > { %v16507_v26 = vpop.f32.mrb[248].mxu0 }
 0xaf1   : > { %v10263_v60 = vpop.f32.mrb[249].mxu0  ;;  %16705 = vmatmul.mubr.msk.f32.gmra.mrb[70].mxu0 %vm338_vm0, %v20470_v52  ;;  %v11740_v26 = vld [vmem:[#allocation2 + $0x118] sm:$0xff] }
 0xaf2   : > { %v20826_v15 = vadd.f32 %v10263_v60, %v10014_v43  ;;  %16707 = vmatprep.mubr.msk.f32.mxu0 %vm338_vm0, %v21344_v46  ;;  %v11742_v46 = vld [vmem:[#allocation2 + $0x128] sm:$0xff] }
 0xaf5   : > { %16708 = vmatmul.mubr.msk.f32.gmra.mrb[72].mxu0 %vm338_vm0, %v21345_v29 }
 0xaf6   : > { %16710 = vmatprep.mubr.msk.f32.mxu0 %vm338_vm0, %v21346_v9  ;;  %v11743_v9 = vld [vmem:[#allocation2 + $0x130] sm:$0xff] }
 0xaf8   : > { %v16521_v59 = vpop.f32.mrb[250].mxu0 }
 0xaf9   : > { %v20834_v2 = vadd.f32 %v16521_v59, %v10175_v45  ;;  %v10447_v62 = vpop.f32.mrb[251].mxu0  ;;  %16711 = vmatmul.mubr.msk.f32.gmra.mrb[222].mxu0 %vm338_vm0, %v21347_v18  ;;  %v21352_v45 = vld [vmem:[#allocation31_spill] sm:$0xff]  ;;  %v11745_v18 = vld [vmem:[#allocation2 + $0x140] sm:$0xff] }
 0xafa   : > { %16713 = vmatprep.mubr.msk.f32.mxu0 %vm338_vm0, %v21348_v38 }
 0xafc   : > { %v16524_v52 = vpop.f32.mrb[252].mxu0 }
 0xafd   : > { %v10456_v42 = vpop.f32.mrb[253].mxu0  ;;  %16714 = vmatmul.mubr.msk.f32.gmra.mrb[74].mxu0 %vm338_vm0, %v21349_v50  ;;  %v11746_v52 = vld [vmem:[#allocation2 + $0x148] sm:$0xff]  ;;  %v11747_v50 = vld [vmem:[#allocation2 + $0x150] sm:$0xff] }
 0xafe   : > { %v20842_v43 = vadd.f32 %v10456_v42, %v10180_v20  ;;  %16716 = vmatprep.mubr.msk.f32.mxu0 %vm338_vm0, %v21350_v56  ;;  %v11464_v20 = vld [vmem:[#allocation2 + $0x19f] sm:$0xff] }
 0xaff   : > { %v11748_v56 = vld [vmem:[#allocation2 + $0x158] sm:$0xff] }
 0xb01   : > { %16717 = vmatmul.mubr.msk.f32.gmra.mrb[76].mxu0 %vm338_vm0, %v21351_v51 }
 0xb02   : > { %16719 = vmatprep.mubr.msk.f32.mxu0 %vm338_vm0, %v21352_v45  ;;  %v11749_v45 = vld [vmem:[#allocation2 + $0x160] sm:$0xff] }
 0xb04   : > { %v16530_v27 = vpop.f32.mrb[254].mxu0 }
 0xb05   : > { %v20850_v31 = vadd.f32 %v16530_v27, %v10203_v34  ;;  %v10475_v3 = vpop.f32.mrb[255].mxu0  ;;  %16720 = vmatmul.mubr.msk.f32.gmra.mrb[228].mxu0 %vm338_vm0, %v21353_v5  ;;  %v12055_v34 = vld [vmem:[#allocation6 + $0x110] sm:$0xff] }
 0xb06   : > { %16722 = vmatprep.mubr.msk.f32.mxu0 %vm338_vm0, %v21354_v36  ;;  %v17220_v21 = vpack.c.bf16 %v12056_v30, %v12055_v34  ;;  %v11757_v34 = vld [vmem:[#allocation2 + $0x1a0] sm:$0xff] }
 0xb08   : > { %v16533_v10 = vpop.f32.mrb[0].mxu0 }
 0xb09   : > { %v10484_v1 = vpop.f32.mrb[1].mxu0  ;;  %16723 = vmatmul.mubr.msk.f32.gmra.mrb[78].mxu0 %vm338_vm0, %v11464_v20  ;;  %v11752_v20 = vld [vmem:[#allocation2 + $0x178] sm:$0xff]  ;;  %v11753_v10 = vld [vmem:[#allocation2 + $0x180] sm:$0xff] }
 0xb0a   : > { %v20857_v24 = vadd.f32 %v10484_v1, %v10208_v39  ;;  %16725 = vmatprep.mubr.msk.f32.mxu0 %vm338_vm0, %v11465_v44 }
 0xb0d   : > { %16726 = vmatmul.mubr.msk.f32.gmra.mrb[80].mxu0 %vm338_vm0, %v11466_v19 }
 0xb0e   : > { %16736 = vmatprep.mubr.msk.f32.mxu0 %vm338_vm0, %v11736_v16 }
 0xb10   : > { %v16539_v41 = vpop.f32.mrb[2].mxu0 }
 0xb11   : > { %v20862_v11 = vadd.f32 %v16539_v41, %v10231_v53  ;;  %v10503_v35 = vpop.f32.mrb[3].mxu0  ;;  %16737 = vmatmul.mubr.msk.f32.vlgmr.msra.gmra.mrb[210].mxu0 %vm338_vm0, %v11737_v12  ;;  %v11741_v53 = vld [vmem:[#allocation2 + $0x120] sm:$0xff] }
 0xb12   : > { %17219 = vmatpush3.bf16.msra.mxu0 %v17216_v47  ;;  %16739 = vmatprep.mubr.msk.f32.mxu0 %vm338_vm0, %v11738_v0  ;;  %v11744_v47 = vld [vmem:[#allocation2 + $0x138] sm:$0xff] }
 0xb13   : > { %17221 = vmatprep.subr.bf16.mxu0 %v17220_v21  ;;  %v12044_v35 = vld [vmem:[#allocation2 + $0x171] sm:$0xff] }
 0xb14   : > { %v16542_v39 = vpop.f32.mrb[4].mxu0 }
 0xb15   : > { %v10512_v48 = vpop.f32.mrb[5].mxu0  ;;  %16740 = vmatmul.mubr.msk.f32.gmra.mrb[82].mxu0 %vm338_vm0, %v11739_v22 }
 0xb16   : > { %v20868_v60 = vadd.f32 %v10512_v48, %v20810_v40  ;;  %16742 = vmatprep.mubr.msk.f32.mxu0 %vm338_vm0, %v11740_v26  ;;  %17223 = vmatpush3.bf16.msra.mxu0 %v17220_v21 }
 0xb19   : > { %16743 = vmatmul.mubr.msk.f32.gmra.mrb[84].mxu0 %vm338_vm0, %v11741_v53  ;;  %v12051_v53 = vld [vmem:[#allocation2 + $0x1a9] sm:$0xff] }
 0xb1a   : > { %16745 = vmatprep.mubr.msk.f32.mxu0 %vm338_vm0, %v11742_v46 }
 0xb1c   : > { %v16548_v29 = vpop.f32.mrb[6].mxu0 }
 0xb1d   : > { %v10562_v59 = vadd.f32 %v16548_v29, %v20818_v37  ;;  %v10531_v62 = vpop.f32.mrb[7].mxu0  ;;  %16746 = vmatmul.mubr.msk.f32.gmra.mrb[216].mxu0 %vm338_vm0, %v11743_v9  ;;  %v11750_v37 = vld [vmem:[#allocation2 + $0x168] sm:$0xff]  ;;  %v12052_v9 = vld [vmem:[#allocation2 + $0x1b1] sm:$0xff] }
 0xb1e   : > { %16748 = vmatprep.mubr.msk.f32.mxu0 %vm338_vm0, %v11744_v47 }
 0xb20   : > { %v16551_v40 = vpop.f32.mrb[8].mxu0 }
 0xb21   : > { %v10540_v38 = vpop.f32.mrb[9].mxu0  ;;  %16749 = vmatmul.mubr.msk.f32.gmra.mrb[86].mxu0 %vm338_vm0, %v11745_v18 }
 0xb22   : > { %v10563_v42 = vadd.f32 %v10540_v38, %v20826_v15  ;;  %16751 = vmatprep.mubr.msk.f32.mxu0 %vm338_vm0, %v11746_v52  ;;  %v11751_v15 = vld [vmem:[#allocation2 + $0x170] sm:$0xff] }
 0xb25   : > { %16752 = vmatmul.mubr.msk.f32.gmra.mrb[88].mxu0 %vm338_vm0, %v11747_v50 }
 0xb26   : > { %16754 = vmatprep.mubr.msk.f32.mxu0 %vm338_vm0, %v11748_v56 }
 0xb28   : > { %v16565_v51 = vpop.f32.mrb[10].mxu0 }
 0xb29   : > { %v10843_v27 = vadd.f32 %v16565_v51, %v20834_v2  ;;  %v10740_v3 = vpop.f32.mrb[11].mxu0  ;;  %16755 = vmatmul.mubr.msk.f32.gmra.mrb[222].mxu0 %vm338_vm0, %v11749_v45 }
 0xb2a   : > { %16757 = vmatprep.mubr.msk.f32.mxu0 %vm338_vm0, %v11750_v37 }
 0xb2c   : > { %v16568_v5 = vpop.f32.mrb[12].mxu0 }
 0xb2d   : > { %v10749_v36 = vpop.f32.mrb[13].mxu0  ;;  %16758 = vmatmul.mubr.msk.f32.gmra.mrb[90].mxu0 %vm338_vm0, %v11751_v15 }
 0xb2e   : > { %v10844_v44 = vadd.f32 %v10749_v36, %v20842_v43  ;;  %16760 = vmatprep.mubr.msk.f32.mxu0 %vm338_vm0, %v11752_v20  ;;  %v11758_v43 = vld [vmem:[#allocation2 + $0x1a8] sm:$0xff] }
 0xb31   : > { %16761 = vmatmul.mubr.msk.f32.gmra.mrb[92].mxu0 %vm338_vm0, %v11753_v10 }
 0xb32   : > { %16763 = vmatprep.mubr.msk.f32.mxu0 %vm338_vm0, %v20738_v28  ;;  %v11759_v28 = vld [vmem:[#allocation2 + $0x1b0] sm:$0xff] }
 0xb34   : > { %v16574_v2 = vpop.f32.mrb[14].mxu0 }
 0xb35   : > { %v10847_v1 = vadd.f32 %v16574_v2, %v20850_v31  ;;  %v10768_v19 = vpop.f32.mrb[15].mxu0  ;;  %16764 = vmatmul.mubr.msk.f32.gmra.mrb[228].mxu0 %vm338_vm0, %v20742_v54 }
 0xb36   : > { %16766 = vmatprep.mubr.msk.f32.mxu0 %vm338_vm0, %v20746_v13 }
 0xb38   : > { %v16577_v30 = vpop.f32.mrb[16].mxu0 }
 0xb39   : > { %v10777_v16 = vpop.f32.mrb[17].mxu0  ;;  %16767 = vmatmul.mubr.msk.f32.gmra.mrb[94].mxu0 %vm338_vm0, %v11757_v34 }
 0xb3a   : > { %v10848_v0 = vadd.f32 %v10777_v16, %v20857_v24  ;;  %16769 = vmatprep.mubr.msk.f32.mxu0 %vm338_vm0, %v11758_v43 }
 0xb3d   : > { %16770 = vmatmul.mubr.msk.f32.gmra.mrb[96].mxu0 %vm338_vm0, %v11759_v28 }
 0xb3e   : > { %16780 = vmatprep.mubr.msk.f32.mxu0 %vm338_vm0, %v20515_v14 }
 0xb40   : > { %v16583_v54 = vpop.f32.mrb[18].mxu0 }
 0xb41   : > { %v10851_v31 = vadd.f32 %v16583_v54, %v20862_v11  ;;  %v10796_v13 = vpop.f32.mrb[19].mxu0  ;;  %16781 = vmatmul.mubr.msk.f32.vlgmr.msra.gmra.mrb[210].mxu0 %vm338_vm0, %v20519_v63 }
 0xb42   : > { %16783 = vmatprep.mubr.msk.f32.mxu0 %vm338_vm0, %v20523_v17 }
 0xb44   : > { %v16586_v21 = vpop.f32.mrb[20].mxu0 }
 0xb45   : > { %v10805_v24 = vpop.f32.mrb[21].mxu0  ;;  %16784 = vmatmul.mubr.msk.f32.gmra.mrb[98].mxu0 %vm338_vm0, %v20527_v8 }
 0xb46   : > { %v10852_v41 = vadd.f32 %v10805_v24, %v20868_v60  ;;  %16786 = vmatprep.mubr.msk.f32.mxu0 %vm338_vm0, %v20531_v23  ;;  %v12050_v60 = vld [vmem:[#allocation2 + $0x1a1] sm:$0xff] }
 0xb49   : > { %16787 = vmatmul.mubr.msk.f32.gmra.mrb[100].mxu0 %vm338_vm0, %v20535_v7 }
 0xb4a   : > { %16789 = vmatprep.mubr.msk.f32.mxu0 %vm338_vm0, %v20539_v32  ;;  %v12042_v32 = vld [vmem:[#allocation2 + $0x161] sm:$0xff] }
 0xb4c   : > { %v16592_v14 = vpop.f32.mrb[22].mxu0 }
 0xb4d   : > { %v10855_v63 = vadd.f32 %v16592_v14, %v10562_v59  ;;  %v10824_v12 = vpop.f32.mrb[23].mxu0  ;;  %16790 = vmatmul.mubr.msk.f32.gmra.mrb[216].mxu0 %vm338_vm0, %v20543_v4 }
 0xb4e   : > { %16792 = vmatprep.mubr.msk.f32.mxu0 %vm338_vm0, %v20547_v58  ;;  %v12043_v58 = vld [vmem:[#allocation2 + $0x169] sm:$0xff] }
 0xb50   : > { %v16595_v17 = vpop.f32.mrb[24].mxu0 }
 0xb51   : > { %v10833_v8 = vpop.f32.mrb[25].mxu0  ;;  %16793 = vmatmul.mubr.msk.f32.gmra.mrb[102].mxu0 %vm338_vm0, %v20551_v61 }
 0xb52   : > { %v10856_v23 = vadd.f32 %v10833_v8, %v10563_v42  ;;  %16795 = vmatprep.mubr.msk.f32.mxu0 %vm338_vm0, %v20555_v25  ;;  %v12045_v25 = vld [vmem:[#allocation2 + $0x179] sm:$0xff] }
 0xb55   : > { %16796 = vmatmul.mubr.msk.f32.gmra.mrb[104].mxu0 %vm338_vm0, %v20559_v6  ;;  %v12046_v6 = vld [vmem:[#allocation2 + $0x181] sm:$0xff] }
 0xb56   : > { %16798 = vmatprep.mubr.msk.f32.mxu0 %vm338_vm0, %v20563_v57 }
 0xb58   : > { %v16609_v7 = vpop.f32.mrb[26].mxu0 }
 0xb59   : > { %v11136_v4 = vadd.f32 %v16609_v7, %v10843_v27  ;;  %v11033_v11 = vpop.f32.mrb[27].mxu0  ;;  %16799 = vmatmul.mubr.msk.f32.gmra.mrb[222].mxu0 %vm338_vm0, %v12042_v32 }
 0xb5a   : > { %16801 = vmatprep.mubr.msk.f32.mxu0 %vm338_vm0, %v12043_v58 }
 0xb5c   : > { %v16612_v61 = vpop.f32.mrb[28].mxu0 }
 0xb5d   : > { %v11042_v39 = vpop.f32.mrb[29].mxu0  ;;  %16802 = vmatmul.mubr.msk.f32.gmra.mrb[106].mxu0 %vm338_vm0, %v12044_v35 }
 0xb5e   : > { %v11137_v22 = vadd.f32 %v11042_v39, %v10844_v44  ;;  %16804 = vmatprep.mubr.msk.f32.mxu0 %vm338_vm0, %v12045_v25 }
 0xb61   : > { %16805 = vmatmul.mubr.msk.f32.gmra.mrb[108].mxu0 %vm338_vm0, %v12046_v6 }
 0xb62   : > { %16807 = vmatprep.mubr.msk.f32.mxu0 %vm338_vm0, %v20790_v33 }
 0xb64   : > { %v16618_v57 = vpop.f32.mrb[30].mxu0 }
 0xb65   : > { %v11140_v48 = vadd.f32 %v16618_v57, %v10847_v1  ;;  %v11061_v26 = vpop.f32.mrb[31].mxu0  ;;  %16808 = vmatmul.mubr.msk.f32.gmra.mrb[228].mxu0 %vm338_vm0, %v20794_v55 }
 0xb66   : > { %16810 = vmatprep.mubr.msk.f32.mxu0 %vm338_vm0, %v20798_v49 }
 0xb68   : > { %v16621_v46 = vpop.f32.mrb[32].mxu0 }
 0xb69   : > { %v11070_v47 = vpop.f32.mrb[33].mxu0  ;;  %16811 = vmatmul.mubr.msk.f32.gmra.mrb[110].mxu0 %vm338_vm0, %v12050_v60 }
 0xb6a   : > { %v11141_v29 = vadd.f32 %v11070_v47, %v10848_v0  ;;  %16813 = vmatprep.mubr.msk.f32.mxu0 %vm338_vm0, %v12051_v53 }
 0xb6d   : > { %16814 = vmatmul.mubr.msk.f32.gmra.mrb[112].mxu0 %vm338_vm0, %v12052_v9 }
 0xb70   : > { %v16627_v33 = vpop.f32.mrb[34].mxu0 }
 0xb71   : > { %v11144_v59 = vadd.f32 %v16627_v33, %v10851_v31  ;;  %v11089_v62 = vpop.f32.mrb[35].mxu0 }
 0xb74   : > { %v16630_v40 = vpop.f32.mrb[36].mxu0 }
 0xb75   : > { %v11098_v55 = vpop.f32.mrb[37].mxu0 }
 0xb76   : > { %v11145_v18 = vadd.f32 %v11098_v55, %v10852_v41 }
 0xb7c   : > { %v16636_v38 = vpop.f32.mrb[38].mxu0 }
 0xb7d   : > { %v11148_v49 = vadd.f32 %v16636_v38, %v10855_v63  ;;  %v11117_v52 = vpop.f32.mrb[39].mxu0 }
 0xb80   : > { %v16639_v42 = vpop.f32.mrb[40].mxu0 }
 0xb81   : > { %v11126_v50 = vpop.f32.mrb[41].mxu0 }
 0xb82   : > { %v11149_v56 = vadd.f32 %v11126_v50, %v10856_v23 }
 0xb88   : > { %v16653_v37 = vpop.f32.mrb[44].mxu0 }
 0xb89   : > { %v11429_v51 = vadd.f32 %v16653_v37, %v11136_v4  ;;  %v11326_v45 = vpop.f32.mrb[45].mxu0 }
 0xb8c   : > { %v16656_v27 = vpop.f32.mrb[46].mxu0 }
 0xb8d   : > { %v11335_v3 = vpop.f32.mrb[47].mxu0 }
 0xb8e   : > { %v11430_v5 = vadd.f32 %v11335_v3, %v11137_v22 }
 0xb94   : > { %v16662_v15 = vpop.f32.mrb[50].mxu0 }
 0xb95   : > { %v11433_v36 = vadd.f32 %v16662_v15, %v11140_v48  ;;  %v11354_v20 = vpop.f32.mrb[51].mxu0 }
 0xb98   : > { %v16665_v44 = vpop.f32.mrb[52].mxu0 }
 0xb99   : > { %v11363_v10 = vpop.f32.mrb[53].mxu0  ;;  %v20950_v44 = vld [vmem:[%s21095_s4] ss:$0 sm:$0xff] }
 0xb9a   : > { %v11434_v2 = vadd.f32 %v11363_v10, %v11141_v29 }
 0xba0   : > { %v16671_v1 = vpop.f32.mrb[56].mxu0 }
 0xba1   : > { %v11437_v19 = vadd.f32 %v16671_v1, %v11144_v59  ;;  %v11382_v34 = vpop.f32.mrb[57].mxu0 }
 0xba4   : > { %v16674_v43 = vpop.f32.mrb[58].mxu0 }
 0xba5   : > { %v11391_v30 = vpop.f32.mrb[59].mxu0 }
 0xba6   : > { %v11438_v16 = vadd.f32 %v11391_v30, %v11145_v18 }
 0xbac   : > { %v16680_v0 = vpop.f32.mrb[62].mxu0 }
 0xbad   : > { %v11441_v28 = vadd.f32 %v16680_v0, %v11148_v49  ;;  %v11410_v54 = vpop.f32.mrb[63].mxu0 }
 0xbb0   : > { %v16683_v31 = vpop.f32.mrb[64].mxu0 }
 0xbb1   : > { %v11419_v13 = vpop.f32.mrb[65].mxu0 }
 0xbb2   : > { %v11442_v21 = vadd.f32 %v11419_v13, %v11149_v56 }
 0xbb8   : > { %v16697_v24 = vpop.f32.mrb[66].mxu0 }
 0xbb9   : > { %v11722_v41 = vadd.f32 %v16697_v24, %v11429_v51  ;;  %v11619_v14 = vpop.f32.mrb[67].mxu0 }
 0xbbc   : > { %v16700_v63 = vpop.f32.mrb[68].mxu0 }
 0xbbd   : > { %v11628_v12 = vpop.f32.mrb[69].mxu0 }
 0xbbe   : > { %v11723_v17 = vadd.f32 %v11628_v12, %v11430_v5 }
 0xbc4   : > { %v16706_v8 = vpop.f32.mrb[70].mxu0 }
 0xbc5   : > { %v11726_v23 = vadd.f32 %v16706_v8, %v11433_v36  ;;  %v11647_v7 = vpop.f32.mrb[71].mxu0 }
 0xbc8   : > { %v16709_v32 = vpop.f32.mrb[72].mxu0 }
 0xbc9   : > { %v11656_v4 = vpop.f32.mrb[73].mxu0 }
 0xbca   : > { %v11727_v11 = vadd.f32 %v11656_v4, %v11434_v2 }
 0xbd0   : > { %v16715_v58 = vpop.f32.mrb[74].mxu0 }
 0xbd1   : > { %v11730_v61 = vadd.f32 %v16715_v58, %v11437_v19  ;;  %v11675_v35 = vpop.f32.mrb[75].mxu0 }
 0xbd4   : > { %v16718_v39 = vpop.f32.mrb[76].mxu0 }
 0xbd5   : > { %v11684_v25 = vpop.f32.mrb[77].mxu0 }
 0xbd6   : > { %v11731_v22 = vadd.f32 %v11684_v25, %v11438_v16 }
 0xbdc   : > { %v16724_v6 = vpop.f32.mrb[78].mxu0 }
 0xbdd   : > { %v11734_v57 = vadd.f32 %v16724_v6, %v11441_v28  ;;  %v11703_v48 = vpop.f32.mrb[79].mxu0 }
 0xbe0   : > { %v16727_v26 = vpop.f32.mrb[80].mxu0 }
 0xbe1   : > { %v11712_v60 = vpop.f32.mrb[81].mxu0 }
 0xbe2   : > { %v11735_v53 = vadd.f32 %v11712_v60, %v11442_v21 }
 0xbe8   : > { %v16741_v46 = vpop.f32.mrb[82].mxu0 }
 0xbe9   : > { %v12015_v47 = vadd.f32 %v16741_v46, %v11722_v41  ;;  %v11912_v29 = vpop.f32.mrb[83].mxu0 }
 0xbec   : > { %v16744_v9 = vpop.f32.mrb[84].mxu0 }
 0xbed   : > { %v11921_v33 = vpop.f32.mrb[85].mxu0 }
 0xbee   : > { %v12016_v59 = vadd.f32 %v11921_v33, %v11723_v17 }
 0xbf4   : > { %v16750_v62 = vpop.f32.mrb[86].mxu0 }
 0xbf5   : > { %v12019_v40 = vadd.f32 %v16750_v62, %v11726_v23  ;;  %v11940_v55 = vpop.f32.mrb[87].mxu0 }
 0xbf8   : > { %v16753_v18 = vpop.f32.mrb[88].mxu0 }
 0xbf9   : > { %v11949_v38 = vpop.f32.mrb[89].mxu0 }
 0xbfa   : > { %v12020_v49 = vadd.f32 %v11949_v38, %v11727_v11 }
 0xc00   : > { %v16759_v52 = vpop.f32.mrb[90].mxu0 }
 0xc01   : > { %v12023_v42 = vadd.f32 %v16759_v52, %v11730_v61  ;;  %v11968_v50 = vpop.f32.mrb[91].mxu0 }
 0xc04   : > { %v16762_v56 = vpop.f32.mrb[92].mxu0 }
 0xc05   : > { %v11977_v37 = vpop.f32.mrb[93].mxu0 }
 0xc06   : > { %v20941_v51 = vadd.f32 %v11977_v37, %v11731_v22 }
 0xc0c   : > { %v16768_v45 = vpop.f32.mrb[94].mxu0 }
 0xc0d   : > { %v20943_v27 = vadd.f32 %v16768_v45, %v11734_v57  ;;  %v11996_v3 = vpop.f32.mrb[95].mxu0 }
 0xc10   : > { %v16771_v5 = vpop.f32.mrb[96].mxu0 }
 0xc11   : > { %v12005_v15 = vpop.f32.mrb[97].mxu0 }
 0xc12   : > { %v20945_v36 = vadd.f32 %v12005_v15, %v11735_v53 }
 0xc14   : > { %v16782_v20 = vpop.f32.mrb[210].mxu0 }
 0xc15   : > { %v12323_v10 = vadd.f32 %v20950_v44, %v16782_v20  ;;  %v12195_v2 = vpop.f32.mrb[211].mxu0 }
 0xc16   : > { %v12322_v1 = vadd.f32 %v20950_v44, %v12195_v2 }
 0xc17   : > { %v12339_v43 = vmax.f32 %v12323_v10, 0.0 }
 0xc18   : > { %v12338_v19 = vmax.f32 %v12322_v1, 0.0  ;;  %v16785_v34 = vpop.f32.mrb[98].mxu0  ;;  %v13751_v1 = vld [vmem:[%s17891_s15 + $0x188] sm:$0xff] }
 0xc19   : > { %v12308_v30 = vadd.f32 %v16785_v34, %v12015_v47  ;;  %v12205_v16 = vpop.f32.mrb[99].mxu0 }
 0xc1a   : > { %16824 = vmatprep.mubr.msk.f32.mxu1 %vm338_vm0, %v12338_v19  ;;  %v20991_v19 = vld [vmem:[%s21097_s6] ss:$0 sm:$0xff] }
 0xc1b   : > { %v12324_v0 = vadd.f32 %v20950_v44, %v12308_v30  ;;  %16825 = vmatmul.mubr.msk.f32.vlgmr.msra.gmra.mrb[110].mxu1 %vm338_vm0, %v12339_v43  ;;  %v13750_v43 = vld [vmem:[%s17891_s15 + $0x180] sm:$0xff] }
 0xc1c   : > { %v16788_v28 = vpop.f32.mrb[100].mxu0 }
 0xc1d   : > { %v12340_v54 = vmax.f32 %v12324_v0, 0.0  ;;  %v12214_v31 = vpop.f32.mrb[101].mxu0 }
 0xc1e   : > { %v12309_v13 = vadd.f32 %v12214_v31, %v12016_v59  ;;  %v13753_v31 = vld [vmem:[%s17891_s15 + $0x198] sm:$0xff] }
 0xc1f   : > { %16827 = vmatprep.mubr.msk.f32.mxu1 %vm338_vm0, %v12340_v54 }
 0xc20   : > { %v12325_v21 = vadd.f32 %v20950_v44, %v12309_v13  ;;  %v16791_v24 = vpop.f32.mrb[216].mxu0 }
 0xc21   : > { %v12223_v41 = vpop.f32.mrb[217].mxu0  ;;  %v12327_v63 = vadd.f32 %v20950_v44, %v16791_v24  ;;  %v13752_v24 = vld [vmem:[%s17891_s15 + $0x190] sm:$0xff] }
 0xc22   : > { %v12341_v14 = vmax.f32 %v12325_v21, 0.0  ;;  %v12326_v12 = vadd.f32 %v20950_v44, %v12223_v41 }
 0xc23   : > { %v12343_v32 = vmax.f32 %v12327_v63, 0.0 }
 0xc24   : > { %v12342_v17 = vmax.f32 %v12326_v12, 0.0  ;;  %v16794_v8 = vpop.f32.mrb[102].mxu0  ;;  %16828 = vmatmul.mubr.msk.f32.gmra.mrb[112].mxu1 %vm338_vm0, %v12341_v14 }
 0xc25   : > { %v12312_v23 = vadd.f32 %v16794_v8, %v12019_v40  ;;  %v12233_v7 = vpop.f32.mrb[103].mxu0 }
 0xc26   : > { %16830 = vmatprep.mubr.msk.f32.mxu1 %vm338_vm0, %v12342_v17  ;;  %v13755_v17 = vld [vmem:[%s17891_s15 + $0x1a8] sm:$0xff] }
 0xc27   : > { %v12328_v4 = vadd.f32 %v20950_v44, %v12312_v23 }
 0xc28   : > { %v16797_v11 = vpop.f32.mrb[104].mxu0  ;;  %16831 = vmatmul.mubr.msk.f32.gmra.mrb[114].mxu1 %vm338_vm0, %v12343_v32  ;;  %v13754_v32 = vld [vmem:[%s17891_s15 + $0x1a0] sm:$0xff] }
 0xc29   : > { %v12344_v58 = vmax.f32 %v12328_v4, 0.0  ;;  %v12242_v61 = vpop.f32.mrb[105].mxu0 }
 0xc2a   : > { %v12313_v35 = vadd.f32 %v12242_v61, %v12020_v49 }
 0xc2b   : > { %16833 = vmatprep.mubr.msk.f32.mxu1 %vm338_vm0, %v12344_v58 }
 0xc2c   : > { %v12329_v39 = vadd.f32 %v20950_v44, %v12313_v35  ;;  %v16800_v25 = vpop.f32.mrb[222].mxu0 }
 0xc2d   : > { %v12251_v22 = vpop.f32.mrb[223].mxu0  ;;  %v12331_v57 = vadd.f32 %v20950_v44, %v16800_v25 }
 0xc2e   : > { %v12345_v6 = vmax.f32 %v12329_v39, 0.0  ;;  %v12330_v48 = vadd.f32 %v20950_v44, %v12251_v22  ;;  %v13757_v22 = vld [vmem:[%s17891_s15 + $0x1b8] sm:$0xff] }
 0xc2f   : > { %v12347_v47 = vmax.f32 %v12331_v57, 0.0 }
 0xc30   : > { %v12346_v26 = vmax.f32 %v12330_v48, 0.0  ;;  %v16803_v60 = vpop.f32.mrb[106].mxu0  ;;  %16834 = vmatmul.mubr.msk.f32.gmra.mrb[116].mxu1 %vm338_vm0, %v12345_v6  ;;  %v13756_v48 = vld [vmem:[%s17891_s15 + $0x1b0] sm:$0xff] }
 0xc31   : > { %v12316_v53 = vadd.f32 %v16803_v60, %v12023_v42  ;;  %v12261_v46 = vpop.f32.mrb[107].mxu0 }
 0xc32   : > { %16836 = vmatprep.mubr.msk.f32.mxu1 %vm338_vm0, %v12346_v26 }
 0xc33   : > { %v12332_v29 = vadd.f32 %v20950_v44, %v12316_v53 }
 0xc34   : > { %v16806_v9 = vpop.f32.mrb[108].mxu0  ;;  %16837 = vmatmul.mubr.msk.f32.gmra.mrb[118].mxu1 %vm338_vm0, %v12347_v47  ;;  %v13759_v47 = vld [vmem:[%s17891_s15 + $0x1c8] sm:$0xff] }
 0xc35   : > { %v12348_v33 = vmax.f32 %v12332_v29, 0.0  ;;  %v12270_v59 = vpop.f32.mrb[109].mxu0 }
 0xc36   : > { %v12317_v62 = vadd.f32 %v12270_v59, %v20941_v51  ;;  %v13758_v59 = vld [vmem:[%s17891_s15 + $0x1c0] sm:$0xff] }
 0xc37   : > { %16839 = vmatprep.mubr.msk.f32.mxu1 %vm338_vm0, %v12348_v33 }
 0xc38   : > { %v12333_v40 = vadd.f32 %v20950_v44, %v12317_v62  ;;  %v16809_v55 = vpop.f32.mrb[228].mxu0 }
 0xc39   : > { %v12279_v18 = vpop.f32.mrb[229].mxu0  ;;  %v12335_v49 = vadd.f32 %v20950_v44, %v16809_v55 }
 0xc3a   : > { %v12349_v38 = vmax.f32 %v12333_v40, 0.0  ;;  %v12334_v52 = vadd.f32 %v20950_v44, %v12279_v18 }
 0xc3b   : > { %v12351_v51 = vmax.f32 %v12335_v49, 0.0 }
 0xc3c   : > { %v12350_v42 = vmax.f32 %v12334_v52, 0.0  ;;  %v16812_v50 = vpop.f32.mrb[110].mxu0  ;;  %16840 = vmatmul.mubr.msk.f32.gmra.mrb[120].mxu1 %vm338_vm0, %v12349_v38 }
 0xc3d   : > { %v12320_v56 = vadd.f32 %v16812_v50, %v20943_v27  ;;  %v12289_v37 = vpop.f32.mrb[111].mxu0 }
 0xc3e   : > { %16842 = vmatprep.mubr.msk.f32.mxu1 %vm338_vm0, %v12350_v42  ;;  %v13761_v42 = vld [vmem:[%s17891_s15 + $0x1d8] sm:$0xff]  ;;  %v13760_v37 = vld [vmem:[%s17891_s15 + $0x1d0] sm:$0xff] }
 0xc3f   : > { %v12336_v45 = vadd.f32 %v20950_v44, %v12320_v56 }
 0xc40   : > { %v16815_v3 = vpop.f32.mrb[112].mxu0  ;;  %16843 = vmatmul.mubr.msk.f32.gmra.mrb[122].mxu1 %vm338_vm0, %v12351_v51 }
 0xc41   : > { %v12352_v5 = vmax.f32 %v12336_v45, 0.0  ;;  %v12298_v15 = vpop.f32.mrb[113].mxu0 }
 0xc42   : > { %v12321_v20 = vadd.f32 %v12298_v15, %v20945_v36  ;;  %v13763_v15 = vld [vmem:[%s17891_s15 + $0x1e8] sm:$0xff] }
 0xc43   : > { %16845 = vmatprep.mubr.msk.f32.mxu1 %vm338_vm0, %v12352_v5 }
 0xc44   : > { %v12337_v27 = vadd.f32 %v20950_v44, %v12321_v20 }
 0xc46   : > { %v12353_v10 = vmax.f32 %v12337_v27, 0.0 }
 0xc48   : > { %16846 = vmatmul.mubr.msk.f32.gmra.mrb[124].mxu1 %vm338_vm0, %v12353_v10 }
 0xcee   : > { %v16826_v2 = vpop.f32.mrb[110].mxu1 }
 0xcef   : > { %v12474_v36 = vadd.f32 %v20991_v19, %v16826_v2  ;;  %v12468_v34 = vpop.f32.mrb[111].mxu1  ;;  %v13762_v2 = vld [vmem:[%s17891_s15 + $0x1e0] sm:$0xff] }
 0xcf0   : > { %v12469_v30 = vadd.f32 %v20991_v19, %v12468_v34 }
 0xcf1   : > { %v12565_v44 = vadd.f32 %v13751_v1, %v12474_v36 }
 0xcf2   : > { %v12564_v16 = vadd.f32 %v13750_v43, %v12469_v30 }
 0xcf3   : > { %v12581_v0 = vmax.f32 %v12565_v44, 0.0 }
 0xcf4   : > { %v12580_v28 = vmax.f32 %v12564_v16, 0.0 }
 0xcf5   : > { %13767 = vst [vmem:[%s19143_s17 + $0x188] sm:$0xff] %v12581_v0  ;;  %v13765_v0 = vld [vmem:[%s17891_s15 + $0x1f8] sm:$0xff] }
 0xcf6   : > { %13766 = vst [vmem:[%s19143_s17 + $0x180] sm:$0xff] %v12580_v28 }
 0xcf7   : > { %v16829_v54 = vpop.f32.mrb[112].mxu1 }
 0xcf8   : > { %v12484_v13 = vadd.f32 %v20991_v19, %v16829_v54  ;;  %v12478_v21 = vpop.f32.mrb[113].mxu1 }
 0xcf9   : > { %v12479_v41 = vadd.f32 %v20991_v19, %v12478_v21 }
 0xcfa   : > { %v12567_v14 = vadd.f32 %v13753_v31, %v12484_v13  ;;  %v13764_v31 = vld [vmem:[%s17891_s15 + $0x1f0] sm:$0xff]  ;;  %s12614_s15 = scalar_lea.sflag [#allocation5], %s17885_s22 }
 0xcfb   : > { %v12566_v63 = vadd.f32 %v13752_v24, %v12479_v41  ;;  %v16832_v12 = vpop.f32.mrb[114].mxu1 }
 0xcfc   : > { %v12583_v8 = vmax.f32 %v12567_v14, 0.0  ;;  %v12494_v23 = vadd.f32 %v20991_v19, %v16832_v12  ;;  %v12488_v7 = vpop.f32.mrb[115].mxu1 }
 0xcfd   : > { %v12582_v4 = vmax.f32 %v12566_v63, 0.0  ;;  %v12489_v11 = vadd.f32 %v20991_v19, %v12488_v7 }
 0xcfe   : > { %13769 = vst [vmem:[%s19143_s17 + $0x198] sm:$0xff] %v12583_v8  ;;  %v12569_v58 = vadd.f32 %v13755_v17, %v12494_v23 }
 0xcff   : > { %13768 = vst [vmem:[%s19143_s17 + $0x190] sm:$0xff] %v12582_v4  ;;  %v12568_v61 = vadd.f32 %v13754_v32, %v12489_v11 }
 0xd00   : > { %v12585_v35 = vmax.f32 %v12569_v58, 0.0 }
 0xd01   : > { %v12584_v39 = vmax.f32 %v12568_v61, 0.0 }
 0xd02   : > { %13771 = vst [vmem:[%s19143_s17 + $0x1a8] sm:$0xff] %v12585_v35 }
 0xd03   : > { %13770 = vst [vmem:[%s19143_s17 + $0x1a0] sm:$0xff] %v12584_v39  ;;  %v16835_v25 = vpop.f32.mrb[116].mxu1 }
 0xd04   : > { %v12504_v6 = vadd.f32 %v20991_v19, %v16835_v25  ;;  %v12498_v57 = vpop.f32.mrb[117].mxu1 }
 0xd05   : > { %v12499_v26 = vadd.f32 %v20991_v19, %v12498_v57 }
 0xd06   : > { %v12571_v60 = vadd.f32 %v13757_v22, %v12504_v6 }
 0xd07   : > { %v12570_v53 = vadd.f32 %v13756_v48, %v12499_v26  ;;  %v16838_v46 = vpop.f32.mrb[118].mxu1 }
 0xd08   : > { %v12587_v29 = vmax.f32 %v12571_v60, 0.0  ;;  %v12514_v9 = vadd.f32 %v20991_v19, %v16838_v46  ;;  %v12508_v33 = vpop.f32.mrb[119].mxu1 }
 0xd09   : > { %v12586_v62 = vmax.f32 %v12570_v53, 0.0  ;;  %v12509_v40 = vadd.f32 %v20991_v19, %v12508_v33 }
 0xd0a   : > { %13773 = vst [vmem:[%s19143_s17 + $0x1b8] sm:$0xff] %v12587_v29  ;;  %v12573_v55 = vadd.f32 %v13759_v47, %v12514_v9 }
 0xd0b   : > { %13772 = vst [vmem:[%s19143_s17 + $0x1b0] sm:$0xff] %v12586_v62  ;;  %v12572_v18 = vadd.f32 %v13758_v59, %v12509_v40 }
 0xd0c   : > { %v12589_v38 = vmax.f32 %v12573_v55, 0.0 }
 0xd0d   : > { %v12588_v49 = vmax.f32 %v12572_v18, 0.0 }
 0xd0e   : > { %13775 = vst [vmem:[%s19143_s17 + $0x1c8] sm:$0xff] %v12589_v38 }
 0xd0f   : > { %13774 = vst [vmem:[%s19143_s17 + $0x1c0] sm:$0xff] %v12588_v49  ;;  %v16841_v52 = vpop.f32.mrb[120].mxu1 }
 0xd10   : > { %v12524_v50 = vadd.f32 %v20991_v19, %v16841_v52  ;;  %v12518_v56 = vpop.f32.mrb[121].mxu1 }
 0xd11   : > { %v12519_v51 = vadd.f32 %v20991_v19, %v12518_v56 }
 0xd12   : > { %v12575_v45 = vadd.f32 %v13761_v42, %v12524_v50 }
 0xd13   : > { %v12574_v3 = vadd.f32 %v13760_v37, %v12519_v51  ;;  %v16844_v5 = vpop.f32.mrb[122].mxu1 }
 0xd14   : > { %v12591_v20 = vmax.f32 %v12575_v45, 0.0  ;;  %v12534_v27 = vadd.f32 %v20991_v19, %v16844_v5  ;;  %v12528_v10 = vpop.f32.mrb[123].mxu1 }
 0xd15   : > { %v12590_v1 = vmax.f32 %v12574_v3, 0.0  ;;  %v12529_v36 = vadd.f32 %v20991_v19, %v12528_v10 }
 0xd16   : > { %13777 = vst [vmem:[%s19143_s17 + $0x1d8] sm:$0xff] %v12591_v20  ;;  %v12577_v34 = vadd.f32 %v13763_v15, %v12534_v27 }
 0xd17   : > { %13776 = vst [vmem:[%s19143_s17 + $0x1d0] sm:$0xff] %v12590_v1  ;;  %v12576_v43 = vadd.f32 %v13762_v2, %v12529_v36 }
 0xd18   : > { %v12593_v30 = vmax.f32 %v12577_v34, 0.0 }
 0xd19   : > { %v12592_v44 = vmax.f32 %v12576_v43, 0.0 }
 0xd1a   : > { %13779 = vst [vmem:[%s19143_s17 + $0x1e8] sm:$0xff] %v12593_v30 }
 0xd1b   : > { %13778 = vst [vmem:[%s19143_s17 + $0x1e0] sm:$0xff] %v12592_v44  ;;  %v16847_v16 = vpop.f32.mrb[124].mxu1 }
 0xd1c   : > { %v12544_v28 = vadd.f32 %v20991_v19, %v16847_v16  ;;  %v12538_v54 = vpop.f32.mrb[125].mxu1 }
 0xd1d   : > { %v12539_v13 = vadd.f32 %v20991_v19, %v12538_v54 }
 0xd1e   : > { %v12579_v21 = vadd.f32 %v13765_v0, %v12544_v28 }
 0xd1f   : > { %v12578_v24 = vadd.f32 %v13764_v31, %v12539_v13 }
 0xd20   : > { %v12595_v41 = vmax.f32 %v12579_v21, 0.0 }
 0xd21   : > { %v12594_v14 = vmax.f32 %v12578_v24, 0.0 }
 0xd22   : > { %13781 = vst [vmem:[%s19143_s17 + $0x1f8] sm:$0xff] %v12595_v41 }
 0xd23   : > { %13780 = vst [vmem:[%s19143_s17 + $0x1f0] sm:$0xff] %v12594_v14 }
 0xd24   : > { %17633 = shalt.err (!%p17630_p7)
}
 0xd25   : > { %s17634_s17 = scalar_lea.hbm %s21043_s9, 8192  ;;  %s17638_s30 = scalar_lea.hbm %s21098_s7, 16384 }
 0xd26   : > { %p17635_p9 = scmp.ne.s32.totalorder %s21043_s9, %s17634_s17  ;;  %p17639_p5 = scmp.lt.u32.totalorder %s21043_s9, %s21098_s7 }
 0xd27   : > { %p17640_p11 = scmp.lt.u32.totalorder %s17638_s30, %s17634_s17  ;;  %p17642_p4 = scmp.lt.u32.totalorder %s17634_s17, %s21043_s9 }
 0xd28   : > { %p17636_p1 = pnand %p17635_p9, %p17834_p12 }
 0xd29   : > { %p17641_p2 = por %p17640_p11, %p17639_p5 }
 0xd2a   : > { %p17637_p0 = pneg %p17636_p1 }
 0xd2b   : > { %p17643_p6 = por %p17642_p4, %p17641_p2 }
 0xd2d   : > { %p17644_p8 = pnand %p17643_p6, %p17637_p0 }
 0xd2f   : > { %17647 = shalt.err (!%p17644_p8)
}
 0xd30   : > { %s17698_s12 = smov 128   ;;  %s17699_s10 = smov 8  }
 0xd31   : > { %17498 = dma.vmem_to_hbm [thread:$0]  (%p17834_p12), %s21045_s23, 8192, %s21043_s9, %s12614_s15, %s17698_s12, %s17698_s12, %s17699_s10  }
 0xd32 PF: > { %s12643_s28 = sand.u32 1, %s17678_s24   ;;  %p21355_p10 = scmp.ne.s32.totalorder %s21199_s8, 0 }
 0xd33   : > { %p21356_p13 = scmp.ge.s32.totalorder %s17690_s27, 2  ;;  %s12644_s16 = scalar_lea.sflag [#allocation5], %s12643_s28 }
 0xd35   : > { %p17509_p3 = pnand %p21356_p13, %p21355_p10 }
 0xd37   : > { %17673 = dma.done.wait (!%p17509_p3), %s12644_s16, 8192  }
 0xd38   : > { %17675 = vsyncadd (!%p17509_p3), %s12644_s16, 4294959104  ;;  %p21_p7 = scmp.ge.s32.totalorder %s17796_s13, 4   ;;  %s21357_s24 = smov %s17682_s25 }
 0xd39   : > { %s21358_s25 = smov %s17686_s26  ;;  %s21359_s26 = smov %s17830_s18 }
 0xd3a   : > { %s21360_s27 = smov %s17796_s13  ;;  %23 = sbr.rel (!%p21_p7) target bundleno = 6 (0x6), region = 111 }
 0xd41   :  { %12649 = vsyncpa [#allocation4], 1 }
 0xd42   :  { %12651 = vsyncpa [#allocation4 + $0x1], 1 }
 0xd43   :  { %12652 = vsyncpa [#allocation7], 1 }
 0xd44   :  { %12653 = vsyncpa [#allocation5], 1 }
 0xd45   :  { %12655 = vsyncpa [#allocation5 + $0x1], 1 }

</bundles_post_ra>
